<compile_context>
chip_gen: v6e
topology: v6e:2x2x1
jax: 0.10.0
libtpu: 0.0.40
codegen_flags: <defaults>
</compile_context>

<pallas_src>
import jax
import jax.numpy as jnp
import numpy as np
from jax import lax
from jax.experimental import pallas as pl
from jax.experimental.pallas import tpu as pltpu

LANE = 128  # TPU lane width


def _round_up(x, m):
    return (x + m - 1) // m * m


# ----------------------------------------------------------------------------
# Pallas kernel
# ----------------------------------------------------------------------------
def _conv_pool_relu(lhs_rows, a_ref, b_lane, out_rows, bt):
    """Banded-matmul 3x3 conv (pad=1) + 2x2 maxpool + bias + relu.

    lhs_rows : list of 3 values (2*out_rows*bt, K), the vertically shifted
               input-row slabs for ky = 0,1,2; rows ordered (out_row, batch).
    a_ref    : (2, 3, K, N) banded weights ref (dx phase, ky tap).
    b_lane   : (1, N) f32 bias, already tiled over the pooled output columns.
    returns  : (out_rows, bt, N) f32.
    """
    n = a_ref.shape[-1]
    parts = []
    for dx in range(2):
        acc = jnp.dot(lhs_rows[0], a_ref[dx, 0],
                      preferred_element_type=jnp.float32)
        for ky in (1, 2):
            acc = acc + jnp.dot(lhs_rows[ky], a_ref[dx, ky],
                                preferred_element_type=jnp.float32)
        acc = acc.reshape(out_rows, 2 * bt, n)        # rows -> (out_row, dy, b)
        parts.append(jnp.maximum(acc[:, :bt, :], acc[:, bt:, :]))  # pool rows
    return jnp.maximum(jnp.maximum(parts[0], parts[1]) + b_lane, 0.0)


def fused_cnn_kernel(x_ref, a1_ref, b1_ref, a2_ref, b2_ref,
                     wf1_ref, bf1_ref, wf2_ref, bf2_ref,
                     logp_ref, proto_ref, h2_ref):
    """One batch tile: conv1->pool->relu->conv2->pool->relu->fc1->fc2->logsm.

    x_ref  : (28, bt, 28*Cin) bf16, lanes = (w, ci) channel-minor
    a1_ref : (2, 3, 28*Cin, 224) bf16   banded conv1 weights
    b1_ref : (1, 224) f32               conv1 bias tiled over (jj, c)
    a2_ref : (2, 3, 224, 224) bf16      banded conv2 weights
    b2_ref : (1, 224) f32               conv2 bias tiled over (jj2, co)
    wf1_ref: (7, 224, 128) bf16         fc1 weights per output row ii2
    wf2_ref: (128, 128) bf16            fc2, classes zero-padded to 128
    bf2_ref: (1, 128) f32               fc2 bias, pad lanes = -1e30
    outputs: logp (bt,128) f32, proto (bt,128) f32
    h2_ref : (7, bt, 224) bf16 VMEM scratch
    """
    bt = x_ref.shape[1]
    wc = x_ref.shape[2]
    bf16 = jnp.bfloat16
    f32 = jnp.float32

    # ---- conv1 (3x3, pad=1) + 2x2 maxpool + relu ----
    x = x_ref[...]                                                  # (28,bt,wc)
    zr = jnp.zeros((1, bt, wc), bf16)
    xp = jnp.concatenate([zr, x, zr], axis=0)                       # (30,bt,wc)
    rows1 = [xp[ky:ky + 28].reshape(28 * bt, wc) for ky in range(3)]
    h1 = _conv_pool_relu(rows1, a1_ref, b1_ref[...], 14, bt).astype(bf16)
    # h1: (14, bt, 224) == [ii, b, jj*16 + c]

    # ---- conv2 + 2x2 maxpool + relu  (Dropout2d(0.8): identity, eval mode) --
    zr2 = jnp.zeros((1, bt, h1.shape[-1]), bf16)
    h1p = jnp.concatenate([zr2, h1, zr2], axis=0)                   # (16,bt,224)
    rows2 = [h1p[ky:ky + 14].reshape(14 * bt, h1.shape[-1]) for ky in range(3)]
    h2 = _conv_pool_relu(rows2, a2_ref, b2_ref[...], 7, bt)
    h2_ref[...] = h2.astype(h2_ref.dtype)   # (7,bt,224) == [ii2, b, jj2*32+co]

    # ---- fc1 + relu (proto): 7 per-output-row matmuls, no flatten needed ----
    acc = jnp.dot(h2_ref[0], wf1_ref[0], preferred_element_type=f32)
    for s in range(1, 7):
        acc = acc + jnp.dot(h2_ref[s], wf1_ref[s], preferred_element_type=f32)
    proto = jnp.maximum(acc + bf1_ref[...], 0.0)                    # (bt,128)
    proto_ref[...] = proto
    # TODO(synk): Dropout(p=0.8) on proto is identity (eval-mode semantics).

    # ---- fc2 + log_softmax (pad-class lanes carry bias -1e30 -> exp()==0) ---
    logits = jnp.dot(proto.astype(bf16), wf2_ref[...],
                     preferred_element_type=f32) + bf2_ref[...]
    m = jnp.max(logits, axis=-1, keepdims=True)
    sh = logits - m
    logp_ref[...] = sh - jnp.log(jnp.sum(jnp.exp(sh), axis=-1, keepdims=True))


# ----------------------------------------------------------------------------
# Weight repacking (one-time, tiny; plain JAX)
# ----------------------------------------------------------------------------
def _banded_conv_weights(w, w_in, w_out):
    """(3,3,Cin,Cout) HWIO conv weights -> (2, 3, w_in*Cin, w_out*Cout) banded
    matrices: result[dx, ky] maps one input row (width-major, channel-minor)
    to the conv outputs at columns 2*jj+dx (jj-major, channel-minor).
    Horizontal zero padding is handled by dropping out-of-range taps."""
    kh, kw, cin, cout = w.shape
    mats = []
    for dx in range(2):
        p = np.zeros((kw, w_out, w_in), np.float32)
        for kx in range(kw):
            for jj in range(w_out):
                j = 2 * jj + dx + kx - 1
                if 0 <= j < w_in:
                    p[kx, jj, j] = 1.0
        a = jnp.einsum("xpJ,yxic->yJipc", jnp.asarray(p), w)
        mats.append(a.reshape(kh, w_in * cin, w_out * cout))
    return jnp.stack(mats, axis=0)


def _pick_batch_tile(batch):
    bt = min(128, _round_up(max(batch, 1), 16))
    # Keep >=2 grid steps when the batch allows it: the parallel batch axis is
    # what shards work across the 2 TensorCores on v7x (no-op on v5e/v6e).
    if bt > 16 and _round_up(batch, bt) // bt < 2:
        bt = max(16, _round_up((batch + 1) // 2, 16))
    return bt


# ----------------------------------------------------------------------------
# Full forward pass (matches CNNEMNIST_L.forward, eval mode)
# ----------------------------------------------------------------------------
def cnnemnist_l_forward(x_nchw, params):
    B, cin, H, W = x_nchw.shape
    assert (H, W) == (28, 28), "fc1 = 7*7*32 fixes the input to 28x28"
    nc = params["w_fc2"].shape[1]
    assert nc <= LANE

    bt = _pick_batch_tile(B)
    Bp = _round_up(B, bt)
    nb = Bp // bt
    wc = W * cin

    # ---- input: NCHW -> (H, B, W*Cin) bf16, batch padded to the tile ----
    xk = jnp.transpose(x_nchw, (2, 0, 3, 1)).reshape(H, B, wc)
    xk = jnp.pad(xk, ((0, 0), (0, Bp - B), (0, 0))).astype(jnp.bfloat16)

    # ---- weight repacking ----
    a1 = _banded_conv_weights(params["w_conv1"], 28, 14).astype(jnp.bfloat16)
    b1 = jnp.tile(params["b_conv1"], 14).reshape(1, 224).astype(jnp.float32)
    a2 = _banded_conv_weights(params["w_conv2"], 14, 7).astype(jnp.bfloat16)
    b2 = jnp.tile(params["b_conv2"], 7).reshape(1, 224).astype(jnp.float32)
    # fc1 rows follow the PyTorch NCHW flatten order f = c*49 + ii2*7 + jj2.
    wf1 = (params["w_fc1"].reshape(32, 7, 7, LANE).transpose(1, 2, 0, 3)
           .reshape(7, 224, LANE)).astype(jnp.bfloat16)
    bf1 = params["b_fc1"].reshape(1, LANE).astype(jnp.float32)
    wf2 = jnp.pad(params["w_fc2"], ((0, 0), (0, LANE - nc))).astype(jnp.bfloat16)
    bf2 = jnp.pad(params["b_fc2"], (0, LANE - nc),
                  constant_values=-1e30).reshape(1, LANE).astype(jnp.float32)

    flops = nb * (2 * (28 * bt) * wc * 224 * 6          # conv1: 2 dx * 3 ky
                  + 2 * (14 * bt) * 224 * 224 * 6       # conv2
                  + 2 * bt * 224 * LANE * 7             # fc1
                  + 2 * bt * LANE * LANE)               # fc2
    bytes_accessed = int(
        xk.size * 2 + 2 * Bp * LANE * 4
        + sum(int(t.size) * t.dtype.itemsize
              for t in (a1, b1, a2, b2, wf1, bf1, wf2, bf2)))
    cost = pl.CostEstimate(flops=int(flops),
                           transcendentals=int(nb * bt * (LANE + 1)),
                           bytes_accessed=bytes_accessed)

    def full(arr, nd):
        return pl.BlockSpec(arr.shape, lambda i: (0,) * nd)

    logp_pad, proto_pad = pl.pallas_call(
        fused_cnn_kernel,
        out_shape=(jax.ShapeDtypeStruct((Bp, LANE), jnp.float32),
                   jax.ShapeDtypeStruct((Bp, LANE), jnp.float32)),
        grid=(nb,),
        in_specs=[
            pl.BlockSpec((28, bt, wc), lambda i: (0, i, 0)),   # input tile
            full(a1, 4), full(b1, 2), full(a2, 4), full(b2, 2),
            full(wf1, 3), full(bf1, 2), full(wf2, 2), full(bf2, 2),
        ],
        out_specs=(pl.BlockSpec((bt, LANE), lambda i: (i, 0)),
                   pl.BlockSpec((bt, LANE), lambda i: (i, 0))),
        scratch_shapes=[pltpu.VMEM((7, bt, 224), jnp.bfloat16)],
        compiler_params=pltpu.CompilerParams(
            dimension_semantics=("parallel",),
            vmem_limit_bytes=48 * 1024 * 1024),
        cost_estimate=cost,
    )(xk, a1, b1, a2, b2, wf1, bf1, wf2, bf2)

    return logp_pad[:B, :nc], proto_pad[:B]


# ----------------------------------------------------------------------------
# Pure-JAX reference (f32) of the same eval-mode forward pass
# ----------------------------------------------------------------------------
def reference_forward(x_nchw, params):
    hp = jax.lax.Precision.HIGHEST
    x = x_nchw.astype(jnp.float32)
    y1 = lax.conv_general_dilated(
        x, params["w_conv1"], window_strides=(1, 1), padding=((1, 1), (1, 1)),
        dimension_numbers=("NCHW", "HWIO", "NCHW"), precision=hp)
    y1 = y1 + params["b_conv1"].reshape(1, -1, 1, 1)
    h1 = jax.nn.relu(lax.reduce_window(y1, -jnp.inf, lax.max,
                                       (1, 1, 2, 2), (1, 1, 2, 2), "VALID"))
    y2 = lax.conv_general_dilated(
        h1, params["w_conv2"], window_strides=(1, 1), padding=((1, 1), (1, 1)),
        dimension_numbers=("NCHW", "HWIO", "NCHW"), precision=hp)
    y2 = y2 + params["b_conv2"].reshape(1, -1, 1, 1)
    h2 = jax.nn.relu(lax.reduce_window(y2, -jnp.inf, lax.max,
                                       (1, 1, 2, 2), (1, 1, 2, 2), "VALID"))
    feat = h2.reshape(h2.shape[0], -1)
    proto = jax.nn.relu(jnp.dot(feat, params["w_fc1"], precision=hp)
                        + params["b_fc1"])
    logits = jnp.dot(proto, params["w_fc2"], precision=hp) + params["b_fc2"]
    return jax.nn.log_softmax(logits, axis=-1), proto


# ----------------------------------------------------------------------------
# Deterministic parameter init (shapes from the module's __init__)
# ----------------------------------------------------------------------------
def init_params(key, num_channels=1, num_classes=26):
    ks = jax.random.split(key, 8)
    return dict(
        w_conv1=jax.random.normal(ks[0], (3, 3, num_channels, 16), jnp.float32) * 0.1,
        b_conv1=jax.random.normal(ks[1], (16,), jnp.float32) * 0.01,
        w_conv2=jax.random.normal(ks[2], (3, 3, 16, 32), jnp.float32) * 0.05,
        b_conv2=jax.random.normal(ks[3], (32,), jnp.float32) * 0.01,
        w_fc1=jax.random.normal(ks[4], (7 * 7 * 32, 128), jnp.float32) * 0.05,
        b_fc1=jax.random.normal(ks[5], (128,), jnp.float32) * 0.01,
        w_fc2=jax.random.normal(ks[6], (128, num_classes), jnp.float32) * 0.1,
        b_fc2=jax.random.normal(ks[7], (num_classes,), jnp.float32) * 0.01,
    )


if __name__ == "__main__":
    num_channels = 1   # EMNIST: 1x28x28 (spatial fixed by fc1 = 7*7*32)
    num_classes = 26   # EMNIST letters
    batch = 2

    key = jax.random.PRNGKey(0)
    k_x, k_p = jax.random.split(key)
    x = jax.random.normal(k_x, (batch, num_channels, 28, 28), jnp.float32)
    params = init_params(k_p, num_channels, num_classes)

    log_probs, proto = jax.jit(cnnemnist_l_forward)(x, params)
    jax.block_until_ready((log_probs, proto))

    assert log_probs.shape == (batch, num_classes)
    assert proto.shape == (batch, 128)
    assert bool(jnp.all(jnp.isfinite(log_probs)))
    assert bool(jnp.all(jnp.isfinite(proto)))
    # log-probabilities normalize over the real classes
    assert float(jnp.max(jnp.abs(jnp.sum(jnp.exp(log_probs), axis=1) - 1.0))) < 1e-3

    # correctness vs a pure-JAX f32 reference (kernel uses bf16 MXU operands)
    ref_logp, ref_proto = jax.jit(reference_forward)(x, params)
    jax.block_until_ready((ref_logp, ref_proto))
    assert float(jnp.max(jnp.abs(log_probs - ref_logp))) < 8e-2
    assert float(jnp.max(jnp.abs(proto - ref_proto))) < 8e-2

    print("KERNEL_OK")
</pallas_src>

<mosaic_0001>
module attributes {stable_mosaic.version = 11 : i64} {
  func.func @fused_cnn_kernel(%arg0: i32, %arg1: memref<28x16x28xbf16, #tpu.memory_space<vmem>>, %arg2: memref<2x3x28x224xbf16, #tpu.memory_space<vmem>>, %arg3: memref<1x224xf32, #tpu.memory_space<vmem>>, %arg4: memref<2x3x224x224xbf16, #tpu.memory_space<vmem>>, %arg5: memref<1x224xf32, #tpu.memory_space<vmem>>, %arg6: memref<7x224x128xbf16, #tpu.memory_space<vmem>>, %arg7: memref<1x128xf32, #tpu.memory_space<vmem>>, %arg8: memref<128x128xbf16, #tpu.memory_space<vmem>>, %arg9: memref<1x128xf32, #tpu.memory_space<vmem>>, %arg10: memref<16x128xf32, #tpu.memory_space<vmem>>, %arg11: memref<16x128xf32, #tpu.memory_space<vmem>>, %arg12: memref<7x16x224xbf16, #tpu.memory_space<vmem>>) attributes {dimension_semantics = [#tpu.dimension_semantics<parallel>], iteration_bounds = array<i64: 1>, scalar_prefetch = 0 : i64, scratch_operands = 1 : i64, tpu.core_type = #tpu.core_type<tc>, window_params = [{transform_indices = @transform_0, window_bounds = array<i64: 28, 16, 28>}, {pipeline_mode = #tpu.pipeline_mode<synchronous>, transform_indices = @transform_1, window_bounds = array<i64: 2, 3, 28, 224>}, {pipeline_mode = #tpu.pipeline_mode<synchronous>, transform_indices = @transform_2, window_bounds = array<i64: 1, 224>}, {pipeline_mode = #tpu.pipeline_mode<synchronous>, transform_indices = @transform_3, window_bounds = array<i64: 2, 3, 224, 224>}, {pipeline_mode = #tpu.pipeline_mode<synchronous>, transform_indices = @transform_4, window_bounds = array<i64: 1, 224>}, {pipeline_mode = #tpu.pipeline_mode<synchronous>, transform_indices = @transform_5, window_bounds = array<i64: 7, 224, 128>}, {pipeline_mode = #tpu.pipeline_mode<synchronous>, transform_indices = @transform_6, window_bounds = array<i64: 1, 128>}, {pipeline_mode = #tpu.pipeline_mode<synchronous>, transform_indices = @transform_7, window_bounds = array<i64: 128, 128>}, {pipeline_mode = #tpu.pipeline_mode<synchronous>, transform_indices = @transform_8, window_bounds = array<i64: 1, 128>}, {transform_indices = @transform_9, window_bounds = array<i64: 16, 128>}, {transform_indices = @transform_10, window_bounds = array<i64: 16, 128>}]} {
    %c0 = arith.constant 0 : index
    %c0_0 = arith.constant 0 : index
    %c0_1 = arith.constant 0 : index
    %0 = vector.load %arg1[%c0, %c0_0, %c0_1] : memref<28x16x28xbf16, #tpu.memory_space<vmem>>, vector<28x16x28xbf16>
    %cst = arith.constant 0.000000e+00 : bf16
    %1 = vector.broadcast %cst : bf16 to vector<1x16x28xbf16>
    %2 = tpu.concatenate %1, %0, %1 in 0 : vector<1x16x28xbf16>, vector<28x16x28xbf16>, vector<1x16x28xbf16> -> vector<30x16x28xbf16>
    %3 = vector.extract_strided_slice %2 {offsets = [0, 0, 0], sizes = [28, 16, 28], strides = [1, 1, 1]} : vector<30x16x28xbf16> to vector<28x16x28xbf16>
    %4 = vector.shape_cast %3 : vector<28x16x28xbf16> to vector<448x28xbf16>
    %5 = vector.extract_strided_slice %2 {offsets = [1, 0, 0], sizes = [28, 16, 28], strides = [1, 1, 1]} : vector<30x16x28xbf16> to vector<28x16x28xbf16>
    %6 = vector.shape_cast %5 : vector<28x16x28xbf16> to vector<448x28xbf16>
    %7 = vector.extract_strided_slice %2 {offsets = [2, 0, 0], sizes = [28, 16, 28], strides = [1, 1, 1]} : vector<30x16x28xbf16> to vector<28x16x28xbf16>
    %8 = vector.shape_cast %7 : vector<28x16x28xbf16> to vector<448x28xbf16>
    %c0_2 = arith.constant 0 : index
    %c0_3 = arith.constant 0 : index
    %9 = vector.load %arg3[%c0_2, %c0_3] : memref<1x224xf32, #tpu.memory_space<vmem>>, vector<1x224xf32>
    %c0_4 = arith.constant 0 : index
    %c0_5 = arith.constant 0 : index
    %c0_6 = arith.constant 0 : index
    %c0_7 = arith.constant 0 : index
    %10 = vector.load %arg2[%c0_4, %c0_5, %c0_6, %c0_7] : memref<2x3x28x224xbf16, #tpu.memory_space<vmem>>, vector<1x1x28x224xbf16>
    %11 = vector.shape_cast %10 : vector<1x1x28x224xbf16> to vector<28x224xbf16>
    %cst_8 = arith.constant dense<0.000000e+00> : vector<448x224xf32>
    %12 = tpu.matmul %4, %11, %cst_8 {dimension_numbers = #tpu.dot_dimension_numbers<[1], [0], [0], [1], [0, 0, 1, 1], [], []>} : vector<448x28xbf16>, vector<28x224xbf16>, vector<448x224xf32> -> vector<448x224xf32>
    %c0_9 = arith.constant 0 : index
    %c1 = arith.constant 1 : index
    %c0_10 = arith.constant 0 : index
    %c0_11 = arith.constant 0 : index
    %13 = vector.load %arg2[%c0_9, %c1, %c0_10, %c0_11] : memref<2x3x28x224xbf16, #tpu.memory_space<vmem>>, vector<1x1x28x224xbf16>
    %14 = vector.shape_cast %13 : vector<1x1x28x224xbf16> to vector<28x224xbf16>
    %cst_12 = arith.constant dense<0.000000e+00> : vector<448x224xf32>
    %15 = tpu.matmul %6, %14, %cst_12 {dimension_numbers = #tpu.dot_dimension_numbers<[1], [0], [0], [1], [0, 0, 1, 1], [], []>} : vector<448x28xbf16>, vector<28x224xbf16>, vector<448x224xf32> -> vector<448x224xf32>
    %16 = arith.addf %12, %15 : vector<448x224xf32>
    %c0_13 = arith.constant 0 : index
    %c2 = arith.constant 2 : index
    %c0_14 = arith.constant 0 : index
    %c0_15 = arith.constant 0 : index
    %17 = vector.load %arg2[%c0_13, %c2, %c0_14, %c0_15] : memref<2x3x28x224xbf16, #tpu.memory_space<vmem>>, vector<1x1x28x224xbf16>
    %18 = vector.shape_cast %17 : vector<1x1x28x224xbf16> to vector<28x224xbf16>
    %cst_16 = arith.constant dense<0.000000e+00> : vector<448x224xf32>
    %19 = tpu.matmul %8, %18, %cst_16 {dimension_numbers = #tpu.dot_dimension_numbers<[1], [0], [0], [1], [0, 0, 1, 1], [], []>} : vector<448x28xbf16>, vector<28x224xbf16>, vector<448x224xf32> -> vector<448x224xf32>
    %20 = arith.addf %16, %19 : vector<448x224xf32>
    %21 = vector.shape_cast %20 : vector<448x224xf32> to vector<14x32x224xf32>
    %22 = vector.extract_strided_slice %21 {offsets = [0, 0, 0], sizes = [14, 16, 224], strides = [1, 1, 1]} : vector<14x32x224xf32> to vector<14x16x224xf32>
    %23 = vector.extract_strided_slice %21 {offsets = [0, 16, 0], sizes = [14, 16, 224], strides = [1, 1, 1]} : vector<14x32x224xf32> to vector<14x16x224xf32>
    %24 = arith.maximumf %22, %23 : vector<14x16x224xf32>
    %c1_17 = arith.constant 1 : index
    %c0_18 = arith.constant 0 : index
    %c0_19 = arith.constant 0 : index
    %c0_20 = arith.constant 0 : index
    %25 = vector.load %arg2[%c1_17, %c0_18, %c0_19, %c0_20] : memref<2x3x28x224xbf16, #tpu.memory_space<vmem>>, vector<1x1x28x224xbf16>
    %26 = vector.shape_cast %25 : vector<1x1x28x224xbf16> to vector<28x224xbf16>
    %cst_21 = arith.constant dense<0.000000e+00> : vector<448x224xf32>
    %27 = tpu.matmul %4, %26, %cst_21 {dimension_numbers = #tpu.dot_dimension_numbers<[1], [0], [0], [1], [0, 0, 1, 1], [], []>} : vector<448x28xbf16>, vector<28x224xbf16>, vector<448x224xf32> -> vector<448x224xf32>
    %c1_22 = arith.constant 1 : index
    %c1_23 = arith.constant 1 : index
    %c0_24 = arith.constant 0 : index
    %c0_25 = arith.constant 0 : index
    %28 = vector.load %arg2[%c1_22, %c1_23, %c0_24, %c0_25] : memref<2x3x28x224xbf16, #tpu.memory_space<vmem>>, vector<1x1x28x224xbf16>
    %29 = vector.shape_cast %28 : vector<1x1x28x224xbf16> to vector<28x224xbf16>
    %cst_26 = arith.constant dense<0.000000e+00> : vector<448x224xf32>
    %30 = tpu.matmul %6, %29, %cst_26 {dimension_numbers = #tpu.dot_dimension_numbers<[1], [0], [0], [1], [0, 0, 1, 1], [], []>} : vector<448x28xbf16>, vector<28x224xbf16>, vector<448x224xf32> -> vector<448x224xf32>
    %31 = arith.addf %27, %30 : vector<448x224xf32>
    %c1_27 = arith.constant 1 : index
    %c2_28 = arith.constant 2 : index
    %c0_29 = arith.constant 0 : index
    %c0_30 = arith.constant 0 : index
    %32 = vector.load %arg2[%c1_27, %c2_28, %c0_29, %c0_30] : memref<2x3x28x224xbf16, #tpu.memory_space<vmem>>, vector<1x1x28x224xbf16>
    %33 = vector.shape_cast %32 : vector<1x1x28x224xbf16> to vector<28x224xbf16>
    %cst_31 = arith.constant dense<0.000000e+00> : vector<448x224xf32>
    %34 = tpu.matmul %8, %33, %cst_31 {dimension_numbers = #tpu.dot_dimension_numbers<[1], [0], [0], [1], [0, 0, 1, 1], [], []>} : vector<448x28xbf16>, vector<28x224xbf16>, vector<448x224xf32> -> vector<448x224xf32>
    %35 = arith.addf %31, %34 : vector<448x224xf32>
    %36 = vector.shape_cast %35 : vector<448x224xf32> to vector<14x32x224xf32>
    %37 = vector.extract_strided_slice %36 {offsets = [0, 0, 0], sizes = [14, 16, 224], strides = [1, 1, 1]} : vector<14x32x224xf32> to vector<14x16x224xf32>
    %38 = vector.extract_strided_slice %36 {offsets = [0, 16, 0], sizes = [14, 16, 224], strides = [1, 1, 1]} : vector<14x32x224xf32> to vector<14x16x224xf32>
    %39 = arith.maximumf %37, %38 : vector<14x16x224xf32>
    %40 = arith.maximumf %24, %39 : vector<14x16x224xf32>
    %41 = vector.shape_cast %9 : vector<1x224xf32> to vector<1x1x224xf32>
    %42 = vector.broadcast %41 : vector<1x1x224xf32> to vector<14x16x224xf32>
    %43 = arith.addf %40, %42 : vector<14x16x224xf32>
    %cst_32 = arith.constant 0.000000e+00 : f32
    %44 = vector.broadcast %cst_32 : f32 to vector<14x16x224xf32>
    %45 = arith.maximumf %43, %44 : vector<14x16x224xf32>
    %46 = arith.truncf %45 : vector<14x16x224xf32> to vector<14x16x224xbf16>
    %cst_33 = arith.constant 0.000000e+00 : bf16
    %47 = vector.broadcast %cst_33 : bf16 to vector<1x16x224xbf16>
    %48 = tpu.concatenate %47, %46, %47 in 0 : vector<1x16x224xbf16>, vector<14x16x224xbf16>, vector<1x16x224xbf16> -> vector<16x16x224xbf16>
    %49 = vector.extract_strided_slice %48 {offsets = [0, 0, 0], sizes = [14, 16, 224], strides = [1, 1, 1]} : vector<16x16x224xbf16> to vector<14x16x224xbf16>
    %50 = vector.shape_cast %49 : vector<14x16x224xbf16> to vector<224x224xbf16>
    %51 = vector.extract_strided_slice %48 {offsets = [1, 0, 0], sizes = [14, 16, 224], strides = [1, 1, 1]} : vector<16x16x224xbf16> to vector<14x16x224xbf16>
    %52 = vector.shape_cast %51 : vector<14x16x224xbf16> to vector<224x224xbf16>
    %53 = vector.extract_strided_slice %48 {offsets = [2, 0, 0], sizes = [14, 16, 224], strides = [1, 1, 1]} : vector<16x16x224xbf16> to vector<14x16x224xbf16>
    %54 = vector.shape_cast %53 : vector<14x16x224xbf16> to vector<224x224xbf16>
    %c0_34 = arith.constant 0 : index
    %c0_35 = arith.constant 0 : index
    %55 = vector.load %arg5[%c0_34, %c0_35] : memref<1x224xf32, #tpu.memory_space<vmem>>, vector<1x224xf32>
    %c0_36 = arith.constant 0 : index
    %c0_37 = arith.constant 0 : index
    %c0_38 = arith.constant 0 : index
    %c0_39 = arith.constant 0 : index
    %56 = vector.load %arg4[%c0_36, %c0_37, %c0_38, %c0_39] : memref<2x3x224x224xbf16, #tpu.memory_space<vmem>>, vector<1x1x224x224xbf16>
    %57 = vector.shape_cast %56 : vector<1x1x224x224xbf16> to vector<224x224xbf16>
    %cst_40 = arith.constant dense<0.000000e+00> : vector<224x224xf32>
    %58 = tpu.matmul %50, %57, %cst_40 {dimension_numbers = #tpu.dot_dimension_numbers<[1], [0], [0], [1], [0, 0, 1, 1], [], []>} : vector<224x224xbf16>, vector<224x224xbf16>, vector<224x224xf32> -> vector<224x224xf32>
    %c0_41 = arith.constant 0 : index
    %c1_42 = arith.constant 1 : index
    %c0_43 = arith.constant 0 : index
    %c0_44 = arith.constant 0 : index
    %59 = vector.load %arg4[%c0_41, %c1_42, %c0_43, %c0_44] : memref<2x3x224x224xbf16, #tpu.memory_space<vmem>>, vector<1x1x224x224xbf16>
    %60 = vector.shape_cast %59 : vector<1x1x224x224xbf16> to vector<224x224xbf16>
    %cst_45 = arith.constant dense<0.000000e+00> : vector<224x224xf32>
    %61 = tpu.matmul %52, %60, %cst_45 {dimension_numbers = #tpu.dot_dimension_numbers<[1], [0], [0], [1], [0, 0, 1, 1], [], []>} : vector<224x224xbf16>, vector<224x224xbf16>, vector<224x224xf32> -> vector<224x224xf32>
    %62 = arith.addf %58, %61 : vector<224x224xf32>
    %c0_46 = arith.constant 0 : index
    %c2_47 = arith.constant 2 : index
    %c0_48 = arith.constant 0 : index
    %c0_49 = arith.constant 0 : index
    %63 = vector.load %arg4[%c0_46, %c2_47, %c0_48, %c0_49] : memref<2x3x224x224xbf16, #tpu.memory_space<vmem>>, vector<1x1x224x224xbf16>
    %64 = vector.shape_cast %63 : vector<1x1x224x224xbf16> to vector<224x224xbf16>
    %cst_50 = arith.constant dense<0.000000e+00> : vector<224x224xf32>
    %65 = tpu.matmul %54, %64, %cst_50 {dimension_numbers = #tpu.dot_dimension_numbers<[1], [0], [0], [1], [0, 0, 1, 1], [], []>} : vector<224x224xbf16>, vector<224x224xbf16>, vector<224x224xf32> -> vector<224x224xf32>
    %66 = arith.addf %62, %65 : vector<224x224xf32>
    %67 = vector.shape_cast %66 : vector<224x224xf32> to vector<7x32x224xf32>
    %68 = vector.extract_strided_slice %67 {offsets = [0, 0, 0], sizes = [7, 16, 224], strides = [1, 1, 1]} : vector<7x32x224xf32> to vector<7x16x224xf32>
    %69 = vector.extract_strided_slice %67 {offsets = [0, 16, 0], sizes = [7, 16, 224], strides = [1, 1, 1]} : vector<7x32x224xf32> to vector<7x16x224xf32>
    %70 = arith.maximumf %68, %69 : vector<7x16x224xf32>
    %c1_51 = arith.constant 1 : index
    %c0_52 = arith.constant 0 : index
    %c0_53 = arith.constant 0 : index
    %c0_54 = arith.constant 0 : index
    %71 = vector.load %arg4[%c1_51, %c0_52, %c0_53, %c0_54] : memref<2x3x224x224xbf16, #tpu.memory_space<vmem>>, vector<1x1x224x224xbf16>
    %72 = vector.shape_cast %71 : vector<1x1x224x224xbf16> to vector<224x224xbf16>
    %cst_55 = arith.constant dense<0.000000e+00> : vector<224x224xf32>
    %73 = tpu.matmul %50, %72, %cst_55 {dimension_numbers = #tpu.dot_dimension_numbers<[1], [0], [0], [1], [0, 0, 1, 1], [], []>} : vector<224x224xbf16>, vector<224x224xbf16>, vector<224x224xf32> -> vector<224x224xf32>
    %c1_56 = arith.constant 1 : index
    %c1_57 = arith.constant 1 : index
    %c0_58 = arith.constant 0 : index
    %c0_59 = arith.constant 0 : index
    %74 = vector.load %arg4[%c1_56, %c1_57, %c0_58, %c0_59] : memref<2x3x224x224xbf16, #tpu.memory_space<vmem>>, vector<1x1x224x224xbf16>
    %75 = vector.shape_cast %74 : vector<1x1x224x224xbf16> to vector<224x224xbf16>
    %cst_60 = arith.constant dense<0.000000e+00> : vector<224x224xf32>
    %76 = tpu.matmul %52, %75, %cst_60 {dimension_numbers = #tpu.dot_dimension_numbers<[1], [0], [0], [1], [0, 0, 1, 1], [], []>} : vector<224x224xbf16>, vector<224x224xbf16>, vector<224x224xf32> -> vector<224x224xf32>
    %77 = arith.addf %73, %76 : vector<224x224xf32>
    %c1_61 = arith.constant 1 : index
    %c2_62 = arith.constant 2 : index
    %c0_63 = arith.constant 0 : index
    %c0_64 = arith.constant 0 : index
    %78 = vector.load %arg4[%c1_61, %c2_62, %c0_63, %c0_64] : memref<2x3x224x224xbf16, #tpu.memory_space<vmem>>, vector<1x1x224x224xbf16>
    %79 = vector.shape_cast %78 : vector<1x1x224x224xbf16> to vector<224x224xbf16>
    %cst_65 = arith.constant dense<0.000000e+00> : vector<224x224xf32>
    %80 = tpu.matmul %54, %79, %cst_65 {dimension_numbers = #tpu.dot_dimension_numbers<[1], [0], [0], [1], [0, 0, 1, 1], [], []>} : vector<224x224xbf16>, vector<224x224xbf16>, vector<224x224xf32> -> vector<224x224xf32>
    %81 = arith.addf %77, %80 : vector<224x224xf32>
    %82 = vector.shape_cast %81 : vector<224x224xf32> to vector<7x32x224xf32>
    %83 = vector.extract_strided_slice %82 {offsets = [0, 0, 0], sizes = [7, 16, 224], strides = [1, 1, 1]} : vector<7x32x224xf32> to vector<7x16x224xf32>
    %84 = vector.extract_strided_slice %82 {offsets = [0, 16, 0], sizes = [7, 16, 224], strides = [1, 1, 1]} : vector<7x32x224xf32> to vector<7x16x224xf32>
    %85 = arith.maximumf %83, %84 : vector<7x16x224xf32>
    %86 = arith.maximumf %70, %85 : vector<7x16x224xf32>
    %87 = vector.shape_cast %55 : vector<1x224xf32> to vector<1x1x224xf32>
    %88 = vector.broadcast %87 : vector<1x1x224xf32> to vector<7x16x224xf32>
    %89 = arith.addf %86, %88 : vector<7x16x224xf32>
    %cst_66 = arith.constant 0.000000e+00 : f32
    %90 = vector.broadcast %cst_66 : f32 to vector<7x16x224xf32>
    %91 = arith.maximumf %89, %90 : vector<7x16x224xf32>
    %92 = arith.truncf %91 : vector<7x16x224xf32> to vector<7x16x224xbf16>
    %c0_67 = arith.constant 0 : index
    %c0_68 = arith.constant 0 : index
    %c0_69 = arith.constant 0 : index
    %93 = vector.load %arg12[%c0_67, %c0_68, %c0_69] : memref<7x16x224xbf16, #tpu.memory_space<vmem>>, vector<7x16x224xbf16>
    tpu.vector_store %arg12[%c0_67, %c0_68, %c0_69], %92 {strides = array<i32>} : memref<7x16x224xbf16, #tpu.memory_space<vmem>>, vector<7x16x224xbf16>,
    %c0_70 = arith.constant 0 : index
    %c0_71 = arith.constant 0 : index
    %c0_72 = arith.constant 0 : index
    %94 = vector.load %arg12[%c0_70, %c0_71, %c0_72] : memref<7x16x224xbf16, #tpu.memory_space<vmem>>, vector<1x16x224xbf16>
    %95 = vector.shape_cast %94 : vector<1x16x224xbf16> to vector<16x224xbf16>
    %c0_73 = arith.constant 0 : index
    %c0_74 = arith.constant 0 : index
    %c0_75 = arith.constant 0 : index
    %96 = vector.load %arg6[%c0_73, %c0_74, %c0_75] : memref<7x224x128xbf16, #tpu.memory_space<vmem>>, vector<1x224x128xbf16>
    %97 = vector.shape_cast %96 : vector<1x224x128xbf16> to vector<224x128xbf16>
    %cst_76 = arith.constant dense<0.000000e+00> : vector<16x128xf32>
    %98 = tpu.matmul %95, %97, %cst_76 {dimension_numbers = #tpu.dot_dimension_numbers<[1], [0], [0], [1], [0, 0, 1, 1], [], []>} : vector<16x224xbf16>, vector<224x128xbf16>, vector<16x128xf32> -> vector<16x128xf32>
    %c1_77 = arith.constant 1 : index
    %c0_78 = arith.constant 0 : index
    %c0_79 = arith.constant 0 : index
    %99 = vector.load %arg12[%c1_77, %c0_78, %c0_79] : memref<7x16x224xbf16, #tpu.memory_space<vmem>>, vector<1x16x224xbf16>
    %100 = vector.shape_cast %99 : vector<1x16x224xbf16> to vector<16x224xbf16>
    %c1_80 = arith.constant 1 : index
    %c0_81 = arith.constant 0 : index
    %c0_82 = arith.constant 0 : index
    %101 = vector.load %arg6[%c1_80, %c0_81, %c0_82] : memref<7x224x128xbf16, #tpu.memory_space<vmem>>, vector<1x224x128xbf16>
    %102 = vector.shape_cast %101 : vector<1x224x128xbf16> to vector<224x128xbf16>
    %cst_83 = arith.constant dense<0.000000e+00> : vector<16x128xf32>
    %103 = tpu.matmul %100, %102, %cst_83 {dimension_numbers = #tpu.dot_dimension_numbers<[1], [0], [0], [1], [0, 0, 1, 1], [], []>} : vector<16x224xbf16>, vector<224x128xbf16>, vector<16x128xf32> -> vector<16x128xf32>
    %104 = arith.addf %98, %103 : vector<16x128xf32>
    %c2_84 = arith.constant 2 : index
    %c0_85 = arith.constant 0 : index
    %c0_86 = arith.constant 0 : index
    %105 = vector.load %arg12[%c2_84, %c0_85, %c0_86] : memref<7x16x224xbf16, #tpu.memory_space<vmem>>, vector<1x16x224xbf16>
    %106 = vector.shape_cast %105 : vector<1x16x224xbf16> to vector<16x224xbf16>
    %c2_87 = arith.constant 2 : index
    %c0_88 = arith.constant 0 : index
    %c0_89 = arith.constant 0 : index
    %107 = vector.load %arg6[%c2_87, %c0_88, %c0_89] : memref<7x224x128xbf16, #tpu.memory_space<vmem>>, vector<1x224x128xbf16>
    %108 = vector.shape_cast %107 : vector<1x224x128xbf16> to vector<224x128xbf16>
    %cst_90 = arith.constant dense<0.000000e+00> : vector<16x128xf32>
    %109 = tpu.matmul %106, %108, %cst_90 {dimension_numbers = #tpu.dot_dimension_numbers<[1], [0], [0], [1], [0, 0, 1, 1], [], []>} : vector<16x224xbf16>, vector<224x128xbf16>, vector<16x128xf32> -> vector<16x128xf32>
    %110 = arith.addf %104, %109 : vector<16x128xf32>
    %c3 = arith.constant 3 : index
    %c0_91 = arith.constant 0 : index
    %c0_92 = arith.constant 0 : index
    %111 = vector.load %arg12[%c3, %c0_91, %c0_92] : memref<7x16x224xbf16, #tpu.memory_space<vmem>>, vector<1x16x224xbf16>
    %112 = vector.shape_cast %111 : vector<1x16x224xbf16> to vector<16x224xbf16>
    %c3_93 = arith.constant 3 : index
    %c0_94 = arith.constant 0 : index
    %c0_95 = arith.constant 0 : index
    %113 = vector.load %arg6[%c3_93, %c0_94, %c0_95] : memref<7x224x128xbf16, #tpu.memory_space<vmem>>, vector<1x224x128xbf16>
    %114 = vector.shape_cast %113 : vector<1x224x128xbf16> to vector<224x128xbf16>
    %cst_96 = arith.constant dense<0.000000e+00> : vector<16x128xf32>
    %115 = tpu.matmul %112, %114, %cst_96 {dimension_numbers = #tpu.dot_dimension_numbers<[1], [0], [0], [1], [0, 0, 1, 1], [], []>} : vector<16x224xbf16>, vector<224x128xbf16>, vector<16x128xf32> -> vector<16x128xf32>
    %116 = arith.addf %110, %115 : vector<16x128xf32>
    %c4 = arith.constant 4 : index
    %c0_97 = arith.constant 0 : index
    %c0_98 = arith.constant 0 : index
    %117 = vector.load %arg12[%c4, %c0_97, %c0_98] : memref<7x16x224xbf16, #tpu.memory_space<vmem>>, vector<1x16x224xbf16>
    %118 = vector.shape_cast %117 : vector<1x16x224xbf16> to vector<16x224xbf16>
    %c4_99 = arith.constant 4 : index
    %c0_100 = arith.constant 0 : index
    %c0_101 = arith.constant 0 : index
    %119 = vector.load %arg6[%c4_99, %c0_100, %c0_101] : memref<7x224x128xbf16, #tpu.memory_space<vmem>>, vector<1x224x128xbf16>
    %120 = vector.shape_cast %119 : vector<1x224x128xbf16> to vector<224x128xbf16>
    %cst_102 = arith.constant dense<0.000000e+00> : vector<16x128xf32>
    %121 = tpu.matmul %118, %120, %cst_102 {dimension_numbers = #tpu.dot_dimension_numbers<[1], [0], [0], [1], [0, 0, 1, 1], [], []>} : vector<16x224xbf16>, vector<224x128xbf16>, vector<16x128xf32> -> vector<16x128xf32>
    %122 = arith.addf %116, %121 : vector<16x128xf32>
    %c5 = arith.constant 5 : index
    %c0_103 = arith.constant 0 : index
    %c0_104 = arith.constant 0 : index
    %123 = vector.load %arg12[%c5, %c0_103, %c0_104] : memref<7x16x224xbf16, #tpu.memory_space<vmem>>, vector<1x16x224xbf16>
    %124 = vector.shape_cast %123 : vector<1x16x224xbf16> to vector<16x224xbf16>
    %c5_105 = arith.constant 5 : index
    %c0_106 = arith.constant 0 : index
    %c0_107 = arith.constant 0 : index
    %125 = vector.load %arg6[%c5_105, %c0_106, %c0_107] : memref<7x224x128xbf16, #tpu.memory_space<vmem>>, vector<1x224x128xbf16>
    %126 = vector.shape_cast %125 : vector<1x224x128xbf16> to vector<224x128xbf16>
    %cst_108 = arith.constant dense<0.000000e+00> : vector<16x128xf32>
    %127 = tpu.matmul %124, %126, %cst_108 {dimension_numbers = #tpu.dot_dimension_numbers<[1], [0], [0], [1], [0, 0, 1, 1], [], []>} : vector<16x224xbf16>, vector<224x128xbf16>, vector<16x128xf32> -> vector<16x128xf32>
    %128 = arith.addf %122, %127 : vector<16x128xf32>
    %c6 = arith.constant 6 : index
    %c0_109 = arith.constant 0 : index
    %c0_110 = arith.constant 0 : index
    %129 = vector.load %arg12[%c6, %c0_109, %c0_110] : memref<7x16x224xbf16, #tpu.memory_space<vmem>>, vector<1x16x224xbf16>
    %130 = vector.shape_cast %129 : vector<1x16x224xbf16> to vector<16x224xbf16>
    %c6_111 = arith.constant 6 : index
    %c0_112 = arith.constant 0 : index
    %c0_113 = arith.constant 0 : index
    %131 = vector.load %arg6[%c6_111, %c0_112, %c0_113] : memref<7x224x128xbf16, #tpu.memory_space<vmem>>, vector<1x224x128xbf16>
    %132 = vector.shape_cast %131 : vector<1x224x128xbf16> to vector<224x128xbf16>
    %cst_114 = arith.constant dense<0.000000e+00> : vector<16x128xf32>
    %133 = tpu.matmul %130, %132, %cst_114 {dimension_numbers = #tpu.dot_dimension_numbers<[1], [0], [0], [1], [0, 0, 1, 1], [], []>} : vector<16x224xbf16>, vector<224x128xbf16>, vector<16x128xf32> -> vector<16x128xf32>
    %134 = arith.addf %128, %133 : vector<16x128xf32>
    %c0_115 = arith.constant 0 : index
    %c0_116 = arith.constant 0 : index
    %135 = vector.load %arg7[%c0_115, %c0_116] : memref<1x128xf32, #tpu.memory_space<vmem>>, vector<1x128xf32>
    %136 = vector.broadcast %135 : vector<1x128xf32> to vector<16x128xf32>
    %137 = arith.addf %134, %136 : vector<16x128xf32>
    %cst_117 = arith.constant 0.000000e+00 : f32
    %138 = vector.broadcast %cst_117 : f32 to vector<16x128xf32>
    %139 = arith.maximumf %137, %138 : vector<16x128xf32>
    %c0_118 = arith.constant 0 : index
    %c0_119 = arith.constant 0 : index
    %140 = vector.load %arg11[%c0_118, %c0_119] : memref<16x128xf32, #tpu.memory_space<vmem>>, vector<16x128xf32>
    tpu.vector_store %arg11[%c0_118, %c0_119], %139 {strides = array<i32>} : memref<16x128xf32, #tpu.memory_space<vmem>>, vector<16x128xf32>,
    %141 = arith.truncf %139 : vector<16x128xf32> to vector<16x128xbf16>
    %c0_120 = arith.constant 0 : index
    %c0_121 = arith.constant 0 : index
    %142 = vector.load %arg8[%c0_120, %c0_121] : memref<128x128xbf16, #tpu.memory_space<vmem>>, vector<128x128xbf16>
    %cst_122 = arith.constant dense<0.000000e+00> : vector<16x128xf32>
    %143 = tpu.matmul %141, %142, %cst_122 {dimension_numbers = #tpu.dot_dimension_numbers<[1], [0], [0], [1], [0, 0, 1, 1], [], []>} : vector<16x128xbf16>, vector<128x128xbf16>, vector<16x128xf32> -> vector<16x128xf32>
    %c0_123 = arith.constant 0 : index
    %c0_124 = arith.constant 0 : index
    %144 = vector.load %arg9[%c0_123, %c0_124] : memref<1x128xf32, #tpu.memory_space<vmem>>, vector<1x128xf32>
    %145 = vector.broadcast %144 : vector<1x128xf32> to vector<16x128xf32>
    %146 = arith.addf %143, %145 : vector<16x128xf32>
    %cst_125 = arith.constant dense<0xFF800000> : vector<16xf32>
    %147 = vector.multi_reduction <maximumf>, %146, %cst_125 [1] : vector<16x128xf32> to vector<16xf32>
    %148 = vector.shape_cast %147 : vector<16xf32> to vector<16x1xf32>
    %149 = vector.broadcast %148 : vector<16x1xf32> to vector<16x128xf32>
    %150 = arith.subf %146, %149 : vector<16x128xf32>
    %151 = math.exp %150 : vector<16x128xf32>
    %cst_126 = arith.constant dense<0.000000e+00> : vector<16xf32>
    %152 = vector.multi_reduction <add>, %151, %cst_126 [1] : vector<16x128xf32> to vector<16xf32>
    %153 = vector.shape_cast %152 : vector<16xf32> to vector<16x1xf32>
    %154 = math.log %153 : vector<16x1xf32>
    %155 = vector.broadcast %154 : vector<16x1xf32> to vector<16x128xf32>
    %156 = arith.subf %150, %155 : vector<16x128xf32>
    %c0_127 = arith.constant 0 : index
    %c0_128 = arith.constant 0 : index
    %157 = vector.load %arg10[%c0_127, %c0_128] : memref<16x128xf32, #tpu.memory_space<vmem>>, vector<16x128xf32>
    tpu.vector_store %arg10[%c0_127, %c0_128], %156 {strides = array<i32>} : memref<16x128xf32, #tpu.memory_space<vmem>>, vector<16x128xf32>,
    return
  }
  func.func @transform_0(%arg0: i32) -> (i32, i32, i32) {
    %c0_i32 = arith.constant 0 : i32
    %c0_i32_0 = arith.constant 0 : i32
    %c0_i32_1 = arith.constant 0 : i32
    return %c0_i32, %arg0, %c0_i32_0 : i32, i32, i32
  }
  func.func @transform_1(%arg0: i32) -> (i32, i32, i32, i32) {
    %c0_i32 = arith.constant 0 : i32
    %c0_i32_0 = arith.constant 0 : i32
    %c0_i32_1 = arith.constant 0 : i32
    %c0_i32_2 = arith.constant 0 : i32
    %c0_i32_3 = arith.constant 0 : i32
    return %c0_i32, %c0_i32_0, %c0_i32_1, %c0_i32_2 : i32, i32, i32, i32
  }
  func.func @transform_2(%arg0: i32) -> (i32, i32) {
    %c0_i32 = arith.constant 0 : i32
    %c0_i32_0 = arith.constant 0 : i32
    %c0_i32_1 = arith.constant 0 : i32
    return %c0_i32, %c0_i32_0 : i32, i32
  }
  func.func @transform_3(%arg0: i32) -> (i32, i32, i32, i32) {
    %c0_i32 = arith.constant 0 : i32
    %c0_i32_0 = arith.constant 0 : i32
    %c0_i32_1 = arith.constant 0 : i32
    %c0_i32_2 = arith.constant 0 : i32
    %c0_i32_3 = arith.constant 0 : i32
    return %c0_i32, %c0_i32_0, %c0_i32_1, %c0_i32_2 : i32, i32, i32, i32
  }
  func.func @transform_4(%arg0: i32) -> (i32, i32) {
    %c0_i32 = arith.constant 0 : i32
    %c0_i32_0 = arith.constant 0 : i32
    %c0_i32_1 = arith.constant 0 : i32
    return %c0_i32, %c0_i32_0 : i32, i32
  }
  func.func @transform_5(%arg0: i32) -> (i32, i32, i32) {
    %c0_i32 = arith.constant 0 : i32
    %c0_i32_0 = arith.constant 0 : i32
    %c0_i32_1 = arith.constant 0 : i32
    %c0_i32_2 = arith.constant 0 : i32
    return %c0_i32, %c0_i32_0, %c0_i32_1 : i32, i32, i32
  }
  func.func @transform_6(%arg0: i32) -> (i32, i32) {
    %c0_i32 = arith.constant 0 : i32
    %c0_i32_0 = arith.constant 0 : i32
    %c0_i32_1 = arith.constant 0 : i32
    return %c0_i32, %c0_i32_0 : i32, i32
  }
  func.func @transform_7(%arg0: i32) -> (i32, i32) {
    %c0_i32 = arith.constant 0 : i32
    %c0_i32_0 = arith.constant 0 : i32
    %c0_i32_1 = arith.constant 0 : i32
    return %c0_i32, %c0_i32_0 : i32, i32
  }
  func.func @transform_8(%arg0: i32) -> (i32, i32) {
    %c0_i32 = arith.constant 0 : i32
    %c0_i32_0 = arith.constant 0 : i32
    %c0_i32_1 = arith.constant 0 : i32
    return %c0_i32, %c0_i32_0 : i32, i32
  }
  func.func @transform_9(%arg0: i32) -> (i32, i32) {
    %c0_i32 = arith.constant 0 : i32
    %c0_i32_0 = arith.constant 0 : i32
    return %arg0, %c0_i32 : i32, i32
  }
  func.func @transform_10(%arg0: i32) -> (i32, i32) {
    %c0_i32 = arith.constant 0 : i32
    %c0_i32_0 = arith.constant 0 : i32
    return %arg0, %c0_i32 : i32, i32
  }
}

</mosaic_0001>

<bundles_post_ra>
// kernel: tile.13
= control target key start
LH: loop header
LB: loop body
LE: loop exit
PB: predicated region body
PF: predicated region fallthrough
CT: control target
= control target key end

     0   :  { %s28_s0 = inlined_call_operand.vmem [shape: f32[16], index: 0, kind: input, shape index: {}]   ;;  %s29_s1 = inlined_call_operand.vmem [shape: f32[14,16], index: 1, kind: output, shape index: {}]  }
   0x1   :  { %v4_v0 = vld [vmem:[%s28_s0] ss:$0 sm:$0xff] }
   0x2   :  { %5 = vst [vmem:[%s29_s1] sm:$0xff] %v4_v0  ;;  %8 = vst [vmem:[%s29_s1 + $0x8] sm:$0xff] %v4_v0 }

// kernel: tile.14
= control target key start
LH: loop header
LB: loop body
LE: loop exit
PB: predicated region body
PF: predicated region fallthrough
CT: control target
= control target key end

     0   :  { %s19_s8 = smov 3  ;;  %s82_s9 = smov 112   ;;  %vm4_vm0 = vcmask 130048   ;;  %vm10_vm1 = vcmask 1048448   ;;  %vm16_vm2 = vcmask 917248   ;;  %vm23_vm3 = vcmask 786048   ;;  %s129_s0 = inlined_call_operand.vmem [shape: f32[14,16], index: 0, kind: input, shape index: {}]   ;;  %s130_s1 = inlined_call_operand.vmem [shape: f32[1,224], index: 1, kind: output, shape index: {}]  }
   0x1   :  { %v67_v0 = vld [vmem:[%s129_s0 + $0x7] sm:$0x1]   ;;  %v69_v1 = vld [vmem:[%s129_s0 + $0x5] ss:$8 sm:%s19_s8]   ;;  %s83_s12 = smov 80   ;;  %s26_s15 = smov 3 }
   0x2   :  { %8 = vrot.lane.b32.xlu0 %v67_v0, %s82_s9  ;;  %21 = vrot.lane.b32.xlu1 %v69_v1, %s83_s12  ;;  %v68_v2 = vld [vmem:[%s129_s0 + $0x6] sm:$0x1]   ;;  %s33_s18 = smov 3  ;;  %s40_s19 = smov 3  ;;  %vm30_vm4 = vcmask 654848   ;;  %vm37_vm5 = vcmask 523648  }
   0x3   :  { %v70_v3 = vld [vmem:[%s129_s0 + $0x4] ss:$8 sm:%s26_s15]   ;;  %s84_s20 = smov 96   ;;  %s85_s21 = smov 64   ;;  %v71_v4 = vld [vmem:[%s129_s0 + $0x3] ss:$8 sm:%s33_s18]  }
   0x4   :  { %s2_s24 = smov 3  ;;  %v72_v5 = vld [vmem:[%s129_s0 + $0x2] ss:$8 sm:%s40_s19]   ;;  %s47_s27 = smov 3  ;;  %vm44_vm6 = vcmask 392448   ;;  %vm51_vm7 = vcmask 261248  }
   0x5   :  { %v3_v6 = vld [vmem:[%s129_s0] ss:$8 sm:%s2_s24]   ;;  %s86_s30 = smov 48   ;;  %s87_s2 = smov 32   ;;  %v73_v7 = vld [vmem:[%s129_s0 + $0x1] ss:$8 sm:%s47_s27]  }
   0x6   :  { %14 = vrot.lane.b32.xlu0 %v68_v2, %s84_s20  ;;  %28 = vrot.lane.b32.xlu1 %v70_v3, %s85_s21  ;;  %5 = vst.msk [vmem:[#allocation0] ss:$8 sm:$0x3] %vm4_vm0, %v3_v6   ;;  %s88_s0 = smov 16  }
   0xa   :  { %35 = vrot.lane.b32.xlu0 %v71_v4, %s86_s30  ;;  %42 = vrot.lane.b32.xlu1 %v72_v5, %s87_s2 }
   0xe   :  { %49 = vrot.lane.b32.xlu0 %v73_v7, %s88_s0 }
  0x74   :  { %v9_v8 = vpop.permute.xlu0 %8   ;;  %v22_v9 = vpop.permute.xlu1 %21  }
  0x75   :  { %11 = vst.msk [vmem:[#allocation0] sm:$0x1] %vm10_vm1, %v9_v8  }
  0x78   :  { %v15_v10 = vpop.permute.xlu0 %14   ;;  %v29_v11 = vpop.permute.xlu1 %28  }
  0x79   :  { %17 = vst.msk [vmem:[#allocation0] sm:$0x1] %vm16_vm2, %v15_v10  }
  0x7a   :  { %24 = vst.msk [vmem:[#allocation0] ss:$8 sm:$0x3] %vm23_vm3, %v22_v9  }
  0x7b   :  { %31 = vst.msk [vmem:[#allocation0] ss:$8 sm:$0x3] %vm30_vm4, %v29_v11  }
  0x7c   :  { %v36_v12 = vpop.permute.xlu0 %35   ;;  %v43_v13 = vpop.permute.xlu1 %42  }
  0x7d   :  { %38 = vst.msk [vmem:[#allocation0] ss:$8 sm:$0x3] %vm37_vm5, %v36_v12  }
  0x7e   :  { %45 = vst.msk [vmem:[#allocation0] ss:$8 sm:$0x3] %vm44_vm6, %v43_v13  }
  0x80   :  { %v50_v14 = vpop.permute.xlu0 %49  }
  0x81   :  { %52 = vst.msk [vmem:[#allocation0] ss:$8 sm:$0x3] %vm51_vm7, %v50_v14  }
  0x88   :  { %v57_v15 = vld [vmem:[#allocation0] sm:$0x1]  ;;  %v62_v16 = vld [vmem:[#allocation0 + $0x8] sm:$0x1] }
  0x89   :  { %60 = vst [vmem:[%s130_s1] sm:$0x1] %v57_v15  ;;  %74 = vst [vmem:[%s130_s1 + $0x1] sm:$0x1] %v62_v16 }

// kernel: tile.18
= control target key start
LH: loop header
LB: loop body
LE: loop exit
PB: predicated region body
PF: predicated region fallthrough
CT: control target
= control target key end

     0   :  { %s22_s0 = inlined_call_operand.vmem [shape: f32[32], index: 0, kind: input, shape index: {}]   ;;  %s23_s1 = inlined_call_operand.vmem [shape: f32[7,32], index: 1, kind: output, shape index: {}]  }
   0x1   :  { %v4_v0 = vld [vmem:[%s22_s0] ss:$0 sm:$0xff] }
   0x2   :  { %5 = vst [vmem:[%s23_s1] sm:$0xff] %v4_v0 }

// kernel: tile.19
= control target key start
LH: loop header
LB: loop body
LE: loop exit
PB: predicated region body
PF: predicated region fallthrough
CT: control target
= control target key end

     0   :  { %s13_s8 = smov 3  ;;  %s47_s9 = smov 96   ;;  %vm4_vm0 = vcmask 261120   ;;  %vm10_vm1 = vcmask 1048320   ;;  %vm17_vm2 = vcmask 785920   ;;  %vm24_vm3 = vcmask 523520   ;;  %s78_s0 = inlined_call_operand.vmem [shape: f32[7,32], index: 0, kind: input, shape index: {}]   ;;  %s79_s1 = inlined_call_operand.vmem [shape: f32[1,224], index: 1, kind: output, shape index: {}]  }
   0x1   :  { %v40_v0 = vld [vmem:[%s78_s0 + $0x3] sm:$0x1]   ;;  %s20_s10 = smov 3  ;;  %v41_v1 = vld [vmem:[%s78_s0 + $0x2] ss:$4 sm:%s13_s8]   ;;  %s2_s15 = smov 3 }
   0x2   :  { %8 = vrot.lane.b32.xlu0 %v40_v0, %s47_s9  ;;  %v42_v2 = vld [vmem:[%s78_s0 + $0x1] ss:$4 sm:%s20_s10]   ;;  %s48_s16 = smov 32  }
   0x3   :  { %22 = vrot.lane.b32.xlu1 %v42_v2, %s48_s16  ;;  %v3_v3 = vld [vmem:[%s78_s0] ss:$4 sm:%s2_s15]   ;;  %s49_s0 = smov 64  }
   0x4   :  { %5 = vst.msk [vmem:[#allocation0] ss:$8 sm:$0x3] %vm4_vm0, %v3_v3  }
   0x6   :  { %15 = vrot.lane.b32.xlu0 %v41_v1, %s49_s0 }
  0x74   :  { %v9_v4 = vpop.permute.xlu0 %8  }
  0x75   :  { %11 = vst.msk [vmem:[#allocation0] sm:$0x1] %vm10_vm1, %v9_v4   ;;  %v23_v5 = vpop.permute.xlu1 %22  }
  0x78   :  { %v16_v6 = vpop.permute.xlu0 %15  }
  0x79   :  { %18 = vst.msk [vmem:[#allocation0] ss:$8 sm:$0x3] %vm17_vm2, %v16_v6  }
  0x7a   :  { %25 = vst.msk [vmem:[#allocation0] ss:$8 sm:$0x3] %vm24_vm3, %v23_v5  }
  0x81   :  { %v30_v7 = vld [vmem:[#allocation0] sm:$0x1]  ;;  %v35_v8 = vld [vmem:[#allocation0 + $0x8] sm:$0x1] }
  0x82   :  { %33 = vst [vmem:[%s79_s1] sm:$0x1] %v30_v7  ;;  %43 = vst [vmem:[%s79_s1 + $0x1] sm:$0x1] %v35_v8 }

// kernel: cnnemnist_l_forward.1
= control target key start
LH: loop header
LB: loop body
LE: loop exit
PB: predicated region body
PF: predicated region fallthrough
CT: control target
= control target key end

     0   :  { %vm344_vm0 = vcmask 1045504   ;;  %v12553_v1 = vmov 0   ;;  %vm259_vm1 = vcmask 228352   ;;  %vm3113_vm2 = vcmask 785408   ;;  %s12542_s1 = inlined_call_operand.vmem [shape: bf16[2,3,28,224], index: 1, kind: input, shape index: {}]   ;;  %s12543_s0 = inlined_call_operand.vmem [shape: bf16[28,16,28], index: 0, kind: input, shape index: {}]   ;;  %s12544_s3 = inlined_call_operand.vmem [shape: bf16[2,3,224,224], index: 3, kind: input, shape index: {}]   ;;  %s12545_s2 = inlined_call_operand.vmem [shape: f32[1,224], index: 2, kind: input, shape index: {}]   ;;  %s12546_s5 = inlined_call_operand.vmem [shape: bf16[7,224,128], index: 5, kind: input, shape index: {}]   ;;  %s12547_s4 = inlined_call_operand.vmem [shape: f32[1,224], index: 4, kind: input, shape index: {}]   ;;  %s12548_s7 = inlined_call_operand.vmem [shape: bf16[128,128], index: 7, kind: input, shape index: {}]   ;;  %s12549_s6 = inlined_call_operand.vmem [shape: f32[1,128], index: 6, kind: input, shape index: {}]   ;;  %s12550_s10 = inlined_call_operand.vmem [shape: f32[16,128], index: 10, kind: output, shape index: {1}]   ;;  %s12551_s8 = inlined_call_operand.vmem [shape: f32[1,128], index: 8, kind: input, shape index: {}]   ;;  %s12552_s9 = inlined_call_operand.vmem [shape: f32[16,128], index: 9, kind: output, shape index: {0}]  }
   0x1   :  { %v7714_v0 = vld [vmem:[%s12542_s1 + $0x34] ss:$8 sps:$4 sm:$0x3f]   ;;  %383 = vmatprep.mubr.bf16.mxu0 %v12553_v1  ;;  %653 = vmatprep.mubr.bf16.mxu1 %v12553_v1  ;;  %v7716_v2 = vld [vmem:[%s12542_s1 + $0x30] ss:$8 sps:$4 sm:$0x3f]  }
   0x2   :  { %6759 = vmatprep.subr.msk.bf16.mxu0 %vm344_vm0, %v7714_v0  ;;  %7707 = vmatprep.subr.msk.bf16.mxu1 %vm344_vm0, %v7714_v0  ;;  %v7717_v3 = vld [vmem:[%s12542_s1 + $0x24] ss:$8 sps:$4 sm:$0xff]   ;;  %v346_v4 = vsel %vm344_vm0, %v7716_v2, 0  ;;  %v7719_v5 = vld [vmem:[%s12542_s1 + $0x20] ss:$8 sps:$4 sm:$0xff]   ;;  %v7721_v9 = vld [vmem:[%s12543_s0 + $0xd8] sm:$0xff]  }
   0x3   :  { %364 = vmatpush1.bf16.msra.mxu0 %v346_v4  ;;  %7709 = vmatpush1.bf16.msra.mxu1 %v346_v4  ;;  %v7722_v6 = vld [vmem:[%s12542_s1 + $0x14] ss:$8 sps:$4 sm:$0x3f]   ;;  %v8276_v7 = vld [vmem:[%s12543_s0] sm:$0xff]   ;;  %v8314_v18 = vld [vmem:[%s12543_s0 + $0x8] sm:$0xff]   ;;  %vm5359_vm3 = vcmask 1043456  }
   0x4   :  { %365 = vmatprep.subr.bf16.mxu0 %v7717_v3  ;;  %7708 = vmatprep.subr.bf16.mxu1 %v7717_v3  ;;  %v7724_v8 = vld [vmem:[%s12542_s1 + $0x10] ss:$8 sps:$4 sm:$0x3f]   ;;  %v7727_v11 = vld [vmem:[%s12542_s1 + $0x4] ss:$8 sps:$4 sm:$0xff]   ;;  %vm5360_vm4 = vcmask 785412  }
   0x5   :  { %v686_v10 = vsel %vm344_vm0, %v7724_v8, 0  ;;  %v7732_v12 = vld [vmem:[%s12542_s1 + $0x54] ss:$8 sps:$4 sm:$0x3f]   ;;  %v7725_v16 = vld [vmem:[%s12542_s1] ss:$8 sps:$4 sm:$0xff]   ;;  %vm11925_vm5 = vmor %vm5360_vm4, %vm5359_vm3 }
   0x6   :  { %v7729_v13 = vld [vmem:[%s12542_s1 + $0x94] ss:$8 sps:$4 sm:$0x3f]   ;;  %v7731_v14 = vld [vmem:[%s12542_s1 + $0x90] ss:$8 sps:$4 sm:$0x3f]  }
   0x7   :  { %366 = vmatpush1.bf16.msra.mxu0 %v7719_v5  ;;  %7710 = vmatpush1.bf16.msra.mxu1 %v7719_v5  ;;  %v7734_v15 = vld [vmem:[%s12542_s1 + $0x50] ss:$8 sps:$4 sm:$0x3f]   ;;  %v1543_v19 = vsel %vm344_vm0, %v7731_v14, 0  ;;  %v7749_v21 = vld [vmem:[%s12542_s1 + $0x80] ss:$8 sps:$4 sm:$0xff]  }
   0x8   :  { %6792 = vmatprep.subr.msk.bf16.mxu1 %vm344_vm0, %v7722_v6  ;;  %v1028_v17 = vsel %vm344_vm0, %v7734_v15, 0  ;;  %6828 = vmatprep.subr.msk.bf16.mxu0 %vm344_vm0, %v7732_v12  ;;  %v8326_v20 = vld [vmem:[%s12543_s0 + $0x10] sm:$0xff]   ;;  %v7751_v22 = vld [vmem:[%s12542_s1 + $0x84] ss:$8 sps:$4 sm:$0xff]   ;;  %v7752_v23 = vld [vmem:[%s12542_s1 + $0x40] ss:$8 sps:$4 sm:$0xff]  }
   0x9   :  { %v7754_v24 = vld [vmem:[%s12542_s1 + $0x44] ss:$8 sps:$4 sm:$0xff]   ;;  %v8349_v25 = vld [vmem:[%s12543_s0 + $0x18] sm:$0xff]   ;;  %v8382_v28 = vld [vmem:[%s12543_s0 + $0x30] sm:$0xff]   ;;  %vm8197_vm6 = vmmov 0  }
   0xa   :  { %6760 = vmatmul.mubr.msk.bf16.vlgmr.msra.gmra.mxu0 %vm259_vm1, %v8276_v7  ;;  %6787 = vmatmul.mubr.msk.bf16.vlgmr.msra.gmra.mxu1 %vm259_vm1, %v7721_v9  ;;  %v8360_v26 = vld [vmem:[%s12543_s0 + $0x20] sm:$0xff]   ;;  %v8371_v27 = vld [vmem:[%s12543_s0 + $0x28] sm:$0xff]   ;;  %v8393_v29 = vld [vmem:[%s12543_s0 + $0x38] sm:$0xff]  }
   0xb   :  { %704 = vmatpush1.bf16.msra.mxu1 %v686_v10  ;;  %393 = vmatprep.mubr.bf16.mxu0 %v12553_v1  ;;  %v8404_v30 = vld [vmem:[%s12543_s0 + $0x40] sm:$0xff]   ;;  %v8415_v31 = vld [vmem:[%s12543_s0 + $0x48] sm:$0xff]   ;;  %v8426_v32 = vld [vmem:[%s12543_s0 + $0x50] sm:$0xff]  }
   0xc   :  { %705 = vmatprep.subr.bf16.mxu1 %v7727_v11  ;;  %723 = vmatprep.mubr.bf16.mxu1 %v12553_v1  ;;  %v8437_v33 = vld [vmem:[%s12543_s0 + $0x58] sm:$0xff]   ;;  %v8448_v34 = vld [vmem:[%s12543_s0 + $0x60] sm:$0xff]   ;;  %v8459_v35 = vld [vmem:[%s12543_s0 + $0x68] sm:$0xff]  }
   0xd   :  { %1046 = vmatpush1.bf16.msra.mxu0 %v1028_v17  ;;  %v7766_v36 = vld [vmem:[%s12542_s1 + $0x74] ss:$8 sps:$4 sm:$0x3f]   ;;  %v8500_v40 = vld [vmem:[%s12543_s0 + $0x80] sm:$0xff]   ;;  %v8511_v41 = vld [vmem:[%s12543_s0 + $0x88] sm:$0xff]  }
   0xe   :  { %1047 = vmatprep.subr.bf16.mxu0 %v7754_v24  ;;  %v7769_v37 = vld [vmem:[%s12542_s1 + $0xb4] ss:$8 sps:$4 sm:$0x3f]   ;;  %v8544_v44 = vld [vmem:[%s12543_s0 + $0xa0] sm:$0xff]   ;;  %v8555_v45 = vld [vmem:[%s12543_s0 + $0xa8] sm:$0xff]  }
   0xf   :  { %706 = vmatpush1.bf16.msra.mxu1 %v7725_v16  ;;  %v8478_v38 = vld [vmem:[%s12543_s0 + $0x70] sm:$0xff]   ;;  %v8489_v39 = vld [vmem:[%s12543_s0 + $0x78] sm:$0xff]   ;;  %v8588_v48 = vld [vmem:[%s12543_s0 + $0xc0] sm:$0xff]  }
  0x10   :  { %6868 = vmatprep.subr.msk.bf16.mxu1 %vm344_vm0, %v7729_v13  ;;  %v8522_v42 = vld [vmem:[%s12543_s0 + $0x90] sm:$0xff]   ;;  %v8533_v43 = vld [vmem:[%s12543_s0 + $0x98] sm:$0xff]   ;;  %v8605_v55 = vld [vmem:[%s12543_s0 + $0xc8] sm:$0xff]  }
  0x11   :  { %1048 = vmatpush1.bf16.msra.mxu0 %v7752_v23  ;;  %v8566_v46 = vld [vmem:[%s12543_s0 + $0xb0] sm:$0xff]   ;;  %v8577_v47 = vld [vmem:[%s12543_s0 + $0xb8] sm:$0xff]  }
  0x12   :  { %6761 = vmatmul.mubr.msk.bf16.gmra.mxu0 %vm259_vm1, %v8314_v18  ;;  %724 = vmatmul.mubr.bf16.vlgmr.msra.gmra.mxu1 %v12553_v1  ;;  %v8622_v3 = vld [vmem:[%s12543_s0 + $0xd0] sm:$0xff]  }
  0x13   :  { %1561 = vmatpush1.bf16.msra.mxu1 %v1543_v19  ;;  %403 = vmatprep.mubr.bf16.mxu0 %v12553_v1  ;;  %v7768_v15 = vld [vmem:[%s12542_s1 + $0x70] ss:$8 sps:$4 sm:$0x3f]  }
  0x14   :  { %733 = vmatprep.mubr.bf16.mxu1 %v12553_v1  ;;  %1562 = vmatprep.subr.bf16.mxu1 %v7751_v22  ;;  %v1880_v24 = vsel %vm344_vm0, %v7768_v15, 0 }
  0x15   :  { %6901 = vmatprep.subr.msk.bf16.mxu0 %vm344_vm0, %v7766_v36  ;;  %v7774_v36 = vld [vmem:[%s12542_s1 + $0x64] ss:$8 sps:$4 sm:$0xff]  }
  0x17   :  { %1563 = vmatpush1.bf16.msra.mxu1 %v7749_v21 }
  0x18   :  { %6937 = vmatprep.subr.msk.bf16.mxu1 %vm344_vm0, %v7769_v37 }
  0x1a   :  { %6762 = vmatmul.mubr.msk.bf16.gmra.mxu0 %vm259_vm1, %v8326_v20  ;;  %6793 = vmatmul.mubr.msk.bf16.gmra.mxu1 %vm259_vm1, %v8276_v7 }
  0x1b   :  { %413 = vmatprep.mubr.bf16.mxu0 %v12553_v1  ;;  %743 = vmatprep.mubr.bf16.mxu1 %v12553_v1 }
  0x22   :  { %6763 = vmatmul.mubr.msk.bf16.gmra.mxu0 %vm259_vm1, %v8349_v25  ;;  %6794 = vmatmul.mubr.msk.bf16.gmra.mxu1 %vm259_vm1, %v8314_v18 }
  0x23   :  { %423 = vmatprep.mubr.bf16.mxu0 %v12553_v1  ;;  %753 = vmatprep.mubr.bf16.mxu1 %v12553_v1 }
  0x2a   :  { %6764 = vmatmul.mubr.msk.bf16.gmra.mxu0 %vm259_vm1, %v8360_v26  ;;  %6795 = vmatmul.mubr.msk.bf16.gmra.mxu1 %vm259_vm1, %v8326_v20 }
  0x2b   :  { %433 = vmatprep.mubr.bf16.mxu0 %v12553_v1  ;;  %763 = vmatprep.mubr.bf16.mxu1 %v12553_v1 }
  0x32   :  { %6765 = vmatmul.mubr.msk.bf16.gmra.mxu0 %vm259_vm1, %v8371_v27  ;;  %6796 = vmatmul.mubr.msk.bf16.gmra.mxu1 %vm259_vm1, %v8349_v25 }
  0x33   :  { %443 = vmatprep.mubr.bf16.mxu0 %v12553_v1  ;;  %773 = vmatprep.mubr.bf16.mxu1 %v12553_v1 }
  0x3a   :  { %6766 = vmatmul.mubr.msk.bf16.gmra.mxu0 %vm259_vm1, %v8382_v28  ;;  %6797 = vmatmul.mubr.msk.bf16.gmra.mxu1 %vm259_vm1, %v8360_v26 }
  0x3b   :  { %453 = vmatprep.mubr.bf16.mxu0 %v12553_v1  ;;  %783 = vmatprep.mubr.bf16.mxu1 %v12553_v1 }
  0x42   :  { %6767 = vmatmul.mubr.msk.bf16.gmra.mxu0 %vm259_vm1, %v8393_v29  ;;  %6798 = vmatmul.mubr.msk.bf16.gmra.mxu1 %vm259_vm1, %v8371_v27 }
  0x43   :  { %463 = vmatprep.mubr.bf16.mxu0 %v12553_v1  ;;  %793 = vmatprep.mubr.bf16.mxu1 %v12553_v1 }
  0x4a   :  { %6768 = vmatmul.mubr.msk.bf16.gmra.mxu0 %vm259_vm1, %v8404_v30  ;;  %6799 = vmatmul.mubr.msk.bf16.gmra.mxu1 %vm259_vm1, %v8382_v28 }
  0x4b   :  { %473 = vmatprep.mubr.bf16.mxu0 %v12553_v1  ;;  %803 = vmatprep.mubr.bf16.mxu1 %v12553_v1 }
  0x52   :  { %6769 = vmatmul.mubr.msk.bf16.gmra.mxu0 %vm259_vm1, %v8415_v31  ;;  %6800 = vmatmul.mubr.msk.bf16.gmra.mxu1 %vm259_vm1, %v8393_v29 }
  0x53   :  { %483 = vmatprep.mubr.bf16.mxu0 %v12553_v1  ;;  %813 = vmatprep.mubr.bf16.mxu1 %v12553_v1 }
  0x5a   :  { %6770 = vmatmul.mubr.msk.bf16.gmra.mxu0 %vm259_vm1, %v8426_v32  ;;  %6801 = vmatmul.mubr.msk.bf16.gmra.mxu1 %vm259_vm1, %v8404_v30 }
  0x5b   :  { %493 = vmatprep.mubr.bf16.mxu0 %v12553_v1  ;;  %823 = vmatprep.mubr.bf16.mxu1 %v12553_v1 }
  0x62   :  { %6771 = vmatmul.mubr.msk.bf16.gmra.mxu0 %vm259_vm1, %v8437_v33  ;;  %6802 = vmatmul.mubr.msk.bf16.gmra.mxu1 %vm259_vm1, %v8415_v31 }
  0x63   :  { %503 = vmatprep.mubr.bf16.mxu0 %v12553_v1  ;;  %833 = vmatprep.mubr.bf16.mxu1 %v12553_v1 }
  0x6a   :  { %6772 = vmatmul.mubr.msk.bf16.gmra.mxu0 %vm259_vm1, %v8448_v34  ;;  %6803 = vmatmul.mubr.msk.bf16.gmra.mxu1 %vm259_vm1, %v8426_v32 }
  0x6b   :  { %513 = vmatprep.mubr.bf16.mxu0 %v12553_v1  ;;  %843 = vmatprep.mubr.bf16.mxu1 %v12553_v1 }
  0x72   :  { %6773 = vmatmul.mubr.msk.bf16.gmra.mxu0 %vm259_vm1, %v8459_v35  ;;  %6804 = vmatmul.mubr.msk.bf16.gmra.mxu1 %vm259_vm1, %v8437_v33 }
  0x73   :  { %523 = vmatprep.mubr.bf16.mxu0 %v12553_v1  ;;  %853 = vmatprep.mubr.bf16.mxu1 %v12553_v1 }
  0x7a   :  { %6774 = vmatmul.mubr.msk.bf16.gmra.mxu0 %vm259_vm1, %v8478_v38  ;;  %6805 = vmatmul.mubr.msk.bf16.gmra.mxu1 %vm259_vm1, %v8448_v34 }
  0x7b   :  { %533 = vmatprep.mubr.bf16.mxu0 %v12553_v1  ;;  %863 = vmatprep.mubr.bf16.mxu1 %v12553_v1 }
  0x82   :  { %6775 = vmatmul.mubr.msk.bf16.gmra.mxu0 %vm259_vm1, %v8489_v39  ;;  %6806 = vmatmul.mubr.msk.bf16.gmra.mxu1 %vm259_vm1, %v8459_v35 }
  0x83   :  { %543 = vmatprep.mubr.bf16.mxu0 %v12553_v1  ;;  %873 = vmatprep.mubr.bf16.mxu1 %v12553_v1 }
  0x8a   :  { %6776 = vmatmul.mubr.msk.bf16.gmra.mxu0 %vm259_vm1, %v8500_v40  ;;  %6807 = vmatmul.mubr.msk.bf16.gmra.mxu1 %vm259_vm1, %v8478_v38 }
  0x8b   :  { %553 = vmatprep.mubr.bf16.mxu0 %v12553_v1  ;;  %883 = vmatprep.mubr.bf16.mxu1 %v12553_v1 }
  0x92   :  { %6777 = vmatmul.mubr.msk.bf16.gmra.mxu0 %vm259_vm1, %v8511_v41  ;;  %6808 = vmatmul.mubr.msk.bf16.gmra.mxu1 %vm259_vm1, %v8489_v39 }
  0x93   :  { %563 = vmatprep.mubr.bf16.mxu0 %v12553_v1  ;;  %893 = vmatprep.mubr.bf16.mxu1 %v12553_v1 }
  0x9a   :  { %6778 = vmatmul.mubr.msk.bf16.gmra.mxu0 %vm259_vm1, %v8522_v42  ;;  %6809 = vmatmul.mubr.msk.bf16.gmra.mxu1 %vm259_vm1, %v8500_v40 }
  0x9b   :  { %573 = vmatprep.mubr.bf16.mxu0 %v12553_v1  ;;  %903 = vmatprep.mubr.bf16.mxu1 %v12553_v1 }
  0xa2   :  { %6779 = vmatmul.mubr.msk.bf16.gmra.mxu0 %vm259_vm1, %v8533_v43  ;;  %6810 = vmatmul.mubr.msk.bf16.gmra.mxu1 %vm259_vm1, %v8511_v41 }
  0xa3   :  { %583 = vmatprep.mubr.bf16.mxu0 %v12553_v1  ;;  %913 = vmatprep.mubr.bf16.mxu1 %v12553_v1 }
  0xaa   :  { %6780 = vmatmul.mubr.msk.bf16.gmra.mxu0 %vm259_vm1, %v8544_v44  ;;  %6811 = vmatmul.mubr.msk.bf16.gmra.mxu1 %vm259_vm1, %v8522_v42 }
  0xab   :  { %593 = vmatprep.mubr.bf16.mxu0 %v12553_v1  ;;  %923 = vmatprep.mubr.bf16.mxu1 %v12553_v1 }
  0xb2   :  { %6781 = vmatmul.mubr.msk.bf16.gmra.mxu0 %vm259_vm1, %v8555_v45  ;;  %6812 = vmatmul.mubr.msk.bf16.gmra.mxu1 %vm259_vm1, %v8533_v43 }
  0xb3   :  { %603 = vmatprep.mubr.bf16.mxu0 %v12553_v1  ;;  %933 = vmatprep.mubr.bf16.mxu1 %v12553_v1 }
  0xba   :  { %6782 = vmatmul.mubr.msk.bf16.gmra.mxu0 %vm259_vm1, %v8566_v46  ;;  %6813 = vmatmul.mubr.msk.bf16.gmra.mxu1 %vm259_vm1, %v8544_v44 }
  0xbb   :  { %613 = vmatprep.mubr.bf16.mxu0 %v12553_v1  ;;  %943 = vmatprep.mubr.bf16.mxu1 %v12553_v1 }
  0xc2   :  { %6783 = vmatmul.mubr.msk.bf16.gmra.mxu0 %vm259_vm1, %v8577_v47  ;;  %6814 = vmatmul.mubr.msk.bf16.gmra.mxu1 %vm259_vm1, %v8555_v45 }
  0xc3   :  { %623 = vmatprep.mubr.bf16.mxu0 %v12553_v1  ;;  %953 = vmatprep.mubr.bf16.mxu1 %v12553_v1 }
  0xca   :  { %v385_v49 = vpop.f32.mrf.mxu0  ;;  %6784 = vmatmul.mubr.msk.bf16.gmra.mxu0 %vm259_vm1, %v8588_v48  ;;  %v8592_v50 = vpop.f32.mrf.mxu1  ;;  %6815 = vmatmul.mubr.msk.bf16.gmra.mxu1 %vm259_vm1, %v8566_v46 }
  0xcb   :  { %12702 = vst [vmem:[#allocation3_spill] sm:$0xff] %v8592_v50  ;;  %633 = vmatprep.mubr.bf16.mxu0 %v12553_v1  ;;  %963 = vmatprep.mubr.bf16.mxu1 %v12553_v1 }
  0xcc   :  { %v387_v51 = vpop.f32.mrf.mxu0  ;;  %v8598_v52 = vpop.f32.mrf.mxu1 }
  0xcd   :  { %12703 = vst [vmem:[#allocation4_spill] sm:$0xff] %v8598_v52 }
  0xce   :  { %v389_v53 = vpop.f32.mrf.mxu0  ;;  %v8600_v54 = vpop.f32.mrf.mxu1 }
  0xcf   :  { %12704 = vst [vmem:[#allocation5_spill] sm:$0xff] %v8600_v54 }
  0xd0   :  { %v391_v56 = vpop.f32.mrf.mxu0  ;;  %v8607_v57 = vpop.f32.mrf.mxu1 }
  0xd1   :  { %12705 = vst [vmem:[#allocation6_spill] sm:$0xff] %v8607_v57 }
  0xd2   :  { %v395_v58 = vpop.f32.mrf.mxu0  ;;  %6785 = vmatmul.mubr.msk.bf16.gmra.mxu0 %vm259_vm1, %v8605_v55  ;;  %v725_v59 = vpop.f32.mrf.mxu1  ;;  %6816 = vmatmul.mubr.msk.bf16.gmra.mxu1 %vm259_vm1, %v8577_v47 }
  0xd3   :  { %v8613_v60 = vadd.f32 %v725_v59, %v385_v49  ;;  %643 = vmatprep.mubr.bf16.mxu0 %v12553_v1  ;;  %973 = vmatprep.mubr.bf16.mxu1 %v12553_v1 }
  0xd4   :  { %v397_v61 = vpop.f32.mrf.mxu0  ;;  %v727_v62 = vpop.f32.mrf.mxu1 }
  0xd5   :  { %v8617_v63 = vadd.f32 %v727_v62, %v387_v51 }
  0xd6   :  { %v399_v0 = vpop.f32.mrf.mxu0  ;;  %v729_v2 = vpop.f32.mrf.mxu1 }
  0xd7   :  { %v8624_v4 = vadd.f32 %v729_v2, %v389_v53 }
  0xd8   :  { %v401_v5 = vpop.f32.mrf.mxu0  ;;  %v731_v6 = vpop.f32.mrf.mxu1 }
  0xd9   :  { %v8626_v8 = vadd.f32 %v731_v6, %v391_v56 }
  0xda   :  { %v405_v9 = vpop.f32.mrf.mxu0  ;;  %6786 = vmatmul.mubr.msk.bf16.gmra.mxu0 %vm259_vm1, %v8622_v3  ;;  %v735_v10 = vpop.f32.mrf.mxu1  ;;  %6817 = vmatmul.mubr.msk.bf16.gmra.mxu1 %vm259_vm1, %v8588_v48 }
  0xdb   :  { %v8632_v11 = vadd.f32 %v735_v10, %v395_v58  ;;  %983 = vmatprep.mubr.bf16.mxu1 %v12553_v1  ;;  %1065 = vmatprep.mubr.bf16.mxu0 %v12553_v1  ;;  %v7772_v58 = vld [vmem:[%s12542_s1 + $0x60] ss:$8 sps:$4 sm:$0xff]  }
  0xdc   :  { %v407_v12 = vpop.f32.mrf.mxu0  ;;  %v737_v13 = vpop.f32.mrf.mxu1 }
  0xdd   :  { %v8636_v14 = vadd.f32 %v737_v13, %v397_v61 }
  0xde   :  { %v409_v16 = vpop.f32.mrf.mxu0  ;;  %v739_v17 = vpop.f32.mrf.mxu1 }
  0xdf   :  { %v8641_v19 = vadd.f32 %v739_v17, %v399_v0 }
  0xe0   :  { %v411_v21 = vpop.f32.mrf.mxu0  ;;  %v741_v22 = vpop.f32.mrf.mxu1 }
  0xe1   :  { %v8643_v23 = vadd.f32 %v741_v22, %v401_v5 }
  0xe2   :  { %v415_v37 = vpop.f32.mrf.mxu0  ;;  %v745_v49 = vpop.f32.mrf.mxu1  ;;  %6818 = vmatmul.mubr.msk.bf16.gmra.mxu1 %vm259_vm1, %v8605_v55  ;;  %6829 = vmatmul.mubr.msk.bf16.vlgmr.msra.gmra.mxu0 %vm259_vm1, %v8314_v18 }
  0xe3   :  { %v8653_v51 = vadd.f32 %v745_v49, %v405_v9  ;;  %993 = vmatprep.mubr.bf16.mxu1 %v12553_v1  ;;  %1075 = vmatprep.mubr.bf16.mxu0 %v12553_v1 }
  0xe4   :  { %v417_v53 = vpop.f32.mrf.mxu0  ;;  %v747_v56 = vpop.f32.mrf.mxu1  ;;  %1898 = vmatpush1.bf16.msra.mxu0 %v1880_v24 }
  0xe5   :  { %v8660_v59 = vadd.f32 %v747_v56, %v407_v12  ;;  %1899 = vmatprep.subr.bf16.mxu0 %v7774_v36  ;;  %v7777_v56 = vld [vmem:[%s12542_s1 + $0xa4] ss:$8 sps:$4 sm:$0xff]  }
  0xe6   :  { %v419_v61 = vpop.f32.mrf.mxu0  ;;  %v749_v62 = vpop.f32.mrf.mxu1 }
  0xe7   :  { %v8662_v0 = vadd.f32 %v749_v62, %v409_v16  ;;  %v7771_v16 = vld [vmem:[%s12542_s1 + $0xb0] ss:$8 sps:$4 sm:$0x3f]  }
  0xe8   :  { %v421_v2 = vpop.f32.mrf.mxu0  ;;  %v751_v5 = vpop.f32.mrf.mxu1  ;;  %1900 = vmatpush1.bf16.msra.mxu0 %v7772_v58 }
  0xe9   :  { %v8664_v6 = vadd.f32 %v751_v5, %v411_v21 }
  0xea   :  { %v425_v9 = vpop.f32.mrf.mxu0  ;;  %v755_v10 = vpop.f32.mrf.mxu1  ;;  %6819 = vmatmul.mubr.msk.bf16.gmra.mxu1 %vm259_vm1, %v8622_v3  ;;  %6830 = vmatmul.mubr.msk.bf16.gmra.mxu0 %vm259_vm1, %v8326_v20 }
  0xeb   :  { %v8670_v12 = vadd.f32 %v755_v10, %v415_v37  ;;  %1085 = vmatprep.mubr.bf16.mxu0 %v12553_v1  ;;  %1580 = vmatprep.mubr.bf16.mxu1 %v12553_v1  ;;  %v2222_v37 = vsel %vm344_vm0, %v7771_v16, 0 }
  0xec   :  { %v427_v13 = vpop.f32.mrf.mxu0  ;;  %v757_v15 = vpop.f32.mrf.mxu1 }
  0xed   :  { %v8677_v17 = vadd.f32 %v757_v15, %v417_v53 }
  0xee   :  { %v429_v21 = vpop.f32.mrf.mxu0  ;;  %v759_v22 = vpop.f32.mrf.mxu1 }
  0xef   :  { %v8679_v24 = vadd.f32 %v759_v22, %v419_v61  ;;  %v7775_v61 = vld [vmem:[%s12542_s1 + $0xa0] ss:$8 sps:$4 sm:$0xff]  }
  0xf0   :  { %v431_v36 = vpop.f32.mrf.mxu0  ;;  %v761_v49 = vpop.f32.mrf.mxu1 }
  0xf1   :  { %v8685_v58 = vadd.f32 %v761_v49, %v421_v2 }
  0xf2   :  { %v435_v62 = vpop.f32.mrf.mxu0  ;;  %v765_v5 = vpop.f32.mrf.mxu1  ;;  %6831 = vmatmul.mubr.msk.bf16.gmra.mxu0 %vm259_vm1, %v8349_v25  ;;  %6869 = vmatmul.mubr.msk.bf16.vlgmr.msra.gmra.mxu1 %vm259_vm1, %v8276_v7 }
  0xf3   :  { %v8691_v53 = vadd.f32 %v765_v5, %v425_v9  ;;  %2240 = vmatpush1.bf16.msra.mxu1 %v2222_v37  ;;  %1095 = vmatprep.mubr.bf16.mxu0 %v12553_v1 }
  0xf4   :  { %v437_v10 = vpop.f32.mrf.mxu0  ;;  %v767_v2 = vpop.f32.mrf.mxu1  ;;  %1590 = vmatprep.mubr.bf16.mxu1 %v12553_v1  ;;  %2241 = vmatprep.subr.bf16.mxu1 %v7777_v56 }
  0xf5   :  { %v8698_v15 = vadd.f32 %v767_v2, %v427_v13 }
  0xf6   :  { %v439_v16 = vpop.f32.mrf.mxu0  ;;  %v769_v22 = vpop.f32.mrf.mxu1 }
  0xf7   :  { %v8700_v49 = vadd.f32 %v769_v22, %v429_v21  ;;  %2242 = vmatpush1.bf16.msra.mxu1 %v7775_v61 }
  0xf8   :  { %v441_v7 = vpop.f32.mrf.mxu0  ;;  %v771_v9 = vpop.f32.mrf.mxu1 }
  0xf9   :  { %v8702_v37 = vadd.f32 %v771_v9, %v431_v36 }
  0xfa   :  { %v445_v5 = vpop.f32.mrf.mxu0  ;;  %v775_v57 = vpop.f32.mrf.mxu1  ;;  %6832 = vmatmul.mubr.msk.bf16.gmra.mxu0 %vm259_vm1, %v8360_v26  ;;  %6870 = vmatmul.mubr.msk.bf16.gmra.mxu1 %vm259_vm1, %v8314_v18 }
  0xfb   :  { %v8708_v56 = vadd.f32 %v775_v57, %v435_v62  ;;  %1105 = vmatprep.mubr.bf16.mxu0 %v12553_v1  ;;  %1600 = vmatprep.mubr.bf16.mxu1 %v12553_v1 }
  0xfc   :  { %v447_v13 = vpop.f32.mrf.mxu0  ;;  %v777_v21 = vpop.f32.mrf.mxu1 }
  0xfd   :  { %v8712_v61 = vadd.f32 %v777_v21, %v437_v10 }
  0xfe   :  { %v449_v36 = vpop.f32.mrf.mxu0  ;;  %v779_v2 = vpop.f32.mrf.mxu1 }
  0xff   :  { %12706 = vst [vmem:[#allocation7_spill] sm:$0xff] %v8712_v61  ;;  %v8714_v22 = vadd.f32 %v779_v2, %v439_v16 }
 0x100   :  { %v451_v9 = vpop.f32.mrf.mxu0  ;;  %v781_v54 = vpop.f32.mrf.mxu1 }
 0x101   :  { %12707 = vst [vmem:[#allocation8_spill] sm:$0xff] %v8714_v22  ;;  %v8716_v52 = vadd.f32 %v781_v54, %v441_v7 }
 0x102   :  { %v455_v50 = vpop.f32.mrf.mxu0  ;;  %v785_v18 = vpop.f32.mrf.mxu1  ;;  %6833 = vmatmul.mubr.msk.bf16.gmra.mxu0 %vm259_vm1, %v8371_v27  ;;  %6871 = vmatmul.mubr.msk.bf16.gmra.mxu1 %vm259_vm1, %v8326_v20 }
 0x103   :  { %12708 = vst [vmem:[#allocation9_spill] sm:$0xff] %v8716_v52  ;;  %v8722_v57 = vadd.f32 %v785_v18, %v445_v5  ;;  %1115 = vmatprep.mubr.bf16.mxu0 %v12553_v1  ;;  %1610 = vmatprep.mubr.bf16.mxu1 %v12553_v1 }
 0x104   :  { %v457_v62 = vpop.f32.mrf.mxu0  ;;  %v787_v10 = vpop.f32.mrf.mxu1 }
 0x105   :  { %v8726_v16 = vadd.f32 %v787_v10, %v447_v13 }
 0x106   :  { %v459_v54 = vpop.f32.mrf.mxu0  ;;  %v789_v7 = vpop.f32.mrf.mxu1 }
 0x107   :  { %12709 = vst [vmem:[#allocation10_spill] sm:$0xff] %v8726_v16  ;;  %v8728_v21 = vadd.f32 %v789_v7, %v449_v36 }
 0x108   :  { %v461_v2 = vpop.f32.mrf.mxu0  ;;  %v791_v52 = vpop.f32.mrf.mxu1 }
 0x109   :  { %12710 = vst [vmem:[#allocation11_spill] sm:$0xff] %v8728_v21  ;;  %v8730_v22 = vadd.f32 %v791_v52, %v451_v9 }
 0x10a   :  { %v465_v61 = vpop.f32.mrf.mxu0  ;;  %v795_v20 = vpop.f32.mrf.mxu1  ;;  %6834 = vmatmul.mubr.msk.bf16.gmra.mxu0 %vm259_vm1, %v8382_v28  ;;  %6872 = vmatmul.mubr.msk.bf16.gmra.mxu1 %vm259_vm1, %v8349_v25 }
 0x10b   :  { %12711 = vst [vmem:[#allocation12_spill] sm:$0xff] %v8730_v22  ;;  %v8736_v5 = vadd.f32 %v795_v20, %v455_v50  ;;  %1125 = vmatprep.mubr.bf16.mxu0 %v12553_v1  ;;  %1620 = vmatprep.mubr.bf16.mxu1 %v12553_v1 }
 0x10c   :  { %v467_v13 = vpop.f32.mrf.mxu0  ;;  %v797_v36 = vpop.f32.mrf.mxu1 }
 0x10d   :  { %v8740_v18 = vadd.f32 %v797_v36, %v457_v62 }
 0x10e   :  { %v469_v52 = vpop.f32.mrf.mxu0  ;;  %v799_v9 = vpop.f32.mrf.mxu1 }
 0x10f   :  { %12712 = vst [vmem:[#allocation13_spill] sm:$0xff] %v8740_v18  ;;  %v8742_v10 = vadd.f32 %v799_v9, %v459_v54 }
 0x110   :  { %v471_v7 = vpop.f32.mrf.mxu0  ;;  %v801_v22 = vpop.f32.mrf.mxu1 }
 0x111   :  { %12713 = vst [vmem:[#allocation14_spill] sm:$0xff] %v8742_v10  ;;  %v8744_v21 = vadd.f32 %v801_v22, %v461_v2 }
 0x112   :  { %v475_v16 = vpop.f32.mrf.mxu0  ;;  %v805_v25 = vpop.f32.mrf.mxu1  ;;  %6835 = vmatmul.mubr.msk.bf16.gmra.mxu0 %vm259_vm1, %v8393_v29  ;;  %6873 = vmatmul.mubr.msk.bf16.gmra.mxu1 %vm259_vm1, %v8360_v26 }
 0x113   :  { %12714 = vst [vmem:[#allocation15_spill] sm:$0xff] %v8744_v21  ;;  %v8750_v50 = vadd.f32 %v805_v25, %v465_v61  ;;  %1135 = vmatprep.mubr.bf16.mxu0 %v12553_v1  ;;  %1630 = vmatprep.mubr.bf16.mxu1 %v12553_v1 }
 0x114   :  { %v477_v62 = vpop.f32.mrf.mxu0  ;;  %v807_v54 = vpop.f32.mrf.mxu1 }
 0x115   :  { %v8754_v20 = vadd.f32 %v807_v54, %v467_v13 }
 0x116   :  { %v479_v22 = vpop.f32.mrf.mxu0  ;;  %v809_v2 = vpop.f32.mrf.mxu1 }
 0x117   :  { %12715 = vst [vmem:[#allocation16_spill] sm:$0xff] %v8754_v20  ;;  %v8756_v36 = vadd.f32 %v809_v2, %v469_v52 }
 0x118   :  { %v481_v9 = vpop.f32.mrf.mxu0  ;;  %v811_v21 = vpop.f32.mrf.mxu1 }
 0x119   :  { %12716 = vst [vmem:[#allocation17_spill] sm:$0xff] %v8756_v36  ;;  %v8758_v10 = vadd.f32 %v811_v21, %v471_v7 }
 0x11a   :  { %v485_v18 = vpop.f32.mrf.mxu0  ;;  %v815_v26 = vpop.f32.mrf.mxu1  ;;  %6836 = vmatmul.mubr.msk.bf16.gmra.mxu0 %vm259_vm1, %v8404_v30  ;;  %6874 = vmatmul.mubr.msk.bf16.gmra.mxu1 %vm259_vm1, %v8371_v27 }
 0x11b   :  { %12717 = vst [vmem:[#allocation18_spill] sm:$0xff] %v8758_v10  ;;  %v8764_v61 = vadd.f32 %v815_v26, %v475_v16  ;;  %1145 = vmatprep.mubr.bf16.mxu0 %v12553_v1  ;;  %1640 = vmatprep.mubr.bf16.mxu1 %v12553_v1 }
 0x11c   :  { %v487_v13 = vpop.f32.mrf.mxu0  ;;  %v817_v52 = vpop.f32.mrf.mxu1 }
 0x11d   :  { %v8768_v25 = vadd.f32 %v817_v52, %v477_v62 }
 0x11e   :  { %v489_v21 = vpop.f32.mrf.mxu0  ;;  %v819_v7 = vpop.f32.mrf.mxu1 }
 0x11f   :  { %12718 = vst [vmem:[#allocation19_spill] sm:$0xff] %v8768_v25  ;;  %v8770_v54 = vadd.f32 %v819_v7, %v479_v22 }
 0x120   :  { %v491_v2 = vpop.f32.mrf.mxu0  ;;  %v821_v10 = vpop.f32.mrf.mxu1 }
 0x121   :  { %12719 = vst [vmem:[#allocation20_spill] sm:$0xff] %v8770_v54  ;;  %v8772_v36 = vadd.f32 %v821_v10, %v481_v9 }
 0x122   :  { %v495_v20 = vpop.f32.mrf.mxu0  ;;  %v825_v27 = vpop.f32.mrf.mxu1  ;;  %6837 = vmatmul.mubr.msk.bf16.gmra.mxu0 %vm259_vm1, %v8415_v31  ;;  %6875 = vmatmul.mubr.msk.bf16.gmra.mxu1 %vm259_vm1, %v8382_v28 }
 0x123   :  { %12720 = vst [vmem:[#allocation21_spill] sm:$0xff] %v8772_v36  ;;  %v8778_v16 = vadd.f32 %v825_v27, %v485_v18  ;;  %1155 = vmatprep.mubr.bf16.mxu0 %v12553_v1  ;;  %1650 = vmatprep.mubr.bf16.mxu1 %v12553_v1 }
 0x124   :  { %v497_v62 = vpop.f32.mrf.mxu0  ;;  %v827_v22 = vpop.f32.mrf.mxu1 }
 0x125   :  { %v8782_v26 = vadd.f32 %v827_v22, %v487_v13 }
 0x126   :  { %v499_v10 = vpop.f32.mrf.mxu0  ;;  %v829_v9 = vpop.f32.mrf.mxu1 }
 0x127   :  { %12721 = vst [vmem:[#allocation22_spill] sm:$0xff] %v8782_v26  ;;  %v8784_v52 = vadd.f32 %v829_v9, %v489_v21 }
 0x128   :  { %v501_v7 = vpop.f32.mrf.mxu0  ;;  %v831_v36 = vpop.f32.mrf.mxu1 }
 0x129   :  { %12722 = vst [vmem:[#allocation23_spill] sm:$0xff] %v8784_v52  ;;  %v8786_v54 = vadd.f32 %v831_v36, %v491_v2 }
 0x12a   :  { %v505_v25 = vpop.f32.mrf.mxu0  ;;  %v835_v28 = vpop.f32.mrf.mxu1  ;;  %6838 = vmatmul.mubr.msk.bf16.gmra.mxu0 %vm259_vm1, %v8426_v32  ;;  %6876 = vmatmul.mubr.msk.bf16.gmra.mxu1 %vm259_vm1, %v8393_v29 }
 0x12b   :  { %12723 = vst [vmem:[#allocation24_spill] sm:$0xff] %v8786_v54  ;;  %v8792_v18 = vadd.f32 %v835_v28, %v495_v20  ;;  %1165 = vmatprep.mubr.bf16.mxu0 %v12553_v1  ;;  %1660 = vmatprep.mubr.bf16.mxu1 %v12553_v1 }
 0x12c   :  { %v507_v13 = vpop.f32.mrf.mxu0  ;;  %v837_v21 = vpop.f32.mrf.mxu1 }
 0x12d   :  { %v8796_v27 = vadd.f32 %v837_v21, %v497_v62 }
 0x12e   :  { %v509_v36 = vpop.f32.mrf.mxu0  ;;  %v839_v2 = vpop.f32.mrf.mxu1 }
 0x12f   :  { %12724 = vst [vmem:[#allocation25_spill] sm:$0xff] %v8796_v27  ;;  %v8798_v22 = vadd.f32 %v839_v2, %v499_v10 }
 0x130   :  { %v511_v9 = vpop.f32.mrf.mxu0  ;;  %v841_v54 = vpop.f32.mrf.mxu1 }
 0x131   :  { %12725 = vst [vmem:[#allocation26_spill] sm:$0xff] %v8798_v22  ;;  %v8800_v52 = vadd.f32 %v841_v54, %v501_v7 }
 0x132   :  { %v515_v26 = vpop.f32.mrf.mxu0  ;;  %v845_v29 = vpop.f32.mrf.mxu1  ;;  %6839 = vmatmul.mubr.msk.bf16.gmra.mxu0 %vm259_vm1, %v8437_v33  ;;  %6877 = vmatmul.mubr.msk.bf16.gmra.mxu1 %vm259_vm1, %v8404_v30 }
 0x133   :  { %12726 = vst [vmem:[#allocation27_spill] sm:$0xff] %v8800_v52  ;;  %v8806_v20 = vadd.f32 %v845_v29, %v505_v25  ;;  %1175 = vmatprep.mubr.bf16.mxu0 %v12553_v1  ;;  %1670 = vmatprep.mubr.bf16.mxu1 %v12553_v1 }
 0x134   :  { %v517_v62 = vpop.f32.mrf.mxu0  ;;  %v847_v10 = vpop.f32.mrf.mxu1 }
 0x135   :  { %v8810_v28 = vadd.f32 %v847_v10, %v507_v13 }
 0x136   :  { %v519_v54 = vpop.f32.mrf.mxu0  ;;  %v849_v7 = vpop.f32.mrf.mxu1 }
 0x137   :  { %12727 = vst [vmem:[#allocation28_spill] sm:$0xff] %v8810_v28  ;;  %v8812_v21 = vadd.f32 %v849_v7, %v509_v36 }
 0x138   :  { %v521_v2 = vpop.f32.mrf.mxu0  ;;  %v851_v52 = vpop.f32.mrf.mxu1 }
 0x139   :  { %12728 = vst [vmem:[#allocation29_spill] sm:$0xff] %v8812_v21  ;;  %v8814_v22 = vadd.f32 %v851_v52, %v511_v9 }
 0x13a   :  { %v525_v27 = vpop.f32.mrf.mxu0  ;;  %v855_v30 = vpop.f32.mrf.mxu1  ;;  %6840 = vmatmul.mubr.msk.bf16.gmra.mxu0 %vm259_vm1, %v8448_v34  ;;  %6878 = vmatmul.mubr.msk.bf16.gmra.mxu1 %vm259_vm1, %v8415_v31 }
 0x13b   :  { %12729 = vst [vmem:[#allocation30_spill] sm:$0xff] %v8814_v22  ;;  %v8820_v25 = vadd.f32 %v855_v30, %v515_v26  ;;  %1185 = vmatprep.mubr.bf16.mxu0 %v12553_v1  ;;  %1680 = vmatprep.mubr.bf16.mxu1 %v12553_v1 }
 0x13c   :  { %v527_v13 = vpop.f32.mrf.mxu0  ;;  %v857_v36 = vpop.f32.mrf.mxu1 }
 0x13d   :  { %v8824_v29 = vadd.f32 %v857_v36, %v517_v62 }
 0x13e   :  { %v529_v52 = vpop.f32.mrf.mxu0  ;;  %v859_v9 = vpop.f32.mrf.mxu1 }
 0x13f   :  { %12730 = vst [vmem:[#allocation31_spill] sm:$0xff] %v8824_v29  ;;  %v8826_v10 = vadd.f32 %v859_v9, %v519_v54 }
 0x140   :  { %v531_v7 = vpop.f32.mrf.mxu0  ;;  %v861_v22 = vpop.f32.mrf.mxu1 }
 0x141   :  { %12731 = vst [vmem:[#allocation32_spill] sm:$0xff] %v8826_v10  ;;  %v8828_v21 = vadd.f32 %v861_v22, %v521_v2 }
 0x142   :  { %v535_v28 = vpop.f32.mrf.mxu0  ;;  %v865_v31 = vpop.f32.mrf.mxu1  ;;  %6841 = vmatmul.mubr.msk.bf16.gmra.mxu0 %vm259_vm1, %v8459_v35  ;;  %6879 = vmatmul.mubr.msk.bf16.gmra.mxu1 %vm259_vm1, %v8426_v32 }
 0x143   :  { %12732 = vst [vmem:[#allocation33_spill] sm:$0xff] %v8828_v21  ;;  %v8834_v26 = vadd.f32 %v865_v31, %v525_v27  ;;  %1195 = vmatprep.mubr.bf16.mxu0 %v12553_v1  ;;  %1690 = vmatprep.mubr.bf16.mxu1 %v12553_v1 }
 0x144   :  { %v537_v62 = vpop.f32.mrf.mxu0  ;;  %v867_v54 = vpop.f32.mrf.mxu1 }
 0x145   :  { %v8838_v30 = vadd.f32 %v867_v54, %v527_v13 }
 0x146   :  { %v539_v22 = vpop.f32.mrf.mxu0  ;;  %v869_v2 = vpop.f32.mrf.mxu1 }
 0x147   :  { %12733 = vst [vmem:[#allocation34_spill] sm:$0xff] %v8838_v30  ;;  %v8840_v36 = vadd.f32 %v869_v2, %v529_v52 }
 0x148   :  { %v541_v9 = vpop.f32.mrf.mxu0  ;;  %v871_v21 = vpop.f32.mrf.mxu1 }
 0x149   :  { %12734 = vst [vmem:[#allocation35_spill] sm:$0xff] %v8840_v36  ;;  %v8842_v10 = vadd.f32 %v871_v21, %v531_v7 }
 0x14a   :  { %v545_v29 = vpop.f32.mrf.mxu0  ;;  %v875_v32 = vpop.f32.mrf.mxu1  ;;  %6842 = vmatmul.mubr.msk.bf16.gmra.mxu0 %vm259_vm1, %v8478_v38  ;;  %6880 = vmatmul.mubr.msk.bf16.gmra.mxu1 %vm259_vm1, %v8437_v33 }
 0x14b   :  { %12735 = vst [vmem:[#allocation36_spill] sm:$0xff] %v8842_v10  ;;  %v8848_v27 = vadd.f32 %v875_v32, %v535_v28  ;;  %1205 = vmatprep.mubr.bf16.mxu0 %v12553_v1  ;;  %1700 = vmatprep.mubr.bf16.mxu1 %v12553_v1 }
 0x14c   :  { %v547_v13 = vpop.f32.mrf.mxu0  ;;  %v877_v52 = vpop.f32.mrf.mxu1 }
 0x14d   :  { %v8852_v31 = vadd.f32 %v877_v52, %v537_v62 }
 0x14e   :  { %v549_v21 = vpop.f32.mrf.mxu0  ;;  %v879_v7 = vpop.f32.mrf.mxu1 }
 0x14f   :  { %12736 = vst [vmem:[#allocation37_spill] sm:$0xff] %v8852_v31  ;;  %v8854_v54 = vadd.f32 %v879_v7, %v539_v22 }
 0x150   :  { %v551_v2 = vpop.f32.mrf.mxu0  ;;  %v881_v10 = vpop.f32.mrf.mxu1 }
 0x151   :  { %12737 = vst [vmem:[#allocation38_spill] sm:$0xff] %v8854_v54  ;;  %v8856_v36 = vadd.f32 %v881_v10, %v541_v9 }
 0x152   :  { %v555_v30 = vpop.f32.mrf.mxu0  ;;  %v885_v33 = vpop.f32.mrf.mxu1  ;;  %6843 = vmatmul.mubr.msk.bf16.gmra.mxu0 %vm259_vm1, %v8489_v39  ;;  %6881 = vmatmul.mubr.msk.bf16.gmra.mxu1 %vm259_vm1, %v8448_v34 }
 0x153   :  { %12738 = vst [vmem:[#allocation39_spill] sm:$0xff] %v8856_v36  ;;  %v8862_v28 = vadd.f32 %v885_v33, %v545_v29  ;;  %1215 = vmatprep.mubr.bf16.mxu0 %v12553_v1  ;;  %1710 = vmatprep.mubr.bf16.mxu1 %v12553_v1 }
 0x154   :  { %v557_v62 = vpop.f32.mrf.mxu0  ;;  %v887_v22 = vpop.f32.mrf.mxu1 }
 0x155   :  { %v8866_v32 = vadd.f32 %v887_v22, %v547_v13 }
 0x156   :  { %v559_v10 = vpop.f32.mrf.mxu0  ;;  %v889_v9 = vpop.f32.mrf.mxu1 }
 0x157   :  { %12739 = vst [vmem:[#allocation40_spill] sm:$0xff] %v8866_v32  ;;  %v8868_v52 = vadd.f32 %v889_v9, %v549_v21 }
 0x158   :  { %v561_v7 = vpop.f32.mrf.mxu0  ;;  %v891_v36 = vpop.f32.mrf.mxu1 }
 0x159   :  { %12740 = vst [vmem:[#allocation41_spill] sm:$0xff] %v8868_v52  ;;  %v8870_v54 = vadd.f32 %v891_v36, %v551_v2 }
 0x15a   :  { %v565_v31 = vpop.f32.mrf.mxu0  ;;  %v895_v34 = vpop.f32.mrf.mxu1  ;;  %6844 = vmatmul.mubr.msk.bf16.gmra.mxu0 %vm259_vm1, %v8500_v40  ;;  %6882 = vmatmul.mubr.msk.bf16.gmra.mxu1 %vm259_vm1, %v8459_v35 }
 0x15b   :  { %12741 = vst [vmem:[#allocation42_spill] sm:$0xff] %v8870_v54  ;;  %v8876_v29 = vadd.f32 %v895_v34, %v555_v30  ;;  %1225 = vmatprep.mubr.bf16.mxu0 %v12553_v1  ;;  %1720 = vmatprep.mubr.bf16.mxu1 %v12553_v1 }
 0x15c   :  { %v567_v13 = vpop.f32.mrf.mxu0  ;;  %v897_v21 = vpop.f32.mrf.mxu1 }
 0x15d   :  { %v8880_v33 = vadd.f32 %v897_v21, %v557_v62 }
 0x15e   :  { %v569_v36 = vpop.f32.mrf.mxu0  ;;  %v899_v2 = vpop.f32.mrf.mxu1 }
 0x15f   :  { %12742 = vst [vmem:[#allocation43_spill] sm:$0xff] %v8880_v33  ;;  %v8882_v22 = vadd.f32 %v899_v2, %v559_v10 }
 0x160   :  { %v571_v9 = vpop.f32.mrf.mxu0  ;;  %v901_v54 = vpop.f32.mrf.mxu1 }
 0x161   :  { %12743 = vst [vmem:[#allocation44_spill] sm:$0xff] %v8882_v22  ;;  %v8884_v52 = vadd.f32 %v901_v54, %v561_v7 }
 0x162   :  { %v575_v32 = vpop.f32.mrf.mxu0  ;;  %v905_v35 = vpop.f32.mrf.mxu1  ;;  %6845 = vmatmul.mubr.msk.bf16.gmra.mxu0 %vm259_vm1, %v8511_v41  ;;  %6883 = vmatmul.mubr.msk.bf16.gmra.mxu1 %vm259_vm1, %v8478_v38 }
 0x163   :  { %12744 = vst [vmem:[#allocation45_spill] sm:$0xff] %v8884_v52  ;;  %v8890_v30 = vadd.f32 %v905_v35, %v565_v31  ;;  %1235 = vmatprep.mubr.bf16.mxu0 %v12553_v1  ;;  %1730 = vmatprep.mubr.bf16.mxu1 %v12553_v1 }
 0x164   :  { %v577_v62 = vpop.f32.mrf.mxu0  ;;  %v907_v10 = vpop.f32.mrf.mxu1 }
 0x165   :  { %v8894_v34 = vadd.f32 %v907_v10, %v567_v13 }
 0x166   :  { %v579_v54 = vpop.f32.mrf.mxu0  ;;  %v909_v7 = vpop.f32.mrf.mxu1 }
 0x167   :  { %12745 = vst [vmem:[#allocation46_spill] sm:$0xff] %v8894_v34  ;;  %v8896_v21 = vadd.f32 %v909_v7, %v569_v36 }
 0x168   :  { %v581_v2 = vpop.f32.mrf.mxu0  ;;  %v911_v52 = vpop.f32.mrf.mxu1 }
 0x169   :  { %12746 = vst [vmem:[#allocation47_spill] sm:$0xff] %v8896_v21  ;;  %v8898_v22 = vadd.f32 %v911_v52, %v571_v9 }
 0x16a   :  { %v585_v33 = vpop.f32.mrf.mxu0  ;;  %v915_v38 = vpop.f32.mrf.mxu1  ;;  %6846 = vmatmul.mubr.msk.bf16.gmra.mxu0 %vm259_vm1, %v8522_v42  ;;  %6884 = vmatmul.mubr.msk.bf16.gmra.mxu1 %vm259_vm1, %v8489_v39 }
 0x16b   :  { %12747 = vst [vmem:[#allocation48_spill] sm:$0xff] %v8898_v22  ;;  %v8904_v31 = vadd.f32 %v915_v38, %v575_v32  ;;  %1245 = vmatprep.mubr.bf16.mxu0 %v12553_v1  ;;  %1740 = vmatprep.mubr.bf16.mxu1 %v12553_v1 }
 0x16c   :  { %v587_v13 = vpop.f32.mrf.mxu0  ;;  %v917_v36 = vpop.f32.mrf.mxu1 }
 0x16d   :  { %v8908_v35 = vadd.f32 %v917_v36, %v577_v62 }
 0x16e   :  { %v589_v52 = vpop.f32.mrf.mxu0  ;;  %v919_v9 = vpop.f32.mrf.mxu1 }
 0x16f   :  { %12748 = vst [vmem:[#allocation49_spill] sm:$0xff] %v8908_v35  ;;  %v8910_v10 = vadd.f32 %v919_v9, %v579_v54 }
 0x170   :  { %v591_v7 = vpop.f32.mrf.mxu0  ;;  %v921_v22 = vpop.f32.mrf.mxu1 }
 0x171   :  { %12749 = vst [vmem:[#allocation50_spill] sm:$0xff] %v8910_v10  ;;  %v8912_v21 = vadd.f32 %v921_v22, %v581_v2 }
 0x172   :  { %v595_v34 = vpop.f32.mrf.mxu0  ;;  %v925_v39 = vpop.f32.mrf.mxu1  ;;  %6847 = vmatmul.mubr.msk.bf16.gmra.mxu0 %vm259_vm1, %v8533_v43  ;;  %6885 = vmatmul.mubr.msk.bf16.gmra.mxu1 %vm259_vm1, %v8500_v40 }
 0x173   :  { %12750 = vst [vmem:[#allocation51_spill] sm:$0xff] %v8912_v21  ;;  %v8918_v32 = vadd.f32 %v925_v39, %v585_v33  ;;  %1255 = vmatprep.mubr.bf16.mxu0 %v12553_v1  ;;  %1750 = vmatprep.mubr.bf16.mxu1 %v12553_v1 }
 0x174   :  { %v597_v62 = vpop.f32.mrf.mxu0  ;;  %v927_v54 = vpop.f32.mrf.mxu1 }
 0x175   :  { %v8922_v38 = vadd.f32 %v927_v54, %v587_v13 }
 0x176   :  { %v599_v22 = vpop.f32.mrf.mxu0  ;;  %v929_v2 = vpop.f32.mrf.mxu1 }
 0x177   :  { %12751 = vst [vmem:[#allocation52_spill] sm:$0xff] %v8922_v38  ;;  %v8924_v36 = vadd.f32 %v929_v2, %v589_v52 }
 0x178   :  { %v601_v9 = vpop.f32.mrf.mxu0  ;;  %v931_v21 = vpop.f32.mrf.mxu1 }
 0x179   :  { %12752 = vst [vmem:[#allocation53_spill] sm:$0xff] %v8924_v36  ;;  %v8926_v10 = vadd.f32 %v931_v21, %v591_v7 }
 0x17a   :  { %v605_v35 = vpop.f32.mrf.mxu0  ;;  %v935_v40 = vpop.f32.mrf.mxu1  ;;  %6848 = vmatmul.mubr.msk.bf16.gmra.mxu0 %vm259_vm1, %v8544_v44  ;;  %6886 = vmatmul.mubr.msk.bf16.gmra.mxu1 %vm259_vm1, %v8511_v41 }
 0x17b   :  { %12753 = vst [vmem:[#allocation54_spill] sm:$0xff] %v8926_v10  ;;  %v8932_v33 = vadd.f32 %v935_v40, %v595_v34  ;;  %1265 = vmatprep.mubr.bf16.mxu0 %v12553_v1  ;;  %1760 = vmatprep.mubr.bf16.mxu1 %v12553_v1 }
 0x17c   :  { %v607_v13 = vpop.f32.mrf.mxu0  ;;  %v937_v52 = vpop.f32.mrf.mxu1 }
 0x17d   :  { %v8936_v39 = vadd.f32 %v937_v52, %v597_v62 }
 0x17e   :  { %v609_v21 = vpop.f32.mrf.mxu0  ;;  %v939_v7 = vpop.f32.mrf.mxu1 }
 0x17f   :  { %12754 = vst [vmem:[#allocation55_spill] sm:$0xff] %v8936_v39  ;;  %v8938_v54 = vadd.f32 %v939_v7, %v599_v22 }
 0x180   :  { %v611_v2 = vpop.f32.mrf.mxu0  ;;  %v941_v10 = vpop.f32.mrf.mxu1 }
 0x181   :  { %12755 = vst [vmem:[#allocation56_spill] sm:$0xff] %v8938_v54  ;;  %v8940_v36 = vadd.f32 %v941_v10, %v601_v9 }
 0x182   :  { %v615_v38 = vpop.f32.mrf.mxu0  ;;  %v945_v41 = vpop.f32.mrf.mxu1  ;;  %6849 = vmatmul.mubr.msk.bf16.gmra.mxu0 %vm259_vm1, %v8555_v45  ;;  %6887 = vmatmul.mubr.msk.bf16.gmra.mxu1 %vm259_vm1, %v8522_v42 }
 0x183   :  { %12756 = vst [vmem:[#allocation57_spill] sm:$0xff] %v8940_v36  ;;  %v8946_v34 = vadd.f32 %v945_v41, %v605_v35  ;;  %1275 = vmatprep.mubr.bf16.mxu0 %v12553_v1  ;;  %1770 = vmatprep.mubr.bf16.mxu1 %v12553_v1 }
 0x184   :  { %v617_v62 = vpop.f32.mrf.mxu0  ;;  %v947_v22 = vpop.f32.mrf.mxu1 }
 0x185   :  { %v8950_v40 = vadd.f32 %v947_v22, %v607_v13 }
 0x186   :  { %v619_v10 = vpop.f32.mrf.mxu0  ;;  %v949_v9 = vpop.f32.mrf.mxu1 }
 0x187   :  { %12757 = vst [vmem:[#allocation58_spill] sm:$0xff] %v8950_v40  ;;  %v8952_v52 = vadd.f32 %v949_v9, %v609_v21 }
 0x188   :  { %v621_v7 = vpop.f32.mrf.mxu0  ;;  %v951_v36 = vpop.f32.mrf.mxu1 }
 0x189   :  { %12758 = vst [vmem:[#allocation59_spill] sm:$0xff] %v8952_v52  ;;  %v8954_v54 = vadd.f32 %v951_v36, %v611_v2 }
 0x18a   :  { %v625_v39 = vpop.f32.mrf.mxu0  ;;  %v955_v42 = vpop.f32.mrf.mxu1  ;;  %6850 = vmatmul.mubr.msk.bf16.gmra.mxu0 %vm259_vm1, %v8566_v46  ;;  %6888 = vmatmul.mubr.msk.bf16.gmra.mxu1 %vm259_vm1, %v8533_v43 }
 0x18b   :  { %12759 = vst [vmem:[#allocation60_spill] sm:$0xff] %v8954_v54  ;;  %v8960_v35 = vadd.f32 %v955_v42, %v615_v38  ;;  %1285 = vmatprep.mubr.bf16.mxu0 %v12553_v1  ;;  %1780 = vmatprep.mubr.bf16.mxu1 %v12553_v1 }
 0x18c   :  { %v627_v13 = vpop.f32.mrf.mxu0  ;;  %v957_v21 = vpop.f32.mrf.mxu1 }
 0x18d   :  { %v8964_v41 = vadd.f32 %v957_v21, %v617_v62 }
 0x18e   :  { %v629_v36 = vpop.f32.mrf.mxu0  ;;  %v959_v2 = vpop.f32.mrf.mxu1 }
 0x18f   :  { %12760 = vst [vmem:[#allocation61_spill] sm:$0xff] %v8964_v41  ;;  %v8966_v22 = vadd.f32 %v959_v2, %v619_v10 }
 0x190   :  { %v631_v9 = vpop.f32.mrf.mxu0  ;;  %v961_v54 = vpop.f32.mrf.mxu1 }
 0x191   :  { %12761 = vst [vmem:[#allocation62_spill] sm:$0xff] %v8966_v22  ;;  %v8968_v52 = vadd.f32 %v961_v54, %v621_v7 }
 0x192   :  { %v635_v40 = vpop.f32.mrf.mxu0  ;;  %v965_v43 = vpop.f32.mrf.mxu1  ;;  %6851 = vmatmul.mubr.msk.bf16.gmra.mxu0 %vm259_vm1, %v8577_v47  ;;  %6889 = vmatmul.mubr.msk.bf16.gmra.mxu1 %vm259_vm1, %v8544_v44 }
 0x193   :  { %12762 = vst [vmem:[#allocation63_spill] sm:$0xff] %v8968_v52  ;;  %v8974_v38 = vadd.f32 %v965_v43, %v625_v39  ;;  %1295 = vmatprep.mubr.bf16.mxu0 %v12553_v1  ;;  %1790 = vmatprep.mubr.bf16.mxu1 %v12553_v1 }
 0x194   :  { %v637_v62 = vpop.f32.mrf.mxu0  ;;  %v967_v10 = vpop.f32.mrf.mxu1 }
 0x195   :  { %v8978_v42 = vadd.f32 %v967_v10, %v627_v13 }
 0x196   :  { %v639_v54 = vpop.f32.mrf.mxu0  ;;  %v969_v7 = vpop.f32.mrf.mxu1 }
 0x197   :  { %12763 = vst [vmem:[#allocation64_spill] sm:$0xff] %v8978_v42  ;;  %v8980_v21 = vadd.f32 %v969_v7, %v629_v36 }
 0x198   :  { %v641_v2 = vpop.f32.mrf.mxu0  ;;  %v971_v52 = vpop.f32.mrf.mxu1 }
 0x199   :  { %12764 = vst [vmem:[#allocation65_spill] sm:$0xff] %v8980_v21  ;;  %v8982_v22 = vadd.f32 %v971_v52, %v631_v9 }
 0x19a   :  { %v645_v41 = vpop.f32.mrf.mxu0  ;;  %v975_v44 = vpop.f32.mrf.mxu1  ;;  %6852 = vmatmul.mubr.msk.bf16.gmra.mxu0 %vm259_vm1, %v8588_v48  ;;  %6890 = vmatmul.mubr.msk.bf16.gmra.mxu1 %vm259_vm1, %v8555_v45 }
 0x19b   :  { %12765 = vst [vmem:[#allocation66_spill] sm:$0xff] %v8982_v22  ;;  %v8988_v39 = vadd.f32 %v975_v44, %v635_v40  ;;  %1305 = vmatprep.mubr.bf16.mxu0 %v12553_v1  ;;  %1800 = vmatprep.mubr.bf16.mxu1 %v12553_v1 }
 0x19c   :  { %v647_v13 = vpop.f32.mrf.mxu0  ;;  %v977_v36 = vpop.f32.mrf.mxu1 }
 0x19d   :  { %v8992_v43 = vadd.f32 %v977_v36, %v637_v62 }
 0x19e   :  { %v649_v52 = vpop.f32.mrf.mxu0  ;;  %v979_v9 = vpop.f32.mrf.mxu1 }
 0x19f   :  { %v8994_v10 = vadd.f32 %v979_v9, %v639_v54 }
 0x1a0   :  { %v651_v7 = vpop.f32.mrf.mxu0  ;;  %v981_v22 = vpop.f32.mrf.mxu1 }
 0x1a1   :  { %v8996_v21 = vadd.f32 %v981_v22, %v641_v2 }
 0x1a2   :  { %v985_v42 = vpop.f32.mrf.mxu1  ;;  %v1067_v45 = vpop.f32.mrf.mxu0  ;;  %6853 = vmatmul.mubr.msk.bf16.gmra.mxu0 %vm259_vm1, %v8605_v55  ;;  %6891 = vmatmul.mubr.msk.bf16.gmra.mxu1 %vm259_vm1, %v8566_v46 }
 0x1a3   :  { %12766 = vst [vmem:[#allocation67_spill] sm:$0xff] %v8996_v21  ;;  %v9002_v40 = vadd.f32 %v985_v42, %v645_v41  ;;  %v9005_v62 = vadd.f32 %v1067_v45, %v8613_v60  ;;  %1315 = vmatprep.mubr.bf16.mxu0 %v12553_v1  ;;  %1810 = vmatprep.mubr.bf16.mxu1 %v12553_v1 }
 0x1a4   :  { %v987_v54 = vpop.f32.mrf.mxu1  ;;  %v1069_v22 = vpop.f32.mrf.mxu0 }
 0x1a5   :  { %v9009_v2 = vadd.f32 %v987_v54, %v647_v13  ;;  %v9012_v44 = vadd.f32 %v1069_v22, %v8617_v63 }
 0x1a6   :  { %v989_v36 = vpop.f32.mrf.mxu1  ;;  %v1071_v9 = vpop.f32.mrf.mxu0 }
 0x1a7   :  { %v9014_v21 = vadd.f32 %v989_v36, %v649_v52  ;;  %v9017_v46 = vadd.f32 %v1071_v9, %v8624_v4  ;;  %v12769_v4 = vmov 0  }
 0x1a8   :  { %v991_v60 = vpop.f32.mrf.mxu1  ;;  %v1073_v41 = vpop.f32.mrf.mxu0 }
 0x1a9   :  { %12767 = vst [vmem:[#allocation68_spill] sm:$0xff] %v9017_v46  ;;  %v9019_v42 = vadd.f32 %v991_v60, %v651_v7  ;;  %v9022_v45 = vadd.f32 %v1073_v41, %v8626_v8 }
 0x1aa   :  { %v9024_v1 = vpop.f32.mrf.mxu1  ;;  %v1077_v13 = vpop.f32.mrf.mxu0  ;;  %6854 = vmatmul.mubr.msk.bf16.gmra.mxu0 %vm259_vm1, %v8622_v3  ;;  %6892 = vmatmul.mubr.msk.bf16.gmra.mxu1 %vm259_vm1, %v8577_v47 }
 0x1ab   :  { %12768 = vst [vmem:[#allocation69_spill] sm:$0xff] %v9022_v45  ;;  %v9031_v63 = vadd.f32 %v1077_v13, %v8632_v11  ;;  %1325 = vmatprep.mubr.bf16.mxu0 %v12769_v4  ;;  %1820 = vmatprep.mubr.bf16.mxu1 %v12769_v4  ;;  %v9059_v13 = vld [vmem:[%s12543_s0 + $0xd8] sm:$0xff]  }
 0x1ac   :  { %v9035_v52 = vpop.f32.mrf.mxu1  ;;  %v1079_v8 = vpop.f32.mrf.mxu0 }
 0x1ad   :  { %v9040_v54 = vadd.f32 %v1079_v8, %v8636_v14 }
 0x1ae   :  { %v9042_v3 = vpop.f32.mrf.mxu1  ;;  %v1081_v22 = vpop.f32.mrf.mxu0 }
 0x1af   :  { %12770 = vst [vmem:[#allocation70_spill] sm:$0xff] %v9040_v54  ;;  %v9047_v11 = vadd.f32 %v1081_v22, %v8641_v19 }
 0x1b0   :  { %v9049_v36 = vpop.f32.mrf.mxu1  ;;  %v1083_v9 = vpop.f32.mrf.mxu0 }
 0x1b1   :  { %12771 = vst [vmem:[#allocation71_spill] sm:$0xff] %v9047_v11  ;;  %v9054_v41 = vadd.f32 %v1083_v9, %v8643_v23 }
 0x1b2   :  { %v1087_v14 = vpop.f32.mrf.mxu0  ;;  %6855 = vmatmul.mubr.msk.bf16.gmra.mxu0 %vm259_vm1, %v9059_v13  ;;  %v9063_v19 = vpop.f32.mrf.mxu1  ;;  %6893 = vmatmul.mubr.msk.bf16.gmra.mxu1 %vm259_vm1, %v8588_v48 }
 0x1b3   :  { %12772 = vst [vmem:[#allocation72_spill] sm:$0xff] %v9054_v41  ;;  %v9070_v23 = vadd.f32 %v1087_v14, %v8653_v51  ;;  %1335 = vmatprep.mubr.bf16.mxu0 %v12769_v4  ;;  %1830 = vmatprep.mubr.bf16.mxu1 %v12769_v4  ;;  %v7780_v14 = vld [vmem:[%s12544_s3 + $0x154] ss:$8 sps:$4 sm:$0xff]  }
 0x1b4   :  { %v1089_v22 = vpop.f32.mrf.mxu0  ;;  %v9074_v9 = vpop.f32.mrf.mxu1  ;;  %3156 = vmatprep.subr.bf16.mxu0 %v7780_v14 }
 0x1b5   :  { %12773 = vst [vmem:[#allocation73_spill] sm:$0xff] %v9070_v23  ;;  %v9077_v60 = vadd.f32 %v1089_v22, %v8660_v59  ;;  %v8166_v23 = vld [vmem:[%s12543_s0 + $0xd0] sm:$0xff]  }
 0x1b6   :  { %v1091_v47 = vpop.f32.mrf.mxu0  ;;  %v9079_v7 = vpop.f32.mrf.mxu1 }
 0x1b7   :  { %12774 = vst [vmem:[#allocation74_spill] sm:$0xff] %v9077_v60  ;;  %v9082_v48 = vadd.f32 %v1091_v47, %v8662_v0  ;;  %v7783_v0 = vld [vmem:[%s12544_s3 + $0x74] ss:$8 sps:$4 sm:$0xff]  }
 0x1b8   :  { %v1093_v8 = vpop.f32.mrf.mxu0  ;;  %v9084_v41 = vpop.f32.mrf.mxu1  ;;  %3471 = vmatprep.subr.bf16.mxu1 %v7783_v0 }
 0x1b9   :  { %12775 = vst [vmem:[#allocation75_spill] sm:$0xff] %v9082_v48  ;;  %v9087_v51 = vadd.f32 %v1093_v8, %v8664_v6 }
 0x1ba   :  { %v1097_v45 = vpop.f32.mrf.mxu0  ;;  %1336 = vmatmul.mubr.bf16.gmra.mxu0 %v12769_v4  ;;  %v9093_v59 = vpop.f32.mrf.mxu1  ;;  %6894 = vmatmul.mubr.msk.bf16.gmra.mxu1 %vm259_vm1, %v8605_v55 }
 0x1bb   :  { %12776 = vst [vmem:[#allocation76_spill] sm:$0xff] %v9087_v51  ;;  %v9101_v47 = vadd.f32 %v1097_v45, %v8670_v12  ;;  %1840 = vmatprep.mubr.bf16.mxu1 %v12769_v4  ;;  %1917 = vmatprep.mubr.bf16.mxu0 %v12769_v4  ;;  %v7778_v12 = vld [vmem:[%s12544_s3 + $0x150] ss:$8 sps:$4 sm:$0xff]  }
 0x1bc   :  { %v1099_v6 = vpop.f32.mrf.mxu0  ;;  %v9105_v8 = vpop.f32.mrf.mxu1 }
 0x1bd   :  { %12777 = vst [vmem:[#allocation77_spill] sm:$0xff] %v9101_v47  ;;  %v9110_v55 = vadd.f32 %v1099_v6, %v8677_v17 }
 0x1be   :  { %v1101_v11 = vpop.f32.mrf.mxu0  ;;  %v9112_v46 = vpop.f32.mrf.mxu1 }
 0x1bf   :  { %12778 = vst [vmem:[#allocation78_spill] sm:$0xff] %v9110_v55  ;;  %v9120_v54 = vadd.f32 %v1101_v11, %v8679_v24 }
 0x1c0   :  { %v1103_v14 = vpop.f32.mrf.mxu0  ;;  %v9122_v0 = vpop.f32.mrf.mxu1 }
 0x1c1   :  { %12779 = vst [vmem:[#allocation79_spill] sm:$0xff] %v9120_v54  ;;  %v9127_v6 = vadd.f32 %v1103_v14, %v8685_v58 }
 0x1c2   :  { %v1107_v22 = vpop.f32.mrf.mxu0  ;;  %v9129_v47 = vpop.f32.mrf.mxu1  ;;  %6895 = vmatmul.mubr.msk.bf16.gmra.mxu1 %vm259_vm1, %v8166_v23  ;;  %1918 = vmatmul.mubr.bf16.vlgmr.msra.gmra.mxu0 %v12769_v4 }
 0x1c3   :  { %12780 = vst [vmem:[#allocation80_spill] sm:$0xff] %v9127_v6  ;;  %v9139_v11 = vadd.f32 %v1107_v22, %v8691_v53  ;;  %1850 = vmatprep.mubr.bf16.mxu1 %v12769_v4  ;;  %1927 = vmatprep.mubr.bf16.mxu0 %v12769_v4  ;;  %v7784_v53 = vld [vmem:[%s12544_s3 + $0x140] ss:$8 sps:$4 sm:$0xff]   ;;  %v7786_v22 = vld [vmem:[%s12544_s3 + $0x144] ss:$8 sps:$4 sm:$0xff]  }
 0x1c4   :  { %v1109_v58 = vpop.f32.mrf.mxu0  ;;  %v9143_v14 = vpop.f32.mrf.mxu1  ;;  %3157 = vmatpush1.bf16.msra.mxu0 %v7778_v12 }
 0x1c5   :  { %12781 = vst [vmem:[#allocation81_spill] sm:$0xff] %v9139_v11  ;;  %v9146_v17 = vadd.f32 %v1109_v58, %v8698_v15  ;;  %3158 = vmatprep.subr.bf16.mxu0 %v7786_v22  ;;  %v12787_v22 = vld [vmem:[#allocation7_spill] sm:$0xff] }
 0x1c6   :  { %v1111_v23 = vpop.f32.mrf.mxu0  ;;  %v9148_v45 = vpop.f32.mrf.mxu1 }
 0x1c7   :  { %12782 = vst [vmem:[#allocation82_spill] sm:$0xff] %v9146_v17  ;;  %v9151_v54 = vadd.f32 %v1111_v23, %v8700_v49  ;;  %v8167_v49 = vld [vmem:[%s12543_s0] sm:$0xff]   ;;  %v12801_v17 = vld [vmem:[#allocation11_spill] sm:$0xff] }
 0x1c8   :  { %v1113_v24 = vpop.f32.mrf.mxu0  ;;  %v9159_v6 = vpop.f32.mrf.mxu1  ;;  %3159 = vmatpush1.bf16.msra.mxu0 %v7784_v53  ;;  %v7789_v53 = vld [vmem:[%s12544_s3 + $0x64] ss:$8 sps:$4 sm:$0xff]  }
 0x1c9   :  { %12783 = vst [vmem:[#allocation83_spill] sm:$0xff] %v9151_v54  ;;  %12784 = vst [vmem:[#allocation84_spill] sm:$0xff] %v9159_v6  ;;  %v9162_v15 = vadd.f32 %v1113_v24, %v8702_v37 }
 0x1ca   :  { %v1117_v12 = vpop.f32.mrf.mxu0  ;;  %v9164_v58 = vpop.f32.mrf.mxu1  ;;  %6896 = vmatmul.mubr.msk.bf16.gmra.mxu1 %vm259_vm1, %v9059_v13  ;;  %6902 = vmatmul.mubr.msk.bf16.gmra.mxu0 %vm259_vm1, %v8167_v49  ;;  %v12790_v49 = vld [vmem:[#allocation8_spill] sm:$0xff] }
 0x1cb   :  { %12785 = vst [vmem:[#allocation85_spill] sm:$0xff] %v9162_v15  ;;  %v9173_v23 = vadd.f32 %v1117_v12, %v8708_v56  ;;  %1937 = vmatprep.mubr.bf16.mxu0 %v12769_v4  ;;  %2259 = vmatprep.mubr.bf16.mxu1 %v12769_v4  ;;  %v7781_v56 = vld [vmem:[%s12544_s3 + $0x70] ss:$8 sps:$4 sm:$0xff]  }
 0x1cc   :  { %v1119_v37 = vpop.f32.mrf.mxu0  ;;  %v9177_v24 = vpop.f32.mrf.mxu1 }
 0x1cd   :  { %12786 = vst [vmem:[#allocation86_spill] sm:$0xff] %v9173_v23  ;;  %v9182_v51 = vadd.f32 %v1119_v37, %v12787_v22  ;;  %v12793_v23 = vld [vmem:[#allocation9_spill] sm:$0xff] }
 0x1ce   :  { %v1121_v48 = vpop.f32.mrf.mxu0  ;;  %v9184_v55 = vpop.f32.mrf.mxu1 }
 0x1cf   :  { %12788 = vst [vmem:[#allocation7_spill] sm:$0xff] %v9182_v51  ;;  %12789 = vst [vmem:[#allocation87_spill] sm:$0xff] %v9184_v55  ;;  %v9192_v60 = vadd.f32 %v1121_v48, %v12790_v49  ;;  %v8168_v48 = vld [vmem:[%s12543_s0 + $0x8] sm:$0xff]  }
 0x1d0   :  { %v1123_v13 = vpop.f32.mrf.mxu0  ;;  %v9197_v37 = vpop.f32.mrf.mxu1  ;;  %v7787_v49 = vld [vmem:[%s12544_s3 + $0x60] ss:$8 sps:$4 sm:$0xff]  }
 0x1d1   :  { %12791 = vst [vmem:[#allocation8_spill] sm:$0xff] %v9192_v60  ;;  %12792 = vst [vmem:[#allocation88_spill] sm:$0xff] %v9197_v37  ;;  %v9202_v11 = vadd.f32 %v1123_v13, %v12793_v23  ;;  %v12798_v60 = vld [vmem:[#allocation10_spill] sm:$0xff] }
 0x1d2   :  { %v1127_v6 = vpop.f32.mrf.mxu0  ;;  %v9204_v55 = vpop.f32.mrf.mxu1  ;;  %6903 = vmatmul.mubr.msk.bf16.gmra.mxu0 %vm259_vm1, %v8168_v48  ;;  %6938 = vmatmul.mubr.msk.bf16.vlgmr.msra.gmra.mxu1 %vm259_vm1, %v8168_v48 }
 0x1d3   :  { %12794 = vst [vmem:[#allocation9_spill] sm:$0xff] %v9202_v11  ;;  %12795 = vst [vmem:[#allocation89_spill] sm:$0xff] %v9204_v55  ;;  %v9217_v23 = vadd.f32 %v1127_v6, %v8722_v57  ;;  %1947 = vmatprep.mubr.bf16.mxu0 %v12769_v4  ;;  %2269 = vmatprep.mubr.bf16.mxu1 %v12769_v4  ;;  %v7790_v57 = vld [vmem:[%s12544_s3 + $0x130] ss:$8 sps:$4 sm:$0xff]   ;;  %v7792_v6 = vld [vmem:[%s12544_s3 + $0x134] ss:$8 sps:$4 sm:$0xff]  }
 0x1d4   :  { %v1129_v13 = vpop.f32.mrf.mxu0  ;;  %v9221_v12 = vpop.f32.mrf.mxu1  ;;  %3472 = vmatpush1.bf16.msra.mxu1 %v7781_v56  ;;  %3160 = vmatprep.subr.bf16.mxu0 %v7792_v6 }
 0x1d5   :  { %12796 = vst [vmem:[#allocation90_spill] sm:$0xff] %v9217_v23  ;;  %12797 = vst [vmem:[#allocation91_spill] sm:$0xff] %v9221_v12  ;;  %v9224_v48 = vadd.f32 %v1129_v13, %v12798_v60  ;;  %3473 = vmatprep.subr.bf16.mxu1 %v7789_v53  ;;  %v12804_v60 = vld [vmem:[#allocation12_spill] sm:$0xff]  ;;  %3161 = vmatpush1.bf16.msra.mxu0 %v7790_v57  ;;  %v12829_v23 = vld [vmem:[#allocation19_spill] sm:$0xff] }
 0x1d6   :  { %v1131_v54 = vpop.f32.mrf.mxu0  ;;  %v9226_v51 = vpop.f32.mrf.mxu1  ;;  %v12818_v57 = vld [vmem:[#allocation16_spill] sm:$0xff] }
 0x1d7   :  { %12799 = vst [vmem:[#allocation10_spill] sm:$0xff] %v9224_v48  ;;  %12800 = vst [vmem:[#allocation92_spill] sm:$0xff] %v9226_v51  ;;  %v9229_v22 = vadd.f32 %v1131_v54, %v12801_v17  ;;  %v7793_v54 = vld [vmem:[%s12544_s3 + $0x50] ss:$8 sps:$4 sm:$0xff]   ;;  %v7795_v17 = vld [vmem:[%s12544_s3 + $0x54] ss:$8 sps:$4 sm:$0xff]  }
 0x1d8   :  { %v1133_v11 = vpop.f32.mrf.mxu0  ;;  %v9237_v56 = vpop.f32.mrf.mxu1  ;;  %3474 = vmatpush1.bf16.msra.mxu1 %v7787_v49  ;;  %v12809_v51 = vld [vmem:[#allocation13_spill] sm:$0xff] }
 0x1d9   :  { %12802 = vst [vmem:[#allocation11_spill] sm:$0xff] %v9229_v22  ;;  %12803 = vst [vmem:[#allocation93_spill] sm:$0xff] %v9237_v56  ;;  %v9240_v53 = vadd.f32 %v1133_v11, %v12804_v60  ;;  %v8169_v56 = vld [vmem:[%s12543_s0 + $0x10] sm:$0xff]   ;;  %3475 = vmatprep.subr.bf16.mxu1 %v7795_v17 }
 0x1da   :  { %v1137_v13 = vpop.f32.mrf.mxu0  ;;  %v9248_v15 = vpop.f32.mrf.mxu1  ;;  %6904 = vmatmul.mubr.msk.bf16.gmra.mxu0 %vm259_vm1, %v8169_v56  ;;  %6939 = vmatmul.mubr.msk.bf16.gmra.mxu1 %vm259_vm1, %v8169_v56  ;;  %v12813_v17 = vld [vmem:[#allocation15_spill] sm:$0xff] }
 0x1db   :  { %12805 = vst [vmem:[#allocation12_spill] sm:$0xff] %v9240_v53  ;;  %12806 = vst [vmem:[#allocation94_spill] sm:$0xff] %v9248_v15  ;;  %v9256_v11 = vadd.f32 %v1137_v13, %v8736_v5  ;;  %1957 = vmatprep.mubr.bf16.mxu0 %v12769_v4  ;;  %2279 = vmatprep.mubr.bf16.mxu1 %v12769_v4  ;;  %v12811_v13 = vld [vmem:[#allocation14_spill] sm:$0xff] }
 0x1dc   :  { %v1139_v49 = vpop.f32.mrf.mxu0  ;;  %v9260_v6 = vpop.f32.mrf.mxu1  ;;  %3476 = vmatpush1.bf16.msra.mxu1 %v7793_v54  ;;  %v12824_v53 = vld [vmem:[#allocation18_spill] sm:$0xff] }
 0x1dd   :  { %12807 = vst [vmem:[#allocation95_spill] sm:$0xff] %v9256_v11  ;;  %12808 = vst [vmem:[#allocation96_spill] sm:$0xff] %v9260_v6  ;;  %v9265_v12 = vadd.f32 %v1139_v49, %v12809_v51  ;;  %v8170_v49 = vld [vmem:[%s12543_s0 + $0x18] sm:$0xff]   ;;  %v8171_v11 = vld [vmem:[%s12543_s0 + $0x20] sm:$0xff]  }
 0x1de   :  { %v1141_v56 = vpop.f32.mrf.mxu0  ;;  %v9267_v15 = vpop.f32.mrf.mxu1 }
 0x1df   :  { %12810 = vst [vmem:[#allocation13_spill] sm:$0xff] %v9265_v12  ;;  %v9272_v55 = vadd.f32 %v1141_v56, %v12811_v13 }
 0x1e0   :  { %v1143_v37 = vpop.f32.mrf.mxu0  ;;  %v9274_v6 = vpop.f32.mrf.mxu1 }
 0x1e1   :  { %12812 = vst [vmem:[#allocation14_spill] sm:$0xff] %v9272_v55  ;;  %v9279_v60 = vadd.f32 %v1143_v37, %v12813_v17 }
 0x1e2   :  { %v1147_v51 = vpop.f32.mrf.mxu0  ;;  %v9281_v54 = vpop.f32.mrf.mxu1  ;;  %6905 = vmatmul.mubr.msk.bf16.gmra.mxu0 %vm259_vm1, %v8170_v49  ;;  %6940 = vmatmul.mubr.msk.bf16.gmra.mxu1 %vm259_vm1, %v8170_v49  ;;  %v12821_v49 = vld [vmem:[#allocation17_spill] sm:$0xff] }
 0x1e3   :  { %12814 = vst [vmem:[#allocation15_spill] sm:$0xff] %v9279_v60  ;;  %12815 = vst [vmem:[#allocation97_spill] sm:$0xff] %v9281_v54  ;;  %v9291_v13 = vadd.f32 %v1147_v51, %v8750_v50  ;;  %1967 = vmatprep.mubr.bf16.mxu0 %v12769_v4  ;;  %2289 = vmatprep.mubr.bf16.mxu1 %v12769_v4  ;;  %v7796_v50 = vld [vmem:[%s12544_s3 + $0x120] ss:$8 sps:$4 sm:$0xff]   ;;  %v7798_v51 = vld [vmem:[%s12544_s3 + $0x124] ss:$8 sps:$4 sm:$0xff]  }
 0x1e4   :  { %v1149_v37 = vpop.f32.mrf.mxu0  ;;  %v9295_v17 = vpop.f32.mrf.mxu1  ;;  %3162 = vmatprep.subr.bf16.mxu0 %v7798_v51 }
 0x1e5   :  { %12816 = vst [vmem:[#allocation98_spill] sm:$0xff] %v9291_v13  ;;  %12817 = vst [vmem:[#allocation99_spill] sm:$0xff] %v9295_v17  ;;  %v9298_v5 = vadd.f32 %v1149_v37, %v12818_v57  ;;  %v7801_v37 = vld [vmem:[%s12544_s3 + $0x44] ss:$8 sps:$4 sm:$0xff]   ;;  %3163 = vmatpush1.bf16.msra.mxu0 %v7796_v50 }
 0x1e6   :  { %v1151_v55 = vpop.f32.mrf.mxu0  ;;  %v9300_v22 = vpop.f32.mrf.mxu1  ;;  %3477 = vmatprep.subr.bf16.mxu1 %v7801_v37  ;;  %v12833_v37 = vld [vmem:[#allocation21_spill] sm:$0xff]  ;;  %v12838_v50 = vld [vmem:[#allocation22_spill] sm:$0xff] }
 0x1e7   :  { %12819 = vst [vmem:[#allocation16_spill] sm:$0xff] %v9298_v5  ;;  %12820 = vst [vmem:[#allocation100_spill] sm:$0xff] %v9300_v22  ;;  %v9303_v12 = vadd.f32 %v1151_v55, %v12821_v49  ;;  %v7799_v55 = vld [vmem:[%s12544_s3 + $0x40] ss:$8 sps:$4 sm:$0xff]  }
 0x1e8   :  { %v1153_v56 = vpop.f32.mrf.mxu0  ;;  %v9311_v60 = vpop.f32.mrf.mxu1  ;;  %3478 = vmatpush1.bf16.msra.mxu1 %v7799_v55  ;;  %v12849_v13 = vld [vmem:[#allocation25_spill] sm:$0xff] }
 0x1e9   :  { %12822 = vst [vmem:[#allocation17_spill] sm:$0xff] %v9303_v12  ;;  %12823 = vst [vmem:[#allocation101_spill] sm:$0xff] %v9311_v60  ;;  %v9314_v57 = vadd.f32 %v1153_v56, %v12824_v53 }
 0x1ea   :  { %v1157_v49 = vpop.f32.mrf.mxu0  ;;  %v9322_v48 = vpop.f32.mrf.mxu1  ;;  %6906 = vmatmul.mubr.msk.bf16.gmra.mxu0 %vm259_vm1, %v8171_v11  ;;  %6941 = vmatmul.mubr.msk.bf16.gmra.mxu1 %vm259_vm1, %v8171_v11 }
 0x1eb   :  { %12825 = vst [vmem:[#allocation18_spill] sm:$0xff] %v9314_v57  ;;  %12826 = vst [vmem:[#allocation102_spill] sm:$0xff] %v9322_v48  ;;  %v9330_v53 = vadd.f32 %v1157_v49, %v8764_v61  ;;  %1977 = vmatprep.mubr.bf16.mxu0 %v12769_v4  ;;  %2299 = vmatprep.mubr.bf16.mxu1 %v12769_v4  ;;  %v12831_v49 = vld [vmem:[#allocation20_spill] sm:$0xff] }
 0x1ec   :  { %v1159_v56 = vpop.f32.mrf.mxu0  ;;  %v9334_v51 = vpop.f32.mrf.mxu1  ;;  %v12844_v57 = vld [vmem:[#allocation24_spill] sm:$0xff] }
 0x1ed   :  { %12827 = vst [vmem:[#allocation103_spill] sm:$0xff] %v9330_v53  ;;  %12828 = vst [vmem:[#allocation104_spill] sm:$0xff] %v9334_v51  ;;  %v9339_v22 = vadd.f32 %v1159_v56, %v12829_v23  ;;  %v8172_v56 = vld [vmem:[%s12543_s0 + $0x28] sm:$0xff]  }
 0x1ee   :  { %v1161_v11 = vpop.f32.mrf.mxu0  ;;  %v9341_v17 = vpop.f32.mrf.mxu1 }
 0x1ef   :  { %12830 = vst [vmem:[#allocation19_spill] sm:$0xff] %v9339_v22  ;;  %v9346_v48 = vadd.f32 %v1161_v11, %v12831_v49 }
 0x1f0   :  { %v1163_v54 = vpop.f32.mrf.mxu0  ;;  %v9348_v51 = vpop.f32.mrf.mxu1 }
 0x1f1   :  { %12832 = vst [vmem:[#allocation20_spill] sm:$0xff] %v9346_v48  ;;  %v9353_v60 = vadd.f32 %v1163_v54, %v12833_v37 }
 0x1f2   :  { %v1167_v23 = vpop.f32.mrf.mxu0  ;;  %v9355_v55 = vpop.f32.mrf.mxu1  ;;  %6907 = vmatmul.mubr.msk.bf16.gmra.mxu0 %vm259_vm1, %v8172_v56  ;;  %6942 = vmatmul.mubr.msk.bf16.gmra.mxu1 %vm259_vm1, %v8172_v56  ;;  %v12841_v56 = vld [vmem:[#allocation23_spill] sm:$0xff] }
 0x1f3   :  { %12834 = vst [vmem:[#allocation21_spill] sm:$0xff] %v9353_v60  ;;  %12835 = vst [vmem:[#allocation105_spill] sm:$0xff] %v9355_v55  ;;  %v9365_v49 = vadd.f32 %v1167_v23, %v8778_v16  ;;  %1987 = vmatprep.mubr.bf16.mxu0 %v12769_v4  ;;  %2309 = vmatprep.mubr.bf16.mxu1 %v12769_v4  ;;  %v7804_v16 = vld [vmem:[%s12544_s3 + $0x114] ss:$8 sps:$4 sm:$0xff]   ;;  %v7802_v60 = vld [vmem:[%s12544_s3 + $0x110] ss:$8 sps:$4 sm:$0xff]  }
 0x1f4   :  { %v1169_v54 = vpop.f32.mrf.mxu0  ;;  %v9369_v37 = vpop.f32.mrf.mxu1  ;;  %3164 = vmatprep.subr.bf16.mxu0 %v7804_v16 }
 0x1f5   :  { %12836 = vst [vmem:[#allocation106_spill] sm:$0xff] %v9365_v49  ;;  %12837 = vst [vmem:[#allocation107_spill] sm:$0xff] %v9369_v37  ;;  %v9372_v61 = vadd.f32 %v1169_v54, %v12838_v50  ;;  %v7807_v54 = vld [vmem:[%s12544_s3 + $0x34] ss:$8 sps:$4 sm:$0xff]   ;;  %3165 = vmatpush1.bf16.msra.mxu0 %v7802_v60 }
 0x1f6   :  { %v1171_v48 = vpop.f32.mrf.mxu0  ;;  %v9374_v12 = vpop.f32.mrf.mxu1  ;;  %3479 = vmatprep.subr.bf16.mxu1 %v7807_v54  ;;  %v12853_v54 = vld [vmem:[#allocation27_spill] sm:$0xff]  ;;  %v12857_v60 = vld [vmem:[#allocation28_spill] sm:$0xff] }
 0x1f7   :  { %12839 = vst [vmem:[#allocation22_spill] sm:$0xff] %v9372_v61  ;;  %12840 = vst [vmem:[#allocation108_spill] sm:$0xff] %v9374_v12  ;;  %v9377_v22 = vadd.f32 %v1171_v48, %v12841_v56  ;;  %v7805_v48 = vld [vmem:[%s12544_s3 + $0x30] ss:$8 sps:$4 sm:$0xff]  }
 0x1f8   :  { %v1173_v23 = vpop.f32.mrf.mxu0  ;;  %v9382_v11 = vpop.f32.mrf.mxu1  ;;  %3480 = vmatpush1.bf16.msra.mxu1 %v7805_v48 }
 0x1f9   :  { %12842 = vst [vmem:[#allocation23_spill] sm:$0xff] %v9377_v22  ;;  %12843 = vst [vmem:[#allocation109_spill] sm:$0xff] %v9382_v11  ;;  %v9388_v50 = vadd.f32 %v1173_v23, %v12844_v57  ;;  %v8173_v11 = vld [vmem:[%s12543_s0 + $0x30] sm:$0xff]  }
 0x1fa   :  { %v1177_v56 = vpop.f32.mrf.mxu0  ;;  %v9396_v5 = vpop.f32.mrf.mxu1  ;;  %6908 = vmatmul.mubr.msk.bf16.gmra.mxu0 %vm259_vm1, %v8173_v11  ;;  %6943 = vmatmul.mubr.msk.bf16.gmra.mxu1 %vm259_vm1, %v8173_v11 }
 0x1fb   :  { %12845 = vst [vmem:[#allocation24_spill] sm:$0xff] %v9388_v50  ;;  %12846 = vst [vmem:[#allocation110_spill] sm:$0xff] %v9396_v5  ;;  %v9404_v57 = vadd.f32 %v1177_v56, %v8792_v18  ;;  %1997 = vmatprep.mubr.bf16.mxu0 %v12769_v4  ;;  %2319 = vmatprep.mubr.bf16.mxu1 %v12769_v4  ;;  %v12851_v56 = vld [vmem:[#allocation26_spill] sm:$0xff] }
 0x1fc   :  { %v1179_v16 = vpop.f32.mrf.mxu0  ;;  %v9408_v23 = vpop.f32.mrf.mxu1  ;;  %v12863_v50 = vld [vmem:[#allocation30_spill] sm:$0xff] }
 0x1fd   :  { %12847 = vst [vmem:[#allocation111_spill] sm:$0xff] %v9404_v57  ;;  %12848 = vst [vmem:[#allocation112_spill] sm:$0xff] %v9408_v23  ;;  %v9413_v12 = vadd.f32 %v1179_v16, %v12849_v13  ;;  %v8174_v16 = vld [vmem:[%s12543_s0 + $0x38] sm:$0xff]  }
 0x1fe   :  { %v1181_v11 = vpop.f32.mrf.mxu0  ;;  %v9415_v37 = vpop.f32.mrf.mxu1  ;;  %v7816_v57 = vld [vmem:[%s12544_s3 + $0xf4] ss:$8 sps:$4 sm:$0xff]  }
 0x1ff   :  { %12850 = vst [vmem:[#allocation25_spill] sm:$0xff] %v9413_v12  ;;  %v9420_v5 = vadd.f32 %v1181_v11, %v12851_v56 }
 0x200   :  { %v1183_v55 = vpop.f32.mrf.mxu0  ;;  %v9422_v23 = vpop.f32.mrf.mxu1 }
 0x201   :  { %12852 = vst [vmem:[#allocation26_spill] sm:$0xff] %v9420_v5  ;;  %v9427_v53 = vadd.f32 %v1183_v55, %v12853_v54 }
 0x202   :  { %v1187_v13 = vpop.f32.mrf.mxu0  ;;  %v9429_v48 = vpop.f32.mrf.mxu1  ;;  %6909 = vmatmul.mubr.msk.bf16.gmra.mxu0 %vm259_vm1, %v8174_v16  ;;  %6944 = vmatmul.mubr.msk.bf16.gmra.mxu1 %vm259_vm1, %v8174_v16  ;;  %v12860_v16 = vld [vmem:[#allocation29_spill] sm:$0xff] }
 0x203   :  { %12854 = vst [vmem:[#allocation27_spill] sm:$0xff] %v9427_v53  ;;  %v9439_v56 = vadd.f32 %v1187_v13, %v8806_v20  ;;  %2007 = vmatprep.mubr.bf16.mxu0 %v12769_v4  ;;  %2329 = vmatprep.mubr.bf16.mxu1 %v12769_v4  ;;  %v7810_v20 = vld [vmem:[%s12544_s3 + $0x104] ss:$8 sps:$4 sm:$0xff]   ;;  %v7808_v53 = vld [vmem:[%s12544_s3 + $0x100] ss:$8 sps:$4 sm:$0xff]  }
 0x204   :  { %v1189_v55 = vpop.f32.mrf.mxu0  ;;  %v9443_v54 = vpop.f32.mrf.mxu1  ;;  %3166 = vmatprep.subr.bf16.mxu0 %v7810_v20 }
 0x205   :  { %12855 = vst [vmem:[#allocation113_spill] sm:$0xff] %v9439_v56  ;;  %12856 = vst [vmem:[#allocation114_spill] sm:$0xff] %v9443_v54  ;;  %v9446_v18 = vadd.f32 %v1189_v55, %v12857_v60  ;;  %v7813_v55 = vld [vmem:[%s12544_s3 + $0x24] ss:$8 sps:$4 sm:$0xff]   ;;  %3167 = vmatpush1.bf16.msra.mxu0 %v7808_v53  ;;  %v12883_v56 = vld [vmem:[#allocation36_spill] sm:$0xff] }
 0x206   :  { %v1191_v5 = vpop.f32.mrf.mxu0  ;;  %v9448_v22 = vpop.f32.mrf.mxu1  ;;  %3481 = vmatprep.subr.bf16.mxu1 %v7813_v55  ;;  %3168 = vmatprep.subr.bf16.mxu0 %v7816_v57  ;;  %v12870_v55 = vld [vmem:[#allocation32_spill] sm:$0xff] }
 0x207   :  { %12858 = vst [vmem:[#allocation28_spill] sm:$0xff] %v9446_v18  ;;  %12859 = vst [vmem:[#allocation115_spill] sm:$0xff] %v9448_v22  ;;  %v9451_v12 = vadd.f32 %v1191_v5, %v12860_v16  ;;  %v7811_v5 = vld [vmem:[%s12544_s3 + $0x20] ss:$8 sps:$4 sm:$0xff]  }
 0x208   :  { %v1193_v13 = vpop.f32.mrf.mxu0  ;;  %v9456_v11 = vpop.f32.mrf.mxu1  ;;  %3482 = vmatpush1.bf16.msra.mxu1 %v7811_v5  ;;  %v7819_v5 = vld [vmem:[%s12544_s3 + $0xe4] ss:$8 sps:$4 sm:$0xff]  }
 0x209   :  { %12861 = vst [vmem:[#allocation29_spill] sm:$0xff] %v9451_v12  ;;  %12862 = vst [vmem:[#allocation116_spill] sm:$0xff] %v9456_v11  ;;  %v9462_v60 = vadd.f32 %v1193_v13, %v12863_v50  ;;  %v8175_v11 = vld [vmem:[%s12543_s0 + $0x40] sm:$0xff]   ;;  %v8176_v18 = vld [vmem:[%s12543_s0 + $0x48] sm:$0xff]  }
 0x20a   :  { %v1197_v16 = vpop.f32.mrf.mxu0  ;;  %v9470_v61 = vpop.f32.mrf.mxu1  ;;  %6910 = vmatmul.mubr.msk.bf16.gmra.mxu0 %vm259_vm1, %v8175_v11  ;;  %6945 = vmatmul.mubr.msk.bf16.gmra.mxu1 %vm259_vm1, %v8175_v11  ;;  %v12868_v11 = vld [vmem:[#allocation31_spill] sm:$0xff] }
 0x20b   :  { %12864 = vst [vmem:[#allocation30_spill] sm:$0xff] %v9462_v60  ;;  %12865 = vst [vmem:[#allocation117_spill] sm:$0xff] %v9470_v61  ;;  %v9478_v50 = vadd.f32 %v1197_v16, %v8820_v25  ;;  %2017 = vmatprep.mubr.bf16.mxu0 %v12769_v4  ;;  %2339 = vmatprep.mubr.bf16.mxu1 %v12769_v4  ;;  %v7814_v25 = vld [vmem:[%s12544_s3 + $0xf0] ss:$8 sps:$4 sm:$0xff]   ;;  %v7825_v12 = vld [vmem:[%s12544_s3 + $0x1b4] ss:$8 sps:$4 sm:$0xff]  }
 0x20c   :  { %v1199_v20 = vpop.f32.mrf.mxu0  ;;  %v9482_v13 = vpop.f32.mrf.mxu1  ;;  %3169 = vmatpush1.bf16.msra.mxu0 %v7814_v25  ;;  %v7820_v25 = vld [vmem:[%s12544_s3 + $0x10] ss:$8 sps:$4 sm:$0xff]  }
 0x20d   :  { %12866 = vst [vmem:[#allocation118_spill] sm:$0xff] %v9478_v50  ;;  %12867 = vst [vmem:[#allocation119_spill] sm:$0xff] %v9482_v13  ;;  %v9490_v22 = vadd.f32 %v1199_v20, %v12868_v11  ;;  %v7822_v20 = vld [vmem:[%s12544_s3 + $0x14] ss:$8 sps:$4 sm:$0xff]   ;;  %v12872_v11 = vld [vmem:[#allocation33_spill] sm:$0xff]  ;;  %3170 = vmatprep.subr.bf16.mxu0 %v7819_v5 }
 0x20e   :  { %v1201_v16 = vpop.f32.mrf.mxu0  ;;  %v9495_v54 = vpop.f32.mrf.mxu1  ;;  %3483 = vmatprep.subr.bf16.mxu1 %v7822_v20  ;;  %v7826_v5 = vld [vmem:[%s12544_s3] ss:$8 sps:$4 sm:$0xff]   ;;  %v12880_v60 = vld [vmem:[#allocation35_spill] sm:$0xff] }
 0x20f   :  { %12869 = vst [vmem:[#allocation31_spill] sm:$0xff] %v9490_v22  ;;  %v9500_v13 = vadd.f32 %v1201_v16, %v12870_v55  ;;  %v7817_v16 = vld [vmem:[%s12544_s3 + $0xe0] ss:$8 sps:$4 sm:$0xff]   ;;  %3484 = vmatpush1.bf16.msra.mxu1 %v7820_v25  ;;  %v7834_v25 = vld [vmem:[%s12544_s3 + $0xd4] ss:$8 sps:$4 sm:$0xff]  }
 0x210   :  { %v1203_v61 = vpop.f32.mrf.mxu0  ;;  %v9502_v49 = vpop.f32.mrf.mxu1  ;;  %3171 = vmatpush1.bf16.msra.mxu0 %v7817_v16  ;;  %v7831_v16 = vld [vmem:[%s12544_s3 + $0x1a4] ss:$8 sps:$4 sm:$0xff]  }
 0x211   :  { %12871 = vst [vmem:[#allocation32_spill] sm:$0xff] %v9500_v13  ;;  %v9513_v53 = vadd.f32 %v1203_v61, %v12872_v11  ;;  %v12877_v61 = vld [vmem:[#allocation34_spill] sm:$0xff]  ;;  %3176 = vmatprep.subr.bf16.mxu0 %v7825_v12 }
 0x212   :  { %v1207_v55 = vpop.f32.mrf.mxu0  ;;  %v9521_v22 = vpop.f32.mrf.mxu1  ;;  %6911 = vmatmul.mubr.msk.bf16.gmra.mxu0 %vm259_vm1, %v8176_v18  ;;  %6946 = vmatmul.mubr.msk.bf16.gmra.mxu1 %vm259_vm1, %v8176_v18  ;;  %v7828_v18 = vld [vmem:[%s12544_s3 + $0x4] ss:$8 sps:$4 sm:$0xff]   ;;  %v7829_v12 = vld [vmem:[%s12544_s3 + $0x1a0] ss:$8 sps:$4 sm:$0xff]  }
 0x213   :  { %12873 = vst [vmem:[#allocation33_spill] sm:$0xff] %v9513_v53  ;;  %12874 = vst [vmem:[#allocation120_spill] sm:$0xff] %v9521_v22  ;;  %v9531_v11 = vadd.f32 %v1207_v55, %v8834_v26  ;;  %2027 = vmatprep.mubr.bf16.mxu0 %v12769_v4  ;;  %2349 = vmatprep.mubr.bf16.mxu1 %v12769_v4  ;;  %v7823_v55 = vld [vmem:[%s12544_s3 + $0x1b0] ss:$8 sps:$4 sm:$0xff]  }
 0x214   :  { %v1209_v57 = vpop.f32.mrf.mxu0  ;;  %v9535_v13 = vpop.f32.mrf.mxu1  ;;  %3485 = vmatprep.subr.bf16.mxu1 %v7828_v18  ;;  %3177 = vmatpush2.bf16.msra.mxu0 %v7823_v55 }
 0x215   :  { %12875 = vst [vmem:[#allocation121_spill] sm:$0xff] %v9531_v11  ;;  %12876 = vst [vmem:[#allocation122_spill] sm:$0xff] %v9535_v13  ;;  %v9544_v26 = vadd.f32 %v1209_v57, %v12877_v61  ;;  %3486 = vmatpush1.bf16.msra.mxu1 %v7826_v5  ;;  %3178 = vmatprep.subr.bf16.mxu0 %v7831_v16  ;;  %v7835_v16 = vld [vmem:[%s12544_s3 + $0x190] ss:$8 sps:$4 sm:$0xff]  }
 0x216   :  { %v1211_v20 = vpop.f32.mrf.mxu0  ;;  %v9552_v53 = vpop.f32.mrf.mxu1  ;;  %3491 = vmatprep.subr.bf16.mxu1 %v7834_v25  ;;  %v7838_v25 = vld [vmem:[%s12544_s3 + $0xc0] ss:$8 sps:$4 sm:$0xff]   ;;  %v12892_v11 = vld [vmem:[#allocation39_spill] sm:$0xff] }
 0x217   :  { %12878 = vst [vmem:[#allocation34_spill] sm:$0xff] %v9544_v26  ;;  %12879 = vst [vmem:[#allocation123_spill] sm:$0xff] %v9552_v53  ;;  %v9555_v50 = vadd.f32 %v1211_v20, %v12880_v60  ;;  %v7832_v60 = vld [vmem:[%s12544_s3 + $0xd0] ss:$8 sps:$4 sm:$0xff]   ;;  %v7855_v26 = vld [vmem:[%s12544_s3 + $0x164] ss:$8 sps:$4 sm:$0xff]  }
 0x218   :  { %v1213_v57 = vpop.f32.mrf.mxu0  ;;  %v9557_v61 = vpop.f32.mrf.mxu1  ;;  %3179 = vmatpush2.bf16.msra.mxu0 %v7829_v12 }
 0x219   :  { %12881 = vst [vmem:[#allocation35_spill] sm:$0xff] %v9555_v50  ;;  %12882 = vst [vmem:[#allocation124_spill] sm:$0xff] %v9557_v61  ;;  %v9566_v13 = vadd.f32 %v1213_v57, %v12883_v56  ;;  %v8177_v61 = vld [vmem:[%s12543_s0 + $0x50] sm:$0xff]   ;;  %3492 = vmatpush2.bf16.msra.mxu1 %v7832_v60 }
 0x21a   :  { %v1217_v18 = vpop.f32.mrf.mxu0  ;;  %v9574_v20 = vpop.f32.mrf.mxu1  ;;  %6912 = vmatmul.mubr.msk.bf16.gmra.mxu0 %vm259_vm1, %v8177_v61  ;;  %6947 = vmatmul.mubr.msk.bf16.gmra.mxu1 %vm259_vm1, %v8177_v61  ;;  %v7837_v57 = vld [vmem:[%s12544_s3 + $0x194] ss:$8 sps:$4 sm:$0xff]   ;;  %v7840_v61 = vld [vmem:[%s12544_s3 + $0xc4] ss:$8 sps:$4 sm:$0xff]  }
 0x21b   :  { %12884 = vst [vmem:[#allocation36_spill] sm:$0xff] %v9566_v13  ;;  %12885 = vst [vmem:[#allocation125_spill] sm:$0xff] %v9574_v20  ;;  %v9582_v56 = vadd.f32 %v1217_v18, %v8848_v27  ;;  %2037 = vmatprep.mubr.bf16.mxu0 %v12769_v4  ;;  %2359 = vmatprep.mubr.bf16.mxu1 %v12769_v4  ;;  %v12888_v18 = vld [vmem:[#allocation37_spill] sm:$0xff]  ;;  %v12902_v13 = vld [vmem:[#allocation42_spill] sm:$0xff] }
 0x21c   :  { %v1219_v55 = vpop.f32.mrf.mxu0  ;;  %v9586_v5 = vpop.f32.mrf.mxu1  ;;  %3180 = vmatprep.subr.bf16.mxu0 %v7837_v57  ;;  %3493 = vmatprep.subr.bf16.mxu1 %v7840_v61  ;;  %v7843_v57 = vld [vmem:[%s12544_s3 + $0x184] ss:$8 sps:$4 sm:$0xff]  }
 0x21d   :  { %12886 = vst [vmem:[#allocation126_spill] sm:$0xff] %v9582_v56  ;;  %12887 = vst [vmem:[#allocation127_spill] sm:$0xff] %v9586_v5  ;;  %v9597_v53 = vadd.f32 %v1219_v55, %v12888_v18  ;;  %v12890_v55 = vld [vmem:[#allocation38_spill] sm:$0xff]  ;;  %3181 = vmatpush2.bf16.msra.mxu0 %v7835_v16  ;;  %3494 = vmatpush2.bf16.msra.mxu1 %v7838_v25  ;;  %v8178_v56 = vld [vmem:[%s12543_s0 + $0x58] sm:$0xff]  }
 0x21e   :  { %v1221_v5 = vpop.f32.mrf.mxu0  ;;  %v9605_v20 = vpop.f32.mrf.mxu1  ;;  %v7844_v16 = vld [vmem:[%s12544_s3 + $0xb0] ss:$8 sps:$4 sm:$0xff]   ;;  %3182 = vmatprep.subr.bf16.mxu0 %v7843_v57  ;;  %v7849_v25 = vld [vmem:[%s12544_s3 + $0x174] ss:$8 sps:$4 sm:$0xff]  }
 0x21f   :  { %12889 = vst [vmem:[#allocation37_spill] sm:$0xff] %v9597_v53  ;;  %v9610_v18 = vadd.f32 %v1221_v5, %v12890_v55  ;;  %v7846_v5 = vld [vmem:[%s12544_s3 + $0xb4] ss:$8 sps:$4 sm:$0xff]   ;;  %v7847_v57 = vld [vmem:[%s12544_s3 + $0x170] ss:$8 sps:$4 sm:$0xff]  }
 0x220   :  { %v1223_v12 = vpop.f32.mrf.mxu0  ;;  %v9612_v60 = vpop.f32.mrf.mxu1  ;;  %3495 = vmatprep.subr.bf16.mxu1 %v7846_v5 }
 0x221   :  { %12891 = vst [vmem:[#allocation38_spill] sm:$0xff] %v9610_v18  ;;  %v9617_v22 = vadd.f32 %v1223_v12, %v12892_v11  ;;  %v7841_v11 = vld [vmem:[%s12544_s3 + $0x180] ss:$8 sps:$4 sm:$0xff]   ;;  %v12896_v18 = vld [vmem:[#allocation40_spill] sm:$0xff]  ;;  %3496 = vmatpush2.bf16.msra.mxu1 %v7844_v16 }
 0x222   :  { %v1227_v61 = vpop.f32.mrf.mxu0  ;;  %v9625_v55 = vpop.f32.mrf.mxu1  ;;  %6913 = vmatmul.mubr.msk.bf16.gmra.mxu0 %vm259_vm1, %v8178_v56  ;;  %6948 = vmatmul.mubr.msk.bf16.gmra.mxu1 %vm259_vm1, %v8178_v56 }
 0x223   :  { %12893 = vst [vmem:[#allocation39_spill] sm:$0xff] %v9617_v22  ;;  %v9641_v12 = vadd.f32 %v1227_v61, %v8862_v28  ;;  %2047 = vmatprep.mubr.bf16.mxu0 %v12769_v4  ;;  %2369 = vmatprep.mubr.bf16.mxu1 %v12769_v4  ;;  %v7852_v28 = vld [vmem:[%s12544_s3 + $0xa4] ss:$8 sps:$4 sm:$0xff]  }
 0x224   :  { %v1229_v27 = vpop.f32.mrf.mxu0  ;;  %v9645_v56 = vpop.f32.mrf.mxu1  ;;  %3183 = vmatpush2.bf16.msra.mxu0 %v7841_v11  ;;  %3497 = vmatprep.subr.bf16.mxu1 %v7852_v28  ;;  %v7856_v28 = vld [vmem:[%s12544_s3 + $0x90] ss:$8 sps:$4 sm:$0xff]  }
 0x225   :  { %12894 = vst [vmem:[#allocation128_spill] sm:$0xff] %v9641_v12  ;;  %12895 = vst [vmem:[#allocation129_spill] sm:$0xff] %v9645_v56  ;;  %v9648_v50 = vadd.f32 %v1229_v27, %v12896_v18  ;;  %v7850_v27 = vld [vmem:[%s12544_s3 + $0xa0] ss:$8 sps:$4 sm:$0xff]   ;;  %3184 = vmatprep.subr.bf16.mxu0 %v7849_v25 }
 0x226   :  { %v1231_v61 = vpop.f32.mrf.mxu0  ;;  %v9656_v22 = vpop.f32.mrf.mxu1  ;;  %v12899_v18 = vld [vmem:[#allocation41_spill] sm:$0xff]  ;;  %3498 = vmatpush2.bf16.msra.mxu1 %v7850_v27 }
 0x227   :  { %12897 = vst [vmem:[#allocation40_spill] sm:$0xff] %v9648_v50  ;;  %12898 = vst [vmem:[#allocation130_spill] sm:$0xff] %v9656_v22  ;;  %v9665_v5 = vadd.f32 %v1231_v61, %v12899_v18  ;;  %v7858_v22 = vld [vmem:[%s12544_s3 + $0x94] ss:$8 sps:$4 sm:$0xff]   ;;  %v8179_v25 = vld [vmem:[%s12543_s0 + $0x60] sm:$0xff]  }
 0x228   :  { %v1233_v11 = vpop.f32.mrf.mxu0  ;;  %v9667_v16 = vpop.f32.mrf.mxu1  ;;  %3185 = vmatpush2.bf16.msra.mxu0 %v7847_v57  ;;  %3499 = vmatprep.subr.bf16.mxu1 %v7858_v22  ;;  %v8180_v22 = vld [vmem:[%s12543_s0 + $0x68] sm:$0xff]  }
 0x229   :  { %12900 = vst [vmem:[#allocation41_spill] sm:$0xff] %v9665_v5  ;;  %12901 = vst [vmem:[#allocation131_spill] sm:$0xff] %v9667_v16  ;;  %v9670_v53 = vadd.f32 %v1233_v11, %v12902_v13  ;;  %v7853_v13 = vld [vmem:[%s12544_s3 + $0x160] ss:$8 sps:$4 sm:$0xff]   ;;  %3186 = vmatprep.subr.bf16.mxu0 %v7855_v26  ;;  %v12907_v16 = vld [vmem:[#allocation43_spill] sm:$0xff] }
 0x22a   :  { %v1237_v61 = vpop.f32.mrf.mxu0  ;;  %v9678_v18 = vpop.f32.mrf.mxu1  ;;  %6914 = vmatmul.mubr.msk.bf16.gmra.mxu0 %vm259_vm1, %v8179_v25  ;;  %6949 = vmatmul.mubr.msk.bf16.gmra.mxu1 %vm259_vm1, %v8179_v25  ;;  %v7859_v26 = vld [vmem:[%s12544_s3 + $0x80] ss:$8 sps:$4 sm:$0xff]   ;;  %v12910_v25 = vld [vmem:[#allocation44_spill] sm:$0xff] }
 0x22b   :  { %12903 = vst [vmem:[#allocation42_spill] sm:$0xff] %v9670_v53  ;;  %12904 = vst [vmem:[#allocation132_spill] sm:$0xff] %v9678_v18  ;;  %v9692_v57 = vadd.f32 %v1237_v61, %v8876_v29  ;;  %2057 = vmatprep.mubr.bf16.mxu0 %v12769_v4  ;;  %2379 = vmatprep.mubr.bf16.mxu1 %v12769_v4  ;;  %v7861_v29 = vld [vmem:[%s12544_s3 + $0x84] ss:$8 sps:$4 sm:$0xff]  }
 0x22c   :  { %v1239_v27 = vpop.f32.mrf.mxu0  ;;  %v9696_v11 = vpop.f32.mrf.mxu1  ;;  %3187 = vmatpush2.bf16.msra.mxu0 %v7853_v13  ;;  %3500 = vmatpush2.bf16.msra.mxu1 %v7856_v28 }
 0x22d   :  { %12905 = vst [vmem:[#allocation133_spill] sm:$0xff] %v9692_v57  ;;  %12906 = vst [vmem:[#allocation134_spill] sm:$0xff] %v9696_v11  ;;  %v9701_v56 = vadd.f32 %v1239_v27, %v12907_v16  ;;  %3501 = vmatprep.subr.bf16.mxu1 %v7861_v29  ;;  %v12912_v27 = vld [vmem:[#allocation45_spill] sm:$0xff] }
 0x22e   :  { %v1241_v61 = vpop.f32.mrf.mxu0  ;;  %v9706_v18 = vpop.f32.mrf.mxu1 }
 0x22f   :  { %12908 = vst [vmem:[#allocation43_spill] sm:$0xff] %v9701_v56  ;;  %12909 = vst [vmem:[#allocation135_spill] sm:$0xff] %v9706_v18  ;;  %v9714_v57 = vadd.f32 %v1241_v61, %v12910_v25 }
 0x230   :  { %v1243_v16 = vpop.f32.mrf.mxu0  ;;  %v9716_v13 = vpop.f32.mrf.mxu1  ;;  %3502 = vmatpush2.bf16.msra.mxu1 %v7859_v26 }
 0x231   :  { %12911 = vst [vmem:[#allocation44_spill] sm:$0xff] %v9714_v57  ;;  %v9721_v12 = vadd.f32 %v1243_v16, %v12912_v27  ;;  %v12917_v16 = vld [vmem:[#allocation46_spill] sm:$0xff] }
 0x232   :  { %v1247_v18 = vpop.f32.mrf.mxu0  ;;  %v9723_v11 = vpop.f32.mrf.mxu1  ;;  %6915 = vmatmul.mubr.msk.bf16.gmra.mxu0 %vm259_vm1, %v8180_v22  ;;  %6950 = vmatmul.mubr.msk.bf16.gmra.mxu1 %vm259_vm1, %v8180_v22  ;;  %v12920_v22 = vld [vmem:[#allocation47_spill] sm:$0xff] }
 0x233   :  { %12913 = vst [vmem:[#allocation45_spill] sm:$0xff] %v9721_v12  ;;  %12914 = vst [vmem:[#allocation136_spill] sm:$0xff] %v9723_v11  ;;  %v9733_v29 = vadd.f32 %v1247_v18, %v8890_v30  ;;  %2067 = vmatprep.mubr.bf16.mxu0 %v12769_v4  ;;  %2389 = vmatprep.mubr.bf16.mxu1 %v12769_v4  ;;  %v12923_v30 = vld [vmem:[#allocation48_spill] sm:$0xff]  ;;  %v12932_v11 = vld [vmem:[#allocation51_spill] sm:$0xff] }
 0x234   :  { %v1249_v61 = vpop.f32.mrf.mxu0  ;;  %v9737_v26 = vpop.f32.mrf.mxu1 }
 0x235   :  { %12915 = vst [vmem:[#allocation137_spill] sm:$0xff] %v9733_v29  ;;  %12916 = vst [vmem:[#allocation138_spill] sm:$0xff] %v9737_v26  ;;  %v9740_v27 = vadd.f32 %v1249_v61, %v12917_v16  ;;  %v8181_v61 = vld [vmem:[%s12543_s0 + $0x70] sm:$0xff]  }
 0x236   :  { %v1251_v28 = vpop.f32.mrf.mxu0  ;;  %v9742_v57 = vpop.f32.mrf.mxu1 }
 0x237   :  { %12918 = vst [vmem:[#allocation46_spill] sm:$0xff] %v9740_v27  ;;  %12919 = vst [vmem:[#allocation139_spill] sm:$0xff] %v9742_v57  ;;  %v9745_v5 = vadd.f32 %v1251_v28, %v12920_v22 }
 0x238   :  { %v1253_v25 = vpop.f32.mrf.mxu0  ;;  %v9747_v12 = vpop.f32.mrf.mxu1 }
 0x239   :  { %12921 = vst [vmem:[#allocation47_spill] sm:$0xff] %v9745_v5  ;;  %12922 = vst [vmem:[#allocation140_spill] sm:$0xff] %v9747_v12  ;;  %v9750_v18 = vadd.f32 %v1253_v25, %v12923_v30  ;;  %v12928_v30 = vld [vmem:[#allocation49_spill] sm:$0xff] }
 0x23a   :  { %v1257_v53 = vpop.f32.mrf.mxu0  ;;  %v9752_v56 = vpop.f32.mrf.mxu1  ;;  %6916 = vmatmul.mubr.msk.bf16.gmra.mxu0 %vm259_vm1, %v8181_v61  ;;  %6951 = vmatmul.mubr.msk.bf16.gmra.mxu1 %vm259_vm1, %v8181_v61 }
 0x23b   :  { %12924 = vst [vmem:[#allocation48_spill] sm:$0xff] %v9750_v18  ;;  %12925 = vst [vmem:[#allocation141_spill] sm:$0xff] %v9752_v56  ;;  %v9760_v28 = vadd.f32 %v1257_v53, %v8904_v31  ;;  %2077 = vmatprep.mubr.bf16.mxu0 %v12769_v4  ;;  %2399 = vmatprep.mubr.bf16.mxu1 %v12769_v4  ;;  %v12930_v53 = vld [vmem:[#allocation50_spill] sm:$0xff] }
 0x23c   :  { %v1259_v25 = vpop.f32.mrf.mxu0  ;;  %v9764_v16 = vpop.f32.mrf.mxu1 }
 0x23d   :  { %12926 = vst [vmem:[#allocation142_spill] sm:$0xff] %v9760_v28  ;;  %12927 = vst [vmem:[#allocation143_spill] sm:$0xff] %v9764_v16  ;;  %v9769_v50 = vadd.f32 %v1259_v25, %v12928_v30  ;;  %v8182_v28 = vld [vmem:[%s12543_s0 + $0x78] sm:$0xff]  }
 0x23e   :  { %v1261_v12 = vpop.f32.mrf.mxu0  ;;  %v9771_v57 = vpop.f32.mrf.mxu1  ;;  %v12937_v16 = vld [vmem:[#allocation52_spill] sm:$0xff] }
 0x23f   :  { %12929 = vst [vmem:[#allocation49_spill] sm:$0xff] %v9769_v50  ;;  %v9776_v61 = vadd.f32 %v1261_v12, %v12930_v53 }
 0x240   :  { %v1263_v26 = vpop.f32.mrf.mxu0  ;;  %v9778_v56 = vpop.f32.mrf.mxu1 }
 0x241   :  { %12931 = vst [vmem:[#allocation50_spill] sm:$0xff] %v9776_v61  ;;  %v9783_v22 = vadd.f32 %v1263_v26, %v12932_v11 }
 0x242   :  { %v1267_v25 = vpop.f32.mrf.mxu0  ;;  %v9785_v30 = vpop.f32.mrf.mxu1  ;;  %6917 = vmatmul.mubr.msk.bf16.gmra.mxu0 %vm259_vm1, %v8182_v28  ;;  %6952 = vmatmul.mubr.msk.bf16.gmra.mxu1 %vm259_vm1, %v8182_v28  ;;  %v12940_v28 = vld [vmem:[#allocation53_spill] sm:$0xff] }
 0x243   :  { %12933 = vst [vmem:[#allocation51_spill] sm:$0xff] %v9783_v22  ;;  %12934 = vst [vmem:[#allocation144_spill] sm:$0xff] %v9785_v30  ;;  %v9795_v53 = vadd.f32 %v1267_v25, %v8918_v32  ;;  %2087 = vmatprep.mubr.bf16.mxu0 %v12769_v4  ;;  %2409 = vmatprep.mubr.bf16.mxu1 %v12769_v4  ;;  %v12943_v32 = vld [vmem:[#allocation54_spill] sm:$0xff]  ;;  %v12952_v30 = vld [vmem:[#allocation57_spill] sm:$0xff] }
 0x244   :  { %v1269_v11 = vpop.f32.mrf.mxu0  ;;  %v9799_v26 = vpop.f32.mrf.mxu1 }
 0x245   :  { %12935 = vst [vmem:[#allocation145_spill] sm:$0xff] %v9795_v53  ;;  %12936 = vst [vmem:[#allocation146_spill] sm:$0xff] %v9799_v26  ;;  %v9802_v31 = vadd.f32 %v1269_v11, %v12937_v16  ;;  %v8183_v16 = vld [vmem:[%s12543_s0 + $0x80] sm:$0xff]  }
 0x246   :  { %v1271_v61 = vpop.f32.mrf.mxu0  ;;  %v9804_v5 = vpop.f32.mrf.mxu1 }
 0x247   :  { %12938 = vst [vmem:[#allocation52_spill] sm:$0xff] %v9802_v31  ;;  %12939 = vst [vmem:[#allocation147_spill] sm:$0xff] %v9804_v5  ;;  %v9807_v50 = vadd.f32 %v1271_v61, %v12940_v28 }
 0x248   :  { %v1273_v12 = vpop.f32.mrf.mxu0  ;;  %v9809_v22 = vpop.f32.mrf.mxu1 }
 0x249   :  { %12941 = vst [vmem:[#allocation53_spill] sm:$0xff] %v9807_v50  ;;  %12942 = vst [vmem:[#allocation148_spill] sm:$0xff] %v9809_v22  ;;  %v9812_v25 = vadd.f32 %v1273_v12, %v12943_v32  ;;  %v12948_v32 = vld [vmem:[#allocation55_spill] sm:$0xff] }
 0x24a   :  { %v1277_v18 = vpop.f32.mrf.mxu0  ;;  %v9814_v27 = vpop.f32.mrf.mxu1  ;;  %6918 = vmatmul.mubr.msk.bf16.gmra.mxu0 %vm259_vm1, %v8183_v16  ;;  %6953 = vmatmul.mubr.msk.bf16.gmra.mxu1 %vm259_vm1, %v8183_v16 }
 0x24b   :  { %12944 = vst [vmem:[#allocation54_spill] sm:$0xff] %v9812_v25  ;;  %12945 = vst [vmem:[#allocation149_spill] sm:$0xff] %v9814_v27  ;;  %v9822_v61 = vadd.f32 %v1277_v18, %v8932_v33  ;;  %2097 = vmatprep.mubr.bf16.mxu0 %v12769_v4  ;;  %2419 = vmatprep.mubr.bf16.mxu1 %v12769_v4  ;;  %v12950_v18 = vld [vmem:[#allocation56_spill] sm:$0xff] }
 0x24c   :  { %v1279_v12 = vpop.f32.mrf.mxu0  ;;  %v9826_v11 = vpop.f32.mrf.mxu1 }
 0x24d   :  { %12946 = vst [vmem:[#allocation150_spill] sm:$0xff] %v9822_v61  ;;  %12947 = vst [vmem:[#allocation151_spill] sm:$0xff] %v9826_v11  ;;  %v9831_v22 = vadd.f32 %v1279_v12, %v12948_v32  ;;  %v8184_v61 = vld [vmem:[%s12543_s0 + $0x88] sm:$0xff]  }
 0x24e   :  { %v1281_v29 = vpop.f32.mrf.mxu0  ;;  %v9833_v5 = vpop.f32.mrf.mxu1  ;;  %v12957_v11 = vld [vmem:[#allocation58_spill] sm:$0xff] }
 0x24f   :  { %12949 = vst [vmem:[#allocation55_spill] sm:$0xff] %v9831_v22  ;;  %v9838_v16 = vadd.f32 %v1281_v29, %v12950_v18 }
 0x250   :  { %v1283_v26 = vpop.f32.mrf.mxu0  ;;  %v9840_v27 = vpop.f32.mrf.mxu1 }
 0x251   :  { %12951 = vst [vmem:[#allocation56_spill] sm:$0xff] %v9838_v16  ;;  %v9845_v28 = vadd.f32 %v1283_v26, %v12952_v30 }
 0x252   :  { %v1287_v12 = vpop.f32.mrf.mxu0  ;;  %v9847_v32 = vpop.f32.mrf.mxu1  ;;  %6919 = vmatmul.mubr.msk.bf16.gmra.mxu0 %vm259_vm1, %v8184_v61  ;;  %6954 = vmatmul.mubr.msk.bf16.gmra.mxu1 %vm259_vm1, %v8184_v61  ;;  %v12960_v61 = vld [vmem:[#allocation59_spill] sm:$0xff] }
 0x253   :  { %12953 = vst [vmem:[#allocation57_spill] sm:$0xff] %v9845_v28  ;;  %12954 = vst [vmem:[#allocation152_spill] sm:$0xff] %v9847_v32  ;;  %v9857_v18 = vadd.f32 %v1287_v12, %v8946_v34  ;;  %2107 = vmatprep.mubr.bf16.mxu0 %v12769_v4  ;;  %2429 = vmatprep.mubr.bf16.mxu1 %v12769_v4  ;;  %v12963_v34 = vld [vmem:[#allocation60_spill] sm:$0xff]  ;;  %v12972_v32 = vld [vmem:[#allocation63_spill] sm:$0xff] }
 0x254   :  { %v1289_v30 = vpop.f32.mrf.mxu0  ;;  %v9861_v26 = vpop.f32.mrf.mxu1 }
 0x255   :  { %12955 = vst [vmem:[#allocation153_spill] sm:$0xff] %v9857_v18  ;;  %12956 = vst [vmem:[#allocation154_spill] sm:$0xff] %v9861_v26  ;;  %v9864_v33 = vadd.f32 %v1289_v30, %v12957_v11  ;;  %v8185_v11 = vld [vmem:[%s12543_s0 + $0x90] sm:$0xff]  }
 0x256   :  { %v1291_v16 = vpop.f32.mrf.mxu0  ;;  %v9866_v50 = vpop.f32.mrf.mxu1 }
 0x257   :  { %12958 = vst [vmem:[#allocation58_spill] sm:$0xff] %v9864_v33  ;;  %12959 = vst [vmem:[#allocation155_spill] sm:$0xff] %v9866_v50  ;;  %v9869_v22 = vadd.f32 %v1291_v16, %v12960_v61 }
 0x258   :  { %v1293_v29 = vpop.f32.mrf.mxu0  ;;  %v9871_v28 = vpop.f32.mrf.mxu1 }
 0x259   :  { %12961 = vst [vmem:[#allocation59_spill] sm:$0xff] %v9869_v22  ;;  %12962 = vst [vmem:[#allocation156_spill] sm:$0xff] %v9871_v28  ;;  %v9874_v12 = vadd.f32 %v1293_v29, %v12963_v34  ;;  %v12968_v34 = vld [vmem:[#allocation61_spill] sm:$0xff] }
 0x25a   :  { %v1297_v25 = vpop.f32.mrf.mxu0  ;;  %v9876_v31 = vpop.f32.mrf.mxu1  ;;  %6920 = vmatmul.mubr.msk.bf16.gmra.mxu0 %vm259_vm1, %v8185_v11  ;;  %6955 = vmatmul.mubr.msk.bf16.gmra.mxu1 %vm259_vm1, %v8185_v11 }
 0x25b   :  { %12964 = vst [vmem:[#allocation60_spill] sm:$0xff] %v9874_v12  ;;  %12965 = vst [vmem:[#allocation157_spill] sm:$0xff] %v9876_v31  ;;  %v9884_v16 = vadd.f32 %v1297_v25, %v8960_v35  ;;  %2117 = vmatprep.mubr.bf16.mxu0 %v12769_v4  ;;  %2439 = vmatprep.mubr.bf16.mxu1 %v12769_v4  ;;  %v12970_v25 = vld [vmem:[#allocation62_spill] sm:$0xff] }
 0x25c   :  { %v1299_v29 = vpop.f32.mrf.mxu0  ;;  %v9888_v30 = vpop.f32.mrf.mxu1 }
 0x25d   :  { %12966 = vst [vmem:[#allocation158_spill] sm:$0xff] %v9884_v16  ;;  %12967 = vst [vmem:[#allocation159_spill] sm:$0xff] %v9888_v30  ;;  %v9893_v28 = vadd.f32 %v1299_v29, %v12968_v34  ;;  %v8186_v16 = vld [vmem:[%s12543_s0 + $0x98] sm:$0xff]  }
 0x25e   :  { %v1301_v53 = vpop.f32.mrf.mxu0  ;;  %v9895_v50 = vpop.f32.mrf.mxu1  ;;  %v12977_v30 = vld [vmem:[#allocation64_spill] sm:$0xff] }
 0x25f   :  { %12969 = vst [vmem:[#allocation61_spill] sm:$0xff] %v9893_v28  ;;  %v9900_v11 = vadd.f32 %v1301_v53, %v12970_v25 }
 0x260   :  { %v1303_v26 = vpop.f32.mrf.mxu0  ;;  %v9902_v31 = vpop.f32.mrf.mxu1 }
 0x261   :  { %12971 = vst [vmem:[#allocation62_spill] sm:$0xff] %v9900_v11  ;;  %v9907_v61 = vadd.f32 %v1303_v26, %v12972_v32 }
 0x262   :  { %v1307_v29 = vpop.f32.mrf.mxu0  ;;  %v9909_v34 = vpop.f32.mrf.mxu1  ;;  %6921 = vmatmul.mubr.msk.bf16.gmra.mxu0 %vm259_vm1, %v8186_v16  ;;  %6956 = vmatmul.mubr.msk.bf16.gmra.mxu1 %vm259_vm1, %v8186_v16  ;;  %v12980_v16 = vld [vmem:[#allocation65_spill] sm:$0xff] }
 0x263   :  { %12973 = vst [vmem:[#allocation63_spill] sm:$0xff] %v9907_v61  ;;  %12974 = vst [vmem:[#allocation160_spill] sm:$0xff] %v9909_v34  ;;  %v9919_v25 = vadd.f32 %v1307_v29, %v8974_v38  ;;  %2127 = vmatprep.mubr.bf16.mxu0 %v12769_v4  ;;  %2449 = vmatprep.mubr.bf16.mxu1 %v12769_v4  ;;  %v12983_v38 = vld [vmem:[#allocation66_spill] sm:$0xff] }
 0x264   :  { %v1309_v32 = vpop.f32.mrf.mxu0  ;;  %v9923_v26 = vpop.f32.mrf.mxu1  ;;  %v13024_v34 = vld [vmem:[#allocation70_spill] sm:$0xff] }
 0x265   :  { %12975 = vst [vmem:[#allocation161_spill] sm:$0xff] %v9919_v25  ;;  %12976 = vst [vmem:[#allocation162_spill] sm:$0xff] %v9923_v26  ;;  %v9926_v35 = vadd.f32 %v1309_v32, %v12977_v30  ;;  %v8187_v30 = vld [vmem:[%s12543_s0 + $0xa0] sm:$0xff]   ;;  %v12992_v26 = vld [vmem:[#allocation67_spill] sm:$0xff] }
 0x266   :  { %v1311_v11 = vpop.f32.mrf.mxu0  ;;  %v9928_v22 = vpop.f32.mrf.mxu1 }
 0x267   :  { %12978 = vst [vmem:[#allocation64_spill] sm:$0xff] %v9926_v35  ;;  %12979 = vst [vmem:[#allocation163_spill] sm:$0xff] %v9928_v22  ;;  %v9931_v28 = vadd.f32 %v1311_v11, %v12980_v16 }
 0x268   :  { %v1313_v53 = vpop.f32.mrf.mxu0  ;;  %v9933_v61 = vpop.f32.mrf.mxu1 }
 0x269   :  { %12981 = vst [vmem:[#allocation65_spill] sm:$0xff] %v9931_v28  ;;  %12982 = vst [vmem:[#allocation164_spill] sm:$0xff] %v9933_v61  ;;  %v9936_v29 = vadd.f32 %v1313_v53, %v12983_v38 }
 0x26a   :  { %v1317_v12 = vpop.f32.mrf.mxu0  ;;  %v9938_v33 = vpop.f32.mrf.mxu1  ;;  %6922 = vmatmul.mubr.msk.bf16.gmra.mxu0 %vm259_vm1, %v8187_v30  ;;  %6957 = vmatmul.mubr.msk.bf16.gmra.mxu1 %vm259_vm1, %v8187_v30 }
 0x26b   :  { %12984 = vst [vmem:[#allocation66_spill] sm:$0xff] %v9936_v29  ;;  %12985 = vst [vmem:[#allocation165_spill] sm:$0xff] %v9938_v33  ;;  %v9946_v11 = vadd.f32 %v1317_v12, %v8988_v39  ;;  %2137 = vmatprep.mubr.bf16.mxu0 %v12769_v4  ;;  %2459 = vmatprep.mubr.bf16.mxu1 %v12769_v4 }
 0x26c   :  { %v1319_v53 = vpop.f32.mrf.mxu0  ;;  %v9950_v32 = vpop.f32.mrf.mxu1 }
 0x26d   :  { %12986 = vst [vmem:[#allocation166_spill] sm:$0xff] %v9946_v11  ;;  %12987 = vst [vmem:[#allocation167_spill] sm:$0xff] %v9950_v32  ;;  %v9955_v38 = vadd.f32 %v1319_v53, %v8992_v43  ;;  %v8188_v11 = vld [vmem:[%s12543_s0 + $0xa8] sm:$0xff]  }
 0x26e   :  { %v1321_v61 = vpop.f32.mrf.mxu0  ;;  %v9957_v18 = vpop.f32.mrf.mxu1 }
 0x26f   :  { %12988 = vst [vmem:[#allocation168_spill] sm:$0xff] %v9955_v38  ;;  %12989 = vst [vmem:[#allocation169_spill] sm:$0xff] %v9957_v18  ;;  %v9962_v12 = vadd.f32 %v1321_v61, %v8994_v10 }
 0x270   :  { %v1323_v30 = vpop.f32.mrf.mxu0  ;;  %v9964_v22 = vpop.f32.mrf.mxu1 }
 0x271   :  { %12990 = vst [vmem:[#allocation170_spill] sm:$0xff] %v9962_v12  ;;  %12991 = vst [vmem:[#allocation171_spill] sm:$0xff] %v9964_v22  ;;  %v9969_v16 = vadd.f32 %v1323_v30, %v12992_v26 }
 0x272   :  { %v1327_v43 = vpop.f32.mrf.mxu0  ;;  %v9971_v53 = vpop.f32.mrf.mxu1  ;;  %6923 = vmatmul.mubr.msk.bf16.gmra.mxu0 %vm259_vm1, %v8188_v11  ;;  %6958 = vmatmul.mubr.msk.bf16.gmra.mxu1 %vm259_vm1, %v8188_v11 }
 0x273   :  { %12993 = vst [vmem:[#allocation67_spill] sm:$0xff] %v9969_v16  ;;  %12994 = vst [vmem:[#allocation172_spill] sm:$0xff] %v9971_v53  ;;  %v9981_v61 = vadd.f32 %v1327_v43, %v9002_v40  ;;  %2147 = vmatprep.mubr.bf16.mxu0 %v12769_v4  ;;  %2469 = vmatprep.mubr.bf16.mxu1 %v12769_v4  ;;  %v13001_v40 = vld [vmem:[#allocation3_spill] sm:$0xff] }
 0x274   :  { %v1329_v26 = vpop.f32.mrf.mxu0  ;;  %v9985_v30 = vpop.f32.mrf.mxu1  ;;  %v996_v43 = vadd.f32 %v9024_v1, %v13001_v40 }
 0x275   :  { %12995 = vst [vmem:[#allocation173_spill] sm:$0xff] %v9981_v61  ;;  %12996 = vst [vmem:[#allocation174_spill] sm:$0xff] %v9985_v30  ;;  %v9988_v32 = vadd.f32 %v1329_v26, %v9009_v2  ;;  %v8189_v2 = vld [vmem:[%s12543_s0 + $0xb0] sm:$0xff]   ;;  %v8192_v61 = vld [vmem:[%s12543_s0 + $0xc8] sm:$0xff]  }
 0x276   :  { %v1331_v39 = vpop.f32.mrf.mxu0  ;;  %v9990_v12 = vpop.f32.mrf.mxu1  ;;  %v8193_v30 = vld [vmem:[%s12543_s0 + $0xd0] sm:$0xff]  }
 0x277   :  { %12997 = vst [vmem:[#allocation175_spill] sm:$0xff] %v9988_v32  ;;  %12998 = vst [vmem:[#allocation176_spill] sm:$0xff] %v9990_v12  ;;  %v9993_v11 = vadd.f32 %v1331_v39, %v9014_v21  ;;  %v13004_v21 = vld [vmem:[#allocation4_spill] sm:$0xff] }
 0x278   :  { %v1333_v10 = vpop.f32.mrf.mxu0  ;;  %v9995_v16 = vpop.f32.mrf.mxu1  ;;  %v998_v39 = vadd.f32 %v9035_v52, %v13004_v21  ;;  %v13010_v52 = vld [vmem:[#allocation6_spill] sm:$0xff] }
 0x279   :  { %12999 = vst [vmem:[#allocation177_spill] sm:$0xff] %v9993_v11  ;;  %13000 = vst [vmem:[#allocation178_spill] sm:$0xff] %v9995_v16  ;;  %v10000_v29 = vadd.f32 %v1333_v10, %v9019_v42  ;;  %v13007_v10 = vld [vmem:[#allocation5_spill] sm:$0xff] }
 0x27a   :  { %v1337_v28 = vpop.f32.mrf.mxu0  ;;  %v10002_v38 = vpop.f32.mrf.mxu1  ;;  %6924 = vmatmul.mubr.msk.bf16.gmra.mxu0 %vm259_vm1, %v8189_v2  ;;  %6959 = vmatmul.mubr.msk.bf16.gmra.mxu1 %vm259_vm1, %v8189_v2  ;;  %v1000_v40 = vadd.f32 %v9042_v3, %v13007_v10 }
 0x27b   :  { %13002 = vst [vmem:[#allocation3_spill] sm:$0xff] %v10000_v29  ;;  %13003 = vst [vmem:[#allocation179_spill] sm:$0xff] %v10002_v38  ;;  %v10011_v26 = vadd.f32 %v1337_v28, %v996_v43  ;;  %2157 = vmatprep.mubr.bf16.mxu0 %v12769_v4  ;;  %2479 = vmatprep.mubr.bf16.mxu1 %v12769_v4  ;;  %v1002_v28 = vadd.f32 %v9049_v36, %v13010_v52  ;;  %v8190_v36 = vld [vmem:[%s12543_s0 + $0xb8] sm:$0xff]  }
 0x27c   :  { %v1339_v1 = vpop.f32.mrf.mxu0  ;;  %v10015_v42 = vpop.f32.mrf.mxu1 }
 0x27d   :  { %13005 = vst [vmem:[#allocation4_spill] sm:$0xff] %v10011_v26  ;;  %13006 = vst [vmem:[#allocation180_spill] sm:$0xff] %v10015_v42  ;;  %v10021_v16 = vadd.f32 %v1339_v1, %v998_v39 }
 0x27e   :  { %v1341_v2 = vpop.f32.mrf.mxu0  ;;  %v10023_v25 = vpop.f32.mrf.mxu1 }
 0x27f   :  { %13008 = vst [vmem:[#allocation5_spill] sm:$0xff] %v10021_v16  ;;  %13009 = vst [vmem:[#allocation181_spill] sm:$0xff] %v10023_v25  ;;  %v10029_v21 = vadd.f32 %v1341_v2, %v1000_v40  ;;  %v8191_v40 = vld [vmem:[%s12543_s0 + $0xc0] sm:$0xff]  }
 0x280   :  { %v1343_v12 = vpop.f32.mrf.mxu0  ;;  %v10031_v42 = vpop.f32.mrf.mxu1 }
 0x281   :  { %13011 = vst [vmem:[#allocation6_spill] sm:$0xff] %v10029_v21  ;;  %13012 = vst [vmem:[#allocation182_spill] sm:$0xff] %v10031_v42  ;;  %v10035_v10 = vadd.f32 %v1343_v12, %v1002_v28 }
 0x282   :  { %v10037_v39 = vpop.f32.mrf.mxu1  ;;  %v1919_v1 = vpop.f32.mrf.mxu0  ;;  %6925 = vmatmul.mubr.msk.bf16.gmra.mxu0 %vm259_vm1, %v8190_v36  ;;  %6960 = vmatmul.mubr.msk.bf16.gmra.mxu1 %vm259_vm1, %v8190_v36 }
 0x283   :  { %13013 = vst [vmem:[#allocation183_spill] sm:$0xff] %v10035_v10  ;;  %13014 = vst [vmem:[#allocation184_spill] sm:$0xff] %v10037_v39  ;;  %2167 = vmatprep.mubr.bf16.mxu0 %v12769_v4  ;;  %2489 = vmatprep.mubr.bf16.mxu1 %v12769_v4  ;;  %v1920_v42 = vadd.f32 %v1919_v1, %v9063_v19  ;;  %v231_v19 = vld [vmem:[%s12545_s2] sm:$0x3] }
 0x284   :  { %v10048_v12 = vpop.f32.mrf.mxu1  ;;  %v1921_v2 = vpop.f32.mrf.mxu0 }
 0x285   :  { %13015 = vst [vmem:[#allocation185_spill] sm:$0xff] %v10048_v12 }
 0x286   :  { %v10050_v52 = vpop.f32.mrf.mxu1  ;;  %v1923_v28 = vpop.f32.mrf.mxu0 }
 0x287   :  { %13016 = vst [vmem:[#allocation186_spill] sm:$0xff] %v10050_v52  ;;  %v1924_v1 = vadd.f32 %v1923_v28, %v9079_v7 }
 0x288   :  { %v10052_v3 = vpop.f32.mrf.mxu1  ;;  %v10054_v43 = vpop.f32.mrf.mxu0 }
 0x289   :  { %13017 = vst [vmem:[#allocation187_spill] sm:$0xff] %v10052_v3  ;;  %v2765_v3 = vlaneseq }
 0x28a   :  { %v10056_v35 = vpop.f32.mrf.mxu1  ;;  %v1929_v36 = vpop.f32.mrf.mxu0  ;;  %6926 = vmatmul.mubr.msk.bf16.gmra.mxu0 %vm259_vm1, %v8191_v40  ;;  %6961 = vmatmul.mubr.msk.bf16.gmra.mxu1 %vm259_vm1, %v8191_v40 }
 0x28b   :  { %13018 = vst [vmem:[#allocation188_spill] sm:$0xff] %v10056_v35  ;;  %2177 = vmatprep.mubr.bf16.mxu0 %v12769_v4  ;;  %2499 = vmatprep.mubr.bf16.mxu1 %v12769_v4  ;;  %v10084_v12 = vshrl.u32 %v2765_v3, 7  ;;  %v1922_v3 = vadd.f32 %v1921_v2, %v9074_v9 }
 0x28c   :  { %v10065_v10 = vpop.f32.mrf.mxu1  ;;  %v1931_v29 = vpop.f32.mrf.mxu0 }
 0x28d   :  { %13019 = vst [vmem:[#allocation189_spill] sm:$0xff] %v10065_v10  ;;  %13022 = vst [vmem:[#allocation192_spill] sm:$0xff] %v10084_v12  ;;  %v12664_v53 = vsub.s32 0, %v10084_v12  ;;  %v1932_v22 = vadd.f32 %v1931_v29, %v9105_v8 }
 0x28e   :  { %v10067_v21 = vpop.f32.mrf.mxu1  ;;  %v1933_v11 = vpop.f32.mrf.mxu0 }
 0x28f   :  { %13020 = vst [vmem:[#allocation190_spill] sm:$0xff] %v10067_v21  ;;  %v1934_v9 = vadd.f32 %v1933_v11, %v9112_v46  ;;  %v13023_v46 = vmax.f32 %v9005_v62, %v9031_v63 }
 0x290   :  { %v10069_v16 = vpop.f32.mrf.mxu1  ;;  %v1935_v32 = vpop.f32.mrf.mxu0 }
 0x291   :  { %13021 = vst [vmem:[#allocation191_spill] sm:$0xff] %v10069_v16  ;;  %v1936_v11 = vadd.f32 %v1935_v32, %v9122_v0  ;;  %v13027_v32 = vld [vmem:[#allocation68_spill] sm:$0xff] }
 0x292   :  { %v10071_v26 = vpop.f32.mrf.mxu0  ;;  %6927 = vmatmul.mubr.msk.bf16.gmra.mxu0 %vm259_vm1, %v8192_v61  ;;  %v2261_v40 = vpop.f32.mrf.mxu1  ;;  %6962 = vmatmul.mubr.msk.bf16.gmra.mxu1 %vm259_vm1, %v8192_v61  ;;  %v1930_v61 = vadd.f32 %v1929_v36, %v9093_v59 }
 0x293   :  { %2187 = vmatprep.mubr.bf16.mxu0 %v12769_v4  ;;  %2509 = vmatprep.mubr.bf16.mxu1 %v12769_v4  ;;  %v2540_v18 = vadd.f32 %v2261_v40, %v1920_v42  ;;  %v7867_v42 = vld [vmem:[%s12544_s3 + $0x3f4] ss:$8 sps:$4 sm:$0xff]  }
 0x294   :  { %v10080_v21 = vpop.f32.mrf.mxu0  ;;  %v2263_v16 = vpop.f32.mrf.mxu1  ;;  %4268 = vmatprep.subr.bf16.mxu1 %v7867_v42 }
 0x295   :  { %v2541_v2 = vadd.f32 %v2263_v16, %v1922_v3 }
 0x296   :  { %v10082_v52 = vpop.f32.mrf.mxu0  ;;  %v2265_v10 = vpop.f32.mrf.mxu1 }
 0x298   :  { %v10086_v35 = vpop.f32.mrf.mxu0  ;;  %v2267_v39 = vpop.f32.mrf.mxu1 }
 0x29a   :  { %v1949_v25 = vpop.f32.mrf.mxu0  ;;  %6928 = vmatmul.mubr.msk.bf16.gmra.mxu0 %vm259_vm1, %v8193_v30  ;;  %v2271_v38 = vpop.f32.mrf.mxu1  ;;  %6963 = vmatmul.mubr.msk.bf16.gmra.mxu1 %vm259_vm1, %v8193_v30  ;;  %v7864_v30 = vld [vmem:[%s12544_s3 + $0x234] ss:$8 sps:$4 sm:$0xff]  }
 0x29b   :  { %v2544_v59 = vadd.f32 %v2271_v38, %v1930_v61  ;;  %2519 = vmatprep.mubr.bf16.mxu1 %v12769_v4  ;;  %v10112_v38 = vrot.slane %v231_v19, %v12664_v53  ;;  %3813 = vmatprep.subr.bf16.mxu0 %v7864_v30  ;;  %v2542_v61 = vadd.f32 %v2265_v10, %v1924_v1  ;;  %v13026_v1 = vsub.s32 1, %v10084_v12 }
 0x29c   :  { %v1951_v36 = vpop.f32.mrf.mxu0  ;;  %v2273_v33 = vpop.f32.mrf.mxu1  ;;  %v13025_v30 = vmax.f32 %v9012_v44, %v13024_v34 }
 0x29d   :  { %v2652_v8 = vmax.f32 %v2540_v18, %v2544_v59  ;;  %v2545_v29 = vadd.f32 %v2273_v33, %v1932_v22  ;;  %v1926_v33 = vadd.f32 %v10054_v43, %v9084_v41  ;;  %v10126_v62 = vrot.slane %v231_v19, %v13026_v1  ;;  %v8194_v41 = vld [vmem:[%s12543_s0 + $0xd8] sm:$0xff]   ;;  %v13028_v43 = vld [vmem:[#allocation71_spill] sm:$0xff] }
 0x29e   :  { %v1953_v28 = vpop.f32.mrf.mxu0  ;;  %v2275_v40 = vpop.f32.mrf.mxu1  ;;  %v13029_v44 = vmax.f32 %v13027_v32, %v13028_v43  ;;  %v1950_v1 = vadd.f32 %v1949_v25, %v9164_v58 }
 0x29f   :  { %v2708_v16 = vmax.f32 %v13023_v46, %v2652_v8  ;;  %v2653_v18 = vmax.f32 %v2541_v2, %v2545_v29  ;;  %v2546_v22 = vadd.f32 %v2275_v40, %v1934_v9  ;;  %v2543_v7 = vadd.f32 %v2267_v39, %v1926_v33  ;;  %v13030_v40 = vld [vmem:[#allocation69_spill] sm:$0xff] }
 0x2a0   :  { %v1955_v3 = vpop.f32.mrf.mxu0  ;;  %v2277_v59 = vpop.f32.mrf.mxu1 }
 0x2a1   :  { %v2654_v53 = vmax.f32 %v2542_v61, %v2546_v22  ;;  %v2709_v10 = vmax.f32 %v13025_v30, %v2653_v18  ;;  %v2547_v63 = vadd.f32 %v2277_v59, %v1936_v11  ;;  %v2775_v0 = vadd.f32 %v10112_v38, %v2708_v16  ;;  %v13031_v61 = vld [vmem:[#allocation72_spill] sm:$0xff] }
 0x2a2   :  { %v10128_v9 = vpop.f32.mrf.mxu0  ;;  %v2281_v2 = vpop.f32.mrf.mxu1  ;;  %6964 = vmatmul.mubr.msk.bf16.gmra.mxu1 %vm259_vm1, %v8194_v41  ;;  %v13032_v46 = vmax.f32 %v13030_v40, %v13031_v61  ;;  %v1940_v30 = vadd.f32 %v10071_v26, %v9129_v47  ;;  %v1944_v47 = vadd.f32 %v10082_v52, %v9148_v45  ;;  %v13034_v61 = vld [vmem:[#allocation73_spill] sm:$0xff] }
 0x2a3   :  { %v2710_v34 = vmax.f32 %v13029_v44, %v2654_v53  ;;  %2529 = vmatprep.mubr.bf16.mxu1 %v12769_v4  ;;  %v2655_v39 = vmax.f32 %v2543_v7, %v2547_v63  ;;  %v2776_v42 = vadd.f32 %v10126_v62, %v2709_v10  ;;  %v2831_v33 = vmax.f32 %v2775_v0, 0.0 }
 0x2a4   :  { %v10139_v19 = vpop.f32.mrf.mxu0  ;;  %v2283_v8 = vpop.f32.mrf.mxu1  ;;  %v1942_v0 = vadd.f32 %v10080_v21, %v9143_v14  ;;  %v1952_v44 = vadd.f32 %v1951_v36, %v9177_v24 }
 0x2a5   :  { %v2777_v29 = vadd.f32 %v10112_v38, %v2710_v34  ;;  %v2711_v18 = vmax.f32 %v13032_v46, %v2655_v39  ;;  %v2832_v63 = vmax.f32 %v2776_v42, 0.0  ;;  %v2548_v34 = vadd.f32 %v2281_v2, %v1940_v30  ;;  %v13033_v42 = vld [vmem:[#allocation87_spill] sm:$0xff]  ;;  %v7870_v2 = vld [vmem:[%s12544_s3 + $0x224] ss:$8 sps:$4 sm:$0xff]  }
 0x2a6   :  { %v10146_v22 = vpop.f32.mrf.mxu0  ;;  %v2285_v16 = vpop.f32.mrf.mxu1  ;;  %v1954_v14 = vadd.f32 %v1953_v28, %v13033_v42  ;;  %v2549_v21 = vadd.f32 %v2283_v8, %v1942_v0  ;;  %v13035_v46 = vld [vmem:[#allocation77_spill] sm:$0xff]  ;;  %v7865_v8 = vld [vmem:[%s12544_s3 + $0x3f0] ss:$8 sps:$4 sm:$0xff]  }
 0x2a7   :  { %v2833_v11 = vmax.f32 %v2777_v29, 0.0  ;;  %v2778_v53 = vadd.f32 %v10126_v62, %v2711_v18  ;;  %v7862_v29 = vld [vmem:[%s12544_s3 + $0x230] ss:$8 sps:$4 sm:$0xff]   ;;  %v2550_v40 = vadd.f32 %v2285_v16, %v1944_v47  ;;  %v13036_v18 = vmax.f32 %v13034_v61, %v13035_v46  ;;  %v7873_v0 = vld [vmem:[%s12544_s3 + $0x3e4] ss:$8 sps:$4 sm:$0xff]  }
 0x2a8   :  { %v10149_v59 = vpop.f32.mrf.mxu0  ;;  %v2287_v7 = vpop.f32.mrf.mxu1 }
 0x2a9   :  { %v10154_v10 = vpack.c.bf16 %v2833_v11, %v2831_v33  ;;  %v2834_v41 = vmax.f32 %v2778_v53, 0.0  ;;  %v13037_v53 = vld [vmem:[#allocation84_spill] sm:$0xff] }
 0x2aa   :  { %v10156_v32 = vpop.f32.mrf.mxu0  ;;  %v2291_v43 = vpop.f32.mrf.mxu1  ;;  %2530 = vmatmul.mubr.bf16.gmra.mxu1 %v12769_v4  ;;  %v1946_v30 = vadd.f32 %v10086_v35, %v13037_v53  ;;  %v7876_v35 = vld [vmem:[%s12544_s3 + $0x214] ss:$8 sps:$4 sm:$0xff]  }
 0x2ab   :  { %v2552_v39 = vadd.f32 %v2291_v43, %v1950_v1  ;;  %3503 = vmatprep.mubr.bf16.mxu1 %v12769_v4  ;;  %v10167_v26 = vpack.c.bf16 %v2834_v41, %v2832_v63  ;;  %v13038_v1 = vld [vmem:[#allocation88_spill] sm:$0xff]  ;;  %v7868_v43 = vld [vmem:[%s12544_s3 + $0x220] ss:$8 sps:$4 sm:$0xff]  }
 0x2ac   :  { %v10165_v58 = vpop.f32.mrf.mxu0  ;;  %v2293_v25 = vpop.f32.mrf.mxu1  ;;  %v1956_v63 = vadd.f32 %v1955_v3, %v13038_v1  ;;  %v13039_v3 = vld [vmem:[#allocation74_spill] sm:$0xff]  ;;  %v13046_v53 = vld [vmem:[#allocation80_spill] sm:$0xff] }
 0x2ad   :  { %v2656_v24 = vmax.f32 %v2548_v34, %v2552_v39  ;;  %v2553_v36 = vadd.f32 %v2293_v25, %v1952_v44  ;;  %7021 = vmatprep.mubr.msk.bf16.mxu0 %vm3113_vm2, %v10167_v26  ;;  %v2551_v34 = vadd.f32 %v2287_v7, %v1946_v30  ;;  %v13040_v39 = vld [vmem:[#allocation78_spill] sm:$0xff] }
 0x2ae   :  { %v10178_v45 = vpop.f32.mrf.mxu0  ;;  %v2295_v52 = vpop.f32.mrf.mxu1  ;;  %3189 = vmatmul.mubr.bf16.vlgmr.msra.gmra.mxu0 %v10154_v10  ;;  %v13041_v47 = vmax.f32 %v13039_v3, %v13040_v39  ;;  %v7871_v7 = vld [vmem:[%s12544_s3 + $0x3e0] ss:$8 sps:$4 sm:$0xff]  }
 0x2af   :  { %v2712_v33 = vmax.f32 %v13036_v18, %v2656_v24  ;;  %v2657_v11 = vmax.f32 %v2549_v21, %v2553_v36  ;;  %v2554_v28 = vadd.f32 %v2295_v52, %v1954_v14  ;;  %3814 = vmatpush1.bf16.msra.mxu0 %v7862_v29  ;;  %v13042_v24 = vld [vmem:[#allocation75_spill] sm:$0xff]  ;;  %v13048_v39 = vld [vmem:[#allocation89_spill] sm:$0xff] }
 0x2b0   :  { %v10190_v41 = vpop.f32.mrf.mxu0  ;;  %v2297_v16 = vpop.f32.mrf.mxu1  ;;  %3815 = vmatprep.subr.bf16.mxu0 %v7870_v2  ;;  %v13043_v36 = vld [vmem:[#allocation79_spill] sm:$0xff] }
 0x2b1   :  { %v2658_v44 = vmax.f32 %v2550_v40, %v2554_v28  ;;  %v2713_v25 = vmax.f32 %v13041_v47, %v2657_v11  ;;  %v2555_v29 = vadd.f32 %v2297_v16, %v1956_v63  ;;  %v2779_v21 = vadd.f32 %v10112_v38, %v2712_v33  ;;  %v7874_v18 = vld [vmem:[%s12544_s3 + $0x210] ss:$8 sps:$4 sm:$0xff]   ;;  %v7879_v33 = vld [vmem:[%s12544_s3 + $0x3d4] ss:$8 sps:$4 sm:$0xff]  }
 0x2b2   :  { %v10204_v42 = vpop.f32.mrf.mxu0  ;;  %v2301_v14 = vpop.f32.mrf.mxu1  ;;  %3504 = vmatmul.mubr.bf16.vlgmr.msra.gmra.mxu1 %v12769_v4  ;;  %v13044_v2 = vmax.f32 %v13042_v24, %v13043_v36  ;;  %v1960_v47 = vadd.f32 %v10128_v9, %v13048_v39  ;;  %v7880_v24 = vld [vmem:[%s12544_s3 + $0x200] ss:$8 sps:$4 sm:$0xff]   ;;  %v7882_v36 = vld [vmem:[%s12544_s3 + $0x204] ss:$8 sps:$4 sm:$0xff]  }
 0x2b3   :  { %7063 = vmatprep.mubr.msk.bf16.mxu1 %vm3113_vm2, %v10167_v26  ;;  %4269 = vmatpush1.bf16.msra.mxu1 %v7865_v8  ;;  %v2659_v40 = vmax.f32 %v2551_v34, %v2555_v29  ;;  %v2780_v28 = vadd.f32 %v10126_v62, %v2713_v25  ;;  %v13045_v8 = vld [vmem:[#allocation76_spill] sm:$0xff]  ;;  %v13049_v25 = vld [vmem:[#allocation94_spill] sm:$0xff] }
 0x2b4   :  { %v2714_v52 = vmax.f32 %v13044_v2, %v2658_v44  ;;  %v10216_v61 = vpop.f32.mrf.mxu0  ;;  %v2303_v46 = vpop.f32.mrf.mxu1  ;;  %3816 = vmatpush1.bf16.msra.mxu0 %v7868_v43  ;;  %4270 = vmatprep.subr.bf16.mxu1 %v7873_v0  ;;  %v13047_v30 = vmax.f32 %v13045_v8, %v13046_v53  ;;  %v2835_v43 = vmax.f32 %v2779_v21, 0.0  ;;  %v7877_v44 = vld [vmem:[%s12544_s3 + $0x3d0] ss:$8 sps:$4 sm:$0xff]   ;;  %v1970_v29 = vadd.f32 %v10156_v32, %v13049_v25  ;;  %v13054_v25 = vld [vmem:[#allocation86_spill] sm:$0xff] }
 0x2b5   :  { %3817 = vmatprep.subr.bf16.mxu0 %v7876_v35  ;;  %v13050_v2 = vld [vmem:[#allocation91_spill] sm:$0xff]  ;;  %v13051_v32 = vld [vmem:[#allocation96_spill] sm:$0xff] }
 0x2b6   :  { %v2781_v11 = vadd.f32 %v10112_v38, %v2714_v52  ;;  %v2715_v1 = vmax.f32 %v13047_v30, %v2659_v40  ;;  %v10229_v63 = vpop.f32.mrf.mxu0  ;;  %v2305_v16 = vpop.f32.mrf.mxu1  ;;  %v1962_v52 = vadd.f32 %v10139_v19, %v13050_v2  ;;  %v13052_v53 = vld [vmem:[#allocation92_spill] sm:$0xff] }
 0x2b7   :  { %4271 = vmatpush1.bf16.msra.mxu1 %v7871_v7  ;;  %v2836_v7 = vmax.f32 %v2780_v28, 0.0  ;;  %v1964_v30 = vadd.f32 %v10146_v22, %v13052_v53  ;;  %v7883_v22 = vld [vmem:[%s12544_s3 + $0x3c0] ss:$8 sps:$4 sm:$0xff]  }
 0x2b8   :  { %v2837_v0 = vmax.f32 %v2781_v11, 0.0  ;;  %v2782_v34 = vadd.f32 %v10126_v62, %v2715_v1  ;;  %v10235_v3 = vpop.f32.mrf.mxu0  ;;  %v2307_v35 = vpop.f32.mrf.mxu1  ;;  %3818 = vmatpush1.bf16.msra.mxu0 %v7874_v18  ;;  %4272 = vmatprep.subr.bf16.mxu1 %v7879_v33  ;;  %v1972_v33 = vadd.f32 %v10165_v58, %v13051_v32  ;;  %v2556_v11 = vadd.f32 %v2301_v14, %v1960_v47  ;;  %v13057_v53 = vld [vmem:[#allocation82_spill] sm:$0xff] }
 0x2b9   :  { %3819 = vmatprep.subr.bf16.mxu0 %v7882_v36  ;;  %v1974_v58 = vadd.f32 %v10178_v45, %v9267_v15  ;;  %v2557_v14 = vadd.f32 %v2303_v46, %v1962_v52  ;;  %v7886_v15 = vld [vmem:[%s12544_s3 + $0x1f0] ss:$8 sps:$4 sm:$0xff]   ;;  %v2558_v45 = vadd.f32 %v2305_v16, %v1964_v30  ;;  %v13053_v46 = vld [vmem:[#allocation81_spill] sm:$0xff]  ;;  %v7891_v52 = vld [vmem:[%s12544_s3 + $0x3b4] ss:$8 sps:$4 sm:$0xff]  }
 0x2ba   :  { %v10241_v21 = vpack.c.bf16 %v2837_v0, %v2835_v43  ;;  %v2838_v40 = vmax.f32 %v2782_v34, 0.0  ;;  %v10251_v18 = vpop.f32.mrf.mxu0  ;;  %v2311_v9 = vpop.f32.mrf.mxu1  ;;  %3514 = vmatmul.mubr.bf16.gmra.mxu1 %v10154_v10  ;;  %v7885_v43 = vld [vmem:[%s12544_s3 + $0x3c4] ss:$8 sps:$4 sm:$0xff]   ;;  %v7888_v34 = vld [vmem:[%s12544_s3 + $0x1f4] ss:$8 sps:$4 sm:$0xff]  }
 0x2bb   :  { %v2560_v8 = vadd.f32 %v2311_v9, %v1970_v29  ;;  %4273 = vmatpush1.bf16.msra.mxu1 %v7877_v44  ;;  %v13055_v29 = vmax.f32 %v13053_v46, %v13054_v25  ;;  %v1976_v9 = vadd.f32 %v10190_v41, %v9274_v6  ;;  %v13058_v30 = vld [vmem:[#allocation7_spill] sm:$0xff]  ;;  %v13063_v25 = vld [vmem:[#allocation85_spill] sm:$0xff] }
 0x2bc   :  { %v10258_v1 = vpack.c.bf16 %v2838_v40, %v2836_v7  ;;  %v10260_v19 = vpop.f32.mrf.mxu0  ;;  %v2313_v28 = vpop.f32.mrf.mxu1  ;;  %3820 = vmatpush1.bf16.msra.mxu0 %v7880_v24  ;;  %v13056_v7 = vld [vmem:[#allocation93_spill] sm:$0xff]  ;;  %4274 = vmatprep.subr.bf16.mxu1 %v7885_v43  ;;  %v13060_v43 = vld [vmem:[#allocation83_spill] sm:$0xff] }
 0x2bd   :  { %v2660_v0 = vmax.f32 %v2556_v11, %v2560_v8  ;;  %v2561_v44 = vadd.f32 %v2313_v28, %v1972_v33  ;;  %v1966_v40 = vadd.f32 %v10149_v59, %v13056_v7  ;;  %3821 = vmatprep.subr.bf16.mxu0 %v7888_v34  ;;  %v7889_v11 = vld [vmem:[%s12544_s3 + $0x3b0] ss:$8 sps:$4 sm:$0xff]   ;;  %v13059_v28 = vmax.f32 %v13057_v53, %v13058_v30 }
 0x2be   :  { %7022 = vmatprep.mubr.msk.bf16.mxu0 %vm3113_vm2, %v10258_v1  ;;  %7064 = vmatprep.mubr.msk.bf16.mxu1 %vm3113_vm2, %v10258_v1  ;;  %v1993_v39 = vpop.f32.mrf.mxu0  ;;  %v2315_v47 = vpop.f32.mrf.mxu1 }
 0x2bf   :  { %v2716_v24 = vmax.f32 %v13055_v29, %v2660_v0  ;;  %v2661_v36 = vmax.f32 %v2557_v14, %v2561_v44  ;;  %v2562_v2 = vadd.f32 %v2315_v47, %v1974_v58  ;;  %3199 = vmatmul.mubr.bf16.gmra.mxu0 %v10241_v21  ;;  %4275 = vmatpush1.bf16.msra.mxu1 %v7883_v22  ;;  %v13061_v0 = vld [vmem:[#allocation8_spill] sm:$0xff]  ;;  %v13064_v29 = vld [vmem:[#allocation9_spill] sm:$0xff] }
 0x2c0   :  { %v10291_v32 = vpop.f32.mrf.mxu0  ;;  %v2317_v16 = vpop.f32.mrf.mxu1  ;;  %v2559_v8 = vadd.f32 %v2307_v35, %v1966_v40  ;;  %3822 = vmatpush1.bf16.msra.mxu0 %v7886_v15  ;;  %v13062_v44 = vmax.f32 %v13060_v43, %v13061_v0  ;;  %4276 = vmatprep.subr.bf16.mxu1 %v7891_v52 }
 0x2c1   :  { %v2662_v33 = vmax.f32 %v2558_v45, %v2562_v2  ;;  %v2717_v58 = vmax.f32 %v13059_v28, %v2661_v36  ;;  %v2563_v59 = vadd.f32 %v2317_v16, %v1976_v9  ;;  %v2783_v41 = vadd.f32 %v10112_v38, %v2716_v24  ;;  %v7892_v28 = vld [vmem:[%s12544_s3 + $0x1e0] ss:$8 sps:$4 sm:$0xff]  }
 0x2c2   :  { %v10299_v14 = vpop.f32.mrf.mxu0  ;;  %v2321_v6 = vpop.f32.mrf.mxu1  ;;  %3524 = vmatmul.mubr.bf16.gmra.mxu1 %v10241_v21  ;;  %v13065_v36 = vmax.f32 %v13063_v25, %v13064_v29  ;;  %v13070_v25 = vld [vmem:[#allocation100_spill] sm:$0xff] }
 0x2c3   :  { %v2718_v22 = vmax.f32 %v13062_v44, %v2662_v33  ;;  %v2663_v34 = vmax.f32 %v2559_v8, %v2563_v59  ;;  %4277 = vmatpush1.bf16.msra.mxu1 %v7889_v11  ;;  %v2784_v46 = vadd.f32 %v10126_v62, %v2717_v58  ;;  %v2839_v7 = vmax.f32 %v2783_v41, 0.0  ;;  %v13066_v33 = vld [vmem:[#allocation97_spill] sm:$0xff]  ;;  %v13067_v11 = vld [vmem:[#allocation102_spill] sm:$0xff]  ;;  %v13068_v44 = vld [vmem:[#allocation99_spill] sm:$0xff] }
 0x2c4   :  { %v10306_v35 = vpop.f32.mrf.mxu0  ;;  %v2323_v47 = vpop.f32.mrf.mxu1  ;;  %v1980_v8 = vadd.f32 %v10204_v42, %v13066_v33  ;;  %v1990_v53 = vadd.f32 %v10251_v18, %v13067_v11  ;;  %v7894_v58 = vld [vmem:[%s12544_s3 + $0x1e4] ss:$8 sps:$4 sm:$0xff]   ;;  %v1982_v42 = vadd.f32 %v10216_v61, %v13068_v44  ;;  %v1984_v29 = vadd.f32 %v10229_v63, %v13070_v25  ;;  %v13072_v11 = vld [vmem:[#allocation95_spill] sm:$0xff] }
 0x2c5   :  { %v2785_v45 = vadd.f32 %v10112_v38, %v2718_v22  ;;  %v2719_v15 = vmax.f32 %v13065_v36, %v2663_v34  ;;  %v2840_v59 = vmax.f32 %v2784_v46, 0.0  ;;  %v13069_v22 = vld [vmem:[#allocation104_spill] sm:$0xff]  ;;  %3823 = vmatprep.subr.bf16.mxu0 %v7894_v58  ;;  %v1994_v61 = vadd.f32 %v1993_v39, %v9341_v17  ;;  %v13075_v25 = vld [vmem:[#allocation10_spill] sm:$0xff] }
 0x2c6   :  { %v10313_v2 = vpop.f32.mrf.mxu0  ;;  %v2325_v24 = vpop.f32.mrf.mxu1  ;;  %v1992_v18 = vadd.f32 %v10260_v19, %v13069_v22  ;;  %v2564_v34 = vadd.f32 %v2321_v6, %v1980_v8  ;;  %3824 = vmatpush1.bf16.msra.mxu0 %v7892_v28  ;;  %v7900_v17 = vld [vmem:[%s12544_s3 + $0x1d4] ss:$8 sps:$4 sm:$0xff]   ;;  %v13071_v8 = vld [vmem:[#allocation90_spill] sm:$0xff] }
 0x2c7   :  { %v2841_v40 = vmax.f32 %v2785_v45, 0.0  ;;  %v2786_v52 = vadd.f32 %v10126_v62, %v2719_v15  ;;  %v7903_v39 = vld [vmem:[%s12544_s3 + $0x394] ss:$8 sps:$4 sm:$0xff]   ;;  %3825 = vmatprep.subr.bf16.mxu0 %v7900_v17 }
 0x2c8   :  { %v10316_v9 = vpop.f32.mrf.mxu0  ;;  %v2327_v16 = vpop.f32.mrf.mxu1 }
 0x2c9   :  { %v10322_v30 = vpack.c.bf16 %v2841_v40, %v2839_v7  ;;  %v2842_v41 = vmax.f32 %v2786_v52, 0.0  ;;  %v7897_v7 = vld [vmem:[%s12544_s3 + $0x3a4] ss:$8 sps:$4 sm:$0xff]   ;;  %v2565_v40 = vadd.f32 %v2323_v47, %v1982_v42  ;;  %v7895_v52 = vld [vmem:[%s12544_s3 + $0x3a0] ss:$8 sps:$4 sm:$0xff]   ;;  %v2566_v47 = vadd.f32 %v2325_v24, %v1984_v29 }
 0x2ca   :  { %v10330_v43 = vpop.f32.mrf.mxu0  ;;  %v2331_v0 = vpop.f32.mrf.mxu1  ;;  %v1996_v42 = vadd.f32 %v10291_v32, %v9348_v51  ;;  %4278 = vmatprep.subr.bf16.mxu1 %v7897_v7  ;;  %v13076_v29 = vld [vmem:[#allocation13_spill] sm:$0xff]  ;;  %v13078_v7 = vld [vmem:[#allocation11_spill] sm:$0xff] }
 0x2cb   :  { %v2568_v45 = vadd.f32 %v2331_v0, %v1990_v53  ;;  %v10338_v36 = vpack.c.bf16 %v2842_v41, %v2840_v59  ;;  %v13073_v53 = vmax.f32 %v13071_v8, %v13072_v11  ;;  %v7898_v41 = vld [vmem:[%s12544_s3 + $0x1d0] ss:$8 sps:$4 sm:$0xff]   ;;  %v13074_v0 = vld [vmem:[#allocation101_spill] sm:$0xff]  ;;  %4279 = vmatpush1.bf16.msra.mxu1 %v7895_v52 }
 0x2cc   :  { %v10340_v15 = vpop.f32.mrf.mxu0  ;;  %v2333_v46 = vpop.f32.mrf.mxu1  ;;  %v1986_v44 = vadd.f32 %v10235_v3, %v13074_v0  ;;  %4280 = vmatprep.subr.bf16.mxu1 %v7903_v39  ;;  %3826 = vmatpush1.bf16.msra.mxu0 %v7898_v41 }
 0x2cd   :  { %v2664_v19 = vmax.f32 %v2564_v34, %v2568_v45  ;;  %v2569_v6 = vadd.f32 %v2333_v46, %v1992_v18  ;;  %7023 = vmatprep.mubr.msk.bf16.mxu0 %vm3113_vm2, %v10338_v36  ;;  %7065 = vmatprep.mubr.msk.bf16.mxu1 %vm3113_vm2, %v10338_v36  ;;  %v7901_v34 = vld [vmem:[%s12544_s3 + $0x390] ss:$8 sps:$4 sm:$0xff]   ;;  %v13077_v46 = vmax.f32 %v13075_v25, %v13076_v29 }
 0x2ce   :  { %v10353_v63 = vpop.f32.mrf.mxu0  ;;  %v2335_v33 = vpop.f32.mrf.mxu1  ;;  %3209 = vmatmul.mubr.bf16.gmra.mxu0 %v10322_v30  ;;  %3534 = vmatmul.mubr.bf16.gmra.mxu1 %v10322_v30  ;;  %v2567_v45 = vadd.f32 %v2327_v16, %v1986_v44 }
 0x2cf   :  { %v2720_v28 = vmax.f32 %v13073_v53, %v2664_v19  ;;  %v2665_v58 = vmax.f32 %v2565_v40, %v2569_v6  ;;  %v2570_v59 = vadd.f32 %v2335_v33, %v1994_v61  ;;  %v13079_v19 = vld [vmem:[#allocation14_spill] sm:$0xff]  ;;  %4281 = vmatpush1.bf16.msra.mxu1 %v7901_v34  ;;  %v13081_v53 = vld [vmem:[#allocation12_spill] sm:$0xff] }
 0x2d0   :  { %v10373_v24 = vpop.f32.mrf.mxu0  ;;  %v2337_v22 = vpop.f32.mrf.mxu1  ;;  %v13080_v6 = vmax.f32 %v13078_v7, %v13079_v19  ;;  %v13085_v34 = vld [vmem:[#allocation110_spill] sm:$0xff] }
 0x2d1   :  { %v2666_v18 = vmax.f32 %v2566_v47, %v2570_v59  ;;  %v2721_v3 = vmax.f32 %v13077_v46, %v2665_v58  ;;  %v2571_v61 = vadd.f32 %v2337_v22, %v1996_v42  ;;  %v2787_v32 = vadd.f32 %v10112_v38, %v2720_v28  ;;  %v13082_v58 = vld [vmem:[#allocation15_spill] sm:$0xff]  ;;  %v7904_v46 = vld [vmem:[%s12544_s3 + $0x1c0] ss:$8 sps:$4 sm:$0xff]  }
 0x2d2   :  { %v10381_v40 = vpop.f32.mrf.mxu0  ;;  %v2341_v51 = vpop.f32.mrf.mxu1  ;;  %v13083_v17 = vmax.f32 %v13081_v53, %v13082_v58  ;;  %v2010_v25 = vadd.f32 %v10330_v43, %v13085_v34  ;;  %v13086_v43 = vld [vmem:[#allocation107_spill] sm:$0xff]  ;;  %v13088_v58 = vld [vmem:[#allocation108_spill] sm:$0xff] }
 0x2d3   :  { %v2722_v52 = vmax.f32 %v13080_v6, %v2666_v18  ;;  %v2667_v33 = vmax.f32 %v2567_v45, %v2571_v61  ;;  %v2788_v11 = vadd.f32 %v10126_v62, %v2721_v3  ;;  %v2843_v0 = vmax.f32 %v2787_v32, 0.0  ;;  %v13084_v18 = vld [vmem:[#allocation105_spill] sm:$0xff] }
 0x2d4   :  { %v10387_v47 = vpop.f32.mrf.mxu0  ;;  %v2343_v16 = vpop.f32.mrf.mxu1  ;;  %v2000_v45 = vadd.f32 %v10299_v14, %v13084_v18  ;;  %v7906_v3 = vld [vmem:[%s12544_s3 + $0x1c4] ss:$8 sps:$4 sm:$0xff]   ;;  %v2002_v6 = vadd.f32 %v10306_v35, %v13086_v43  ;;  %v7912_v35 = vld [vmem:[%s12544_s3 + $0x294] ss:$8 sps:$4 sm:$0xff]  }
 0x2d5   :  { %v2789_v8 = vadd.f32 %v10112_v38, %v2722_v52  ;;  %v2723_v39 = vmax.f32 %v13083_v17, %v2667_v33  ;;  %v2844_v61 = vmax.f32 %v2788_v11, 0.0  ;;  %v7909_v14 = vld [vmem:[%s12544_s3 + $0x384] ss:$8 sps:$4 sm:$0xff]   ;;  %v13087_v52 = vld [vmem:[#allocation112_spill] sm:$0xff]  ;;  %3827 = vmatprep.subr.bf16.mxu0 %v7906_v3  ;;  %v7907_v11 = vld [vmem:[%s12544_s3 + $0x380] ss:$8 sps:$4 sm:$0xff]   ;;  %v2004_v17 = vadd.f32 %v10313_v2, %v13088_v58 }
 0x2d6   :  { %v10394_v59 = vpop.f32.mrf.mxu0  ;;  %v2345_v28 = vpop.f32.mrf.mxu1  ;;  %v2012_v33 = vadd.f32 %v10340_v15, %v13087_v52  ;;  %3828 = vmatpush1.bf16.msra.mxu0 %v7904_v46  ;;  %4282 = vmatprep.subr.bf16.mxu1 %v7909_v14  ;;  %v2014_v15 = vadd.f32 %v10353_v63, %v9415_v37  ;;  %v7910_v2 = vld [vmem:[%s12544_s3 + $0x290] ss:$8 sps:$4 sm:$0xff]   ;;  %v7915_v37 = vld [vmem:[%s12544_s3 + $0x454] ss:$8 sps:$4 sm:$0xff]   ;;  %v13092_v14 = vld [vmem:[#allocation109_spill] sm:$0xff] }
 0x2d7   :  { %v2845_v44 = vmax.f32 %v2789_v8, 0.0  ;;  %v2790_v41 = vadd.f32 %v10126_v62, %v2723_v39  ;;  %v2572_v8 = vadd.f32 %v2341_v51, %v2000_v45  ;;  %v2573_v51 = vadd.f32 %v2343_v16, %v2002_v6  ;;  %4283 = vmatpush1.bf16.msra.mxu1 %v7907_v11  ;;  %v13089_v16 = vld [vmem:[#allocation98_spill] sm:$0xff]  ;;  %3833 = vmatprep.subr.bf16.mxu0 %v7912_v35  ;;  %v13094_v11 = vld [vmem:[#allocation19_spill] sm:$0xff]  ;;  %v13097_v35 = vld [vmem:[#allocation20_spill] sm:$0xff] }
 0x2d8   :  { %v10397_v42 = vpop.f32.mrf.mxu0  ;;  %v2347_v22 = vpop.f32.mrf.mxu1  ;;  %v2574_v63 = vadd.f32 %v2345_v28, %v2004_v17  ;;  %v2006_v43 = vadd.f32 %v10316_v9, %v13092_v14  ;;  %v2016_v6 = vadd.f32 %v10373_v24, %v9422_v23  ;;  %4288 = vmatprep.subr.bf16.mxu1 %v7915_v37  ;;  %v7921_v23 = vld [vmem:[%s12544_s3 + $0x444] ss:$8 sps:$4 sm:$0xff]   ;;  %v7927_v14 = vld [vmem:[%s12544_s3 + $0x434] ss:$8 sps:$4 sm:$0xff]  }
 0x2d9   :  { %v10403_v29 = vpack.c.bf16 %v2845_v44, %v2843_v0  ;;  %v2846_v32 = vmax.f32 %v2790_v41, 0.0 }
 0x2da   :  { %v10411_v7 = vpop.f32.mrf.mxu0  ;;  %v2351_v19 = vpop.f32.mrf.mxu1  ;;  %3834 = vmatpush2.bf16.msra.mxu0 %v7910_v2 }
 0x2db   :  { %v2576_v53 = vadd.f32 %v2351_v19, %v2010_v25  ;;  %v10425_v39 = vpack.c.bf16 %v2846_v32, %v2844_v61  ;;  %v13090_v25 = vld [vmem:[#allocation103_spill] sm:$0xff] }
 0x2dc   :  { %v10427_v0 = vpop.f32.mrf.mxu0  ;;  %v2353_v44 = vpop.f32.mrf.mxu1  ;;  %v13091_v46 = vmax.f32 %v13089_v16, %v13090_v25  ;;  %v7913_v19 = vld [vmem:[%s12544_s3 + $0x450] ss:$8 sps:$4 sm:$0xff]   ;;  %v13099_v25 = vld [vmem:[#allocation18_spill] sm:$0xff] }
 0x2dd   :  { %v2668_v41 = vmax.f32 %v2572_v8, %v2576_v53  ;;  %v2577_v18 = vadd.f32 %v2353_v44, %v2012_v33  ;;  %7024 = vmatprep.mubr.msk.bf16.mxu0 %vm3113_vm2, %v10425_v39  ;;  %7066 = vmatprep.mubr.msk.bf16.mxu1 %vm3113_vm2, %v10425_v39  ;;  %v2575_v8 = vadd.f32 %v2347_v22, %v2006_v43  ;;  %v13093_v53 = vld [vmem:[#allocation16_spill] sm:$0xff]  ;;  %v7919_v22 = vld [vmem:[%s12544_s3 + $0x440] ss:$8 sps:$4 sm:$0xff]  }
 0x2de   :  { %v10441_v45 = vpop.f32.mrf.mxu0  ;;  %v2355_v34 = vpop.f32.mrf.mxu1  ;;  %3219 = vmatmul.mubr.bf16.gmra.mxu0 %v10403_v29  ;;  %3544 = vmatmul.mubr.bf16.gmra.mxu1 %v10403_v29  ;;  %v13095_v58 = vmax.f32 %v13093_v53, %v13094_v11  ;;  %v2020_v11 = vadd.f32 %v10381_v40, %v9429_v48  ;;  %v7930_v40 = vld [vmem:[%s12544_s3 + $0x424] ss:$8 sps:$4 sm:$0xff]  }
 0x2df   :  { %v2724_v3 = vmax.f32 %v13091_v46, %v2668_v41  ;;  %v2669_v61 = vmax.f32 %v2573_v51, %v2577_v18  ;;  %v2578_v32 = vadd.f32 %v2355_v34, %v2014_v15  ;;  %v13096_v51 = vld [vmem:[#allocation17_spill] sm:$0xff]  ;;  %4289 = vmatpush2.bf16.msra.mxu1 %v7913_v19 }
 0x2e0   :  { %v10458_v28 = vpop.f32.mrf.mxu0  ;;  %v2357_v52 = vpop.f32.mrf.mxu1  ;;  %v13098_v41 = vmax.f32 %v13096_v51, %v13097_v35  ;;  %4290 = vmatprep.subr.bf16.mxu1 %v7921_v23  ;;  %v13100_v46 = vld [vmem:[#allocation21_spill] sm:$0xff]  ;;  %v13103_v51 = vld [vmem:[#allocation114_spill] sm:$0xff] }
 0x2e1   :  { %v2670_v33 = vmax.f32 %v2574_v63, %v2578_v32  ;;  %v2725_v17 = vmax.f32 %v13095_v58, %v2669_v61  ;;  %v2579_v44 = vadd.f32 %v2357_v52, %v2016_v6  ;;  %v2791_v24 = vadd.f32 %v10112_v38, %v2724_v3  ;;  %v7925_v52 = vld [vmem:[%s12544_s3 + $0x430] ss:$8 sps:$4 sm:$0xff]   ;;  %v13102_v58 = vld [vmem:[#allocation117_spill] sm:$0xff] }
 0x2e2   :  { %v10463_v15 = vpop.f32.mrf.mxu0  ;;  %v2361_v9 = vpop.f32.mrf.mxu1  ;;  %v13101_v3 = vmax.f32 %v13099_v25, %v13100_v46  ;;  %v7916_v23 = vld [vmem:[%s12544_s3 + $0x280] ss:$8 sps:$4 sm:$0xff]   ;;  %v2022_v35 = vadd.f32 %v10387_v47, %v13103_v51  ;;  %v13105_v46 = vld [vmem:[#allocation115_spill] sm:$0xff] }
 0x2e3   :  { %v2726_v18 = vmax.f32 %v13098_v41, %v2670_v33  ;;  %v2671_v2 = vmax.f32 %v2575_v8, %v2579_v44  ;;  %v2792_v16 = vadd.f32 %v10126_v62, %v2725_v17  ;;  %v2847_v43 = vmax.f32 %v2791_v24, 0.0  ;;  %4291 = vmatpush2.bf16.msra.mxu1 %v7919_v22  ;;  %v7918_v24 = vld [vmem:[%s12544_s3 + $0x284] ss:$8 sps:$4 sm:$0xff]   ;;  %v7936_v51 = vld [vmem:[%s12544_s3 + $0x414] ss:$8 sps:$4 sm:$0xff]  }
 0x2e4   :  { %v10475_v34 = vpop.f32.mrf.mxu0  ;;  %v2363_v63 = vpop.f32.mrf.mxu1  ;;  %4292 = vmatprep.subr.bf16.mxu1 %v7927_v14  ;;  %v2030_v17 = vadd.f32 %v10411_v7, %v13102_v58  ;;  %v13104_v7 = vld [vmem:[#allocation119_spill] sm:$0xff]  ;;  %3835 = vmatprep.subr.bf16.mxu0 %v7918_v24 }
 0x2e5   :  { %v2793_v37 = vadd.f32 %v10112_v38, %v2726_v18  ;;  %v2727_v61 = vmax.f32 %v13101_v3, %v2671_v2  ;;  %v2848_v41 = vmax.f32 %v2792_v16, 0.0  ;;  %v2032_v2 = vadd.f32 %v10427_v0, %v13104_v7  ;;  %3836 = vmatpush2.bf16.msra.mxu0 %v7916_v23  ;;  %v7924_v14 = vld [vmem:[%s12544_s3 + $0x274] ss:$8 sps:$4 sm:$0xff]  }
 0x2e6   :  { %v10482_v32 = vpop.f32.mrf.mxu0  ;;  %v2365_v19 = vpop.f32.mrf.mxu1  ;;  %v2024_v3 = vadd.f32 %v10394_v59, %v13105_v46  ;;  %v2034_v0 = vadd.f32 %v10441_v45, %v9495_v54  ;;  %v7922_v59 = vld [vmem:[%s12544_s3 + $0x270] ss:$8 sps:$4 sm:$0xff]   ;;  %v7928_v54 = vld [vmem:[%s12544_s3 + $0x420] ss:$8 sps:$4 sm:$0xff]   ;;  %3837 = vmatprep.subr.bf16.mxu0 %v7924_v14 }
 0x2e7   :  { %v2849_v6 = vmax.f32 %v2793_v37, 0.0  ;;  %v2794_v33 = vadd.f32 %v10126_v62, %v2727_v61  ;;  %v2580_v37 = vadd.f32 %v2361_v9, %v2020_v11  ;;  %4293 = vmatpush2.bf16.msra.mxu1 %v7925_v52  ;;  %v2581_v9 = vadd.f32 %v2363_v63, %v2022_v35  ;;  %v13106_v63 = vld [vmem:[#allocation106_spill] sm:$0xff]  ;;  %v13107_v11 = vld [vmem:[#allocation111_spill] sm:$0xff]  ;;  %v13109_v35 = vld [vmem:[#allocation116_spill] sm:$0xff] }
 0x2e8   :  { %v10491_v8 = vpop.f32.mrf.mxu0  ;;  %v2367_v53 = vpop.f32.mrf.mxu1  ;;  %4294 = vmatprep.subr.bf16.mxu1 %v7930_v40  ;;  %v2582_v45 = vadd.f32 %v2365_v19, %v2024_v3  ;;  %v13108_v58 = vmax.f32 %v13106_v63, %v13107_v11  ;;  %v13114_v14 = vld [vmem:[#allocation26_spill] sm:$0xff]  ;;  %v13116_v63 = vld [vmem:[#allocation24_spill] sm:$0xff]  ;;  %v13117_v11 = vld [vmem:[#allocation27_spill] sm:$0xff] }
 0x2e9   :  { %v10497_v44 = vpack.c.bf16 %v2849_v6, %v2847_v43  ;;  %v2850_v18 = vmax.f32 %v2794_v33, 0.0  ;;  %3838 = vmatpush2.bf16.msra.mxu0 %v7922_v59 }
 0x2ea   :  { %v10507_v22 = vpop.f32.mrf.mxu0  ;;  %v2371_v48 = vpop.f32.mrf.mxu1 }
 0x2eb   :  { %v2584_v25 = vadd.f32 %v2371_v48, %v2030_v17  ;;  %v10516_v47 = vpack.c.bf16 %v2850_v18, %v2848_v41  ;;  %v2026_v41 = vadd.f32 %v10397_v42, %v13109_v35  ;;  %v2036_v18 = vadd.f32 %v10458_v28, %v9502_v49  ;;  %4295 = vmatpush2.bf16.msra.mxu1 %v7928_v54  ;;  %v7934_v49 = vld [vmem:[%s12544_s3 + $0x410] ss:$8 sps:$4 sm:$0xff]  }
 0x2ec   :  { %v10518_v16 = vpop.f32.mrf.mxu0  ;;  %v2373_v61 = vpop.f32.mrf.mxu1  ;;  %4296 = vmatprep.subr.bf16.mxu1 %v7936_v51  ;;  %v7937_v51 = vld [vmem:[%s12544_s3 + $0x400] ss:$8 sps:$4 sm:$0xff]  }
 0x2ed   :  { %v2672_v43 = vmax.f32 %v2580_v37, %v2584_v25  ;;  %v2585_v6 = vadd.f32 %v2373_v61, %v2032_v2  ;;  %7025 = vmatprep.mubr.msk.bf16.mxu0 %vm3113_vm2, %v10516_v47  ;;  %7067 = vmatprep.mubr.msk.bf16.mxu1 %vm3113_vm2, %v10516_v47  ;;  %v2583_v7 = vadd.f32 %v2367_v53, %v2026_v41  ;;  %v13110_v2 = vld [vmem:[#allocation22_spill] sm:$0xff]  ;;  %v13111_v37 = vld [vmem:[#allocation25_spill] sm:$0xff] }
 0x2ee   :  { %v10532_v52 = vpop.f32.mrf.mxu0  ;;  %v2375_v33 = vpop.f32.mrf.mxu1  ;;  %3229 = vmatmul.mubr.bf16.gmra.mxu0 %v10497_v44  ;;  %3554 = vmatmul.mubr.bf16.gmra.mxu1 %v10497_v44  ;;  %v13112_v25 = vmax.f32 %v13110_v2, %v13111_v37  ;;  %v7939_v53 = vld [vmem:[%s12544_s3 + $0x404] ss:$8 sps:$4 sm:$0xff]   ;;  %v13119_v37 = vld [vmem:[#allocation120_spill] sm:$0xff] }
 0x2ef   :  { %v2728_v17 = vmax.f32 %v13108_v58, %v2672_v43  ;;  %v2673_v23 = vmax.f32 %v2581_v9, %v2585_v6  ;;  %v2586_v24 = vadd.f32 %v2375_v33, %v2034_v0  ;;  %v13113_v0 = vld [vmem:[#allocation23_spill] sm:$0xff]  ;;  %v13118_v58 = vmax.f32 %v13116_v63, %v13117_v11  ;;  %4297 = vmatpush2.bf16.msra.mxu1 %v7934_v49 }
 0x2f0   :  { %v10549_v19 = vpop.f32.mrf.mxu0  ;;  %v2377_v48 = vpop.f32.mrf.mxu1  ;;  %v13115_v9 = vmax.f32 %v13113_v0, %v13114_v14  ;;  %4298 = vmatprep.subr.bf16.mxu1 %v7939_v53  ;;  %v13121_v53 = vld [vmem:[#allocation122_spill] sm:$0xff]  ;;  %v13123_v11 = vld [vmem:[#allocation123_spill] sm:$0xff] }
 0x2f1   :  { %v2674_v40 = vmax.f32 %v2582_v45, %v2586_v24  ;;  %v2729_v46 = vmax.f32 %v13112_v25, %v2673_v23  ;;  %v2587_v3 = vadd.f32 %v2377_v48, %v2036_v18  ;;  %v2795_v28 = vadd.f32 %v10112_v38, %v2728_v17  ;;  %v7931_v18 = vld [vmem:[%s12544_s3 + $0x260] ss:$8 sps:$4 sm:$0xff]   ;;  %v7933_v48 = vld [vmem:[%s12544_s3 + $0x264] ss:$8 sps:$4 sm:$0xff]  }
 0x2f2   :  { %v10554_v61 = vpop.f32.mrf.mxu0  ;;  %v2381_v42 = vpop.f32.mrf.mxu1  ;;  %v2040_v25 = vadd.f32 %v10463_v15, %v13119_v37  ;;  %3839 = vmatprep.subr.bf16.mxu0 %v7933_v48  ;;  %v13122_v15 = vld [vmem:[#allocation127_spill] sm:$0xff]  ;;  %v13125_v37 = vld [vmem:[#allocation118_spill] sm:$0xff] }
 0x2f3   :  { %v2730_v43 = vmax.f32 %v13115_v9, %v2674_v40  ;;  %v2675_v6 = vmax.f32 %v2583_v7, %v2587_v3  ;;  %v2796_v45 = vadd.f32 %v10126_v62, %v2729_v46  ;;  %v2851_v35 = vmax.f32 %v2795_v28, 0.0  ;;  %v13120_v46 = vld [vmem:[#allocation125_spill] sm:$0xff]  ;;  %v7942_v28 = vld [vmem:[%s12544_s3 + $0x254] ss:$8 sps:$4 sm:$0xff]   ;;  %3840 = vmatpush2.bf16.msra.mxu0 %v7931_v18  ;;  %4299 = vmatpush2.bf16.msra.mxu1 %v7937_v51  ;;  %v7940_v51 = vld [vmem:[%s12544_s3 + $0x250] ss:$8 sps:$4 sm:$0xff]  }
 0x2f4   :  { %v10566_v59 = vpop.f32.mrf.mxu0  ;;  %v2383_v33 = vpop.f32.mrf.mxu1  ;;  %v2050_v3 = vadd.f32 %v10507_v22, %v13120_v46  ;;  %v2588_v22 = vadd.f32 %v2381_v42, %v2040_v25  ;;  %3841 = vmatprep.subr.bf16.mxu0 %v7942_v28 }
 0x2f5   :  { %v2797_v54 = vadd.f32 %v10112_v38, %v2730_v43  ;;  %v2731_v17 = vmax.f32 %v13118_v58, %v2675_v6  ;;  %v2852_v0 = vmax.f32 %v2796_v45, 0.0  ;;  %v2042_v6 = vadd.f32 %v10475_v34, %v13121_v53 }
 0x2f6   :  { %v10573_v23 = vpop.f32.mrf.mxu0  ;;  %v2385_v24 = vpop.f32.mrf.mxu1  ;;  %v2044_v58 = vadd.f32 %v10482_v32, %v13123_v11  ;;  %v2054_v34 = vadd.f32 %v10532_v52, %v9605_v20  ;;  %v13127_v20 = vld [vmem:[#allocation124_spill] sm:$0xff] }
 0x2f7   :  { %v2853_v41 = vmax.f32 %v2797_v54, 0.0  ;;  %v2798_v40 = vadd.f32 %v10126_v62, %v2731_v17  ;;  %v2052_v54 = vadd.f32 %v10518_v16, %v13122_v15  ;;  %v2046_v52 = vadd.f32 %v10491_v8, %v13127_v20  ;;  %3842 = vmatpush2.bf16.msra.mxu0 %v7940_v51  ;;  %v13128_v15 = vld [vmem:[#allocation28_spill] sm:$0xff]  ;;  %v13129_v8 = vld [vmem:[#allocation31_spill] sm:$0xff] }
 0x2f8   :  { %v10585_v7 = vpop.f32.mrf.mxu0  ;;  %v2387_v2 = vpop.f32.mrf.mxu1  ;;  %v2590_v48 = vadd.f32 %v2385_v24, %v2044_v58  ;;  %v7943_v24 = vld [vmem:[%s12544_s3 + $0x240] ss:$8 sps:$4 sm:$0xff]  }
 0x2f9   :  { %v10591_v49 = vpack.c.bf16 %v2853_v41, %v2851_v35  ;;  %v2854_v14 = vmax.f32 %v2798_v40, 0.0  ;;  %v2589_v41 = vadd.f32 %v2383_v33, %v2042_v6  ;;  %v13124_v40 = vld [vmem:[#allocation113_spill] sm:$0xff]  ;;  %v2056_v33 = vadd.f32 %v10549_v19, %v9612_v60 }
 0x2fa   :  { %v2069_v9 = vpop.f32.mrf.mxu0  ;;  %v2391_v43 = vpop.f32.mrf.mxu1  ;;  %v13126_v25 = vmax.f32 %v13124_v40, %v13125_v37  ;;  %v2591_v6 = vadd.f32 %v2387_v2, %v2046_v52  ;;  %v13131_v58 = vld [vmem:[#allocation29_spill] sm:$0xff]  ;;  %v7948_v52 = vld [vmem:[%s12544_s3 + $0x314] ss:$8 sps:$4 sm:$0xff]  }
 0x2fb   :  { %v2592_v63 = vadd.f32 %v2391_v43, %v2050_v3  ;;  %v10602_v17 = vpack.c.bf16 %v2854_v14, %v2852_v0  ;;  %v7945_v43 = vld [vmem:[%s12544_s3 + $0x244] ss:$8 sps:$4 sm:$0xff]  }
 0x2fc   :  { %v2071_v45 = vpop.f32.mrf.mxu0  ;;  %v2393_v35 = vpop.f32.mrf.mxu1  ;;  %3843 = vmatprep.subr.bf16.mxu0 %v7945_v43  ;;  %v13135_v40 = vld [vmem:[#allocation33_spill] sm:$0xff]  ;;  %v7951_v43 = vld [vmem:[%s12544_s3 + $0x4d4] ss:$8 sps:$4 sm:$0xff]  }
 0x2fd   :  { %v2676_v18 = vmax.f32 %v2588_v22, %v2592_v63  ;;  %v2593_v16 = vadd.f32 %v2393_v35, %v2052_v54  ;;  %7026 = vmatprep.mubr.msk.bf16.mxu0 %vm3113_vm2, %v10602_v17  ;;  %7068 = vmatprep.mubr.msk.bf16.mxu1 %vm3113_vm2, %v10602_v17  ;;  %v13130_v54 = vmax.f32 %v13128_v15, %v13129_v8  ;;  %v13132_v35 = vld [vmem:[#allocation32_spill] sm:$0xff] }
 0x2fe   :  { %v2073_v32 = vpop.f32.mrf.mxu0  ;;  %v2395_v42 = vpop.f32.mrf.mxu1  ;;  %3239 = vmatmul.mubr.bf16.gmra.mxu0 %v10591_v49  ;;  %3564 = vmatmul.mubr.bf16.gmra.mxu1 %v10591_v49  ;;  %v13133_v51 = vmax.f32 %v13131_v58, %v13132_v35  ;;  %v13138_v58 = vld [vmem:[#allocation129_spill] sm:$0xff] }
 0x2ff   :  { %v2732_v46 = vmax.f32 %v13126_v25, %v2676_v18  ;;  %v2677_v3 = vmax.f32 %v2589_v41, %v2593_v16  ;;  %v2594_v28 = vadd.f32 %v2395_v42, %v2054_v34  ;;  %3844 = vmatpush2.bf16.msra.mxu0 %v7943_v24  ;;  %4923 = vmatprep.subr.bf16.mxu1 %v7951_v43 }
 0x300   :  { %v2075_v0 = vpop.f32.mrf.mxu0  ;;  %v2397_v14 = vpop.f32.mrf.mxu1  ;;  %4581 = vmatprep.subr.bf16.mxu0 %v7948_v52  ;;  %v2062_v35 = vadd.f32 %v10566_v59, %v13138_v58  ;;  %v13142_v52 = vld [vmem:[#allocation121_spill] sm:$0xff] }
 0x301   :  { %v2678_v53 = vmax.f32 %v2590_v48, %v2594_v28  ;;  %v2733_v22 = vmax.f32 %v13130_v54, %v2677_v3  ;;  %v2595_v60 = vadd.f32 %v2397_v14, %v2056_v33  ;;  %v2799_v11 = vadd.f32 %v10112_v38, %v2732_v46  ;;  %v13134_v48 = vld [vmem:[#allocation30_spill] sm:$0xff] }
 0x302   :  { %v10631_v19 = vpop.f32.mrf.mxu0  ;;  %v2401_v63 = vpop.f32.mrf.mxu1  ;;  %v13136_v37 = vmax.f32 %v13134_v48, %v13135_v40  ;;  %v13140_v48 = vld [vmem:[#allocation130_spill] sm:$0xff] }
 0x303   :  { %v2734_v34 = vmax.f32 %v13133_v51, %v2678_v53  ;;  %v2679_v41 = vmax.f32 %v2591_v6, %v2595_v60  ;;  %v2800_v42 = vadd.f32 %v10126_v62, %v2733_v22  ;;  %v2855_v28 = vmax.f32 %v2799_v11, 0.0  ;;  %v13137_v6 = vld [vmem:[#allocation132_spill] sm:$0xff]  ;;  %v13139_v51 = vld [vmem:[#allocation134_spill] sm:$0xff] }
 0x304   :  { %v10637_v18 = vpop.f32.mrf.mxu0  ;;  %v2403_v16 = vpop.f32.mrf.mxu1  ;;  %v2060_v53 = vadd.f32 %v10554_v61, %v9625_v55  ;;  %v2070_v15 = vadd.f32 %v2069_v9, %v13137_v6  ;;  %v2064_v55 = vadd.f32 %v10573_v23, %v13140_v48  ;;  %v13143_v23 = vld [vmem:[#allocation126_spill] sm:$0xff] }
 0x305   :  { %v2801_v2 = vadd.f32 %v10112_v38, %v2734_v34  ;;  %v2735_v25 = vmax.f32 %v13136_v37, %v2679_v41  ;;  %v2856_v54 = vmax.f32 %v2800_v42, 0.0  ;;  %v2072_v34 = vadd.f32 %v2071_v45, %v13139_v51  ;;  %v13141_v37 = vld [vmem:[#allocation135_spill] sm:$0xff] }
 0x306   :  { %v10644_v3 = vpop.f32.mrf.mxu0  ;;  %v2405_v46 = vpop.f32.mrf.mxu1  ;;  %v2596_v41 = vadd.f32 %v2401_v63, %v2060_v53  ;;  %v2074_v42 = vadd.f32 %v2073_v32, %v13141_v37  ;;  %v13145_v32 = vld [vmem:[#allocation131_spill] sm:$0xff] }
 0x307   :  { %v2857_v20 = vmax.f32 %v2801_v2, 0.0  ;;  %v2802_v33 = vadd.f32 %v10126_v62, %v2735_v25  ;;  %v2597_v25 = vadd.f32 %v2403_v16, %v2062_v35  ;;  %v2598_v63 = vadd.f32 %v2405_v46, %v2064_v55  ;;  %v13146_v46 = vld [vmem:[#allocation34_spill] sm:$0xff]  ;;  %v13147_v35 = vld [vmem:[#allocation37_spill] sm:$0xff] }
 0x308   :  { %v10650_v14 = vpop.f32.mrf.mxu0  ;;  %v2407_v24 = vpop.f32.mrf.mxu1  ;;  %v2066_v16 = vadd.f32 %v10585_v7, %v13145_v32  ;;  %v13148_v51 = vmax.f32 %v13146_v46, %v13147_v35  ;;  %v13150_v7 = vld [vmem:[#allocation38_spill] sm:$0xff] }
 0x309   :  { %v10658_v8 = vpack.c.bf16 %v2857_v20, %v2855_v28  ;;  %v2858_v22 = vmax.f32 %v2802_v33, 0.0  ;;  %v13144_v33 = vmax.f32 %v13142_v52, %v13143_v23 }
 0x30a   :  { %v2089_v60 = vpop.f32.mrf.mxu0  ;;  %v2411_v11 = vpop.f32.mrf.mxu1  ;;  %v2599_v58 = vadd.f32 %v2407_v24, %v2066_v16 }
 0x30b   :  { %v2600_v2 = vadd.f32 %v2411_v11, %v2070_v15  ;;  %v10665_v61 = vpack.c.bf16 %v2858_v22, %v2856_v54  ;;  %v2076_v15 = vadd.f32 %v2075_v0, %v9716_v13 }
 0x30c   :  { %v2091_v9 = vpop.f32.mrf.mxu0  ;;  %v2413_v40 = vpop.f32.mrf.mxu1 }
 0x30d   :  { %v2680_v28 = vmax.f32 %v2596_v41, %v2600_v2  ;;  %v2601_v20 = vadd.f32 %v2413_v40, %v2072_v34  ;;  %7027 = vmatprep.mubr.msk.bf16.mxu0 %vm3113_vm2, %v10665_v61  ;;  %7069 = vmatprep.mubr.msk.bf16.mxu1 %vm3113_vm2, %v10665_v61  ;;  %v13149_v40 = vld [vmem:[#allocation35_spill] sm:$0xff] }
 0x30e   :  { %v2093_v59 = vpop.f32.mrf.mxu0  ;;  %v2415_v45 = vpop.f32.mrf.mxu1  ;;  %3249 = vmatmul.mubr.bf16.gmra.mxu0 %v10658_v8  ;;  %3574 = vmatmul.mubr.bf16.gmra.mxu1 %v10658_v8  ;;  %v13151_v37 = vmax.f32 %v13149_v40, %v13150_v7  ;;  %v13157_v40 = vld [vmem:[#allocation138_spill] sm:$0xff]  ;;  %v13158_v7 = vld [vmem:[#allocation143_spill] sm:$0xff] }
 0x30f   :  { %v2736_v43 = vmax.f32 %v13144_v33, %v2680_v28  ;;  %v2681_v53 = vmax.f32 %v2597_v25, %v2601_v20  ;;  %v2602_v6 = vadd.f32 %v2415_v45, %v2074_v42  ;;  %v13152_v20 = vld [vmem:[#allocation36_spill] sm:$0xff]  ;;  %v13153_v45 = vld [vmem:[#allocation39_spill] sm:$0xff] }
 0x310   :  { %v2095_v54 = vpop.f32.mrf.mxu0  ;;  %v2417_v22 = vpop.f32.mrf.mxu1 }
 0x311   :  { %v2682_v11 = vmax.f32 %v2598_v63, %v2602_v6  ;;  %v2737_v34 = vmax.f32 %v13148_v51, %v2681_v53  ;;  %v2603_v41 = vadd.f32 %v2417_v22, %v2076_v15  ;;  %v2803_v55 = vadd.f32 %v10112_v38, %v2736_v43  ;;  %v13155_v15 = vld [vmem:[#allocation136_spill] sm:$0xff] }
 0x312   :  { %v10683_v2 = vpop.f32.mrf.mxu0  ;;  %v2421_v48 = vpop.f32.mrf.mxu1  ;;  %v13154_v63 = vmax.f32 %v13152_v20, %v13153_v45  ;;  %v2080_v22 = vadd.f32 %v10631_v19, %v13155_v15 }
 0x313   :  { %v2738_v13 = vmax.f32 %v13151_v37, %v2682_v11  ;;  %v2683_v0 = vmax.f32 %v2599_v58, %v2603_v41  ;;  %v2804_v28 = vadd.f32 %v10126_v62, %v2737_v34  ;;  %v2859_v43 = vmax.f32 %v2803_v55, 0.0  ;;  %v13156_v11 = vld [vmem:[#allocation141_spill] sm:$0xff] }
 0x314   :  { %v10689_v42 = vpop.f32.mrf.mxu0  ;;  %v2423_v25 = vpop.f32.mrf.mxu1  ;;  %v2090_v58 = vadd.f32 %v2089_v60, %v13156_v11  ;;  %v2082_v55 = vadd.f32 %v10637_v18, %v13157_v40  ;;  %v2092_v37 = vadd.f32 %v2091_v9, %v13158_v7  ;;  %v13165_v40 = vld [vmem:[#allocation43_spill] sm:$0xff] }
 0x315   :  { %v2805_v24 = vadd.f32 %v10112_v38, %v2738_v13  ;;  %v2739_v52 = vmax.f32 %v13154_v63, %v2683_v0  ;;  %v2860_v35 = vmax.f32 %v2804_v28, 0.0  ;;  %v2604_v13 = vadd.f32 %v2421_v48, %v2080_v22 }
 0x316   :  { %v10696_v23 = vpop.f32.mrf.mxu0  ;;  %v2425_v33 = vpop.f32.mrf.mxu1  ;;  %v2094_v63 = vadd.f32 %v2093_v59, %v9771_v57  ;;  %v2605_v28 = vadd.f32 %v2423_v25, %v2082_v55  ;;  %v13163_v57 = vld [vmem:[#allocation140_spill] sm:$0xff]  ;;  %v2096_v25 = vadd.f32 %v2095_v54, %v9778_v56 }
 0x317   :  { %v2861_v53 = vmax.f32 %v2805_v24, 0.0  ;;  %v2806_v6 = vadd.f32 %v10126_v62, %v2739_v52  ;;  %v13159_v24 = vld [vmem:[#allocation139_spill] sm:$0xff]  ;;  %v2086_v59 = vadd.f32 %v10650_v14, %v13163_v57  ;;  %v13168_v14 = vld [vmem:[#allocation44_spill] sm:$0xff] }
 0x318   :  { %v10699_v32 = vpop.f32.mrf.mxu0  ;;  %v2427_v16 = vpop.f32.mrf.mxu1  ;;  %v2084_v20 = vadd.f32 %v10644_v3, %v13159_v24  ;;  %v13161_v3 = vld [vmem:[#allocation133_spill] sm:$0xff] }
 0x319   :  { %v10704_v46 = vpack.c.bf16 %v2861_v53, %v2859_v43  ;;  %v2862_v51 = vmax.f32 %v2806_v6, 0.0  ;;  %v13160_v53 = vld [vmem:[#allocation128_spill] sm:$0xff] }
 0x31a   :  { %v2109_v34 = vpop.f32.mrf.mxu0  ;;  %v2431_v41 = vpop.f32.mrf.mxu1  ;;  %v2606_v48 = vadd.f32 %v2425_v33, %v2084_v20  ;;  %v13162_v6 = vmax.f32 %v13160_v53, %v13161_v3  ;;  %v13164_v33 = vld [vmem:[#allocation40_spill] sm:$0xff]  ;;  %v13167_v20 = vld [vmem:[#allocation41_spill] sm:$0xff] }
 0x31b   :  { %v2608_v0 = vadd.f32 %v2431_v41, %v2090_v58  ;;  %v10711_v45 = vpack.c.bf16 %v2862_v51, %v2860_v35  ;;  %v2607_v41 = vadd.f32 %v2427_v16, %v2086_v59  ;;  %v13166_v55 = vmax.f32 %v13164_v33, %v13165_v40 }
 0x31c   :  { %v2111_v19 = vpop.f32.mrf.mxu0  ;;  %v2433_v60 = vpop.f32.mrf.mxu1 }
 0x31d   :  { %v2684_v52 = vmax.f32 %v2604_v13, %v2608_v0  ;;  %v2609_v43 = vadd.f32 %v2433_v60, %v2092_v37  ;;  %7028 = vmatprep.mubr.msk.bf16.mxu0 %vm3113_vm2, %v10711_v45  ;;  %7070 = vmatprep.mubr.msk.bf16.mxu1 %vm3113_vm2, %v10711_v45  ;;  %v13169_v60 = vmax.f32 %v13167_v20, %v13168_v14  ;;  %v13175_v20 = vld [vmem:[#allocation146_spill] sm:$0xff]  ;;  %v13176_v14 = vld [vmem:[#allocation151_spill] sm:$0xff] }
 0x31e   :  { %v2113_v18 = vpop.f32.mrf.mxu0  ;;  %v2435_v9 = vpop.f32.mrf.mxu1  ;;  %3259 = vmatmul.mubr.bf16.gmra.mxu0 %v10704_v46  ;;  %3584 = vmatmul.mubr.bf16.gmra.mxu1 %v10704_v46 }
 0x31f   :  { %v2740_v15 = vmax.f32 %v13162_v6, %v2684_v52  ;;  %v2685_v22 = vmax.f32 %v2605_v28, %v2609_v43  ;;  %v2610_v11 = vadd.f32 %v2435_v9, %v2094_v63  ;;  %v13170_v43 = vld [vmem:[#allocation42_spill] sm:$0xff]  ;;  %v13171_v9 = vld [vmem:[#allocation45_spill] sm:$0xff] }
 0x320   :  { %v2115_v58 = vpop.f32.mrf.mxu0  ;;  %v2437_v35 = vpop.f32.mrf.mxu1 }
 0x321   :  { %v2686_v51 = vmax.f32 %v2606_v48, %v2610_v11  ;;  %v2741_v7 = vmax.f32 %v13166_v55, %v2685_v22  ;;  %v2611_v37 = vadd.f32 %v2437_v35, %v2096_v25  ;;  %v2807_v24 = vadd.f32 %v10112_v38, %v2740_v15  ;;  %v13173_v25 = vld [vmem:[#allocation144_spill] sm:$0xff] }
 0x322   :  { %v10729_v13 = vpop.f32.mrf.mxu0  ;;  %v2441_v0 = vpop.f32.mrf.mxu1  ;;  %v13172_v48 = vmax.f32 %v13170_v43, %v13171_v9  ;;  %v2100_v35 = vadd.f32 %v10683_v2, %v13173_v25 }
 0x323   :  { %v2742_v56 = vmax.f32 %v13169_v60, %v2686_v51  ;;  %v2687_v54 = vmax.f32 %v2607_v41, %v2611_v37  ;;  %v2808_v52 = vadd.f32 %v10126_v62, %v2741_v7  ;;  %v2863_v15 = vmax.f32 %v2807_v24, 0.0  ;;  %v13174_v51 = vld [vmem:[#allocation149_spill] sm:$0xff] }
 0x324   :  { %v10735_v63 = vpop.f32.mrf.mxu0  ;;  %v2443_v28 = vpop.f32.mrf.mxu1  ;;  %v2110_v41 = vadd.f32 %v2109_v34, %v13174_v51  ;;  %v2102_v24 = vadd.f32 %v10689_v42, %v13175_v20  ;;  %v2112_v60 = vadd.f32 %v2111_v19, %v13176_v14  ;;  %v13183_v20 = vld [vmem:[#allocation49_spill] sm:$0xff] }
 0x325   :  { %v2809_v16 = vadd.f32 %v10112_v38, %v2742_v56  ;;  %v2743_v53 = vmax.f32 %v13172_v48, %v2687_v54  ;;  %v2864_v40 = vmax.f32 %v2808_v52, 0.0  ;;  %v2612_v56 = vadd.f32 %v2441_v0, %v2100_v35 }
 0x326   :  { %v10742_v3 = vpop.f32.mrf.mxu0  ;;  %v2445_v6 = vpop.f32.mrf.mxu1  ;;  %v2114_v48 = vadd.f32 %v2113_v18, %v9833_v5  ;;  %v2613_v52 = vadd.f32 %v2443_v28, %v2102_v24  ;;  %v13181_v5 = vld [vmem:[#allocation148_spill] sm:$0xff]  ;;  %v2116_v28 = vadd.f32 %v2115_v58, %v9840_v27 }
 0x327   :  { %v2865_v22 = vmax.f32 %v2809_v16, 0.0  ;;  %v2810_v11 = vadd.f32 %v10126_v62, %v2743_v53  ;;  %v13177_v16 = vld [vmem:[#allocation147_spill] sm:$0xff]  ;;  %v2106_v18 = vadd.f32 %v10699_v32, %v13181_v5  ;;  %v13186_v32 = vld [vmem:[#allocation50_spill] sm:$0xff] }
 0x328   :  { %v10745_v57 = vpop.f32.mrf.mxu0  ;;  %v2447_v59 = vpop.f32.mrf.mxu1  ;;  %v2104_v43 = vadd.f32 %v10696_v23, %v13177_v16  ;;  %v13179_v23 = vld [vmem:[#allocation142_spill] sm:$0xff] }
 0x329   :  { %v10750_v33 = vpack.c.bf16 %v2865_v22, %v2863_v15  ;;  %v2866_v55 = vmax.f32 %v2810_v11, 0.0  ;;  %v13178_v22 = vld [vmem:[#allocation137_spill] sm:$0xff] }
 0x32a   :  { %v2129_v7 = vpop.f32.mrf.mxu0  ;;  %v2451_v37 = vpop.f32.mrf.mxu1  ;;  %v2614_v0 = vadd.f32 %v2445_v6, %v2104_v43  ;;  %v13180_v11 = vmax.f32 %v13178_v22, %v13179_v23  ;;  %v13182_v6 = vld [vmem:[#allocation46_spill] sm:$0xff]  ;;  %v13185_v43 = vld [vmem:[#allocation47_spill] sm:$0xff] }
 0x32b   :  { %v2616_v54 = vadd.f32 %v2451_v37, %v2110_v41  ;;  %v10757_v9 = vpack.c.bf16 %v2866_v55, %v2864_v40  ;;  %v2615_v37 = vadd.f32 %v2447_v59, %v2106_v18  ;;  %v13184_v24 = vmax.f32 %v13182_v6, %v13183_v20 }
 0x32c   :  { %v2131_v2 = vpop.f32.mrf.mxu0  ;;  %v2453_v34 = vpop.f32.mrf.mxu1 }
 0x32d   :  { %v2688_v53 = vmax.f32 %v2612_v56, %v2616_v54  ;;  %v2617_v15 = vadd.f32 %v2453_v34, %v2112_v60  ;;  %7029 = vmatprep.mubr.msk.bf16.mxu0 %vm3113_vm2, %v10757_v9  ;;  %7071 = vmatprep.mubr.msk.bf16.mxu1 %vm3113_vm2, %v10757_v9  ;;  %v13187_v34 = vmax.f32 %v13185_v43, %v13186_v32  ;;  %v13193_v43 = vld [vmem:[#allocation154_spill] sm:$0xff]  ;;  %v13194_v32 = vld [vmem:[#allocation159_spill] sm:$0xff] }
 0x32e   :  { %v2133_v42 = vpop.f32.mrf.mxu0  ;;  %v2455_v19 = vpop.f32.mrf.mxu1  ;;  %3269 = vmatmul.mubr.bf16.gmra.mxu0 %v10750_v33  ;;  %3594 = vmatmul.mubr.bf16.gmra.mxu1 %v10750_v33 }
 0x32f   :  { %v2744_v25 = vmax.f32 %v13180_v11, %v2688_v53  ;;  %v2689_v35 = vmax.f32 %v2613_v52, %v2617_v15  ;;  %v2618_v51 = vadd.f32 %v2455_v19, %v2114_v48  ;;  %v13188_v15 = vld [vmem:[#allocation48_spill] sm:$0xff]  ;;  %v13189_v19 = vld [vmem:[#allocation51_spill] sm:$0xff] }
 0x330   :  { %v2135_v41 = vpop.f32.mrf.mxu0  ;;  %v2457_v40 = vpop.f32.mrf.mxu1 }
 0x331   :  { %v2690_v55 = vmax.f32 %v2614_v0, %v2618_v51  ;;  %v2745_v14 = vmax.f32 %v13184_v24, %v2689_v35  ;;  %v2619_v60 = vadd.f32 %v2457_v40, %v2116_v28  ;;  %v2811_v16 = vadd.f32 %v10112_v38, %v2744_v25  ;;  %v13191_v28 = vld [vmem:[#allocation152_spill] sm:$0xff] }
 0x332   :  { %v10775_v56 = vpop.f32.mrf.mxu0  ;;  %v2461_v54 = vpop.f32.mrf.mxu1  ;;  %v13190_v0 = vmax.f32 %v13188_v15, %v13189_v19  ;;  %v2120_v40 = vadd.f32 %v10729_v13, %v13191_v28 }
 0x333   :  { %v2746_v27 = vmax.f32 %v13187_v34, %v2690_v55  ;;  %v2691_v58 = vmax.f32 %v2615_v37, %v2619_v60  ;;  %v2812_v53 = vadd.f32 %v10126_v62, %v2745_v14  ;;  %v2867_v25 = vmax.f32 %v2811_v16, 0.0  ;;  %v13192_v55 = vld [vmem:[#allocation157_spill] sm:$0xff] }
 0x334   :  { %v10781_v48 = vpop.f32.mrf.mxu0  ;;  %v2463_v52 = vpop.f32.mrf.mxu1  ;;  %v2130_v37 = vadd.f32 %v2129_v7, %v13192_v55  ;;  %v2122_v16 = vadd.f32 %v10735_v63, %v13193_v43  ;;  %v2132_v34 = vadd.f32 %v2131_v2, %v13194_v32  ;;  %v13201_v43 = vld [vmem:[#allocation55_spill] sm:$0xff] }
 0x335   :  { %v2813_v59 = vadd.f32 %v10112_v38, %v2746_v27  ;;  %v2747_v22 = vmax.f32 %v13190_v0, %v2691_v58  ;;  %v2868_v20 = vmax.f32 %v2812_v53, 0.0  ;;  %v2620_v27 = vadd.f32 %v2461_v54, %v2120_v40 }
 0x336   :  { %v10788_v23 = vpop.f32.mrf.mxu0  ;;  %v2465_v11 = vpop.f32.mrf.mxu1  ;;  %v2134_v0 = vadd.f32 %v2133_v42, %v9895_v50  ;;  %v2621_v53 = vadd.f32 %v2463_v52, %v2122_v16  ;;  %v13199_v50 = vld [vmem:[#allocation156_spill] sm:$0xff]  ;;  %v2136_v52 = vadd.f32 %v2135_v41, %v9902_v31 }
 0x337   :  { %v2869_v35 = vmax.f32 %v2813_v59, 0.0  ;;  %v2814_v51 = vadd.f32 %v10126_v62, %v2747_v22  ;;  %v13195_v59 = vld [vmem:[#allocation155_spill] sm:$0xff]  ;;  %v2126_v42 = vadd.f32 %v10745_v57, %v13199_v50  ;;  %v13204_v57 = vld [vmem:[#allocation56_spill] sm:$0xff] }
 0x338   :  { %v10791_v5 = vpop.f32.mrf.mxu0  ;;  %v2467_v18 = vpop.f32.mrf.mxu1  ;;  %v2124_v15 = vadd.f32 %v10742_v3, %v13195_v59  ;;  %v13197_v3 = vld [vmem:[#allocation150_spill] sm:$0xff] }
 0x339   :  { %v10796_v6 = vpack.c.bf16 %v2869_v35, %v2867_v25  ;;  %v2870_v24 = vmax.f32 %v2814_v51, 0.0  ;;  %v13196_v35 = vld [vmem:[#allocation145_spill] sm:$0xff] }
 0x33a   :  { %v2149_v14 = vpop.f32.mrf.mxu0  ;;  %v2471_v60 = vpop.f32.mrf.mxu1  ;;  %v2622_v54 = vadd.f32 %v2465_v11, %v2124_v15  ;;  %v13198_v51 = vmax.f32 %v13196_v35, %v13197_v3  ;;  %v13200_v11 = vld [vmem:[#allocation52_spill] sm:$0xff]  ;;  %v13203_v15 = vld [vmem:[#allocation53_spill] sm:$0xff] }
 0x33b   :  { %v2624_v58 = vadd.f32 %v2471_v60, %v2130_v37  ;;  %v10803_v19 = vpack.c.bf16 %v2870_v24, %v2868_v20  ;;  %v2623_v60 = vadd.f32 %v2467_v18, %v2126_v42  ;;  %v13202_v16 = vmax.f32 %v13200_v11, %v13201_v43 }
 0x33c   :  { %v2151_v13 = vpop.f32.mrf.mxu0  ;;  %v2473_v7 = vpop.f32.mrf.mxu1 }
 0x33d   :  { %v2692_v22 = vmax.f32 %v2620_v27, %v2624_v58  ;;  %v2625_v25 = vadd.f32 %v2473_v7, %v2132_v34  ;;  %7030 = vmatprep.mubr.msk.bf16.mxu0 %vm3113_vm2, %v10803_v19  ;;  %7072 = vmatprep.mubr.msk.bf16.mxu1 %vm3113_vm2, %v10803_v19  ;;  %v13205_v7 = vmax.f32 %v13203_v15, %v13204_v57  ;;  %v13211_v15 = vld [vmem:[#allocation162_spill] sm:$0xff]  ;;  %v13212_v57 = vld [vmem:[#allocation167_spill] sm:$0xff] }
 0x33e   :  { %v2153_v63 = vpop.f32.mrf.mxu0  ;;  %v2475_v2 = vpop.f32.mrf.mxu1  ;;  %3279 = vmatmul.mubr.bf16.gmra.mxu0 %v10796_v6  ;;  %3604 = vmatmul.mubr.bf16.gmra.mxu1 %v10796_v6 }
 0x33f   :  { %v2748_v28 = vmax.f32 %v13198_v51, %v2692_v22  ;;  %v2693_v40 = vmax.f32 %v2621_v53, %v2625_v25  ;;  %v2626_v55 = vadd.f32 %v2475_v2, %v2134_v0  ;;  %v13206_v25 = vld [vmem:[#allocation54_spill] sm:$0xff]  ;;  %v13207_v2 = vld [vmem:[#allocation57_spill] sm:$0xff] }
 0x340   :  { %v2155_v37 = vpop.f32.mrf.mxu0  ;;  %v2477_v20 = vpop.f32.mrf.mxu1 }
 0x341   :  { %v2694_v24 = vmax.f32 %v2622_v54, %v2626_v55  ;;  %v2749_v32 = vmax.f32 %v13202_v16, %v2693_v40  ;;  %v2627_v34 = vadd.f32 %v2477_v20, %v2136_v52  ;;  %v2815_v59 = vadd.f32 %v10112_v38, %v2748_v28  ;;  %v13209_v52 = vld [vmem:[#allocation160_spill] sm:$0xff] }
 0x342   :  { %v10821_v27 = vpop.f32.mrf.mxu0  ;;  %v2481_v58 = vpop.f32.mrf.mxu1  ;;  %v13208_v54 = vmax.f32 %v13206_v25, %v13207_v2  ;;  %v2140_v20 = vadd.f32 %v10775_v56, %v13209_v52 }
 0x343   :  { %v2750_v31 = vmax.f32 %v13205_v7, %v2694_v24  ;;  %v2695_v41 = vmax.f32 %v2623_v60, %v2627_v34  ;;  %v2816_v22 = vadd.f32 %v10126_v62, %v2749_v32  ;;  %v2871_v28 = vmax.f32 %v2815_v59, 0.0  ;;  %v13210_v24 = vld [vmem:[#allocation165_spill] sm:$0xff] }
 0x344   :  { %v10827_v0 = vpop.f32.mrf.mxu0  ;;  %v2483_v53 = vpop.f32.mrf.mxu1  ;;  %v2150_v60 = vadd.f32 %v2149_v14, %v13210_v24  ;;  %v2142_v59 = vadd.f32 %v10781_v48, %v13211_v15  ;;  %v2152_v7 = vadd.f32 %v2151_v13, %v13212_v57 }
 0x345   :  { %v2817_v18 = vadd.f32 %v10112_v38, %v2750_v31  ;;  %v2751_v35 = vmax.f32 %v13208_v54, %v2695_v41  ;;  %v2872_v43 = vmax.f32 %v2816_v22, 0.0  ;;  %v2628_v31 = vadd.f32 %v2481_v58, %v2140_v20  ;;  %v13214_v54 = vld [vmem:[#allocation169_spill] sm:$0xff] }
 0x346   :  { %v10834_v3 = vpop.f32.mrf.mxu0  ;;  %v2485_v51 = vpop.f32.mrf.mxu1  ;;  %v2629_v22 = vadd.f32 %v2483_v53, %v2142_v59 }
 0x347   :  { %v2873_v40 = vmax.f32 %v2817_v18, 0.0  ;;  %v2818_v55 = vadd.f32 %v10126_v62, %v2751_v35  ;;  %v13213_v18 = vld [vmem:[#allocation163_spill] sm:$0xff]  ;;  %v2154_v35 = vadd.f32 %v2153_v63, %v13214_v54  ;;  %v13218_v63 = vld [vmem:[#allocation164_spill] sm:$0xff] }
 0x348   :  { %v10837_v50 = vpop.f32.mrf.mxu0  ;;  %v2487_v42 = vpop.f32.mrf.mxu1  ;;  %v2144_v25 = vadd.f32 %v10788_v23, %v13213_v18  ;;  %v13216_v23 = vld [vmem:[#allocation158_spill] sm:$0xff]  ;;  %v2146_v53 = vadd.f32 %v10791_v5, %v13218_v63 }
 0x349   :  { %v10842_v11 = vpack.c.bf16 %v2873_v40, %v2871_v28  ;;  %v2874_v16 = vmax.f32 %v2818_v55, 0.0  ;;  %v13215_v55 = vld [vmem:[#allocation153_spill] sm:$0xff]  ;;  %v13224_v5 = vld [vmem:[#allocation62_spill] sm:$0xff] }
 0x34a   :  { %v2169_v32 = vpop.f32.mrf.mxu0  ;;  %v2491_v34 = vpop.f32.mrf.mxu1  ;;  %v2630_v58 = vadd.f32 %v2485_v51, %v2144_v25  ;;  %v13217_v52 = vmax.f32 %v13215_v55, %v13216_v23  ;;  %v2631_v57 = vadd.f32 %v2487_v42, %v2146_v53  ;;  %v13220_v51 = vld [vmem:[#allocation58_spill] sm:$0xff]  ;;  %v13226_v55 = vld [vmem:[#allocation60_spill] sm:$0xff]  ;;  %v13227_v23 = vld [vmem:[#allocation63_spill] sm:$0xff] }
 0x34b   :  { %v2632_v41 = vadd.f32 %v2491_v34, %v2150_v60  ;;  %v10849_v2 = vpack.c.bf16 %v2874_v16, %v2872_v43  ;;  %v13219_v43 = vld [vmem:[#allocation171_spill] sm:$0xff] }
 0x34c   :  { %v2171_v56 = vpop.f32.mrf.mxu0  ;;  %v2493_v14 = vpop.f32.mrf.mxu1  ;;  %v2156_v16 = vadd.f32 %v2155_v37, %v13219_v43 }
 0x34d   :  { %v2696_v28 = vmax.f32 %v2628_v31, %v2632_v41  ;;  %v2633_v40 = vadd.f32 %v2493_v14, %v2152_v7  ;;  %7031 = vmatprep.mubr.msk.bf16.mxu0 %vm3113_vm2, %v10849_v2  ;;  %7073 = vmatprep.mubr.msk.bf16.mxu1 %vm3113_vm2, %v10849_v2  ;;  %v13221_v7 = vld [vmem:[#allocation61_spill] sm:$0xff] }
 0x34e   :  { %v2173_v48 = vpop.f32.mrf.mxu0  ;;  %v2495_v13 = vpop.f32.mrf.mxu1  ;;  %3289 = vmatmul.mubr.bf16.gmra.mxu0 %v10842_v11  ;;  %3614 = vmatmul.mubr.bf16.gmra.mxu1 %v10842_v11  ;;  %v13222_v31 = vmax.f32 %v13220_v51, %v13221_v7 }
 0x34f   :  { %v2752_v20 = vmax.f32 %v13217_v52, %v2696_v28  ;;  %v2697_v24 = vmax.f32 %v2629_v22, %v2633_v40  ;;  %v2634_v60 = vadd.f32 %v2495_v13, %v2154_v35  ;;  %v13223_v35 = vld [vmem:[#allocation59_spill] sm:$0xff]  ;;  %v13228_v52 = vmax.f32 %v13226_v55, %v13227_v23  ;;  %v13233_v55 = vld [vmem:[#allocation176_spill] sm:$0xff] }
 0x350   :  { %v2175_v34 = vpop.f32.mrf.mxu0  ;;  %v2497_v15 = vpop.f32.mrf.mxu1  ;;  %v13225_v22 = vmax.f32 %v13223_v35, %v13224_v5  ;;  %v13231_v35 = vld [vmem:[#allocation174_spill] sm:$0xff]  ;;  %v2164_v23 = vadd.f32 %v10834_v3, %v13233_v55 }
 0x351   :  { %v2698_v59 = vmax.f32 %v2630_v58, %v2634_v60  ;;  %v2753_v41 = vmax.f32 %v13222_v31, %v2697_v24  ;;  %v2635_v18 = vadd.f32 %v2497_v15, %v2156_v16  ;;  %v2819_v54 = vadd.f32 %v10112_v38, %v2752_v20  ;;  %v13229_v15 = vld [vmem:[#allocation172_spill] sm:$0xff] }
 0x352   :  { %v10867_v25 = vpop.f32.mrf.mxu0  ;;  %v2501_v14 = vpop.f32.mrf.mxu1  ;;  %v2162_v5 = vadd.f32 %v10827_v0, %v13231_v35 }
 0x353   :  { %v2754_v37 = vmax.f32 %v13225_v22, %v2698_v59  ;;  %v2699_v28 = vmax.f32 %v2631_v57, %v2635_v18  ;;  %v2820_v58 = vadd.f32 %v10126_v62, %v2753_v41  ;;  %v2875_v63 = vmax.f32 %v2819_v54, 0.0  ;;  %v13230_v57 = vld [vmem:[#allocation179_spill] sm:$0xff]  ;;  %v13232_v54 = vld [vmem:[#allocation180_spill] sm:$0xff] }
 0x354   :  { %v10873_v40 = vpop.f32.mrf.mxu0  ;;  %v2503_v13 = vpop.f32.mrf.mxu1  ;;  %v2160_v59 = vadd.f32 %v10821_v27, %v13229_v15  ;;  %v2170_v51 = vadd.f32 %v2169_v32, %v13230_v57  ;;  %v2172_v22 = vadd.f32 %v2171_v56, %v13232_v54  ;;  %v13234_v32 = vld [vmem:[#allocation181_spill] sm:$0xff]  ;;  %v13236_v15 = vld [vmem:[#allocation166_spill] sm:$0xff]  ;;  %v13241_v54 = vld [vmem:[#allocation168_spill] sm:$0xff] }
 0x355   :  { %v2821_v42 = vadd.f32 %v10112_v38, %v2754_v37  ;;  %v2755_v24 = vmax.f32 %v13228_v52, %v2699_v28  ;;  %v2876_v31 = vmax.f32 %v2820_v58, 0.0 }
 0x356   :  { %v2505_v60 = vpop.f32.mrf.mxu1  ;;  %v10880_v20 = vpop.f32.mrf.mxu0  ;;  %v2636_v37 = vadd.f32 %v2501_v14, %v2160_v59 }
 0x357   :  { %v2877_v53 = vmax.f32 %v2821_v42, 0.0  ;;  %v2822_v43 = vadd.f32 %v10126_v62, %v2755_v24  ;;  %v2174_v24 = vadd.f32 %v2173_v48, %v13234_v32  ;;  %v2638_v56 = vadd.f32 %v2505_v60, %v2164_v23  ;;  %v13238_v48 = vld [vmem:[#allocation178_spill] sm:$0xff]  ;;  %v13240_v60 = vld [vmem:[#allocation64_spill] sm:$0xff]  ;;  %v13243_v32 = vld [vmem:[#allocation65_spill] sm:$0xff] }
 0x358   :  { %v2507_v16 = vpop.f32.mrf.mxu1  ;;  %v2185_v28 = vpop.f32.mrf.mxu0 }
 0x359   :  { %v10886_v7 = vpack.c.bf16 %v2877_v53, %v2875_v63  ;;  %v2878_v41 = vmax.f32 %v2822_v43, 0.0  ;;  %v2637_v63 = vadd.f32 %v2503_v13, %v2162_v5  ;;  %v13235_v43 = vld [vmem:[#allocation161_spill] sm:$0xff]  ;;  %v2166_v13 = vadd.f32 %v10837_v50, %v13238_v48 }
 0x35a   :  { %v2511_v18 = vpop.f32.mrf.mxu1  ;;  %v2189_v14 = vpop.f32.mrf.mxu0  ;;  %v13237_v3 = vmax.f32 %v13235_v43, %v13236_v15 }
 0x35b   :  { %v2640_v42 = vadd.f32 %v2511_v18, %v2170_v51  ;;  %v10893_v52 = vpack.c.bf16 %v2878_v41, %v2876_v31  ;;  %v13239_v31 = vld [vmem:[#allocation182_spill] sm:$0xff]  ;;  %v2639_v5 = vadd.f32 %v2507_v16, %v2166_v13 }
 0x35c   :  { %v2513_v27 = vpop.f32.mrf.mxu1  ;;  %v2176_v41 = vadd.f32 %v2175_v34, %v13239_v31  ;;  %v13246_v16 = vld [vmem:[#allocation66_spill] sm:$0xff]  ;;  %v13249_v31 = vld [vmem:[#allocation184_spill] sm:$0xff] }
 0x35d   :  { %v2700_v58 = vmax.f32 %v2636_v37, %v2640_v42  ;;  %v2641_v53 = vadd.f32 %v2513_v27, %v2172_v22  ;;  %7032 = vmatprep.mubr.msk.bf16.mxu0 %vm3113_vm2, %v10893_v52  ;;  %7074 = vmatprep.mubr.msk.bf16.mxu1 %vm3113_vm2, %v10893_v52  ;;  %v13242_v22 = vmax.f32 %v13240_v60, %v13241_v54  ;;  %v2191_v27 = vpop.f32.mrf.mxu0 }
 0x35e   :  { %v2515_v0 = vpop.f32.mrf.mxu1  ;;  %3299 = vmatmul.mubr.bf16.gmra.mxu0 %v10886_v7  ;;  %3624 = vmatmul.mubr.bf16.gmra.mxu1 %v10886_v7 }
 0x35f   :  { %v2756_v59 = vmax.f32 %v13237_v3, %v2700_v58  ;;  %v2701_v57 = vmax.f32 %v2637_v63, %v2641_v53  ;;  %v2642_v51 = vadd.f32 %v2515_v0, %v2174_v24  ;;  %v13244_v24 = vld [vmem:[#allocation170_spill] sm:$0xff] }
 0x360   :  { %v2517_v18 = vpop.f32.mrf.mxu1  ;;  %v13245_v63 = vmax.f32 %v13243_v32, %v13244_v24  ;;  %v13252_v32 = vld [vmem:[#allocation189_spill] sm:$0xff] }
 0x361   :  { %v2702_v35 = vmax.f32 %v2638_v56, %v2642_v51  ;;  %v2757_v37 = vmax.f32 %v13242_v22, %v2701_v57  ;;  %v2643_v42 = vadd.f32 %v2517_v18, %v2176_v41  ;;  %v2823_v23 = vadd.f32 %v10112_v38, %v2756_v59  ;;  %v13247_v56 = vld [vmem:[#allocation67_spill] sm:$0xff]  ;;  %v2193_v51 = vpop.f32.mrf.mxu0  ;;  %v13250_v18 = vld [vmem:[#allocation188_spill] sm:$0xff] }
 0x362   :  { %v2521_v55 = vpop.f32.mrf.mxu1  ;;  %v13248_v43 = vmax.f32 %v13246_v16, %v13247_v56  ;;  %v2180_v41 = vadd.f32 %v10867_v25, %v13249_v31 }
 0x363   :  { %v2758_v50 = vmax.f32 %v13245_v63, %v2702_v35  ;;  %v2703_v58 = vmax.f32 %v2639_v5, %v2643_v42  ;;  %v2824_v0 = vadd.f32 %v10126_v62, %v2757_v37  ;;  %v2879_v57 = vmax.f32 %v2823_v23, 0.0  ;;  %v13251_v37 = vld [vmem:[#allocation185_spill] sm:$0xff]  ;;  %v2195_v24 = vpop.f32.mrf.mxu0 }
 0x364   :  { %v2523_v34 = vpop.f32.mrf.mxu1  ;;  %v2190_v35 = vadd.f32 %v2189_v14, %v13250_v18  ;;  %v2182_v42 = vadd.f32 %v10873_v40, %v13251_v37  ;;  %v2192_v23 = vadd.f32 %v2191_v27, %v13252_v32  ;;  %v2644_v63 = vadd.f32 %v2521_v55, %v2180_v41  ;;  %v13254_v14 = vld [vmem:[#allocation190_spill] sm:$0xff]  ;;  %v13257_v55 = vld [vmem:[#allocation173_spill] sm:$0xff]  ;;  %v13258_v27 = vld [vmem:[#allocation4_spill] sm:$0xff] }
 0x365   :  { %v2825_v53 = vadd.f32 %v10112_v38, %v2758_v50  ;;  %v2759_v15 = vmax.f32 %v13248_v43, %v2703_v58  ;;  %v2880_v60 = vmax.f32 %v2824_v0, 0.0  ;;  %v13253_v58 = vld [vmem:[#allocation186_spill] sm:$0xff]  ;;  %v2194_v56 = vadd.f32 %v2193_v51, %v13254_v14 }
 0x366   :  { %v2525_v3 = vpop.f32.mrf.mxu1  ;;  %v2645_v43 = vadd.f32 %v2523_v34, %v2182_v42  ;;  %v13259_v41 = vmax.f32 %v13257_v55, %v13258_v27 }
 0x367   :  { %v2881_v48 = vmax.f32 %v2825_v53, 0.0  ;;  %v2826_v59 = vadd.f32 %v10126_v62, %v2759_v15  ;;  %v2184_v53 = vadd.f32 %v10880_v20, %v13253_v58  ;;  %v13264_v58 = vld [vmem:[#allocation6_spill] sm:$0xff] }
 0x368   :  { %v2527_v13 = vpop.f32.mrf.mxu1 }
 0x369   :  { %v10924_v5 = vpack.c.bf16 %v2881_v48, %v2879_v57  ;;  %v2882_v54 = vmax.f32 %v2826_v59, 0.0  ;;  %v13255_v57 = vld [vmem:[#allocation187_spill] sm:$0xff]  ;;  %v2646_v31 = vadd.f32 %v2525_v3, %v2184_v53 }
 0x36a   :  { %v2531_v22 = vpop.f32.mrf.mxu1  ;;  %v2186_v48 = vadd.f32 %v2185_v28, %v13255_v57  ;;  %v13256_v59 = vld [vmem:[#allocation191_spill] sm:$0xff] }
 0x36b   :  { %v2648_v50 = vadd.f32 %v2531_v22, %v2190_v35  ;;  %v10931_v16 = vpack.c.bf16 %v2882_v54, %v2880_v60  ;;  %v2196_v40 = vadd.f32 %v2195_v24, %v13256_v59  ;;  %v13260_v60 = vld [vmem:[#allocation175_spill] sm:$0xff]  ;;  %v13261_v54 = vld [vmem:[#allocation5_spill] sm:$0xff] }
 0x36c   :  { %v2533_v25 = vpop.f32.mrf.mxu1  ;;  %v2647_v3 = vadd.f32 %v2527_v13, %v2186_v48  ;;  %v13262_v22 = vmax.f32 %v13260_v60, %v13261_v54  ;;  %v7949_v13 = vld [vmem:[%s12544_s3 + $0x4d0] ss:$8 sps:$4 sm:$0xff]  }
 0x36d   :  { %v2704_v0 = vmax.f32 %v2644_v63, %v2648_v50  ;;  %v2649_v15 = vadd.f32 %v2533_v25, %v2192_v23  ;;  %7033 = vmatprep.mubr.msk.bf16.mxu0 %vm3113_vm2, %v10931_v16  ;;  %7075 = vmatprep.mubr.msk.bf16.mxu1 %vm3113_vm2, %v10931_v16  ;;  %v13263_v50 = vld [vmem:[#allocation177_spill] sm:$0xff]  ;;  %v13266_v57 = vld [vmem:[#allocation3_spill] sm:$0xff] }
 0x36e   :  { %v2535_v20 = vpop.f32.mrf.mxu1  ;;  %v3190_v35 = vpop.f32.mrf.mxu0  ;;  %3309 = vmatmul.mubr.bf16.gmra.mxu0 %v10924_v5  ;;  %3634 = vmatmul.mubr.bf16.gmra.mxu1 %v10924_v5  ;;  %v13265_v53 = vmax.f32 %v13263_v50, %v13264_v58  ;;  %v13267_v48 = vld [vmem:[#allocation183_spill] sm:$0xff]  ;;  %v7967_v50 = vld [vmem:[%s12544_s3 + $0x4a0] ss:$8 sps:$4 sm:$0xff]  }
 0x36f   :  { %v2760_v18 = vmax.f32 %v13259_v41, %v2704_v0  ;;  %v2705_v51 = vmax.f32 %v2645_v43, %v2649_v15  ;;  %v2650_v34 = vadd.f32 %v2535_v20, %v2194_v56  ;;  %7229 = vmatprep.mubr.msk.bf16.mxu1 %vm3113_vm2, %v10167_v26  ;;  %v13268_v59 = vmax.f32 %v13266_v57, %v13267_v48  ;;  %v7957_v20 = vld [vmem:[%s12544_s3 + $0x4c4] ss:$8 sps:$4 sm:$0xff]   ;;  %v7973_v57 = vld [vmem:[%s12544_s3 + $0x490] ss:$8 sps:$4 sm:$0xff]  }
 0x370   :  { %v2537_v28 = vpop.f32.mrf.mxu1  ;;  %v3192_v23 = vpop.f32.mrf.mxu0  ;;  %v7981_v48 = vld [vmem:[%s12544_s3 + $0x484] ss:$8 sps:$4 sm:$0xff]  }
 0x371   :  { %v2761_v37 = vmax.f32 %v13262_v22, %v2705_v51  ;;  %v2706_v42 = vmax.f32 %v2646_v31, %v2650_v34  ;;  %v2651_v32 = vadd.f32 %v2537_v28, %v2196_v40  ;;  %v2827_v63 = vadd.f32 %v10112_v38, %v2760_v18 }
 0x372   :  { %v3505_v24 = vpop.f32.mrf.mxu1  ;;  %v3194_v55 = vpop.f32.mrf.mxu0 }
 0x373   :  { %v2762_v25 = vmax.f32 %v13265_v53, %v2706_v42  ;;  %v2707_v14 = vmax.f32 %v2647_v3, %v2651_v32  ;;  %v10954_v56 = vadd.f32 %v3505_v24, %v3190_v35  ;;  %v2828_v0 = vadd.f32 %v10126_v62, %v2761_v37  ;;  %v7955_v35 = vld [vmem:[%s12544_s3 + $0x4c0] ss:$8 sps:$4 sm:$0xff]   ;;  %v7961_v37 = vld [vmem:[%s12544_s3 + $0x4b0] ss:$8 sps:$4 sm:$0xff]   ;;  %v7969_v32 = vld [vmem:[%s12544_s3 + $0x4a4] ss:$8 sps:$4 sm:$0xff]  }
 0x374   :  { %v3507_v43 = vpop.f32.mrf.mxu1  ;;  %v2883_v41 = vmax.f32 %v2827_v63, 0.0  ;;  %v10990_v42 = vpop.f32.mrf.mxu0  ;;  %v7975_v53 = vld [vmem:[%s12544_s3 + $0x494] ss:$8 sps:$4 sm:$0xff]  }
 0x375   :  { %v2829_v15 = vadd.f32 %v10112_v38, %v2762_v25  ;;  %v2763_v40 = vmax.f32 %v13268_v59, %v2707_v14  ;;  %v10964_v31 = vadd.f32 %v3507_v43, %v3192_v23  ;;  %v2884_v28 = vmax.f32 %v2828_v0, 0.0  ;;  %13270 = vst [vmem:[#allocation68_spill] sm:$0xff] %v10990_v42  ;;  %v7946_v0 = vld [vmem:[%s12544_s3 + $0x310] ss:$8 sps:$4 sm:$0xff]  }
 0x376   :  { %v3509_v27 = vpop.f32.mrf.mxu1  ;;  %4301 = vmatmul.mubr.bf16.vlgmr.msra.gmra.mxu1 %v10154_v10 }
 0x377   :  { %v2885_v18 = vmax.f32 %v2829_v15, 0.0  ;;  %v2830_v51 = vadd.f32 %v10126_v62, %v2763_v40  ;;  %v10970_v34 = vadd.f32 %v3509_v27, %v3194_v55  ;;  %7230 = vmatprep.mubr.msk.bf16.mxu1 %vm3113_vm2, %v10258_v1  ;;  %4924 = vmatpush1.bf16.msra.mxu1 %v7949_v13  ;;  %v7963_v62 = vld [vmem:[%s12544_s3 + $0x4b4] ss:$8 sps:$4 sm:$0xff]   ;;  %v7954_v15 = vld [vmem:[%s12544_s3 + $0x304] ss:$8 sps:$4 sm:$0xff]  }
 0x378   :  { %v10975_v38 = vpop.f32.mrf.mxu1  ;;  %4925 = vmatprep.subr.bf16.mxu1 %v7957_v20  ;;  %v7952_v40 = vld [vmem:[%s12544_s3 + $0x300] ss:$8 sps:$4 sm:$0xff]   ;;  %v7960_v20 = vld [vmem:[%s12544_s3 + $0x2f4] ss:$8 sps:$4 sm:$0xff]  }
 0x379   :  { %13269 = vst [vmem:[#allocation70_spill] sm:$0xff] %v10975_v38  ;;  %v2886_v3 = vmax.f32 %v2830_v51, 0.0  ;;  %v10980_v60 = vpack.c.bf16 %v2885_v18, %v2883_v41  ;;  %v7979_v55 = vld [vmem:[%s12544_s3 + $0x480] ss:$8 sps:$4 sm:$0xff]   ;;  %v7987_v27 = vld [vmem:[%s12544_s3 + $0x474] ss:$8 sps:$4 sm:$0xff]  }
 0x37a   :  { %v3515_v54 = vpop.f32.mrf.mxu1  ;;  %v7958_v18 = vld [vmem:[%s12544_s3 + $0x2f0] ss:$8 sps:$4 sm:$0xff]  }
 0x37b   :  { %v10985_v22 = vpack.c.bf16 %v2886_v3, %v2884_v28  ;;  %4926 = vmatpush1.bf16.msra.mxu1 %v7955_v35  ;;  %v7966_v35 = vld [vmem:[%s12544_s3 + $0x2e4] ss:$8 sps:$4 sm:$0xff]   ;;  %v7985_v28 = vld [vmem:[%s12544_s3 + $0x470] ss:$8 sps:$4 sm:$0xff]  }
 0x37c   :  { %4927 = vmatprep.subr.bf16.mxu1 %v7963_v62  ;;  %v3517_v23 = vpop.f32.mrf.mxu1  ;;  %v7993_v3 = vld [vmem:[%s12544_s3 + $0x464] ss:$8 sps:$4 sm:$0xff]  }
 0x37d   :  { %7034 = vmatprep.mubr.msk.bf16.mxu0 %vm3113_vm2, %v10985_v22 }
 0x37e   :  { %3319 = vmatmul.mubr.bf16.gmra.mxu0 %v10980_v60  ;;  %4311 = vmatmul.mubr.bf16.gmra.mxu1 %v10241_v21  ;;  %v3519_v14 = vpop.f32.mrf.mxu1 }
 0x37f   :  { %v3200_v24 = vpop.f32.mrf.mxu0  ;;  %7132 = vmatprep.mubr.msk.bf16.mxu0 %vm3113_vm2, %v10258_v1  ;;  %7231 = vmatprep.mubr.msk.bf16.mxu1 %vm3113_vm2, %v10338_v36 }
 0x380   :  { %v11001_v63 = vadd.f32 %v3515_v54, %v3200_v24  ;;  %4928 = vmatpush1.bf16.msra.mxu1 %v7961_v37  ;;  %v11028_v59 = vpop.f32.mrf.mxu1  ;;  %v7972_v24 = vld [vmem:[%s12544_s3 + $0x2d4] ss:$8 sps:$4 sm:$0xff]  }
 0x381   :  { %v3202_v58 = vpop.f32.mrf.mxu0  ;;  %4929 = vmatprep.subr.bf16.mxu1 %v7969_v32  ;;  %13271 = vst [vmem:[#allocation71_spill] sm:$0xff] %v11028_v59  ;;  %v7964_v32 = vld [vmem:[%s12544_s3 + $0x2e0] ss:$8 sps:$4 sm:$0xff]  }
 0x382   :  { %v11011_v25 = vadd.f32 %v3517_v23, %v3202_v58  ;;  %v3525_v41 = vpop.f32.mrf.mxu1 }
 0x383   :  { %v3204_v43 = vpop.f32.mrf.mxu0 }
 0x384   :  { %v11013_v13 = vadd.f32 %v3519_v14, %v3204_v43  ;;  %4930 = vmatpush1.bf16.msra.mxu1 %v7967_v50  ;;  %v3527_v62 = vpop.f32.mrf.mxu1  ;;  %v7991_v50 = vld [vmem:[%s12544_s3 + $0x460] ss:$8 sps:$4 sm:$0xff]  }
 0x385   :  { %4931 = vmatprep.subr.bf16.mxu1 %v7975_v53  ;;  %v11050_v51 = vpop.f32.mrf.mxu0  ;;  %v7999_v53 = vld [vmem:[%s12544_s3 + $0x534] ss:$8 sps:$4 sm:$0xff]  }
 0x386   :  { %3846 = vmatmul.mubr.bf16.vlgmr.msra.gmra.mxu0 %v10241_v21  ;;  %4321 = vmatmul.mubr.bf16.gmra.mxu1 %v10322_v30  ;;  %13272 = vst [vmem:[#allocation69_spill] sm:$0xff] %v11050_v51  ;;  %v3529_v14 = vpop.f32.mrf.mxu1 }
 0x387   :  { %7133 = vmatprep.mubr.msk.bf16.mxu0 %vm3113_vm2, %v10338_v36  ;;  %7232 = vmatprep.mubr.msk.bf16.mxu1 %vm3113_vm2, %v10425_v39 }
 0x388   :  { %4582 = vmatpush1.bf16.msra.mxu0 %v7946_v0  ;;  %4932 = vmatpush1.bf16.msra.mxu1 %v7973_v57  ;;  %v7978_v57 = vld [vmem:[%s12544_s3 + $0x2c4] ss:$8 sps:$4 sm:$0xff]  }
 0x389   :  { %4583 = vmatprep.subr.bf16.mxu0 %v7954_v15  ;;  %4933 = vmatprep.subr.bf16.mxu1 %v7981_v48  ;;  %v7970_v15 = vld [vmem:[%s12544_s3 + $0x2d0] ss:$8 sps:$4 sm:$0xff]  }
 0x38a   :  { %v7997_v48 = vld [vmem:[%s12544_s3 + $0x530] ss:$8 sps:$4 sm:$0xff]  }
 0x38c   :  { %4584 = vmatpush1.bf16.msra.mxu0 %v7952_v40  ;;  %4934 = vmatpush1.bf16.msra.mxu1 %v7979_v55  ;;  %v8005_v40 = vld [vmem:[%s12544_s3 + $0x524] ss:$8 sps:$4 sm:$0xff]   ;;  %v11106_v55 = vpop.f32.mrf.mxu1 }
 0x38d   :  { %4585 = vmatprep.subr.bf16.mxu0 %v7960_v20  ;;  %4935 = vmatprep.subr.bf16.mxu1 %v7987_v27  ;;  %v7976_v20 = vld [vmem:[%s12544_s3 + $0x2c0] ss:$8 sps:$4 sm:$0xff]   ;;  %13273 = vst [vmem:[#allocation72_spill] sm:$0xff] %v11106_v55  ;;  %v7984_v27 = vld [vmem:[%s12544_s3 + $0x2b4] ss:$8 sps:$4 sm:$0xff]  }
 0x38e   :  { %3856 = vmatmul.mubr.bf16.gmra.mxu0 %v10322_v30  ;;  %v3210_v54 = vpop.f32.mrf.mxu0  ;;  %4331 = vmatmul.mubr.bf16.gmra.mxu1 %v10403_v29 }
 0x38f   :  { %7134 = vmatprep.mubr.msk.bf16.mxu0 %vm3113_vm2, %v10425_v39  ;;  %v11065_v37 = vadd.f32 %v3525_v41, %v3210_v54  ;;  %7233 = vmatprep.mubr.msk.bf16.mxu1 %vm3113_vm2, %v10516_v47  ;;  %v8003_v41 = vld [vmem:[%s12544_s3 + $0x520] ss:$8 sps:$4 sm:$0xff]   ;;  %v8009_v54 = vld [vmem:[%s12544_s3 + $0x510] ss:$8 sps:$4 sm:$0xff]  }
 0x390   :  { %4586 = vmatpush1.bf16.msra.mxu0 %v7958_v18  ;;  %v3212_v23 = vpop.f32.mrf.mxu0  ;;  %4936 = vmatpush1.bf16.msra.mxu1 %v7985_v28  ;;  %v8011_v18 = vld [vmem:[%s12544_s3 + $0x514] ss:$8 sps:$4 sm:$0xff]   ;;  %v7982_v28 = vld [vmem:[%s12544_s3 + $0x2b0] ss:$8 sps:$4 sm:$0xff]  }
 0x391   :  { %4587 = vmatprep.subr.bf16.mxu0 %v7966_v35  ;;  %v11078_v58 = vadd.f32 %v3527_v62, %v3212_v23  ;;  %4937 = vmatprep.subr.bf16.mxu1 %v7993_v3  ;;  %v3535_v35 = vpop.f32.mrf.mxu1  ;;  %v7990_v62 = vld [vmem:[%s12544_s3 + $0x2a4] ss:$8 sps:$4 sm:$0xff]  }
 0x392   :  { %v3214_v43 = vpop.f32.mrf.mxu0 }
 0x393   :  { %v11083_v0 = vadd.f32 %v3529_v14, %v3214_v43  ;;  %v3537_v23 = vpop.f32.mrf.mxu1  ;;  %v7996_v43 = vld [vmem:[%s12544_s3 + $0x374] ss:$8 sps:$4 sm:$0xff]  }
 0x394   :  { %4588 = vmatpush1.bf16.msra.mxu0 %v7964_v32  ;;  %4938 = vmatpush1.bf16.msra.mxu1 %v7991_v50  ;;  %v11120_v3 = vpop.f32.mrf.mxu0  ;;  %v8014_v32 = vld [vmem:[%s12544_s3 + $0x504] ss:$8 sps:$4 sm:$0xff]  }
 0x395   :  { %4589 = vmatprep.subr.bf16.mxu0 %v7972_v24  ;;  %4943 = vmatprep.subr.bf16.mxu1 %v7999_v53  ;;  %13274 = vst [vmem:[#allocation87_spill] sm:$0xff] %v11120_v3  ;;  %v7988_v53 = vld [vmem:[%s12544_s3 + $0x2a0] ss:$8 sps:$4 sm:$0xff]  }
 0x396   :  { %3866 = vmatmul.mubr.bf16.gmra.mxu0 %v10403_v29  ;;  %4341 = vmatmul.mubr.bf16.gmra.mxu1 %v10497_v44 }
 0x397   :  { %7135 = vmatprep.mubr.msk.bf16.mxu0 %vm3113_vm2, %v10516_v47  ;;  %7234 = vmatprep.mubr.msk.bf16.mxu1 %vm3113_vm2, %v10602_v17 }
 0x398   :  { %4590 = vmatpush1.bf16.msra.mxu0 %v7970_v15  ;;  %4944 = vmatpush2.bf16.msra.mxu1 %v7997_v48  ;;  %v8012_v15 = vld [vmem:[%s12544_s3 + $0x500] ss:$8 sps:$4 sm:$0xff]   ;;  %v8020_v48 = vld [vmem:[%s12544_s3 + $0x4f4] ss:$8 sps:$4 sm:$0xff]  }
 0x399   :  { %4591 = vmatprep.subr.bf16.mxu0 %v7978_v57  ;;  %4945 = vmatprep.subr.bf16.mxu1 %v8005_v40  ;;  %v3539_v40 = vpop.f32.mrf.mxu1 }
 0x39c   :  { %4592 = vmatpush1.bf16.msra.mxu0 %v7976_v20  ;;  %4946 = vmatpush2.bf16.msra.mxu1 %v8003_v41  ;;  %v7994_v41 = vld [vmem:[%s12544_s3 + $0x370] ss:$8 sps:$4 sm:$0xff]  }
 0x39d   :  { %4593 = vmatprep.subr.bf16.mxu0 %v7984_v27  ;;  %4947 = vmatprep.subr.bf16.mxu1 %v8011_v18  ;;  %v8002_v18 = vld [vmem:[%s12544_s3 + $0x364] ss:$8 sps:$4 sm:$0xff]  }
 0x39e   :  { %3876 = vmatmul.mubr.bf16.gmra.mxu0 %v10497_v44  ;;  %v3220_v24 = vpop.f32.mrf.mxu0  ;;  %4351 = vmatmul.mubr.bf16.gmra.mxu1 %v10591_v49 }
 0x39f   :  { %7136 = vmatprep.mubr.msk.bf16.mxu0 %vm3113_vm2, %v10602_v17  ;;  %v11135_v50 = vadd.f32 %v3535_v35, %v3220_v24  ;;  %7235 = vmatprep.mubr.msk.bf16.mxu1 %vm3113_vm2, %v10665_v61  ;;  %v8018_v35 = vld [vmem:[%s12544_s3 + $0x4f0] ss:$8 sps:$4 sm:$0xff]  }
 0x3a0   :  { %4594 = vmatpush1.bf16.msra.mxu0 %v7982_v28  ;;  %v3222_v14 = vpop.f32.mrf.mxu0  ;;  %4948 = vmatpush2.bf16.msra.mxu1 %v8009_v54  ;;  %v8023_v28 = vld [vmem:[%s12544_s3 + $0x4e4] ss:$8 sps:$4 sm:$0xff]   ;;  %v11176_v54 = vpop.f32.mrf.mxu1 }
 0x3a1   :  { %4595 = vmatprep.subr.bf16.mxu0 %v7990_v62  ;;  %v11148_v57 = vadd.f32 %v3537_v23, %v3222_v14  ;;  %4949 = vmatprep.subr.bf16.mxu1 %v8014_v32  ;;  %v8000_v62 = vld [vmem:[%s12544_s3 + $0x360] ss:$8 sps:$4 sm:$0xff]   ;;  %13275 = vst [vmem:[#allocation73_spill] sm:$0xff] %v11176_v54  ;;  %v8008_v32 = vld [vmem:[%s12544_s3 + $0x354] ss:$8 sps:$4 sm:$0xff]  }
 0x3a2   :  { %v3224_v20 = vpop.f32.mrf.mxu0  ;;  %v8021_v23 = vld [vmem:[%s12544_s3 + $0x4e0] ss:$8 sps:$4 sm:$0xff]   ;;  %v3545_v24 = vpop.f32.mrf.mxu1 }
 0x3a3   :  { %v11153_v27 = vadd.f32 %v3539_v40, %v3224_v20  ;;  %v8015_v20 = vld [vmem:[%s12544_s3 + $0x340] ss:$8 sps:$4 sm:$0xff]  }
 0x3a4   :  { %4596 = vmatpush1.bf16.msra.mxu0 %v7988_v53  ;;  %4950 = vmatpush2.bf16.msra.mxu1 %v8012_v15  ;;  %v8006_v53 = vld [vmem:[%s12544_s3 + $0x350] ss:$8 sps:$4 sm:$0xff]   ;;  %v11187_v14 = vpop.f32.mrf.mxu0  ;;  %v3547_v15 = vpop.f32.mrf.mxu1 }
 0x3a5   :  { %4601 = vmatprep.subr.bf16.mxu0 %v7996_v43  ;;  %4951 = vmatprep.subr.bf16.mxu1 %v8020_v48  ;;  %13276 = vst [vmem:[#allocation77_spill] sm:$0xff] %v11187_v14  ;;  %v8017_v43 = vld [vmem:[%s12544_s3 + $0x344] ss:$8 sps:$4 sm:$0xff]  }
 0x3a6   :  { %3886 = vmatmul.mubr.bf16.gmra.mxu0 %v10591_v49  ;;  %4361 = vmatmul.mubr.bf16.gmra.mxu1 %v10658_v8 }
 0x3a7   :  { %7137 = vmatprep.mubr.msk.bf16.mxu0 %vm3113_vm2, %v10665_v61  ;;  %7236 = vmatprep.mubr.msk.bf16.mxu1 %vm3113_vm2, %v10711_v45 }
 0x3a8   :  { %4602 = vmatpush2.bf16.msra.mxu0 %v7994_v41  ;;  %4952 = vmatpush2.bf16.msra.mxu1 %v8018_v35 }
 0x3a9   :  { %4603 = vmatprep.subr.bf16.mxu0 %v8002_v18  ;;  %4953 = vmatprep.subr.bf16.mxu1 %v8023_v28  ;;  %v8026_v18 = vld [vmem:[%s12544_s3 + $0x334] ss:$8 sps:$4 sm:$0xff]   ;;  %v3549_v28 = vpop.f32.mrf.mxu1 }
 0x3ac   :  { %4604 = vmatpush2.bf16.msra.mxu0 %v8000_v62  ;;  %4954 = vmatpush2.bf16.msra.mxu1 %v8021_v23  ;;  %v8024_v23 = vld [vmem:[%s12544_s3 + $0x330] ss:$8 sps:$4 sm:$0xff]  }
 0x3ad   :  { %4605 = vmatprep.subr.bf16.mxu0 %v8008_v32  ;;  %5671 = vmatprep.subr.bf16.mxu1 %v12769_v4 }
 0x3ae   :  { %3896 = vmatmul.mubr.bf16.gmra.mxu0 %v10658_v8  ;;  %v3230_v48 = vpop.f32.mrf.mxu0  ;;  %4371 = vmatmul.mubr.bf16.gmra.mxu1 %v10704_v46 }
 0x3af   :  { %7138 = vmatprep.mubr.msk.bf16.mxu0 %vm3113_vm2, %v10711_v45  ;;  %v11197_v40 = vadd.f32 %v3545_v24, %v3230_v48  ;;  %7237 = vmatprep.mubr.msk.bf16.mxu1 %vm3113_vm2, %v10757_v9  ;;  %v8029_v24 = vld [vmem:[%s12544_s3 + $0x324] ss:$8 sps:$4 sm:$0xff]  }
 0x3b0   :  { %4606 = vmatpush2.bf16.msra.mxu0 %v8006_v53  ;;  %v3232_v41 = vpop.f32.mrf.mxu0  ;;  %v8027_v53 = vld [vmem:[%s12544_s3 + $0x320] ss:$8 sps:$4 sm:$0xff]  }
 0x3b1   :  { %4607 = vmatprep.subr.bf16.mxu0 %v8017_v43  ;;  %v11207_v35 = vadd.f32 %v3547_v15, %v3232_v41  ;;  %v11226_v43 = vpop.f32.mrf.mxu1 }
 0x3b2   :  { %v3234_v62 = vpop.f32.mrf.mxu0 }
 0x3b3   :  { %v11209_v32 = vadd.f32 %v3549_v28, %v3234_v62  ;;  %v3555_v15 = vpop.f32.mrf.mxu1 }
 0x3b4   :  { %4608 = vmatpush2.bf16.msra.mxu0 %v8015_v20  ;;  %v11228_v48 = vpop.f32.mrf.mxu0 }
 0x3b5   :  { %4609 = vmatprep.subr.bf16.mxu0 %v8026_v18  ;;  %v3557_v20 = vpop.f32.mrf.mxu1 }
 0x3b6   :  { %3906 = vmatmul.mubr.bf16.gmra.mxu0 %v10704_v46  ;;  %4381 = vmatmul.mubr.bf16.gmra.mxu1 %v10750_v33 }
 0x3b7   :  { %7139 = vmatprep.mubr.msk.bf16.mxu0 %vm3113_vm2, %v10757_v9  ;;  %7238 = vmatprep.mubr.msk.bf16.mxu1 %vm3113_vm2, %v10803_v19 }
 0x3b8   :  { %4610 = vmatpush2.bf16.msra.mxu0 %v8024_v23  ;;  %v3559_v23 = vpop.f32.mrf.mxu1 }
 0x3b9   :  { %4611 = vmatprep.subr.bf16.mxu0 %v8029_v24 }
 0x3bc   :  { %4612 = vmatpush2.bf16.msra.mxu0 %v8027_v53 }
 0x3bd   :  { %5534 = vmatprep.subr.bf16.mxu0 %v12769_v4 }
 0x3be   :  { %3916 = vmatmul.mubr.bf16.gmra.mxu0 %v10750_v33  ;;  %v3240_v41 = vpop.f32.mrf.mxu0  ;;  %4391 = vmatmul.mubr.bf16.gmra.mxu1 %v10796_v6 }
 0x3bf   :  { %7140 = vmatprep.mubr.msk.bf16.mxu0 %vm3113_vm2, %v10803_v19  ;;  %v11235_v18 = vadd.f32 %v3555_v15, %v3240_v41  ;;  %7239 = vmatprep.mubr.msk.bf16.mxu1 %vm3113_vm2, %v10849_v2  ;;  %v11249_v15 = vpop.f32.mrf.mxu1 }
 0x3c0   :  { %v3242_v28 = vpop.f32.mrf.mxu0 }
 0x3c1   :  { %v11239_v62 = vadd.f32 %v3557_v20, %v3242_v28  ;;  %v3565_v41 = vpop.f32.mrf.mxu1 }
 0x3c2   :  { %v3244_v24 = vpop.f32.mrf.mxu0 }
 0x3c3   :  { %v11241_v53 = vadd.f32 %v3559_v23, %v3244_v24  ;;  %v3567_v20 = vpop.f32.mrf.mxu1 }
 0x3c4   :  { %v11251_v55 = vpop.f32.mrf.mxu0 }
 0x3c5   :  { %v3569_v54 = vpop.f32.mrf.mxu1 }
 0x3c6   :  { %3926 = vmatmul.mubr.bf16.gmra.mxu0 %v10796_v6  ;;  %4401 = vmatmul.mubr.bf16.gmra.mxu1 %v10842_v11 }
 0x3c7   :  { %7141 = vmatprep.mubr.msk.bf16.mxu0 %vm3113_vm2, %v10849_v2  ;;  %7240 = vmatprep.mubr.msk.bf16.mxu1 %vm3113_vm2, %v10893_v52 }
 0x3ce   :  { %3936 = vmatmul.mubr.bf16.gmra.mxu0 %v10842_v11  ;;  %v3250_v28 = vpop.f32.mrf.mxu0  ;;  %4411 = vmatmul.mubr.bf16.gmra.mxu1 %v10886_v7 }
 0x3cf   :  { %7142 = vmatprep.mubr.msk.bf16.mxu0 %vm3113_vm2, %v10893_v52  ;;  %v11257_v23 = vadd.f32 %v3565_v41, %v3250_v28  ;;  %7241 = vmatprep.mubr.msk.bf16.mxu1 %vm3113_vm2, %v10931_v16  ;;  %v11271_v41 = vpop.f32.mrf.mxu1 }
 0x3d0   :  { %v3252_v24 = vpop.f32.mrf.mxu0  ;;  %13280 = vst [vmem:[#allocation78_spill] sm:$0xff] %v11271_v41 }
 0x3d1   :  { %13277 = vst [vmem:[#allocation84_spill] sm:$0xff] %v11257_v23  ;;  %v11261_v3 = vadd.f32 %v3567_v20, %v3252_v24  ;;  %v3575_v28 = vpop.f32.mrf.mxu1 }
 0x3d2   :  { %v3254_v14 = vpop.f32.mrf.mxu0 }
 0x3d3   :  { %13278 = vst [vmem:[#allocation88_spill] sm:$0xff] %v11261_v3  ;;  %v11263_v38 = vadd.f32 %v3569_v54, %v3254_v14  ;;  %v3577_v20 = vpop.f32.mrf.mxu1 }
 0x3d4   :  { %v11273_v42 = vpop.f32.mrf.mxu0 }
 0x3d5   :  { %13279 = vst [vmem:[#allocation74_spill] sm:$0xff] %v11263_v38  ;;  %13281 = vst [vmem:[#allocation75_spill] sm:$0xff] %v11273_v42  ;;  %v3579_v59 = vpop.f32.mrf.mxu1 }
 0x3d6   :  { %3946 = vmatmul.mubr.bf16.gmra.mxu0 %v10886_v7  ;;  %4421 = vmatmul.mubr.bf16.gmra.mxu1 %v10924_v5 }
 0x3d7   :  { %7143 = vmatprep.mubr.msk.bf16.mxu0 %vm3113_vm2, %v10931_v16  ;;  %7242 = vmatprep.mubr.msk.bf16.mxu1 %vm3113_vm2, %v10985_v22  ;;  %v11288_v42 = vpop.f32.mrf.mxu1 }
 0x3d8   :  { %13285 = vst [vmem:[#allocation89_spill] sm:$0xff] %v11288_v42 }
 0x3de   :  { %3956 = vmatmul.mubr.bf16.gmra.mxu0 %v10924_v5  ;;  %v3260_v54 = vpop.f32.mrf.mxu0  ;;  %4431 = vmatmul.mubr.bf16.gmra.mxu1 %v10980_v60 }
 0x3df   :  { %7144 = vmatprep.mubr.msk.bf16.mxu0 %vm3113_vm2, %v10985_v22  ;;  %v11279_v14 = vadd.f32 %v3575_v28, %v3260_v54  ;;  %7340 = vmatprep.mubr.msk.bf16.mxu1 %vm3113_vm2, %v10258_v1  ;;  %v3585_v28 = vpop.f32.mrf.mxu1 }
 0x3e0   :  { %v3262_v24 = vpop.f32.mrf.mxu0 }
 0x3e1   :  { %13282 = vst [vmem:[#allocation79_spill] sm:$0xff] %v11279_v14  ;;  %v11283_v12 = vadd.f32 %v3577_v20, %v3262_v24  ;;  %v3587_v54 = vpop.f32.mrf.mxu1 }
 0x3e2   :  { %v3264_v51 = vpop.f32.mrf.mxu0 }
 0x3e3   :  { %13283 = vst [vmem:[#allocation76_spill] sm:$0xff] %v11283_v12  ;;  %v11285_v41 = vadd.f32 %v3579_v59, %v3264_v51  ;;  %v3589_v51 = vpop.f32.mrf.mxu1 }
 0x3e4   :  { %v11294_v14 = vpop.f32.mrf.mxu0 }
 0x3e5   :  { %13284 = vst [vmem:[#allocation80_spill] sm:$0xff] %v11285_v41  ;;  %13286 = vst [vmem:[#allocation94_spill] sm:$0xff] %v11294_v14  ;;  %v3591_v14 = vpop.f32.mrf.mxu1 }
 0x3e6   :  { %3966 = vmatmul.mubr.bf16.gmra.mxu0 %v10980_v60  ;;  %4956 = vmatmul.mubr.bf16.vlgmr.msra.gmra.mxu1 %v10241_v21 }
 0x3e7   :  { %3975 = vmatprep.mubr.bf16.mxu0 %v12769_v4  ;;  %7341 = vmatprep.mubr.msk.bf16.mxu1 %vm3113_vm2, %v10338_v36 }
 0x3ee   :  { %3976 = vmatmul.mubr.bf16.gmra.mxu0 %v12769_v4  ;;  %v3270_v20 = vpop.f32.mrf.mxu0  ;;  %4966 = vmatmul.mubr.bf16.gmra.mxu1 %v10322_v30  ;;  %v3595_v23 = vpop.f32.mrf.mxu1 }
 0x3ef   :  { %4613 = vmatprep.mubr.bf16.mxu0 %v12769_v4  ;;  %v11299_v59 = vadd.f32 %v3585_v28, %v3270_v20  ;;  %7342 = vmatprep.mubr.msk.bf16.mxu1 %vm3113_vm2, %v10425_v39  ;;  %v8030_v20 = vld [vmem:[%s12546_s5 + $0xa8] sm:$0xff]  }
 0x3f0   :  { %v3272_v24 = vpop.f32.mrf.mxu0  ;;  %v3597_v28 = vpop.f32.mrf.mxu1 }
 0x3f1   :  { %v11303_v41 = vadd.f32 %v3587_v54, %v3272_v24 }
 0x3f2   :  { %v3274_v42 = vpop.f32.mrf.mxu0 }
 0x3f3   :  { %v11305_v12 = vadd.f32 %v3589_v51, %v3274_v42  ;;  %v3599_v42 = vpop.f32.mrf.mxu1 }
 0x3f4   :  { %v3276_v38 = vpop.f32.mrf.mxu0 }
 0x3f5   :  { %13287 = vst [vmem:[#allocation91_spill] sm:$0xff] %v11305_v12  ;;  %v11307_v3 = vadd.f32 %v3591_v14, %v3276_v38 }
 0x3f6   :  { %4614 = vmatmul.mubr.bf16.vlgmr.msra.gmra.mxu0 %v12769_v4  ;;  %4976 = vmatmul.mubr.bf16.gmra.mxu1 %v10403_v29 }
 0x3f7   :  { %13288 = vst [vmem:[#allocation96_spill] sm:$0xff] %v11307_v3  ;;  %7271 = vmatprep.mubr.msk.bf16.mxu0 %vm3113_vm2, %v10167_v26  ;;  %7343 = vmatprep.mubr.msk.bf16.mxu1 %vm3113_vm2, %v10516_v47 }
 0x3f8   :  { %5535 = vmatpush1.bf16.msra.mxu0 %v8030_v20 }
 0x3f9   :  { %5536 = vmatprep.subr.bf16.mxu0 %v12769_v4 }
 0x3fe   :  { %4624 = vmatmul.mubr.bf16.gmra.mxu0 %v10154_v10  ;;  %v3280_v54 = vpop.f32.mrf.mxu0  ;;  %4986 = vmatmul.mubr.bf16.gmra.mxu1 %v10497_v44  ;;  %v3601_v10 = vpop.f32.mrf.mxu1 }
 0x3ff   :  { %7272 = vmatprep.mubr.msk.bf16.mxu0 %vm3113_vm2, %v10258_v1  ;;  %v11319_v38 = vadd.f32 %v3595_v23, %v3280_v54  ;;  %7344 = vmatprep.mubr.msk.bf16.mxu1 %vm3113_vm2, %v10602_v17  ;;  %v8031_v23 = vld [vmem:[%s12546_s5 + $0xa0] sm:$0xff]  }
 0x400   :  { %v3282_v14 = vpop.f32.mrf.mxu0  ;;  %v3605_v3 = vpop.f32.mrf.mxu1  ;;  %5537 = vmatpush1.bf16.msra.mxu0 %v8031_v23 }
 0x401   :  { %v11323_v26 = vadd.f32 %v3597_v28, %v3282_v14  ;;  %5538 = vmatprep.subr.bf16.mxu0 %v12769_v4  ;;  %v8032_v14 = vld [vmem:[%s12546_s5 + $0x98] sm:$0xff]  }
 0x402   :  { %v3284_v51 = vpop.f32.mrf.mxu0  ;;  %v3607_v28 = vpop.f32.mrf.mxu1 }
 0x403   :  { %v11328_v24 = vadd.f32 %v3599_v42, %v3284_v51 }
 0x404   :  { %v3286_v12 = vpop.f32.mrf.mxu0  ;;  %5539 = vmatpush1.bf16.msra.mxu0 %v8032_v14  ;;  %v8034_v14 = vld [vmem:[%s12546_s5 + $0x88] sm:$0xff]  }
 0x405   :  { %v11331_v1 = vadd.f32 %v3601_v10, %v3286_v12  ;;  %v3609_v12 = vpop.f32.mrf.mxu1  ;;  %5540 = vmatprep.subr.bf16.mxu0 %v12769_v4 }
 0x406   :  { %4634 = vmatmul.mubr.bf16.gmra.mxu0 %v10241_v21  ;;  %4996 = vmatmul.mubr.bf16.gmra.mxu1 %v10591_v49 }
 0x407   :  { %7273 = vmatprep.mubr.msk.bf16.mxu0 %vm3113_vm2, %v10338_v36  ;;  %7345 = vmatprep.mubr.msk.bf16.mxu1 %vm3113_vm2, %v10665_v61  ;;  %v3611_v42 = vpop.f32.mrf.mxu1 }
 0x40e   :  { %4644 = vmatmul.mubr.bf16.gmra.mxu0 %v10322_v30  ;;  %v3290_v21 = vpop.f32.mrf.mxu0  ;;  %5006 = vmatmul.mubr.bf16.gmra.mxu1 %v10658_v8  ;;  %v3615_v30 = vpop.f32.mrf.mxu1 }
 0x40f   :  { %7274 = vmatprep.mubr.msk.bf16.mxu0 %vm3113_vm2, %v10425_v39  ;;  %v11347_v36 = vadd.f32 %v3605_v3, %v3290_v21  ;;  %7346 = vmatprep.mubr.msk.bf16.mxu1 %vm3113_vm2, %v10711_v45 }
 0x410   :  { %v3292_v54 = vpop.f32.mrf.mxu0  ;;  %v3617_v23 = vpop.f32.mrf.mxu1 }
 0x411   :  { %v11354_v20 = vadd.f32 %v3607_v28, %v3292_v54  ;;  %v8033_v28 = vld [vmem:[%s12546_s5 + $0x90] sm:$0xff]  }
 0x412   :  { %v3294_v10 = vpop.f32.mrf.mxu0  ;;  %5541 = vmatpush1.bf16.msra.mxu0 %v8033_v28  ;;  %v8035_v28 = vld [vmem:[%s12546_s5 + $0x38] sm:$0xff]  }
 0x413   :  { %v11356_v51 = vadd.f32 %v3609_v12, %v3294_v10  ;;  %5542 = vmatprep.subr.bf16.mxu0 %v12769_v4  ;;  %v3619_v12 = vpop.f32.mrf.mxu1  ;;  %5672 = vmatpush1.bf16.msra.mxu1 %v8035_v28 }
 0x414   :  { %v3296_v39 = vpop.f32.mrf.mxu0  ;;  %5673 = vmatprep.subr.bf16.mxu1 %v12769_v4 }
 0x415   :  { %v11359_v3 = vadd.f32 %v3611_v42, %v3296_v39 }
 0x416   :  { %4654 = vmatmul.mubr.bf16.gmra.mxu0 %v10403_v29  ;;  %5016 = vmatmul.mubr.bf16.gmra.mxu1 %v10704_v46  ;;  %v3621_v29 = vpop.f32.mrf.mxu1 }
 0x417   :  { %7275 = vmatprep.mubr.msk.bf16.mxu0 %vm3113_vm2, %v10516_v47  ;;  %7347 = vmatprep.mubr.msk.bf16.mxu1 %vm3113_vm2, %v10757_v9 }
 0x418   :  { %5543 = vmatpush1.bf16.msra.mxu0 %v8034_v14 }
 0x419   :  { %5544 = vmatprep.subr.bf16.mxu0 %v12769_v4 }
 0x41e   :  { %4664 = vmatmul.mubr.bf16.gmra.mxu0 %v10497_v44  ;;  %v3300_v21 = vpop.f32.mrf.mxu0  ;;  %5026 = vmatmul.mubr.bf16.gmra.mxu1 %v10750_v33  ;;  %v3625_v42 = vpop.f32.mrf.mxu1 }
 0x41f   :  { %7276 = vmatprep.mubr.msk.bf16.mxu0 %vm3113_vm2, %v10602_v17  ;;  %v11375_v47 = vadd.f32 %v3615_v30, %v3300_v21  ;;  %7348 = vmatprep.mubr.msk.bf16.mxu1 %vm3113_vm2, %v10803_v19 }
 0x420   :  { %v3302_v54 = vpop.f32.mrf.mxu0  ;;  %v3627_v17 = vpop.f32.mrf.mxu1 }
 0x421   :  { %v11382_v10 = vadd.f32 %v3617_v23, %v3302_v54  ;;  %v8036_v23 = vld [vmem:[%s12546_s5 + $0x80] sm:$0xff]  }
 0x422   :  { %v3304_v44 = vpop.f32.mrf.mxu0  ;;  %5545 = vmatpush1.bf16.msra.mxu0 %v8036_v23  ;;  %v8039_v23 = vld [vmem:[%s12546_s5 + $0x78] sm:$0xff]  }
 0x423   :  { %v11384_v39 = vadd.f32 %v3619_v12, %v3304_v44  ;;  %v3629_v12 = vpop.f32.mrf.mxu1  ;;  %5546 = vmatprep.subr.bf16.mxu0 %v12769_v4 }
 0x424   :  { %v3306_v30 = vpop.f32.mrf.mxu0 }
 0x425   :  { %13289 = vst [vmem:[#allocation92_spill] sm:$0xff] %v11384_v39  ;;  %v11390_v21 = vadd.f32 %v3621_v29, %v3306_v30  ;;  %v8038_v29 = vld [vmem:[%s12546_s5 + $0x28] sm:$0xff]  }
 0x426   :  { %4674 = vmatmul.mubr.bf16.gmra.mxu0 %v10591_v49  ;;  %5036 = vmatmul.mubr.bf16.gmra.mxu1 %v10796_v6  ;;  %v8037_v49 = vld [vmem:[%s12546_s5 + $0x30] sm:$0xff]  }
 0x427   :  { %13290 = vst [vmem:[#allocation81_spill] sm:$0xff] %v11390_v21  ;;  %7277 = vmatprep.mubr.msk.bf16.mxu0 %vm3113_vm2, %v10665_v61  ;;  %7349 = vmatprep.mubr.msk.bf16.mxu1 %vm3113_vm2, %v10849_v2  ;;  %v3631_v61 = vpop.f32.mrf.mxu1  ;;  %v8041_v21 = vld [vmem:[%s12546_s5 + $0x18] sm:$0xff]  }
 0x428   :  { %5674 = vmatpush1.bf16.msra.mxu1 %v8037_v49  ;;  %5547 = vmatpush1.bf16.msra.mxu0 %v8039_v23 }
 0x429   :  { %5675 = vmatprep.subr.bf16.mxu1 %v12769_v4  ;;  %5548 = vmatprep.subr.bf16.mxu0 %v12769_v4 }
 0x42c   :  { %5676 = vmatpush1.bf16.msra.mxu1 %v8038_v29 }
 0x42d   :  { %5677 = vmatprep.subr.bf16.mxu1 %v12769_v4 }
 0x42e   :  { %4684 = vmatmul.mubr.bf16.gmra.mxu0 %v10658_v8  ;;  %v3310_v54 = vpop.f32.mrf.mxu0  ;;  %v3635_v14 = vpop.f32.mrf.mxu1  ;;  %5046 = vmatmul.mubr.bf16.gmra.mxu1 %v10842_v11  ;;  %v8040_v8 = vld [vmem:[%s12546_s5 + $0x20] sm:$0xff]  }
 0x42f   :  { %7278 = vmatprep.mubr.msk.bf16.mxu0 %vm3113_vm2, %v10711_v45  ;;  %v11414_v44 = vadd.f32 %v3625_v42, %v3310_v54  ;;  %7350 = vmatprep.mubr.msk.bf16.mxu1 %vm3113_vm2, %v10893_v52 }
 0x430   :  { %v3312_v30 = vpop.f32.mrf.mxu0  ;;  %v3637_v28 = vpop.f32.mrf.mxu1  ;;  %5678 = vmatpush1.bf16.msra.mxu1 %v8040_v8 }
 0x431   :  { %13291 = vst [vmem:[#allocation86_spill] sm:$0xff] %v11414_v44  ;;  %v11425_v49 = vadd.f32 %v3627_v17, %v3312_v30  ;;  %5679 = vmatprep.subr.bf16.mxu1 %v12769_v4 }
 0x432   :  { %v3314_v45 = vpop.f32.mrf.mxu0  ;;  %v3639_v42 = vpop.f32.mrf.mxu1 }
 0x433   :  { %v11427_v54 = vadd.f32 %v3629_v12, %v3314_v45 }
 0x434   :  { %v3316_v29 = vpop.f32.mrf.mxu0  ;;  %v3641_v44 = vpop.f32.mrf.mxu1  ;;  %5680 = vmatpush1.bf16.msra.mxu1 %v8041_v21  ;;  %v8044_v21 = vld [vmem:[%s12546_s5 + $0x8] sm:$0xff]  }
 0x435   :  { %v11434_v39 = vadd.f32 %v3631_v61, %v3316_v29  ;;  %v8042_v61 = vld [vmem:[%s12546_s5 + $0x70] sm:$0xff]   ;;  %5681 = vmatprep.subr.bf16.mxu1 %v12769_v4 }
 0x436   :  { %4694 = vmatmul.mubr.bf16.gmra.mxu0 %v10704_v46  ;;  %v11437_v17 = vpop.f32.mrf.mxu1  ;;  %5056 = vmatmul.mubr.bf16.gmra.mxu1 %v10886_v7  ;;  %v8043_v46 = vld [vmem:[%s12546_s5 + $0x10] sm:$0xff]  }
 0x437   :  { %7279 = vmatprep.mubr.msk.bf16.mxu0 %vm3113_vm2, %v10757_v9  ;;  %7351 = vmatprep.mubr.msk.bf16.mxu1 %vm3113_vm2, %v10931_v16 }
 0x438   :  { %v11444_v12 = vpop.f32.mrf.mxu1  ;;  %5549 = vmatpush1.bf16.msra.mxu0 %v8042_v61  ;;  %5682 = vmatpush1.bf16.msra.mxu1 %v8043_v46 }
 0x439   :  { %5554 = vmatprep.subr.bf16.mxu0 %v12769_v4  ;;  %5683 = vmatprep.subr.bf16.mxu1 %v12769_v4 }
 0x43a   :  { %v11453_v30 = vpop.f32.mrf.mxu1 }
 0x43c   :  { %v11456_v9 = vpop.f32.mrf.mxu1  ;;  %5684 = vmatpush1.bf16.msra.mxu1 %v8044_v21 }
 0x43d   :  { %13292 = vst [vmem:[#allocation93_spill] sm:$0xff] %v11456_v9  ;;  %5685 = vmatprep.subr.bf16.mxu1 %v12769_v4 }
 0x43e   :  { %v3320_v23 = vpop.f32.mrf.mxu0  ;;  %4704 = vmatmul.mubr.bf16.gmra.mxu0 %v10750_v33  ;;  %v11465_v45 = vpop.f32.mrf.mxu1  ;;  %5066 = vmatmul.mubr.bf16.gmra.mxu1 %v10924_v5  ;;  %v8046_v33 = vld [vmem:[%s12546_s5] sm:$0xff]  }
 0x43f   :  { %v11463_v8 = vadd.f32 %v3635_v14, %v3320_v23  ;;  %7280 = vmatprep.mubr.msk.bf16.mxu0 %vm3113_vm2, %v10803_v19  ;;  %7352 = vmatprep.mubr.msk.bf16.mxu1 %vm3113_vm2, %v10985_v22 }
 0x440   :  { %v3322_v29 = vpop.f32.mrf.mxu0  ;;  %v11474_v46 = vpop.f32.mrf.mxu1  ;;  %5686 = vmatpush1.bf16.msra.mxu1 %v8046_v33 }
 0x441   :  { %v11472_v61 = vadd.f32 %v3637_v28, %v3322_v29  ;;  %5691 = vmatprep.subr.bf16.mxu1 %v12769_v4  ;;  %v8047_v28 = vld [vmem:[%s12546_s5 + $0x68] sm:$0xff]  }
 0x442   :  { %v3324_v14 = vpop.f32.mrf.mxu0  ;;  %v11482_v9 = vpop.f32.mrf.mxu1 }
 0x443   :  { %v11480_v23 = vadd.f32 %v3639_v42, %v3324_v14 }
 0x444   :  { %v3326_v19 = vpop.f32.mrf.mxu0  ;;  %v11486_v21 = vpop.f32.mrf.mxu1  ;;  %5692 = vmatpush2.bf16.msra.mxu1 %v8047_v28 }
 0x445   :  { %v11484_v22 = vadd.f32 %v3641_v44, %v3326_v19  ;;  %5693 = vmatprep.subr.bf16.mxu1 %v12769_v4 }
 0x446   :  { %v3847_v29 = vpop.f32.mrf.mxu0  ;;  %4714 = vmatmul.mubr.bf16.gmra.mxu0 %v10796_v6  ;;  %v11496_v14 = vpop.f32.mrf.mxu1  ;;  %5076 = vmatmul.mubr.bf16.gmra.mxu1 %v10980_v60  ;;  %v8045_v6 = vld [vmem:[%s12546_s5 + $0xd8] sm:$0xff]  }
 0x447   :  { %v11494_v42 = vadd.f32 %v3847_v29, %v10954_v56  ;;  %7281 = vmatprep.mubr.msk.bf16.mxu0 %vm3113_vm2, %v10849_v2  ;;  %5085 = vmatprep.mubr.bf16.mxu1 %v12769_v4  ;;  %v8049_v56 = vld [vmem:[%s12546_s5 + $0x60] sm:$0xff]  }
 0x448   :  { %v3849_v44 = vpop.f32.mrf.mxu0  ;;  %v11505_v19 = vpop.f32.mrf.mxu1  ;;  %5555 = vmatpush2.bf16.msra.mxu0 %v8045_v6  ;;  %5694 = vmatpush2.bf16.msra.mxu1 %v8049_v56 }
 0x449   :  { %v11503_v33 = vadd.f32 %v3849_v44, %v10964_v31  ;;  %13293 = vst [vmem:[#allocation82_spill] sm:$0xff] %v11505_v19  ;;  %5556 = vmatprep.subr.bf16.mxu0 %v12769_v4  ;;  %5695 = vmatprep.subr.bf16.mxu1 %v12769_v4  ;;  %v8050_v44 = vld [vmem:[%s12546_s5 + $0x58] sm:$0xff]  }
 0x44a   :  { %v3851_v2 = vpop.f32.mrf.mxu0  ;;  %v11517_v28 = vpop.f32.mrf.mxu1 }
 0x44b   :  { %v11515_v60 = vadd.f32 %v3851_v2, %v10970_v34  ;;  %13294 = vst [vmem:[#allocation7_spill] sm:$0xff] %v11517_v28 }
 0x44c   :  { %v11519_v31 = vpop.f32.mrf.mxu0  ;;  %v11522_v29 = vpop.f32.mrf.mxu1  ;;  %5696 = vmatpush2.bf16.msra.mxu1 %v8050_v44 }
 0x44d   :  { %13295 = vst [vmem:[#allocation83_spill] sm:$0xff] %v11522_v29  ;;  %5697 = vmatprep.subr.bf16.mxu1 %v12769_v4 }
 0x44e   :  { %v3857_v19 = vpop.f32.mrf.mxu0  ;;  %4724 = vmatmul.mubr.bf16.gmra.mxu0 %v10842_v11  ;;  %v11532_v6 = vpop.f32.mrf.mxu1  ;;  %5086 = vmatmul.mubr.bf16.gmra.mxu1 %v12769_v4  ;;  %v8052_v11 = vld [vmem:[%s12546_s5 + $0x50] sm:$0xff]  }
 0x44f   :  { %v11530_v34 = vadd.f32 %v3857_v19, %v11001_v63  ;;  %7282 = vmatprep.mubr.msk.bf16.mxu0 %vm3113_vm2, %v10893_v52 }
 0x450   :  { %v3859_v56 = vpop.f32.mrf.mxu0  ;;  %v11542_v28 = vpop.f32.mrf.mxu1  ;;  %5698 = vmatpush2.bf16.msra.mxu1 %v8052_v11 }
 0x451   :  { %v11540_v29 = vadd.f32 %v3859_v56, %v11011_v25  ;;  %13296 = vst [vmem:[#allocation8_spill] sm:$0xff] %v11542_v28  ;;  %v8048_v25 = vld [vmem:[%s12546_s5 + $0xd0] sm:$0xff]   ;;  %5699 = vmatprep.subr.bf16.mxu1 %v12769_v4 }
 0x452   :  { %v3861_v63 = vpop.f32.mrf.mxu0  ;;  %v11553_v44 = vpop.f32.mrf.mxu1  ;;  %5557 = vmatpush2.bf16.msra.mxu0 %v8048_v25 }
 0x453   :  { %v11551_v19 = vadd.f32 %v3861_v63, %v11013_v13  ;;  %v8053_v13 = vld [vmem:[%s12546_s5 + $0x48] sm:$0xff]   ;;  %5558 = vmatprep.subr.bf16.mxu0 %v12769_v4 }
 0x454   :  { %v11558_v56 = vpop.f32.mrf.mxu0  ;;  %v11562_v28 = vpop.f32.mrf.mxu1  ;;  %5700 = vmatpush2.bf16.msra.mxu1 %v8053_v13 }
 0x455   :  { %13297 = vst [vmem:[#allocation85_spill] sm:$0xff] %v11562_v28  ;;  %5701 = vmatprep.subr.bf16.mxu1 %v12769_v4 }
 0x456   :  { %v3867_v63 = vpop.f32.mrf.mxu0  ;;  %4734 = vmatmul.mubr.bf16.gmra.mxu0 %v10886_v7  ;;  %v11573_v11 = vpop.f32.mrf.mxu1  ;;  %v8051_v7 = vld [vmem:[%s12546_s5 + $0xc8] sm:$0xff]  }
 0x457   :  { %v11571_v52 = vadd.f32 %v3867_v63, %v11065_v37  ;;  %13298 = vst [vmem:[#allocation9_spill] sm:$0xff] %v11573_v11  ;;  %7283 = vmatprep.mubr.msk.bf16.mxu0 %vm3113_vm2, %v10931_v16  ;;  %v8055_v37 = vld [vmem:[%s12546_s5 + $0x40] sm:$0xff]   ;;  %5559 = vmatpush2.bf16.msra.mxu0 %v8051_v7 }
 0x458   :  { %v3869_v25 = vpop.f32.mrf.mxu0  ;;  %v11580_v28 = vpop.f32.mrf.mxu1  ;;  %5560 = vmatprep.subr.bf16.mxu0 %v12769_v4  ;;  %5702 = vmatpush2.bf16.msra.mxu1 %v8055_v37 }
 0x459   :  { %v11578_v2 = vadd.f32 %v3869_v25, %v11078_v58  ;;  %13299 = vst [vmem:[#allocation97_spill] sm:$0xff] %v11580_v28  ;;  %6011 = vmatprep.subr.bf16.mxu1 %v12769_v4 }
 0x45a   :  { %v3871_v63 = vpop.f32.mrf.mxu0  ;;  %v11592_v13 = vpop.f32.mrf.mxu1 }
 0x45b   :  { %v11590_v16 = vadd.f32 %v3871_v63, %v11083_v0  ;;  %13301 = vst [vmem:[#allocation99_spill] sm:$0xff] %v11592_v13 }
 0x45c   :  { %v11594_v58 = vpop.f32.mrf.mxu0  ;;  %v11597_v25 = vpop.f32.mrf.mxu1 }
 0x45d   :  { %13300 = vst [vmem:[#allocation102_spill] sm:$0xff] %v11590_v16  ;;  %13302 = vst [vmem:[#allocation104_spill] sm:$0xff] %v11594_v58 }
 0x45e   :  { %13303 = vst [vmem:[#allocation100_spill] sm:$0xff] %v11597_v25  ;;  %v3877_v28 = vpop.f32.mrf.mxu0  ;;  %4744 = vmatmul.mubr.bf16.gmra.mxu0 %v10924_v5  ;;  %v11604_v0 = vpop.f32.mrf.mxu1  ;;  %v8054_v25 = vld [vmem:[%s12546_s5 + $0xc0] sm:$0xff]  }
 0x45f   :  { %v11602_v11 = vadd.f32 %v3877_v28, %v11135_v50  ;;  %13304 = vst [vmem:[#allocation90_spill] sm:$0xff] %v11604_v0  ;;  %5561 = vmatpush2.bf16.msra.mxu0 %v8054_v25 }
 0x460   :  { %v3879_v63 = vpop.f32.mrf.mxu0  ;;  %v11611_v37 = vpop.f32.mrf.mxu1  ;;  %5562 = vmatprep.subr.bf16.mxu0 %v12769_v4 }
 0x461   :  { %v11609_v13 = vadd.f32 %v3879_v63, %v11148_v57  ;;  %13305 = vst [vmem:[#allocation95_spill] sm:$0xff] %v11611_v37  ;;  %v8060_v37 = vld [vmem:[%s12546_s5 + $0xb8] sm:$0xff]  }
 0x462   :  { %v3881_v58 = vpop.f32.mrf.mxu0  ;;  %v11621_v28 = vpop.f32.mrf.mxu1 }
 0x463   :  { %v11619_v50 = vadd.f32 %v3881_v58, %v11153_v27  ;;  %13307 = vst [vmem:[#allocation10_spill] sm:$0xff] %v11621_v28  ;;  %5563 = vmatpush2.bf16.msra.mxu0 %v8060_v37 }
 0x464   :  { %v11623_v7 = vpop.f32.mrf.mxu0  ;;  %v11628_v63 = vpop.f32.mrf.mxu1  ;;  %5564 = vmatprep.subr.bf16.mxu0 %v12769_v4 }
 0x465   :  { %13306 = vst [vmem:[#allocation101_spill] sm:$0xff] %v11619_v50  ;;  %13308 = vst [vmem:[#allocation13_spill] sm:$0xff] %v11628_v63  ;;  %v8063_v63 = vld [vmem:[%s12546_s5 + $0xb0] sm:$0xff]  }
 0x466   :  { %v3887_v5 = vpop.f32.mrf.mxu0  ;;  %v11636_v58 = vpop.f32.mrf.mxu1 }
 0x467   :  { %v11634_v27 = vadd.f32 %v3887_v5, %v11197_v40  ;;  %13310 = vst [vmem:[#allocation14_spill] sm:$0xff] %v11636_v58  ;;  %5565 = vmatpush2.bf16.msra.mxu0 %v8063_v63 }
 0x468   :  { %v3889_v25 = vpop.f32.mrf.mxu0  ;;  %v11642_v57 = vpop.f32.mrf.mxu1  ;;  %5840 = vmatprep.subr.bf16.mxu0 %v12769_v4 }
 0x469   :  { %13309 = vst [vmem:[#allocation11_spill] sm:$0xff] %v11634_v27  ;;  %v11640_v28 = vadd.f32 %v3889_v25, %v11207_v35  ;;  %13312 = vst [vmem:[#allocation15_spill] sm:$0xff] %v11642_v57 }
 0x46a   :  { %v3891_v0 = vpop.f32.mrf.mxu0  ;;  %v11650_v40 = vpop.f32.mrf.mxu1 }
 0x46b   :  { %13311 = vst [vmem:[#allocation12_spill] sm:$0xff] %v11640_v28  ;;  %v11648_v50 = vadd.f32 %v3891_v0, %v11209_v32  ;;  %13314 = vst [vmem:[#allocation110_spill] sm:$0xff] %v11650_v40  ;;  %v3552_v40 = vadd.f32 %v11226_v43, %v11228_v48  ;;  %v13339_v28 = vld [vmem:[#allocation89_spill] sm:$0xff] }
 0x46c   :  { %v3893_v37 = vpop.f32.mrf.mxu0  ;;  %v11653_v5 = vpop.f32.mrf.mxu1 }
 0x46d   :  { %13313 = vst [vmem:[#allocation105_spill] sm:$0xff] %v11648_v50  ;;  %13315 = vst [vmem:[#allocation107_spill] sm:$0xff] %v11653_v5  ;;  %v3562_v5 = vadd.f32 %v11249_v15, %v11251_v55  ;;  %v13325_v15 = vld [vmem:[#allocation84_spill] sm:$0xff] }
 0x46e   :  { %v3897_v35 = vpop.f32.mrf.mxu0  ;;  %v11658_v57 = vpop.f32.mrf.mxu1 }
 0x46f   :  { %v11656_v25 = vadd.f32 %v3897_v35, %v11235_v18  ;;  %13317 = vst [vmem:[#allocation108_spill] sm:$0xff] %v11658_v57 }
 0x470   :  { %v3899_v58 = vpop.f32.mrf.mxu0  ;;  %v11665_v0 = vpop.f32.mrf.mxu1 }
 0x471   :  { %13316 = vst [vmem:[#allocation112_spill] sm:$0xff] %v11656_v25  ;;  %v11663_v32 = vadd.f32 %v3899_v58, %v11239_v62  ;;  %13319 = vst [vmem:[#allocation103_spill] sm:$0xff] %v11665_v0  ;;  %v11678_v62 = vadd.f32 %v3893_v37, %v3552_v40 }
 0x472   :  { %v3901_v63 = vpop.f32.mrf.mxu0  ;;  %v11676_v57 = vpop.f32.mrf.mxu1 }
 0x473   :  { %13318 = vst [vmem:[#allocation98_spill] sm:$0xff] %v11663_v32  ;;  %v11674_v35 = vadd.f32 %v3901_v63, %v11241_v53  ;;  %13321 = vst [vmem:[#allocation16_spill] sm:$0xff] %v11676_v57  ;;  %v13327_v57 = vld [vmem:[#allocation88_spill] sm:$0xff] }
 0x474   :  { %v3903_v16 = vpop.f32.mrf.mxu0  ;;  %13322 = vst [vmem:[#allocation19_spill] sm:$0xff] %v11678_v62  ;;  %v11684_v43 = vpop.f32.mrf.mxu1  ;;  %v13337_v62 = vld [vmem:[#allocation78_spill] sm:$0xff] }
 0x475   :  { %13320 = vst [vmem:[#allocation109_spill] sm:$0xff] %v11674_v35  ;;  %v11682_v0 = vadd.f32 %v3903_v16, %v3562_v5  ;;  %13324 = vst [vmem:[#allocation20_spill] sm:$0xff] %v11684_v43  ;;  %v13329_v16 = vld [vmem:[#allocation74_spill] sm:$0xff] }
 0x476   :  { %v3907_v48 = vpop.f32.mrf.mxu0  ;;  %v11691_v53 = vpop.f32.mrf.mxu1 }
 0x477   :  { %13323 = vst [vmem:[#allocation17_spill] sm:$0xff] %v11682_v0  ;;  %v11689_v18 = vadd.f32 %v3907_v48, %v13325_v15  ;;  %13326 = vst [vmem:[#allocation18_spill] sm:$0xff] %v11691_v53  ;;  %v13332_v48 = vld [vmem:[#allocation79_spill] sm:$0xff] }
 0x478   :  { %v3909_v63 = vpop.f32.mrf.mxu0  ;;  %v11696_v37 = vpop.f32.mrf.mxu1 }
 0x479   :  { %v11694_v40 = vadd.f32 %v3909_v63, %v13327_v57  ;;  %13328 = vst [vmem:[#allocation21_spill] sm:$0xff] %v11696_v37  ;;  %v13334_v63 = vld [vmem:[#allocation76_spill] sm:$0xff] }
 0x47a   :  { %v3911_v58 = vpop.f32.mrf.mxu0  ;;  %v11701_v43 = vpop.f32.mrf.mxu1 }
 0x47b   :  { %v11699_v5 = vadd.f32 %v3911_v58, %v13329_v16  ;;  %13330 = vst [vmem:[#allocation117_spill] sm:$0xff] %v11701_v43  ;;  %v13336_v43 = vld [vmem:[#allocation75_spill] sm:$0xff] }
 0x47c   :  { %v3913_v35 = vpop.f32.mrf.mxu0  ;;  %v11703_v50 = vpop.f32.mrf.mxu1  ;;  %v3572_v32 = vadd.f32 %v13337_v62, %v13336_v43 }
 0x47d   :  { %13331 = vst [vmem:[#allocation114_spill] sm:$0xff] %v11703_v50  ;;  %v13338_v50 = vld [vmem:[#allocation94_spill] sm:$0xff] }
 0x47e   :  { %v3917_v55 = vpop.f32.mrf.mxu0  ;;  %v11708_v53 = vpop.f32.mrf.mxu1  ;;  %v3582_v25 = vadd.f32 %v13339_v28, %v13338_v50 }
 0x47f   :  { %v11706_v15 = vadd.f32 %v3917_v55, %v13332_v48  ;;  %13333 = vst [vmem:[#allocation119_spill] sm:$0xff] %v11708_v53  ;;  %v13340_v48 = vld [vmem:[#allocation80_spill] sm:$0xff] }
 0x480   :  { %v3919_v0 = vpop.f32.mrf.mxu0  ;;  %v11715_v58 = vpop.f32.mrf.mxu1 }
 0x481   :  { %v11713_v37 = vadd.f32 %v3919_v0, %v13334_v63  ;;  %13335 = vst [vmem:[#allocation115_spill] sm:$0xff] %v11715_v58  ;;  %v11728_v0 = vadd.f32 %v3913_v35, %v3572_v32 }
 0x482   :  { %v3921_v16 = vpop.f32.mrf.mxu0  ;;  %v11726_v27 = vpop.f32.mrf.mxu1 }
 0x483   :  { %v11724_v53 = vadd.f32 %v3921_v16, %v13340_v48  ;;  %13341 = vst [vmem:[#allocation106_spill] sm:$0xff] %v11726_v27  ;;  %v13351_v27 = vld [vmem:[#allocation96_spill] sm:$0xff] }
 0x484   :  { %v3923_v57 = vpop.f32.mrf.mxu0  ;;  %v11734_v62 = vpop.f32.mrf.mxu1 }
 0x485   :  { %v11732_v58 = vadd.f32 %v3923_v57, %v3582_v25  ;;  %13343 = vst [vmem:[#allocation116_spill] sm:$0xff] %v11734_v62  ;;  %v13348_v25 = vld [vmem:[#allocation91_spill] sm:$0xff] }
 0x486   :  { %v3927_v43 = vpop.f32.mrf.mxu0  ;;  %v11741_v16 = vpop.f32.mrf.mxu1 }
 0x487   :  { %13342 = vst [vmem:[#allocation111_spill] sm:$0xff] %v11732_v58  ;;  %v11739_v28 = vadd.f32 %v3927_v43, %v11299_v59  ;;  %13345 = vst [vmem:[#allocation25_spill] sm:$0xff] %v11741_v16 }
 0x488   :  { %v3929_v48 = vpop.f32.mrf.mxu0  ;;  %v11746_v35 = vpop.f32.mrf.mxu1 }
 0x489   :  { %13344 = vst [vmem:[#allocation22_spill] sm:$0xff] %v11739_v28  ;;  %v11744_v32 = vadd.f32 %v3929_v48, %v11303_v41  ;;  %13347 = vst [vmem:[#allocation26_spill] sm:$0xff] %v11746_v35 }
 0x48a   :  { %v3931_v63 = vpop.f32.mrf.mxu0  ;;  %v11751_v55 = vpop.f32.mrf.mxu1 }
 0x48b   :  { %13346 = vst [vmem:[#allocation23_spill] sm:$0xff] %v11744_v32  ;;  %v11749_v57 = vadd.f32 %v3931_v63, %v13348_v25  ;;  %13350 = vst [vmem:[#allocation27_spill] sm:$0xff] %v11751_v55  ;;  %v13392_v32 = vld [vmem:[#allocation192_spill] sm:$0xff] }
 0x48c   :  { %v3933_v62 = vpop.f32.mrf.mxu0  ;;  %v11756_v59 = vpop.f32.mrf.mxu1 }
 0x48d   :  { %13349 = vst [vmem:[#allocation24_spill] sm:$0xff] %v11749_v57  ;;  %v11754_v50 = vadd.f32 %v3933_v62, %v13351_v27  ;;  %13353 = vst [vmem:[#allocation125_spill] sm:$0xff] %v11756_v59  ;;  %v13390_v57 = vld [vmem:[#allocation71_spill] sm:$0xff] }
 0x48e   :  { %v3937_v43 = vpop.f32.mrf.mxu0  ;;  %v11761_v41 = vpop.f32.mrf.mxu1 }
 0x48f   :  { %13352 = vst [vmem:[#allocation120_spill] sm:$0xff] %v11754_v50  ;;  %v11759_v16 = vadd.f32 %v3937_v43, %v11319_v38  ;;  %13355 = vst [vmem:[#allocation127_spill] sm:$0xff] %v11761_v41 }
 0x490   :  { %v3939_v48 = vpop.f32.mrf.mxu0  ;;  %v11768_v25 = vpop.f32.mrf.mxu1 }
 0x491   :  { %13354 = vst [vmem:[#allocation122_spill] sm:$0xff] %v11759_v16  ;;  %v11766_v63 = vadd.f32 %v3939_v48, %v11323_v26  ;;  %13357 = vst [vmem:[#allocation113_spill] sm:$0xff] %v11768_v25  ;;  %v13393_v16 = vsub.s32 0, %v13392_v32 }
 0x492   :  { %v3941_v55 = vpop.f32.mrf.mxu0  ;;  %v11775_v38 = vpop.f32.mrf.mxu1 }
 0x493   :  { %13356 = vst [vmem:[#allocation123_spill] sm:$0xff] %v11766_v63  ;;  %v11773_v62 = vadd.f32 %v3941_v55, %v11328_v24  ;;  %13359 = vst [vmem:[#allocation124_spill] sm:$0xff] %v11775_v38 }
 0x494   :  { %v3943_v43 = vpop.f32.mrf.mxu0  ;;  %v11782_v26 = vpop.f32.mrf.mxu1 }
 0x495   :  { %13358 = vst [vmem:[#allocation118_spill] sm:$0xff] %v11773_v62  ;;  %v11780_v35 = vadd.f32 %v3943_v43, %v11331_v1  ;;  %13361 = vst [vmem:[#allocation31_spill] sm:$0xff] %v11782_v26  ;;  %v13389_v62 = vld [vmem:[#allocation69_spill] sm:$0xff] }
 0x496   :  { %v3947_v48 = vpop.f32.mrf.mxu0  ;;  %v11789_v24 = vpop.f32.mrf.mxu1 }
 0x497   :  { %13360 = vst [vmem:[#allocation28_spill] sm:$0xff] %v11780_v35  ;;  %v11787_v27 = vadd.f32 %v3947_v48, %v11347_v36  ;;  %13363 = vst [vmem:[#allocation32_spill] sm:$0xff] %v11789_v24  ;;  %v13377_v35 = vld [vmem:[#allocation81_spill] sm:$0xff] }
 0x498   :  { %v3949_v55 = vpop.f32.mrf.mxu0  ;;  %v11794_v41 = vpop.f32.mrf.mxu1 }
 0x499   :  { %13362 = vst [vmem:[#allocation29_spill] sm:$0xff] %v11787_v27  ;;  %v11792_v38 = vadd.f32 %v3949_v55, %v11354_v20  ;;  %13365 = vst [vmem:[#allocation33_spill] sm:$0xff] %v11794_v41 }
 0x49a   :  { %v3951_v59 = vpop.f32.mrf.mxu0  ;;  %v11799_v43 = vpop.f32.mrf.mxu1 }
 0x49b   :  { %13364 = vst [vmem:[#allocation30_spill] sm:$0xff] %v11792_v38  ;;  %v11797_v1 = vadd.f32 %v3951_v59, %v11356_v51  ;;  %13367 = vst [vmem:[#allocation129_spill] sm:$0xff] %v11799_v43 }
 0x49c   :  { %v3953_v26 = vpop.f32.mrf.mxu0  ;;  %v11804_v36 = vpop.f32.mrf.mxu1 }
 0x49d   :  { %13366 = vst [vmem:[#allocation132_spill] sm:$0xff] %v11797_v1  ;;  %v11802_v25 = vadd.f32 %v3953_v26, %v11359_v3  ;;  %13369 = vst [vmem:[#allocation130_spill] sm:$0xff] %v11804_v36  ;;  %v13374_v26 = vld [vmem:[#allocation92_spill] sm:$0xff] }
 0x49e   :  { %v3957_v48 = vpop.f32.mrf.mxu0  ;;  %v11809_v20 = vpop.f32.mrf.mxu1 }
 0x49f   :  { %13368 = vst [vmem:[#allocation134_spill] sm:$0xff] %v11802_v25  ;;  %v11807_v24 = vadd.f32 %v3957_v48, %v11375_v47  ;;  %13371 = vst [vmem:[#allocation121_spill] sm:$0xff] %v11809_v20 }
 0x4a0   :  { %v3959_v55 = vpop.f32.mrf.mxu0  ;;  %v11816_v59 = vpop.f32.mrf.mxu1 }
 0x4a1   :  { %13370 = vst [vmem:[#allocation135_spill] sm:$0xff] %v11807_v24  ;;  %v11814_v51 = vadd.f32 %v3959_v55, %v11382_v10  ;;  %13373 = vst [vmem:[#allocation131_spill] sm:$0xff] %v11816_v59  ;;  %v13380_v24 = vld [vmem:[#allocation86_spill] sm:$0xff] }
 0x4a2   :  { %v3961_v43 = vpop.f32.mrf.mxu0  ;;  %v11823_v47 = vpop.f32.mrf.mxu1 }
 0x4a3   :  { %13372 = vst [vmem:[#allocation126_spill] sm:$0xff] %v11814_v51  ;;  %v11821_v36 = vadd.f32 %v3961_v43, %v13374_v26  ;;  %13376 = vst [vmem:[#allocation37_spill] sm:$0xff] %v11823_v47 }
 0x4a4   :  { %v3963_v48 = vpop.f32.mrf.mxu0  ;;  %v11830_v10 = vpop.f32.mrf.mxu1 }
 0x4a5   :  { %13375 = vst [vmem:[#allocation34_spill] sm:$0xff] %v11821_v36  ;;  %v11828_v41 = vadd.f32 %v3963_v48, %v13377_v35  ;;  %13379 = vst [vmem:[#allocation38_spill] sm:$0xff] %v11830_v10 }
 0x4a6   :  { %v3967_v55 = vpop.f32.mrf.mxu0  ;;  %v4957_v43 = vpop.f32.mrf.mxu1 }
 0x4a7   :  { %13378 = vst [vmem:[#allocation35_spill] sm:$0xff] %v11828_v41  ;;  %v11835_v3 = vadd.f32 %v3967_v55, %v13380_v24 }
 0x4a8   :  { %v3969_v26 = vpop.f32.mrf.mxu0  ;;  %v4959_v51 = vpop.f32.mrf.mxu1 }
 0x4a9   :  { %13381 = vst [vmem:[#allocation36_spill] sm:$0xff] %v11835_v3  ;;  %v11838_v47 = vadd.f32 %v3969_v26, %v11425_v49 }
 0x4aa   :  { %v3971_v38 = vpop.f32.mrf.mxu0  ;;  %v4961_v35 = vpop.f32.mrf.mxu1 }
 0x4ab   :  { %13382 = vst [vmem:[#allocation39_spill] sm:$0xff] %v11838_v47  ;;  %v11841_v20 = vadd.f32 %v3971_v38, %v11427_v54 }
 0x4ac   :  { %v3973_v48 = vpop.f32.mrf.mxu0  ;;  %v4963_v36 = vpop.f32.mrf.mxu1 }
 0x4ad   :  { %13383 = vst [vmem:[#allocation136_spill] sm:$0xff] %v11841_v20  ;;  %v11844_v10 = vadd.f32 %v3973_v48, %v11434_v39 }
 0x4ae   :  { %v3977_v59 = vpop.f32.mrf.mxu0  ;;  %v4967_v55 = vpop.f32.mrf.mxu1 }
 0x4af   :  { %13384 = vst [vmem:[#allocation141_spill] sm:$0xff] %v11844_v10  ;;  %v11847_v24 = vadd.f32 %v3977_v59, %v11463_v8 }
 0x4b0   :  { %v3979_v41 = vpop.f32.mrf.mxu0  ;;  %v4969_v54 = vpop.f32.mrf.mxu1 }
 0x4b1   :  { %13385 = vst [vmem:[#allocation138_spill] sm:$0xff] %v11847_v24  ;;  %v11852_v26 = vadd.f32 %v3979_v41, %v11472_v61  ;;  %v2915_v61 = vld [vmem:[%s12547_s4] sm:$0x3] }
 0x4b2   :  { %v3981_v38 = vpop.f32.mrf.mxu0  ;;  %v4971_v48 = vpop.f32.mrf.mxu1  ;;  %v11891_v28 = vrot.slane %v2915_v61, %v13393_v16 }
 0x4b3   :  { %13386 = vst [vmem:[#allocation143_spill] sm:$0xff] %v11852_v26  ;;  %v11857_v39 = vadd.f32 %v3981_v38, %v11480_v23 }
 0x4b4   :  { %v3983_v1 = vpop.f32.mrf.mxu0  ;;  %v4973_v49 = vpop.f32.mrf.mxu1 }
 0x4b5   :  { %13387 = vst [vmem:[#allocation139_spill] sm:$0xff] %v11857_v39  ;;  %v11862_v59 = vadd.f32 %v3983_v1, %v11484_v22 }
 0x4b6   :  { %v4615_v24 = vpop.f32.mrf.mxu0  ;;  %v11866_v41 = vpop.f32.mrf.mxu1 }
 0x4b7   :  { %13388 = vst [vmem:[#allocation128_spill] sm:$0xff] %v11862_v59  ;;  %v4616_v47 = vadd.f32 %v4615_v24, %v11437_v17 }
 0x4b8   :  { %v4617_v3 = vpop.f32.mrf.mxu0  ;;  %v11868_v25 = vpop.f32.mrf.mxu1 }
 0x4b9   :  { %v4618_v1 = vadd.f32 %v4617_v3, %v11444_v12  ;;  %v5096_v27 = vadd.f32 %v4957_v43, %v4616_v47  ;;  %v3522_v12 = vadd.f32 %v13390_v57, %v13389_v62  ;;  %v13391_v3 = vld [vmem:[#allocation93_spill] sm:$0xff]  ;;  %v13396_v62 = vsub.s32 1, %v13392_v32 }
 0x4ba   :  { %v4619_v23 = vpop.f32.mrf.mxu0  ;;  %v11870_v38 = vpop.f32.mrf.mxu1  ;;  %v13398_v32 = vmax.f32 %v11503_v33, %v11540_v29 }
 0x4bb   :  { %v4620_v39 = vadd.f32 %v4619_v23, %v11453_v30 }
 0x4bc   :  { %v4621_v26 = vpop.f32.mrf.mxu0  ;;  %v11873_v8 = vpop.f32.mrf.mxu1 }
 0x4bd   :  { %v4622_v63 = vadd.f32 %v4621_v26, %v13391_v3  ;;  %v5098_v57 = vadd.f32 %v4961_v35, %v4620_v39  ;;  %v11901_v26 = vrot.slane %v2915_v61, %v13396_v62  ;;  %v13402_v62 = vld [vmem:[#allocation82_spill] sm:$0xff] }
 0x4be   :  { %v4625_v22 = vpop.f32.mrf.mxu0  ;;  %v11880_v10 = vpop.f32.mrf.mxu1 }
 0x4bf   :  { %v4626_v59 = vadd.f32 %v4625_v22, %v11465_v45  ;;  %v5097_v22 = vadd.f32 %v4959_v51, %v4618_v1  ;;  %v13397_v51 = vmax.f32 %v11494_v42, %v11530_v34 }
 0x4c0   :  { %v4627_v20 = vpop.f32.mrf.mxu0  ;;  %v11884_v24 = vpop.f32.mrf.mxu1 }
 0x4c1   :  { %v5100_v50 = vadd.f32 %v4967_v55, %v4626_v59  ;;  %v4628_v17 = vadd.f32 %v4627_v20, %v11474_v46  ;;  %v13394_v46 = vld [vmem:[#allocation68_spill] sm:$0xff]  ;;  %v13395_v20 = vld [vmem:[#allocation70_spill] sm:$0xff]  ;;  %v3993_v59 = vadd.f32 %v11558_v56, %v3522_v12 }
 0x4c2   :  { %v4629_v45 = vpop.f32.mrf.mxu0  ;;  %v11894_v43 = vpop.f32.mrf.mxu1  ;;  %v3512_v55 = vadd.f32 %v13395_v20, %v13394_v46 }
 0x4c3   :  { %v5152_v58 = vmax.f32 %v5096_v27, %v5100_v50  ;;  %v5101_v30 = vadd.f32 %v4969_v54, %v4628_v17  ;;  %v4630_v47 = vadd.f32 %v4629_v45, %v11482_v9  ;;  %v5099_v17 = vadd.f32 %v4963_v36, %v4622_v63 }
 0x4c4   :  { %v4631_v16 = vpop.f32.mrf.mxu0  ;;  %v11907_v23 = vpop.f32.mrf.mxu1  ;;  %v3989_v1 = vadd.f32 %v11519_v31, %v3512_v55  ;;  %v13399_v31 = vmax.f32 %v11515_v60, %v11551_v19 }
 0x4c5   :  { %v5180_v50 = vmax.f32 %v13397_v51, %v5152_v58  ;;  %v5153_v27 = vmax.f32 %v5097_v22, %v5101_v30  ;;  %v5102_v54 = vadd.f32 %v4971_v48, %v4630_v47  ;;  %v4632_v9 = vadd.f32 %v4631_v16, %v11486_v21  ;;  %v8119_v30 = vld [vmem:[%s12546_s5 + $0x290] sm:$0xff]  }
 0x4c6   :  { %v4635_v56 = vpop.f32.mrf.mxu0  ;;  %v11914_v42 = vpop.f32.mrf.mxu1  ;;  %v4045_v21 = vmax.f32 %v3989_v1, %v3993_v59 }
 0x4c7   :  { %v5219_v35 = vadd.f32 %v11891_v28, %v5180_v50  ;;  %v5181_v39 = vmax.f32 %v13398_v32, %v5153_v27  ;;  %v5154_v61 = vmax.f32 %v5098_v57, %v5102_v54  ;;  %v5103_v12 = vadd.f32 %v4973_v49, %v4632_v9  ;;  %v13403_v27 = vld [vmem:[#allocation7_spill] sm:$0xff] }
 0x4c8   :  { %v4637_v34 = vpop.f32.mrf.mxu0  ;;  %v11920_v48 = vpop.f32.mrf.mxu1  ;;  %v4636_v19 = vadd.f32 %v4635_v56, %v11496_v14  ;;  %v13404_v56 = vld [vmem:[#allocation8_spill] sm:$0xff] }
 0x4c9   :  { %v5220_v58 = vadd.f32 %v11901_v26, %v5181_v39  ;;  %v5182_v63 = vmax.f32 %v13399_v31, %v5154_v61  ;;  %v5155_v36 = vmax.f32 %v5099_v17, %v5103_v12  ;;  %v5247_v33 = vmax.f32 %v5219_v35, 0.0  ;;  %v13405_v39 = vld [vmem:[#allocation77_spill] sm:$0xff] }
 0x4ca   :  { %v4639_v3 = vpop.f32.mrf.mxu0  ;;  %v11923_v22 = vpop.f32.mrf.mxu1  ;;  %v4638_v16 = vadd.f32 %v4637_v34, %v13402_v62  ;;  %v5104_v14 = vadd.f32 %v11866_v41, %v4636_v19  ;;  %v13406_v61 = vld [vmem:[#allocation73_spill] sm:$0xff]  ;;  %v13407_v34 = vld [vmem:[#allocation83_spill] sm:$0xff] }
 0x4cb   :  { %v5248_v29 = vmax.f32 %v5220_v58, 0.0  ;;  %v5221_v49 = vadd.f32 %v11891_v28, %v5182_v63  ;;  %v5183_v45 = vmax.f32 %v4045_v21, %v5155_v36  ;;  %v4640_v54 = vadd.f32 %v4639_v3, %v13403_v27  ;;  %v13408_v36 = vld [vmem:[#allocation87_spill] sm:$0xff]  ;;  %v13409_v3 = vld [vmem:[#allocation72_spill] sm:$0xff] }
 0x4cc   :  { %v4641_v47 = vpop.f32.mrf.mxu0  ;;  %v11931_v20 = vpop.f32.mrf.mxu1  ;;  %v3542_v12 = vadd.f32 %v13406_v61, %v13405_v39  ;;  %v5105_v58 = vadd.f32 %v11868_v25, %v4638_v16 }
 0x4cd   :  { %v7664_v46 = vpack.c.bf16 %v5248_v29, %v5247_v33  ;;  %v5222_v60 = vadd.f32 %v11901_v26, %v5183_v45  ;;  %v5249_v59 = vmax.f32 %v5221_v49, 0.0  ;;  %v4642_v21 = vadd.f32 %v4641_v47, %v13407_v34 }
 0x4ce   :  { %v4645_v55 = vpop.f32.mrf.mxu0  ;;  %v11937_v50 = vpop.f32.mrf.mxu1  ;;  %v3532_v33 = vadd.f32 %v13409_v3, %v13408_v36  ;;  %v4001_v29 = vadd.f32 %v11623_v7, %v3542_v12  ;;  %v5106_v49 = vadd.f32 %v11870_v38, %v4640_v54  ;;  %v13410_v47 = vmax.f32 %v11571_v52, %v11602_v11 }
 0x4cf   :  { %5362 = vst.msk [vmem:[#allocation2] sm:$0xff] %vm11925_vm5, %v7664_v46  ;;  %v5250_v57 = vmax.f32 %v5222_v60, 0.0  ;;  %v4646_v51 = vadd.f32 %v4645_v55, %v11532_v6  ;;  %v13412_v55 = vld [vmem:[#allocation104_spill] sm:$0xff]  ;;  %v13413_v38 = vmax.f32 %v11578_v2, %v11609_v13  ;;  %v8059_v2 = vld [vmem:[%s12546_s5 + $0x188] sm:$0xff]  }
 0x4d0   :  { %v4647_v9 = vpop.f32.mrf.mxu0  ;;  %v11943_v32 = vpop.f32.mrf.mxu1 }
 0x4d1   :  { %v7665_v1 = vpack.c.bf16 %v5250_v57, %v5249_v59  ;;  %v5108_v17 = vadd.f32 %v11880_v10, %v4646_v51  ;;  %v4648_v35 = vadd.f32 %v4647_v9, %v13404_v56  ;;  %v3997_v59 = vadd.f32 %v13412_v55, %v3532_v33  ;;  %v13414_v9 = vld [vmem:[#allocation102_spill] sm:$0xff]  ;;  %v8061_v33 = vld [vmem:[%s12546_s5 + $0x180] sm:$0xff]  }
 0x4d2   :  { %v4649_v6 = vpop.f32.mrf.mxu0  ;;  %v11953_v63 = vpop.f32.mrf.mxu1  ;;  %v5107_v57 = vadd.f32 %v11873_v8, %v4642_v21 }
 0x4d3   :  { %5363 = vst.msk [vmem:[#allocation2 + $0x8] sm:$0xff] %vm11925_vm5, %v7665_v1  ;;  %v5156_v31 = vmax.f32 %v5104_v14, %v5108_v17  ;;  %v5109_v41 = vadd.f32 %v11884_v24, %v4648_v35  ;;  %v4650_v10 = vadd.f32 %v4649_v6, %v11553_v44  ;;  %v13411_v24 = vld [vmem:[#allocation85_spill] sm:$0xff]  ;;  %v4049_v27 = vmax.f32 %v3997_v59, %v4001_v29 }
 0x4d4   :  { %v4651_v45 = vpop.f32.mrf.mxu0  ;;  %v11964_v44 = vpop.f32.mrf.mxu1  ;;  %v13415_v1 = vld [vmem:[#allocation101_spill] sm:$0xff] }
 0x4d5   :  { %v5184_v46 = vmax.f32 %v13410_v47, %v5156_v31  ;;  %v5157_v25 = vmax.f32 %v5105_v58, %v5109_v41  ;;  %v5110_v60 = vadd.f32 %v11894_v43, %v4650_v10  ;;  %v4652_v19 = vadd.f32 %v4651_v45, %v13411_v24  ;;  %v13417_v41 = vld [vmem:[#allocation9_spill] sm:$0xff]  ;;  %v13420_v24 = vld [vmem:[#allocation99_spill] sm:$0xff] }
 0x4d6   :  { %v4655_v62 = vpop.f32.mrf.mxu0  ;;  %v11973_v51 = vpop.f32.mrf.mxu1  ;;  %v13416_v14 = vmax.f32 %v13414_v9, %v13415_v1  ;;  %v13418_v45 = vld [vmem:[#allocation97_spill] sm:$0xff]  ;;  %v13423_v9 = vld [vmem:[#allocation10_spill] sm:$0xff] }
 0x4d7   :  { %v5223_v7 = vadd.f32 %v11891_v28, %v5184_v46  ;;  %v5185_v16 = vmax.f32 %v13413_v38, %v5157_v25  ;;  %v5158_v52 = vmax.f32 %v5106_v49, %v5110_v60  ;;  %v5111_v11 = vadd.f32 %v11907_v23, %v4652_v19  ;;  %v13419_v46 = vld [vmem:[#allocation90_spill] sm:$0xff] }
 0x4d8   :  { %v4657_v43 = vpop.f32.mrf.mxu0  ;;  %v11979_v56 = vpop.f32.mrf.mxu1  ;;  %v4656_v10 = vadd.f32 %v4655_v62, %v13417_v41  ;;  %v13429_v41 = vld [vmem:[#allocation98_spill] sm:$0xff] }
 0x4d9   :  { %v5224_v54 = vadd.f32 %v11901_v26, %v5185_v16  ;;  %v5186_v8 = vmax.f32 %v13416_v14, %v5158_v52  ;;  %v5159_v17 = vmax.f32 %v5107_v57, %v5111_v11  ;;  %v5251_v39 = vmax.f32 %v5223_v7, 0.0  ;;  %v13421_v7 = vld [vmem:[#allocation95_spill] sm:$0xff]  ;;  %v13422_v52 = vld [vmem:[#allocation100_spill] sm:$0xff] }
 0x4da   :  { %v4659_v13 = vpop.f32.mrf.mxu0  ;;  %v8056_v35 = vld [vmem:[#allocation2] ss:$8 sps:$4 sm:$0xff]   ;;  %v8058_v23 = vld [vmem:[#allocation2 + $0x4] ss:$8 sps:$4 sm:$0xff]   ;;  %v11985_v21 = vpop.f32.mrf.mxu1  ;;  %v4658_v47 = vadd.f32 %v4657_v43, %v13418_v45  ;;  %v5112_v57 = vadd.f32 %v11914_v42, %v4656_v10 }
 0x4db   :  { %v5252_v61 = vmax.f32 %v5224_v54, 0.0  ;;  %v5225_v12 = vadd.f32 %v11891_v28, %v5186_v8  ;;  %v5187_v34 = vmax.f32 %v4049_v27, %v5159_v17  ;;  %7428 = vmatprep.mubr.msk.bf16.mxu1 %vm3113_vm2, %v8058_v23  ;;  %v4660_v19 = vadd.f32 %v4659_v13, %v13420_v24  ;;  %v8062_v27 = vld [vmem:[%s12546_s5 + $0x178] sm:$0xff]   ;;  %v13431_v45 = vld [vmem:[#allocation105_spill] sm:$0xff] }
 0x4dc   :  { %v4661_v6 = vpop.f32.mrf.mxu0  ;;  %v11990_v36 = vpop.f32.mrf.mxu1  ;;  %5704 = vmatmul.mubr.bf16.vlgmr.msra.gmra.mxu1 %v8056_v35  ;;  %v5113_v54 = vadd.f32 %v11920_v48, %v4658_v47  ;;  %v13425_v13 = vld [vmem:[#allocation112_spill] sm:$0xff]  ;;  %v13427_v48 = vld [vmem:[#allocation13_spill] sm:$0xff] }
 0x4dd   :  { %v7666_v58 = vpack.c.bf16 %v5252_v61, %v5251_v39  ;;  %v5226_v31 = vadd.f32 %v11901_v26, %v5187_v34  ;;  %6012 = vmatpush1.bf16.msra.mxu1 %v8059_v2  ;;  %v5253_v29 = vmax.f32 %v5225_v12, 0.0  ;;  %v4662_v11 = vadd.f32 %v4661_v6, %v13422_v52  ;;  %v13424_v2 = vld [vmem:[#allocation11_spill] sm:$0xff]  ;;  %v13432_v47 = vld [vmem:[#allocation109_spill] sm:$0xff] }
 0x4de   :  { %v4665_v3 = vpop.f32.mrf.mxu0  ;;  %v11999_v60 = vpop.f32.mrf.mxu1  ;;  %6013 = vmatprep.subr.bf16.mxu1 %v12769_v4  ;;  %v5114_v8 = vadd.f32 %v11923_v22, %v4660_v19  ;;  %v13426_v35 = vmax.f32 %v13424_v2, %v13425_v13  ;;  %v8064_v22 = vld [vmem:[%s12546_s5 + $0x170] sm:$0xff]  }
 0x4df   :  { %5364 = vst.msk [vmem:[#allocation2 + $0x10] sm:$0xff] %vm11925_vm5, %v7666_v58  ;;  %v5254_v49 = vmax.f32 %v5226_v31, 0.0  ;;  %v4666_v25 = vadd.f32 %v4665_v3, %v13419_v46  ;;  %v13428_v31 = vld [vmem:[#allocation12_spill] sm:$0xff]  ;;  %v13433_v46 = vmax.f32 %v13431_v45, %v13432_v47  ;;  %v13438_v13 = vld [vmem:[#allocation15_spill] sm:$0xff] }
 0x4e0   :  { %v4667_v55 = vpop.f32.mrf.mxu0  ;;  %v12006_v16 = vpop.f32.mrf.mxu1  ;;  %v13430_v10 = vmax.f32 %v13428_v31, %v13429_v41  ;;  %v13442_v47 = vld [vmem:[#allocation107_spill] sm:$0xff] }
 0x4e1   :  { %v7667_v59 = vpack.c.bf16 %v5254_v49, %v5253_v29  ;;  %v5116_v62 = vadd.f32 %v11937_v50, %v4666_v25  ;;  %v4668_v38 = vadd.f32 %v4667_v55, %v13421_v7  ;;  %6014 = vmatpush1.bf16.msra.mxu1 %v8061_v33  ;;  %v8068_v55 = vld [vmem:[%s12546_s5 + $0x118] sm:$0xff]  }
 0x4e2   :  { %v4669_v43 = vpop.f32.mrf.mxu0  ;;  %v12017_v14 = vpop.f32.mrf.mxu1  ;;  %6015 = vmatprep.subr.bf16.mxu1 %v12769_v4 }
 0x4e3   :  { %5365 = vst.msk [vmem:[#allocation2 + $0x18] sm:$0xff] %vm11925_vm5, %v7667_v59  ;;  %v5160_v42 = vmax.f32 %v5112_v57, %v5116_v62  ;;  %v5117_v50 = vadd.f32 %v11943_v32, %v4668_v38  ;;  %v4670_v1 = vadd.f32 %v4669_v43, %v13423_v9  ;;  %v5115_v32 = vadd.f32 %v11931_v20, %v4662_v11  ;;  %v13434_v11 = vld [vmem:[#allocation19_spill] sm:$0xff]  ;;  %v13435_v43 = vld [vmem:[#allocation17_spill] sm:$0xff] }
 0x4e4   :  { %v4671_v17 = vpop.f32.mrf.mxu0  ;;  %v12026_v34 = vpop.f32.mrf.mxu1 }
 0x4e5   :  { %v5188_v23 = vmax.f32 %v13426_v35, %v5160_v42  ;;  %v5161_v39 = vmax.f32 %v5113_v54, %v5117_v50  ;;  %v5118_v61 = vadd.f32 %v11953_v63, %v4670_v1  ;;  %v4672_v12 = vadd.f32 %v4671_v17, %v13427_v48  ;;  %6016 = vmatpush1.bf16.msra.mxu1 %v8062_v27 }
 0x4e6   :  { %v4675_v6 = vpop.f32.mrf.mxu0  ;;  %v12037_v29 = vpop.f32.mrf.mxu1  ;;  %6017 = vmatprep.subr.bf16.mxu1 %v12769_v4  ;;  %v13436_v27 = vmax.f32 %v13434_v11, %v13435_v43  ;;  %v13445_v43 = vld [vmem:[#allocation20_spill] sm:$0xff] }
 0x4e7   :  { %v5227_v58 = vadd.f32 %v11891_v28, %v5188_v23  ;;  %v5189_v3 = vmax.f32 %v13430_v10, %v5161_v39  ;;  %v5162_v33 = vmax.f32 %v5114_v8, %v5118_v61  ;;  %v5119_v63 = vadd.f32 %v11964_v44, %v4672_v12  ;;  %v8069_v44 = vld [vmem:[%s12546_s5 + $0x168] sm:$0xff]   ;;  %v8070_v39 = vld [vmem:[%s12546_s5 + $0x110] sm:$0xff]   ;;  %v8071_v61 = vld [vmem:[%s12546_s5 + $0x160] sm:$0xff]  }
 0x4e8   :  { %v4677_v20 = vpop.f32.mrf.mxu0  ;;  %v12044_v19 = vpop.f32.mrf.mxu1  ;;  %v13437_v8 = vld [vmem:[#allocation14_spill] sm:$0xff] }
 0x4e9   :  { %v5228_v49 = vadd.f32 %v11901_v26, %v5189_v3  ;;  %v5190_v25 = vmax.f32 %v13433_v46, %v5162_v33  ;;  %v5163_v24 = vmax.f32 %v5115_v32, %v5119_v63  ;;  %6018 = vmatpush1.bf16.msra.mxu1 %v8064_v22  ;;  %v5255_v7 = vmax.f32 %v5227_v58, 0.0  ;;  %v13439_v32 = vld [vmem:[#allocation108_spill] sm:$0xff]  ;;  %v13440_v58 = vld [vmem:[#allocation110_spill] sm:$0xff]  ;;  %v13441_v63 = vld [vmem:[#allocation103_spill] sm:$0xff] }
 0x4ea   :  { %v4679_v59 = vpop.f32.mrf.mxu0  ;;  %v8065_v57 = vld [vmem:[#allocation2 + $0x10] ss:$8 sps:$4 sm:$0xff]   ;;  %v8067_v62 = vld [vmem:[#allocation2 + $0x14] ss:$8 sps:$4 sm:$0xff]   ;;  %v12056_v42 = vpop.f32.mrf.mxu1  ;;  %6019 = vmatprep.subr.bf16.mxu1 %v12769_v4  ;;  %v4676_v17 = vadd.f32 %v4675_v6, %v13437_v8  ;;  %v4678_v35 = vadd.f32 %v4677_v20, %v13438_v13 }
 0x4eb   :  { %v5256_v38 = vmax.f32 %v5228_v49, 0.0  ;;  %v5229_v52 = vadd.f32 %v11891_v28, %v5190_v25  ;;  %v5191_v54 = vmax.f32 %v13436_v27, %v5163_v24  ;;  %7411 = vmatprep.mubr.msk.bf16.mxu0 %vm3113_vm2, %v8067_v62  ;;  %v4680_v31 = vadd.f32 %v4679_v59, %v13440_v58  ;;  %v8072_v24 = vld [vmem:[%s12546_s5 + $0x108] sm:$0xff]  }
 0x4ec   :  { %v4681_v50 = vpop.f32.mrf.mxu0  ;;  %v12062_v2 = vpop.f32.mrf.mxu1  ;;  %5567 = vmatmul.mubr.bf16.vlgmr.msra.gmra.mxu0 %v8065_v57  ;;  %v5120_v3 = vadd.f32 %v11973_v51, %v4676_v17  ;;  %v5121_v45 = vadd.f32 %v11979_v56, %v4678_v35  ;;  %v8073_v51 = vld [vmem:[%s12546_s5 + $0x158] sm:$0xff]   ;;  %v13447_v35 = vmax.f32 %v11699_v5, %v11724_v53  ;;  %v13448_v5 = vld [vmem:[#allocation111_spill] sm:$0xff] }
 0x4ed   :  { %v7668_v9 = vpack.c.bf16 %v5256_v38, %v5255_v7  ;;  %v5230_v1 = vadd.f32 %v11901_v26, %v5191_v54  ;;  %5841 = vmatpush1.bf16.msra.mxu0 %v8068_v55  ;;  %6020 = vmatpush1.bf16.msra.mxu1 %v8069_v44  ;;  %v5257_v48 = vmax.f32 %v5229_v52, 0.0  ;;  %v4682_v46 = vadd.f32 %v4681_v50, %v13442_v47  ;;  %v13443_v56 = vld [vmem:[#allocation16_spill] sm:$0xff] }
 0x4ee   :  { %v4685_v23 = vpop.f32.mrf.mxu0  ;;  %v12074_v22 = vpop.f32.mrf.mxu1  ;;  %5842 = vmatprep.subr.bf16.mxu0 %v12769_v4  ;;  %6021 = vmatprep.subr.bf16.mxu1 %v12769_v4  ;;  %v5122_v57 = vadd.f32 %v11985_v21, %v4680_v31  ;;  %v13444_v7 = vmax.f32 %v11689_v18, %v11706_v15  ;;  %v8074_v21 = vld [vmem:[%s12546_s5 + $0x100] sm:$0xff]   ;;  %v8075_v18 = vld [vmem:[%s12546_s5 + $0x150] sm:$0xff]  }
 0x4ef   :  { %5366 = vst.msk [vmem:[#allocation2 + $0x20] sm:$0xff] %vm11925_vm5, %v7668_v9  ;;  %v5258_v12 = vmax.f32 %v5230_v1, 0.0  ;;  %v4686_v6 = vadd.f32 %v4685_v23, %v13439_v32  ;;  %v5123_v54 = vadd.f32 %v11990_v36, %v4682_v46  ;;  %v8081_v46 = vld [vmem:[%s12546_s5 + $0xf0] sm:$0xff]  }
 0x4f0   :  { %v4687_v41 = vpop.f32.mrf.mxu0  ;;  %v12082_v49 = vpop.f32.mrf.mxu1 }
 0x4f1   :  { %v7669_v10 = vpack.c.bf16 %v5258_v12, %v5257_v48  ;;  %v5124_v33 = vadd.f32 %v11999_v60, %v4686_v6  ;;  %v4688_v20 = vadd.f32 %v4687_v41, %v13441_v63  ;;  %5843 = vmatpush1.bf16.msra.mxu0 %v8070_v39  ;;  %6022 = vmatpush1.bf16.msra.mxu1 %v8071_v61  ;;  %v8080_v48 = vld [vmem:[%s12546_s5 + $0x1b8] sm:$0xff]  }
 0x4f2   :  { %v4689_v25 = vpop.f32.mrf.mxu0  ;;  %v12096_v59 = vpop.f32.mrf.mxu1  ;;  %5844 = vmatprep.subr.bf16.mxu0 %v12769_v4  ;;  %6023 = vmatprep.subr.bf16.mxu1 %v12769_v4  ;;  %v13449_v6 = vmax.f32 %v11728_v0, %v13448_v5 }
 0x4f3   :  { %5367 = vst.msk [vmem:[#allocation2 + $0x28] sm:$0xff] %vm11925_vm5, %v7669_v10  ;;  %v5164_v60 = vmax.f32 %v5120_v3, %v5124_v33  ;;  %v5125_v55 = vadd.f32 %v12006_v16, %v4688_v20  ;;  %v4690_v44 = vadd.f32 %v4689_v25, %v13443_v56  ;;  %v13450_v33 = vld [vmem:[#allocation18_spill] sm:$0xff]  ;;  %v8082_v25 = vld [vmem:[%s12546_s5 + $0x1b0] sm:$0xff]  }
 0x4f4   :  { %v4691_v62 = vpop.f32.mrf.mxu0  ;;  %v12106_v27 = vpop.f32.mrf.mxu1 }
 0x4f5   :  { %v5192_v38 = vmax.f32 %v13444_v7, %v5164_v60  ;;  %v5165_v52 = vmax.f32 %v5121_v45, %v5125_v55  ;;  %v5126_v11 = vadd.f32 %v12017_v14, %v4690_v44  ;;  %v4692_v16 = vadd.f32 %v4691_v62, %v13445_v43  ;;  %5845 = vmatpush1.bf16.msra.mxu0 %v8072_v24  ;;  %v13451_v45 = vld [vmem:[#allocation21_spill] sm:$0xff]  ;;  %v13452_v60 = vld [vmem:[#allocation119_spill] sm:$0xff] }
 0x4f6   :  { %v4695_v50 = vpop.f32.mrf.mxu0  ;;  %6024 = vmatpush1.bf16.msra.mxu1 %v8073_v51  ;;  %v13446_v14 = vmax.f32 %v11694_v40, %v11713_v37  ;;  %v12120_v8 = vpop.f32.mrf.mxu1  ;;  %5846 = vmatprep.subr.bf16.mxu0 %v12769_v4  ;;  %v8079_v40 = vld [vmem:[%s12546_s5 + $0xf8] sm:$0xff]   ;;  %v13453_v44 = vld [vmem:[#allocation117_spill] sm:$0xff] }
 0x4f7   :  { %v5231_v15 = vadd.f32 %v11891_v28, %v5192_v38  ;;  %v5166_v1 = vmax.f32 %v5122_v57, %v5126_v11  ;;  %v5127_v36 = vadd.f32 %v12026_v34, %v4692_v16  ;;  %6025 = vmatprep.subr.bf16.mxu1 %v12769_v4  ;;  %v4696_v63 = vadd.f32 %v4695_v50, %v13450_v33  ;;  %v13454_v11 = vld [vmem:[#allocation115_spill] sm:$0xff]  ;;  %v13455_v50 = vld [vmem:[#allocation114_spill] sm:$0xff] }
 0x4f8   :  { %v5193_v9 = vmax.f32 %v13446_v14, %v5165_v52  ;;  %v4697_v17 = vpop.f32.mrf.mxu0  ;;  %v12128_v61 = vpop.f32.mrf.mxu1 }
 0x4f9   :  { %v5194_v23 = vmax.f32 %v13447_v35, %v5166_v1  ;;  %v5167_v39 = vmax.f32 %v5123_v54, %v5127_v36  ;;  %5847 = vmatpush1.bf16.msra.mxu0 %v8074_v21  ;;  %v5259_v12 = vmax.f32 %v5231_v15, 0.0  ;;  %v4698_v47 = vadd.f32 %v4697_v17, %v13451_v45  ;;  %v8083_v15 = vld [vmem:[%s12546_s5 + $0xe8] sm:$0xff]  }
 0x4fa   :  { %v5232_v13 = vadd.f32 %v11901_v26, %v5193_v9  ;;  %v4699_v37 = vpop.f32.mrf.mxu0  ;;  %6026 = vmatpush1.bf16.msra.mxu1 %v8075_v18  ;;  %v8078_v34 = vld [vmem:[#allocation2 + $0x24] ss:$8 sps:$4 sm:$0xff]   ;;  %v12140_v31 = vpop.f32.mrf.mxu1  ;;  %5848 = vmatprep.subr.bf16.mxu0 %v12769_v4  ;;  %v5128_v38 = vadd.f32 %v12037_v29, %v4696_v63  ;;  %v13464_v63 = vld [vmem:[#allocation24_spill] sm:$0xff] }
 0x4fb   :  { %v5233_v53 = vadd.f32 %v11891_v28, %v5194_v23  ;;  %v5195_v58 = vmax.f32 %v13449_v6, %v5167_v39  ;;  %6031 = vmatprep.subr.bf16.mxu1 %v12769_v4  ;;  %7473 = vmatprep.mubr.msk.bf16.mxu0 %vm3113_vm2, %v8078_v34  ;;  %v4700_v57 = vadd.f32 %v4699_v37, %v13453_v44  ;;  %v8084_v29 = vld [vmem:[%s12546_s5 + $0x1a8] sm:$0xff]   ;;  %v13460_v34 = vld [vmem:[#allocation116_spill] sm:$0xff]  ;;  %v13462_v6 = vld [vmem:[#allocation123_spill] sm:$0xff] }
 0x4fc   :  { %v5260_v32 = vmax.f32 %v5232_v13, 0.0  ;;  %v4701_v41 = vpop.f32.mrf.mxu0  ;;  %v12147_v20 = vpop.f32.mrf.mxu1  ;;  %v5129_v54 = vadd.f32 %v12044_v19, %v4698_v47  ;;  %v13456_v19 = vld [vmem:[#allocation106_spill] sm:$0xff] }
 0x4fd   :  { %v5234_v3 = vadd.f32 %v11901_v26, %v5195_v58  ;;  %5849 = vmatpush1.bf16.msra.mxu0 %v8079_v40  ;;  %v5261_v24 = vmax.f32 %v5233_v53, 0.0  ;;  %v4702_v21 = vadd.f32 %v4701_v41, %v13455_v50  ;;  %v5130_v36 = vadd.f32 %v12056_v42, %v4700_v57  ;;  %v13457_v13 = vld [vmem:[#allocation22_spill] sm:$0xff]  ;;  %v8085_v42 = vld [vmem:[%s12546_s5 + $0xe0] sm:$0xff]  }
 0x4fe   :  { %v7670_v10 = vpack.c.bf16 %v5260_v32, %v5259_v12  ;;  %v4705_v0 = vpop.f32.mrf.mxu0  ;;  %6032 = vmatpush2.bf16.msra.mxu1 %v8080_v48  ;;  %v12159_v56 = vpop.f32.mrf.mxu1  ;;  %5850 = vmatprep.subr.bf16.mxu0 %v12769_v4  ;;  %v13458_v35 = vld [vmem:[#allocation122_spill] sm:$0xff]  ;;  %v8086_v53 = vld [vmem:[%s12546_s5 + $0x1a0] sm:$0xff]  }
 0x4ff   :  { %v5262_v51 = vmax.f32 %v5234_v3, 0.0  ;;  %v4706_v55 = vadd.f32 %v4705_v0, %v13452_v60  ;;  %6033 = vmatprep.subr.bf16.mxu1 %v12769_v4  ;;  %v13459_v23 = vmax.f32 %v13457_v13, %v13458_v35  ;;  %v5131_v48 = vadd.f32 %v12062_v2, %v4702_v21  ;;  %v13465_v45 = vld [vmem:[#allocation118_spill] sm:$0xff]  ;;  %v8091_v60 = vld [vmem:[%s12546_s5 + $0x198] sm:$0xff]   ;;  %v13470_v50 = vld [vmem:[#allocation25_spill] sm:$0xff] }
 0x500   :  { %5368 = vst.msk [vmem:[#allocation2 + $0x30] sm:$0xff] %vm11925_vm5, %v7670_v10  ;;  %v4707_v62 = vpop.f32.mrf.mxu0  ;;  %v12167_v16 = vpop.f32.mrf.mxu1  ;;  %v13466_v47 = vmax.f32 %v13464_v63, %v13465_v45  ;;  %v13473_v35 = vld [vmem:[#allocation27_spill] sm:$0xff] }
 0x501   :  { %v7671_v7 = vpack.c.bf16 %v5262_v51, %v5261_v24  ;;  %v5132_v52 = vadd.f32 %v12074_v22, %v4706_v55  ;;  %v4708_v43 = vadd.f32 %v4707_v62, %v13454_v11  ;;  %5851 = vmatpush1.bf16.msra.mxu0 %v8081_v46  ;;  %v13467_v62 = vld [vmem:[#allocation120_spill] sm:$0xff]  ;;  %v13478_v63 = vld [vmem:[#allocation135_spill] sm:$0xff] }
 0x502   :  { %v4709_v18 = vpop.f32.mrf.mxu0  ;;  %6034 = vmatpush2.bf16.msra.mxu1 %v8082_v25  ;;  %v12181_v1 = vpop.f32.mrf.mxu1  ;;  %5852 = vmatprep.subr.bf16.mxu0 %v12769_v4  ;;  %v8090_v25 = vld [vmem:[%s12546_s5 + $0x148] sm:$0xff]  }
 0x503   :  { %5369 = vst.msk [vmem:[#allocation2 + $0x38] sm:$0xff] %vm11925_vm5, %v7671_v7  ;;  %v5168_v22 = vmax.f32 %v5128_v38, %v5132_v52  ;;  %v5133_v14 = vadd.f32 %v12082_v49, %v4708_v43  ;;  %v4710_v9 = vadd.f32 %v4709_v18, %v13456_v19  ;;  %6035 = vmatprep.subr.bf16.mxu1 %v12769_v4  ;;  %v13468_v7 = vld [vmem:[#allocation28_spill] sm:$0xff]  ;;  %v13471_v18 = vld [vmem:[#allocation26_spill] sm:$0xff]  ;;  %v8093_v19 = vld [vmem:[%s12546_s5 + $0x190] sm:$0xff]  }
 0x504   :  { %v4711_v17 = vpop.f32.mrf.mxu0  ;;  %v12192_v12 = vpop.f32.mrf.mxu1  ;;  %v13469_v38 = vmax.f32 %v13467_v62, %v13468_v7 }
 0x505   :  { %v5196_v39 = vmax.f32 %v13459_v23, %v5168_v22  ;;  %v5169_v40 = vmax.f32 %v5129_v54, %v5133_v14  ;;  %v5134_v37 = vadd.f32 %v12096_v59, %v4710_v9  ;;  %v4712_v49 = vadd.f32 %v4711_v17, %v13460_v34  ;;  %5853 = vmatpush1.bf16.msra.mxu0 %v8083_v15  ;;  %v13461_v59 = vld [vmem:[#allocation23_spill] sm:$0xff]  ;;  %v8092_v14 = vld [vmem:[%s12546_s5 + $0x140] sm:$0xff]  }
 0x506   :  { %v4715_v32 = vpop.f32.mrf.mxu0  ;;  %6036 = vmatpush2.bf16.msra.mxu1 %v8084_v29  ;;  %v13463_v58 = vmax.f32 %v13461_v59, %v13462_v6  ;;  %5854 = vmatprep.subr.bf16.mxu0 %v12769_v4  ;;  %v12214_v24 = vpop.f32.mrf.mxu1  ;;  %v13472_v17 = vld [vmem:[#allocation127_spill] sm:$0xff]  ;;  %v8094_v6 = vld [vmem:[%s12546_s5 + $0x138] sm:$0xff]  }
 0x507   :  { %v5235_v5 = vadd.f32 %v11891_v28, %v5196_v39  ;;  %v5170_v2 = vmax.f32 %v5130_v36, %v5134_v37  ;;  %v5135_v10 = vadd.f32 %v12106_v27, %v4712_v49  ;;  %6037 = vmatprep.subr.bf16.mxu1 %v12769_v4  ;;  %v4716_v21 = vadd.f32 %v4715_v32, %v13470_v50  ;;  %v13474_v49 = vld [vmem:[#allocation113_spill] sm:$0xff]  ;;  %v13485_v50 = vld [vmem:[#allocation34_spill] sm:$0xff] }
 0x508   :  { %v5197_v41 = vmax.f32 %v13463_v58, %v5169_v40  ;;  %v4717_v3 = vpop.f32.mrf.mxu0  ;;  %v12229_v29 = vpop.f32.mrf.mxu1 }
 0x509   :  { %v5198_v0 = vmax.f32 %v13466_v47, %v5170_v2  ;;  %v5171_v46 = vmax.f32 %v5131_v48, %v5135_v10  ;;  %5855 = vmatpush1.bf16.msra.mxu0 %v8085_v42  ;;  %v5263_v55 = vmax.f32 %v5235_v5, 0.0  ;;  %v4718_v15 = vadd.f32 %v4717_v3, %v13471_v18 }
 0x50a   :  { %v5236_v33 = vadd.f32 %v11901_v26, %v5197_v41  ;;  %v4719_v51 = vpop.f32.mrf.mxu0  ;;  %6038 = vmatpush2.bf16.msra.mxu1 %v8086_v53  ;;  %v8089_v27 = vld [vmem:[#allocation2 + $0x34] ss:$8 sps:$4 sm:$0xff]   ;;  %5860 = vmatprep.subr.bf16.mxu0 %v12769_v4  ;;  %v5136_v37 = vadd.f32 %v12120_v8, %v4716_v21  ;;  %v12247_v42 = vpop.f32.mrf.mxu1  ;;  %v13475_v53 = vld [vmem:[#allocation125_spill] sm:$0xff]  ;;  %v8095_v8 = vld [vmem:[%s12546_s5 + $0x268] sm:$0xff]  }
 0x50b   :  { %v5237_v57 = vadd.f32 %v11891_v28, %v5198_v0  ;;  %v5199_v52 = vmax.f32 %v13469_v38, %v5171_v46  ;;  %6039 = vmatprep.subr.bf16.mxu1 %v12769_v4  ;;  %7518 = vmatprep.mubr.msk.bf16.mxu1 %vm3113_vm2, %v8089_v27  ;;  %v4720_v23 = vadd.f32 %v4719_v51, %v13473_v35  ;;  %v13476_v41 = vld [vmem:[#allocation124_spill] sm:$0xff] }
 0x50c   :  { %v5264_v44 = vmax.f32 %v5236_v33, 0.0  ;;  %v4721_v11 = vpop.f32.mrf.mxu0  ;;  %v5137_v32 = vadd.f32 %v12128_v61, %v4718_v15  ;;  %v13477_v33 = vld [vmem:[#allocation29_spill] sm:$0xff]  ;;  %v12269_v27 = vpop.f32.mrf.mxu1 }
 0x50d   :  { %v5238_v54 = vadd.f32 %v11901_v26, %v5199_v52  ;;  %5861 = vmatpush2.bf16.msra.mxu0 %v8090_v25  ;;  %v5265_v9 = vmax.f32 %v5237_v57, 0.0  ;;  %v4722_v5 = vadd.f32 %v4721_v11, %v13475_v53  ;;  %v5138_v10 = vadd.f32 %v12140_v31, %v4720_v23  ;;  %v13480_v25 = vld [vmem:[#allocation31_spill] sm:$0xff]  ;;  %v13482_v57 = vld [vmem:[#allocation126_spill] sm:$0xff] }
 0x50e   :  { %v7672_v43 = vpack.c.bf16 %v5264_v44, %v5263_v55  ;;  %v4725_v22 = vpop.f32.mrf.mxu0  ;;  %6040 = vmatpush2.bf16.msra.mxu1 %v8091_v60  ;;  %5862 = vmatprep.subr.bf16.mxu0 %v12769_v4  ;;  %v13479_v45 = vmax.f32 %v13477_v33, %v13478_v63  ;;  %v8096_v31 = vld [vmem:[%s12546_s5 + $0x130] sm:$0xff]   ;;  %v8097_v55 = vld [vmem:[%s12546_s5 + $0x260] sm:$0xff]   ;;  %v13481_v44 = vld [vmem:[#allocation30_spill] sm:$0xff]  ;;  %v5087_v11 = vpop.f32.mrf.mxu1 }
 0x50f   :  { %v5266_v36 = vmax.f32 %v5238_v54, 0.0  ;;  %v4726_v13 = vadd.f32 %v4725_v22, %v13472_v17  ;;  %6041 = vmatprep.subr.bf16.mxu1 %v12769_v4  ;;  %v13483_v62 = vmax.f32 %v13481_v44, %v13482_v57  ;;  %v13484_v54 = vld [vmem:[#allocation132_spill] sm:$0xff]  ;;  %v13487_v17 = vld [vmem:[#allocation134_spill] sm:$0xff] }
 0x510   :  { %5370 = vst.msk [vmem:[#allocation2 + $0x40] sm:$0xff] %vm11925_vm5, %v7672_v43  ;;  %v4727_v39 = vpop.f32.mrf.mxu0  ;;  %v13486_v21 = vmax.f32 %v13484_v54, %v13485_v50  ;;  %v13500_v50 = vld [vmem:[#allocation38_spill] sm:$0xff] }
 0x511   :  { %v7673_v40 = vpack.c.bf16 %v5266_v36, %v5265_v9  ;;  %v5140_v34 = vadd.f32 %v12159_v56, %v4726_v13  ;;  %v4728_v48 = vadd.f32 %v4727_v39, %v13474_v49  ;;  %5863 = vmatpush2.bf16.msra.mxu0 %v8092_v14  ;;  %v8087_v56 = vld [vmem:[#allocation2 + $0x30] ss:$8 sps:$4 sm:$0xff]  }
 0x512   :  { %v4729_v59 = vpop.f32.mrf.mxu0  ;;  %6042 = vmatpush2.bf16.msra.mxu1 %v8093_v19  ;;  %5864 = vmatprep.subr.bf16.mxu0 %v12769_v4  ;;  %v8099_v14 = vld [vmem:[%s12546_s5 + $0x258] sm:$0xff]   ;;  %v13488_v13 = vld [vmem:[#allocation35_spill] sm:$0xff] }
 0x513   :  { %5371 = vst.msk [vmem:[#allocation2 + $0x48] sm:$0xff] %vm11925_vm5, %v7673_v40  ;;  %v5172_v61 = vmax.f32 %v5136_v37, %v5140_v34  ;;  %v5141_v58 = vadd.f32 %v12167_v16, %v4728_v48  ;;  %v4730_v2 = vadd.f32 %v4729_v59, %v13476_v41  ;;  %6353 = vmatprep.subr.bf16.mxu1 %v12769_v4  ;;  %v5089_v40 = vpop.f32.mrf.mxu1  ;;  %v13490_v49 = vld [vmem:[#allocation32_spill] sm:$0xff]  ;;  %v8100_v59 = vld [vmem:[%s12546_s5 + $0x120] sm:$0xff]  }
 0x514   :  { %v4731_v3 = vpop.f32.mrf.mxu0  ;;  %v5139_v16 = vadd.f32 %v12147_v20, %v4722_v5  ;;  %v13489_v35 = vmax.f32 %v13487_v17, %v13488_v13  ;;  %v13493_v41 = vld [vmem:[#allocation129_spill] sm:$0xff] }
 0x515   :  { %v5200_v47 = vmax.f32 %v13479_v45, %v5172_v61  ;;  %v5173_v0 = vmax.f32 %v5137_v32, %v5141_v58  ;;  %v5142_v46 = vadd.f32 %v12181_v1, %v4730_v2  ;;  %v4732_v51 = vadd.f32 %v4731_v3, %v13480_v25  ;;  %6044 = vmatmul.mubr.bf16.vlgmr.msra.gmra.mxu1 %v8087_v56  ;;  %v13491_v32 = vld [vmem:[#allocation33_spill] sm:$0xff]  ;;  %v5091_v3 = vpop.f32.mrf.mxu1  ;;  %v13494_v45 = vld [vmem:[#allocation131_spill] sm:$0xff]  ;;  %v13495_v25 = vld [vmem:[#allocation130_spill] sm:$0xff] }
 0x516   :  { %v4735_v60 = vpop.f32.mrf.mxu0  ;;  %5865 = vmatpush2.bf16.msra.mxu0 %v8094_v6  ;;  %6354 = vmatpush1.bf16.msra.mxu1 %v8095_v8  ;;  %v8101_v6 = vld [vmem:[%s12546_s5 + $0x250] sm:$0xff]   ;;  %v13492_v61 = vld [vmem:[#allocation121_spill] sm:$0xff] }
 0x517   :  { %v5239_v1 = vadd.f32 %v11891_v28, %v5200_v47  ;;  %v5201_v7 = vmax.f32 %v13483_v62, %v5173_v0  ;;  %v5174_v20 = vmax.f32 %v5138_v10, %v5142_v46  ;;  %v5143_v38 = vadd.f32 %v12192_v12, %v4732_v51  ;;  %5866 = vmatprep.subr.bf16.mxu0 %v12769_v4  ;;  %v8098_v12 = vld [vmem:[%s12546_s5 + $0x128] sm:$0xff]  }
 0x518   :  { %v4737_v52 = vpop.f32.mrf.mxu0  ;;  %6355 = vmatprep.subr.bf16.mxu1 %v12769_v4  ;;  %v4736_v48 = vadd.f32 %v4735_v60, %v13490_v49  ;;  %v8102_v60 = vld [vmem:[%s12546_s5 + $0x1f8] sm:$0xff]   ;;  %v8112_v49 = vld [vmem:[%s12546_s5 + $0x1e8] sm:$0xff]  }
 0x519   :  { %v5240_v43 = vadd.f32 %v11901_v26, %v5201_v7  ;;  %v5202_v18 = vmax.f32 %v13486_v21, %v5174_v20  ;;  %v5175_v15 = vmax.f32 %v5139_v16, %v5143_v38  ;;  %v5267_v19 = vmax.f32 %v5239_v1, 0.0  ;;  %v5093_v7 = vpop.f32.mrf.mxu1  ;;  %v13497_v38 = vld [vmem:[#allocation36_spill] sm:$0xff] }
 0x51a   :  { %v4739_v22 = vpop.f32.mrf.mxu0  ;;  %5867 = vmatpush2.bf16.msra.mxu0 %v8096_v31  ;;  %6356 = vmatpush1.bf16.msra.mxu1 %v8097_v55  ;;  %v4738_v53 = vadd.f32 %v4737_v52, %v13491_v32  ;;  %v5144_v63 = vadd.f32 %v12214_v24, %v4736_v48  ;;  %v8076_v31 = vld [vmem:[#allocation2 + $0x20] ss:$8 sps:$4 sm:$0xff]   ;;  %v8105_v20 = vld [vmem:[#allocation2 + $0x44] ss:$8 sps:$4 sm:$0xff]  }
 0x51b   :  { %v5268_v9 = vmax.f32 %v5240_v43, 0.0  ;;  %v5241_v36 = vadd.f32 %v11891_v28, %v5202_v18  ;;  %v5203_v23 = vmax.f32 %v13489_v35, %v5175_v15  ;;  %5868 = vmatprep.subr.bf16.mxu0 %v12769_v4  ;;  %6357 = vmatprep.subr.bf16.mxu1 %v12769_v4  ;;  %v4740_v2 = vadd.f32 %v4739_v22, %v13493_v41  ;;  %v13496_v24 = vld [vmem:[#allocation37_spill] sm:$0xff]  ;;  %v13498_v52 = vld [vmem:[#allocation138_spill] sm:$0xff]  ;;  %v13504_v35 = vld [vmem:[#allocation136_spill] sm:$0xff] }
 0x51c   :  { %v4741_v39 = vpop.f32.mrf.mxu0  ;;  %v5145_v46 = vadd.f32 %v12229_v29, %v4738_v53  ;;  %v8106_v29 = vld [vmem:[%s12546_s5 + $0x248] sm:$0xff]  }
 0x51d   :  { %v7674_v37 = vpack.c.bf16 %v5268_v9, %v5267_v19  ;;  %v5242_v34 = vadd.f32 %v11901_v26, %v5203_v23  ;;  %v5269_v8 = vmax.f32 %v5241_v36, 0.0  ;;  %v4742_v51 = vadd.f32 %v4741_v39, %v13495_v25  ;;  %v13505_v23 = vld [vmem:[#allocation139_spill] sm:$0xff]  ;;  %v8124_v25 = vld [vmem:[%s12546_s5 + $0x228] sm:$0xff]  }
 0x51e   :  { %v4745_v5 = vpop.f32.mrf.mxu0  ;;  %5869 = vmatpush2.bf16.msra.mxu0 %v8098_v12  ;;  %6358 = vmatpush1.bf16.msra.mxu1 %v8099_v14  ;;  %v5146_v57 = vadd.f32 %v12247_v42, %v4740_v2  ;;  %v8107_v42 = vld [vmem:[%s12546_s5 + $0x1f0] sm:$0xff]   ;;  %v13506_v39 = vmax.f32 %v13504_v35, %v13505_v23 }
 0x51f   :  { %5372 = vst.msk [vmem:[#allocation2 + $0x50] sm:$0xff] %vm11925_vm5, %v7674_v37  ;;  %v5270_v56 = vmax.f32 %v5242_v34, 0.0  ;;  %v4746_v58 = vadd.f32 %v4745_v5, %v13492_v61  ;;  %5870 = vmatprep.subr.bf16.mxu0 %v12769_v4  ;;  %6359 = vmatprep.subr.bf16.mxu1 %v12769_v4  ;;  %v5147_v15 = vadd.f32 %v12269_v27, %v4742_v51  ;;  %v13501_v12 = vld [vmem:[#allocation39_spill] sm:$0xff]  ;;  %v8108_v27 = vld [vmem:[%s12546_s5 + $0x240] sm:$0xff]   ;;  %v8125_v51 = vld [vmem:[%s12546_s5 + $0x278] sm:$0xff]  }
 0x520   :  { %v4747_v10 = vpop.f32.mrf.mxu0  ;;  %v13502_v14 = vld [vmem:[#allocation143_spill] sm:$0xff]  ;;  %v13507_v5 = vld [vmem:[#allocation141_spill] sm:$0xff] }
 0x521   :  { %v7675_v33 = vpack.c.bf16 %v5270_v56, %v5269_v8  ;;  %v4748_v47 = vadd.f32 %v4747_v10, %v13494_v45  ;;  %v5148_v0 = vadd.f32 %v5087_v11, %v4746_v58  ;;  %v13499_v11 = vmax.f32 %v13497_v38, %v13498_v52  ;;  %v8113_v56 = vld [vmem:[%s12546_s5 + $0x238] sm:$0xff]   ;;  %v8115_v10 = vld [vmem:[%s12546_s5 + $0x230] sm:$0xff]   ;;  %v8120_v45 = vld [vmem:[%s12546_s5 + $0x1c8] sm:$0xff]  }
 0x522   :  { %v4749_v16 = vpop.f32.mrf.mxu0  ;;  %5871 = vmatpush2.bf16.msra.mxu0 %v8100_v59  ;;  %6360 = vmatpush1.bf16.msra.mxu1 %v8101_v6  ;;  %v13503_v19 = vmax.f32 %v13501_v12, %v13502_v14  ;;  %v13508_v59 = vld [vmem:[#allocation128_spill] sm:$0xff]  ;;  %v8138_v38 = vld [vmem:[%s12546_s5 + $0x2c0] sm:$0xff]  }
 0x523   :  { %5373 = vst.msk [vmem:[#allocation2 + $0x58] sm:$0xff] %vm11925_vm5, %v7675_v33  ;;  %v5176_v55 = vmax.f32 %v5144_v63, %v5148_v0  ;;  %v4750_v1 = vadd.f32 %v4749_v16, %v13496_v24  ;;  %v5149_v44 = vadd.f32 %v5089_v40, %v4748_v47  ;;  %6182 = vmatprep.subr.bf16.mxu0 %v12769_v4  ;;  %v8117_v33 = vld [vmem:[%s12546_s5 + $0x298] sm:$0xff]   ;;  %v8118_v63 = vld [vmem:[%s12546_s5 + $0x1d0] sm:$0xff]   ;;  %v8121_v47 = vld [vmem:[%s12546_s5 + $0x288] sm:$0xff]  }
 0x524   :  { %6361 = vmatprep.subr.bf16.mxu1 %v12769_v4  ;;  %v4751_v62 = vpop.f32.mrf.mxu0  ;;  %v13509_v6 = vmax.f32 %v13507_v5, %v13508_v59  ;;  %v8122_v0 = vld [vmem:[%s12546_s5 + $0x1c0] sm:$0xff]   ;;  %v8129_v24 = vld [vmem:[%s12546_s5 + $0x210] sm:$0xff]   ;;  %v8139_v52 = vld [vmem:[%s12546_s5 + $0x2b8] sm:$0xff]  }
 0x525   :  { %v5204_v43 = vmax.f32 %v13499_v11, %v5176_v55  ;;  %v5177_v54 = vmax.f32 %v5145_v46, %v5149_v44  ;;  %v4752_v21 = vadd.f32 %v4751_v62, %v13500_v50  ;;  %v5150_v18 = vadd.f32 %v5091_v3, %v4750_v1  ;;  %5873 = vmatmul.mubr.bf16.vlgmr.msra.gmra.mxu0 %v8076_v31  ;;  %v8116_v3 = vld [vmem:[%s12546_s5 + $0x1d8] sm:$0xff]   ;;  %v8123_v46 = vld [vmem:[%s12546_s5 + $0x280] sm:$0xff]   ;;  %v8130_v1 = vld [vmem:[%s12546_s5 + $0x208] sm:$0xff]  }
 0x526   :  { %6183 = vmatpush1.bf16.msra.mxu0 %v8102_v60  ;;  %7563 = vmatprep.mubr.msk.bf16.mxu0 %vm3113_vm2, %v8105_v20  ;;  %v8126_v16 = vld [vmem:[%s12546_s5 + $0x220] sm:$0xff]   ;;  %v8127_v60 = vld [vmem:[%s12546_s5 + $0x270] sm:$0xff]   ;;  %v8128_v31 = vld [vmem:[%s12546_s5 + $0x218] sm:$0xff]  }
 0x527   :  { %v5243_v22 = vadd.f32 %v11891_v28, %v5204_v43  ;;  %v5205_v9 = vmax.f32 %v13503_v19, %v5177_v54  ;;  %v5178_v36 = vmax.f32 %v5146_v57, %v5150_v18  ;;  %v5151_v17 = vadd.f32 %v5093_v7, %v4752_v21  ;;  %6362 = vmatpush1.bf16.msra.mxu1 %v8106_v29  ;;  %v8131_v44 = vld [vmem:[%s12546_s5 + $0x200] sm:$0xff]   ;;  %v8132_v29 = vld [vmem:[%s12546_s5 + $0x2d8] sm:$0xff]   ;;  %v8136_v7 = vld [vmem:[%s12546_s5 + $0x2d0] sm:$0xff]  }
 0x528   :  { %6184 = vmatprep.subr.bf16.mxu0 %v12769_v4  ;;  %6363 = vmatprep.subr.bf16.mxu1 %v12769_v4  ;;  %v8103_v57 = vld [vmem:[#allocation2 + $0x40] ss:$8 sps:$4 sm:$0xff]   ;;  %v8140_v11 = vld [vmem:[%s12546_s5 + $0x2b0] sm:$0xff]   ;;  %v8145_v18 = vld [vmem:[%s12546_s5 + $0x2f8] sm:$0xff]  }
 0x529   :  { %v5244_v13 = vadd.f32 %v11901_v26, %v5205_v9  ;;  %v5206_v40 = vmax.f32 %v13506_v39, %v5178_v36  ;;  %v5179_v37 = vmax.f32 %v5147_v15, %v5151_v17  ;;  %v5271_v48 = vmax.f32 %v5243_v22, 0.0  ;;  %v8137_v20 = vld [vmem:[%s12546_s5 + $0x2c8] sm:$0xff]   ;;  %v8142_v54 = vld [vmem:[%s12546_s5 + $0x2a0] sm:$0xff]   ;;  %v8146_v15 = vld [vmem:[%s12546_s5 + $0x2f0] sm:$0xff]  }
 0x52a   :  { %6185 = vmatpush1.bf16.msra.mxu0 %v8107_v42  ;;  %v8111_v34 = vld [vmem:[#allocation2 + $0x54] ss:$8 sps:$4 sm:$0xff]   ;;  %v8109_v55 = vld [vmem:[#allocation2 + $0x50] ss:$8 sps:$4 sm:$0xff]   ;;  %v8141_v43 = vld [vmem:[%s12546_s5 + $0x2a8] sm:$0xff]   ;;  %v8196_v17 = vmov 0.0  }
 0x52b   :  { %v5272_v32 = vmax.f32 %v5244_v13, 0.0  ;;  %v5245_v53 = vadd.f32 %v11891_v28, %v5206_v40  ;;  %v5207_v8 = vmax.f32 %v13509_v6, %v5179_v37  ;;  %6364 = vmatpush1.bf16.msra.mxu1 %v8108_v27  ;;  %6186 = vmatprep.subr.bf16.mxu0 %v12769_v4  ;;  %v8114_v28 = vld [vmem:[%s12546_s5 + $0x1e0] sm:$0xff]   ;;  %v8143_v50 = vld [vmem:[%s12546_s5 + $0x308] sm:$0xff]   ;;  %v8149_v27 = vld [vmem:[%s12548_s7 + $0x38] sm:$0xff]  }
 0x52c   :  { %6365 = vmatprep.subr.bf16.mxu1 %v12769_v4  ;;  %7608 = vmatprep.mubr.msk.bf16.mxu1 %vm3113_vm2, %v8111_v34  ;;  %v8144_v21 = vld [vmem:[%s12546_s5 + $0x300] sm:$0xff]   ;;  %v8147_v42 = vld [vmem:[%s12546_s5 + $0x2e8] sm:$0xff]   ;;  %v8150_v13 = vld [vmem:[%s12548_s7 + $0x30] sm:$0xff]  }
 0x52d   :  { %v7676_v61 = vpack.c.bf16 %v5272_v32, %v5271_v48  ;;  %v5246_v58 = vadd.f32 %v11901_v26, %v5207_v8  ;;  %v5273_v41 = vmax.f32 %v5245_v53, 0.0  ;;  %v8148_v22 = vld [vmem:[%s12546_s5 + $0x2e0] sm:$0xff]   ;;  %v8154_v53 = vld [vmem:[%s12548_s7 + $0x10] sm:$0xff]   ;;  %v8155_v6 = vld [vmem:[%s12548_s7 + $0x8] sm:$0xff]  }
 0x52e   :  { %6187 = vmatpush1.bf16.msra.mxu0 %v8112_v49  ;;  %v8152_v39 = vld [vmem:[%s12548_s7 + $0x20] sm:$0xff]   ;;  %v8153_v49 = vld [vmem:[%s12548_s7 + $0x18] sm:$0xff]  }
 0x52f   :  { %5374 = vst.msk [vmem:[#allocation2 + $0x60] sm:$0xff] %vm11925_vm5, %v7676_v61  ;;  %v5274_v2 = vmax.f32 %v5246_v58, 0.0  ;;  %6366 = vmatpush1.bf16.msra.mxu1 %v8113_v56  ;;  %6188 = vmatprep.subr.bf16.mxu0 %v12769_v4  ;;  %v8156_v56 = vld [vmem:[%s12548_s7] sm:$0xff]  }
 0x530   :  { %6367 = vmatprep.subr.bf16.mxu1 %v12769_v4 }
 0x531   :  { %v7677_v26 = vpack.c.bf16 %v5274_v2, %v5273_v41 }
 0x532   :  { %6189 = vmatpush1.bf16.msra.mxu0 %v8114_v28 }
 0x533   :  { %5375 = vst.msk [vmem:[#allocation2 + $0x68] sm:$0xff] %vm11925_vm5, %v7677_v26  ;;  %6368 = vmatpush1.bf16.msra.mxu1 %v8115_v10  ;;  %6190 = vmatprep.subr.bf16.mxu0 %v12769_v4 }
 0x534   :  { %6373 = vmatprep.subr.bf16.mxu1 %v12769_v4 }
 0x536   :  { %6191 = vmatpush1.bf16.msra.mxu0 %v8116_v3 }
 0x537   :  { %6374 = vmatpush2.bf16.msra.mxu1 %v8117_v33  ;;  %6192 = vmatprep.subr.bf16.mxu0 %v12769_v4 }
 0x538   :  { %6375 = vmatprep.subr.bf16.mxu1 %v12769_v4 }
 0x53a   :  { %6193 = vmatpush1.bf16.msra.mxu0 %v8118_v63  ;;  %v8135_v62 = vld [vmem:[#allocation2 + $0x64] ss:$8 sps:$4 sm:$0xff]   ;;  %v8133_v12 = vld [vmem:[#allocation2 + $0x60] ss:$8 sps:$4 sm:$0xff]  }
 0x53b   :  { %6376 = vmatpush2.bf16.msra.mxu1 %v8119_v30  ;;  %6194 = vmatprep.subr.bf16.mxu0 %v12769_v4 }
 0x53c   :  { %6377 = vmatprep.subr.bf16.mxu1 %v12769_v4 }
 0x53e   :  { %6195 = vmatpush1.bf16.msra.mxu0 %v8120_v45 }
 0x53f   :  { %6378 = vmatpush2.bf16.msra.mxu1 %v8121_v47  ;;  %6196 = vmatprep.subr.bf16.mxu0 %v12769_v4 }
 0x540   :  { %6379 = vmatprep.subr.bf16.mxu1 %v12769_v4 }
 0x542   :  { %6197 = vmatpush1.bf16.msra.mxu0 %v8122_v0 }
 0x543   :  { %6380 = vmatpush2.bf16.msra.mxu1 %v8123_v46  ;;  %6202 = vmatprep.subr.bf16.mxu0 %v12769_v4 }
 0x544   :  { %6381 = vmatprep.subr.bf16.mxu1 %v12769_v4 }
 0x546   :  { %6203 = vmatpush2.bf16.msra.mxu0 %v8124_v25 }
 0x547   :  { %6382 = vmatpush2.bf16.msra.mxu1 %v8125_v51  ;;  %6204 = vmatprep.subr.bf16.mxu0 %v12769_v4 }
 0x548   :  { %6383 = vmatprep.subr.bf16.mxu1 %v12769_v4 }
 0x54a   :  { %6205 = vmatpush2.bf16.msra.mxu0 %v8126_v16 }
 0x54b   :  { %6384 = vmatpush2.bf16.msra.mxu1 %v8127_v60  ;;  %6206 = vmatprep.subr.bf16.mxu0 %v12769_v4 }
 0x54c   :  { %7687 = vmatprep.subr.bf16.mxu1 %v8196_v17 }
 0x54e   :  { %6386 = vmatmul.mubr.bf16.vlgmr.msra.gmra.mxu1 %v8109_v55  ;;  %6207 = vmatpush2.bf16.msra.mxu0 %v8128_v31 }
 0x54f   :  { %6208 = vmatprep.subr.bf16.mxu0 %v12769_v4  ;;  %7688 = vmatpush3.bf16.msra.mxu1 %v8149_v27 }
 0x550   :  { %7689 = vmatprep.subr.bf16.mxu1 %v8196_v17  ;;  %7703 = vmatprep.mubr.msk.bf16.mxu1 %vm8197_vm6, %v8196_v17 }
 0x552   :  { %6209 = vmatpush2.bf16.msra.mxu0 %v8129_v24  ;;  %v7654_v24 = vld [vmem:[%s12549_s6] ss:$0 sm:$0xff] }
 0x553   :  { %6210 = vmatprep.subr.bf16.mxu0 %v12769_v4  ;;  %7690 = vmatpush3.bf16.msra.mxu1 %v8150_v13 }
 0x554   :  { %7691 = vmatprep.subr.bf16.mxu1 %v8196_v17 }
 0x556   :  { %6211 = vmatpush2.bf16.msra.mxu0 %v8130_v1 }
 0x557   :  { %6212 = vmatprep.subr.bf16.mxu0 %v12769_v4 }
 0x55a   :  { %6213 = vmatpush2.bf16.msra.mxu0 %v8131_v44 }
 0x55b   :  { %6524 = vmatprep.subr.bf16.mxu0 %v12769_v4 }
 0x55d   :  { %6215 = vmatmul.mubr.bf16.vlgmr.msra.gmra.mxu0 %v8103_v57 }
 0x55e   :  { %6525 = vmatpush1.bf16.msra.mxu0 %v8132_v29  ;;  %7653 = vmatprep.mubr.msk.bf16.mxu0 %vm3113_vm2, %v8135_v62 }
 0x55f   :  { %6526 = vmatprep.subr.bf16.mxu0 %v12769_v4 }
 0x562   :  { %6527 = vmatpush1.bf16.msra.mxu0 %v8136_v7 }
 0x563   :  { %6528 = vmatprep.subr.bf16.mxu0 %v12769_v4 }
 0x566   :  { %6529 = vmatpush1.bf16.msra.mxu0 %v8137_v20 }
 0x567   :  { %6530 = vmatprep.subr.bf16.mxu0 %v12769_v4 }
 0x56a   :  { %6531 = vmatpush1.bf16.msra.mxu0 %v8138_v38 }
 0x56b   :  { %6532 = vmatprep.subr.bf16.mxu0 %v12769_v4 }
 0x56e   :  { %6533 = vmatpush1.bf16.msra.mxu0 %v8139_v52 }
 0x56f   :  { %6534 = vmatprep.subr.bf16.mxu0 %v12769_v4 }
 0x572   :  { %6535 = vmatpush1.bf16.msra.mxu0 %v8140_v11 }
 0x573   :  { %6536 = vmatprep.subr.bf16.mxu0 %v12769_v4 }
 0x576   :  { %6537 = vmatpush1.bf16.msra.mxu0 %v8141_v43  ;;  %v7655_v43 = vld [vmem:[%s12551_s8] ss:$0 sm:$0xff] }
 0x577   :  { %6538 = vmatprep.subr.bf16.mxu0 %v12769_v4 }
 0x57a   :  { %6539 = vmatpush1.bf16.msra.mxu0 %v8142_v54 }
 0x57b   :  { %6544 = vmatprep.subr.bf16.mxu0 %v12769_v4 }
 0x57e   :  { %6545 = vmatpush2.bf16.msra.mxu0 %v8143_v50 }
 0x57f   :  { %6546 = vmatprep.subr.bf16.mxu0 %v12769_v4 }
 0x582   :  { %6547 = vmatpush2.bf16.msra.mxu0 %v8144_v21 }
 0x583   :  { %6548 = vmatprep.subr.bf16.mxu0 %v12769_v4 }
 0x586   :  { %6549 = vmatpush2.bf16.msra.mxu0 %v8145_v18 }
 0x587   :  { %6550 = vmatprep.subr.bf16.mxu0 %v12769_v4 }
 0x58a   :  { %6551 = vmatpush2.bf16.msra.mxu0 %v8146_v15 }
 0x58b   :  { %6552 = vmatprep.subr.bf16.mxu0 %v12769_v4 }
 0x58e   :  { %6553 = vmatpush2.bf16.msra.mxu0 %v8147_v42 }
 0x58f   :  { %6554 = vmatprep.subr.bf16.mxu0 %v12769_v4  ;;  %v8151_v4 = vld [vmem:[%s12548_s7 + $0x28] sm:$0xff]  }
 0x590   :  { %7692 = vmatpush3.bf16.msra.mxu1 %v8151_v4 }
 0x591   :  { %7693 = vmatprep.subr.bf16.mxu1 %v8196_v17 }
 0x592   :  { %6555 = vmatpush2.bf16.msra.mxu0 %v8148_v22 }
 0x594   :  { %7694 = vmatpush3.bf16.msra.mxu1 %v8152_v39 }
 0x595   :  { %6557 = vmatmul.mubr.bf16.vlgmr.msra.gmra.mxu0 %v8133_v12  ;;  %7695 = vmatprep.subr.bf16.mxu1 %v8196_v17 }
 0x598   :  { %7696 = vmatpush3.bf16.msra.mxu1 %v8153_v49 }
 0x599   :  { %7697 = vmatprep.subr.bf16.mxu1 %v8196_v17 }
 0x59c   :  { %v5705_v14 = vpop.f32.mrf.mxu1  ;;  %7698 = vmatpush3.bf16.msra.mxu1 %v8154_v53 }
 0x59d   :  { %7699 = vmatprep.subr.bf16.mxu1 %v8196_v17 }
 0x59e   :  { %v5707_v19 = vpop.f32.mrf.mxu1 }
 0x5a0   :  { %v5708_v9 = vpop.f32.mrf.mxu1  ;;  %7700 = vmatpush3.bf16.msra.mxu1 %v8155_v6 }
 0x5a1   :  { %7701 = vmatprep.subr.bf16.mxu1 %v8196_v17 }
 0x5a2   :  { %v5710_v36 = vpop.f32.mrf.mxu1 }
 0x5a4   :  { %7702 = vmatpush3.bf16.msra.mxu1 %v8156_v56 }
 0x5ac   :  { %v5568_v35 = vpop.f32.mrf.mxu0 }
 0x5ad   :  { %v5706_v23 = vadd.f32 %v5705_v14, %v5568_v35 }
 0x5ae   :  { %v5570_v40 = vpop.f32.mrf.mxu0 }
 0x5b0   :  { %v5571_v37 = vpop.f32.mrf.mxu0 }
 0x5b1   :  { %v5709_v34 = vadd.f32 %v5708_v9, %v5571_v37 }
 0x5b2   :  { %v5573_v48 = vpop.f32.mrf.mxu0 }
 0x5d5   :  { %v6045_v32 = vpop.f32.mrf.mxu1 }
 0x5d7   :  { %v6047_v5 = vpop.f32.mrf.mxu1 }
 0x5d9   :  { %v6048_v59 = vpop.f32.mrf.mxu1 }
 0x5db   :  { %v6050_v8 = vpop.f32.mrf.mxu1 }
 0x5e5   :  { %v5874_v61 = vpop.f32.mrf.mxu0 }
 0x5e6   :  { %v5881_v58 = vadd.f32 %v5874_v61, %v5706_v23 }
 0x5e7   :  { %v5876_v28 = vpop.f32.mrf.mxu0 }
 0x5e8   :  { %v6052_v41 = vadd.f32 %v6045_v32, %v5881_v58 }
 0x5e9   :  { %v5877_v2 = vpop.f32.mrf.mxu0 }
 0x5ea   :  { %v5882_v10 = vadd.f32 %v5877_v2, %v5709_v34 }
 0x5eb   :  { %v5879_v26 = vpop.f32.mrf.mxu0 }
 0x5ec   :  { %v6053_v3 = vadd.f32 %v6048_v59, %v5882_v10 }
 0x60e   :  { %v6387_v33 = vpop.f32.mrf.mxu1 }
 0x610   :  { %v6389_v63 = vpop.f32.mrf.mxu1 }
 0x612   :  { %v6390_v30 = vpop.f32.mrf.mxu1 }
 0x614   :  { %v6392_v45 = vpop.f32.mrf.mxu1 }
 0x61d   :  { %v6216_v47 = vpop.f32.mrf.mxu0 }
 0x61e   :  { %v6223_v0 = vadd.f32 %v6216_v47, %v6052_v41 }
 0x61f   :  { %v6218_v46 = vpop.f32.mrf.mxu0 }
 0x620   :  { %v6394_v25 = vadd.f32 %v6387_v33, %v6223_v0 }
 0x621   :  { %v6219_v51 = vpop.f32.mrf.mxu0 }
 0x622   :  { %v6224_v16 = vadd.f32 %v6219_v51, %v6053_v3 }
 0x623   :  { %v6221_v60 = vpop.f32.mrf.mxu0 }
 0x624   :  { %v6395_v31 = vadd.f32 %v6390_v30, %v6224_v16 }
 0x655   :  { %v6558_v55 = vpop.f32.mrf.mxu0 }
 0x656   :  { %v6565_v1 = vadd.f32 %v6558_v55, %v6394_v25 }
 0x657   :  { %v6560_v44 = vpop.f32.mrf.mxu0 }
 0x658   :  { %v6574_v29 = vadd.f32 %v7654_v24, %v6565_v1 }
 0x659   :  { %v6561_v57 = vpop.f32.mrf.mxu0 }
 0x65a   :  { %v6576_v62 = vmax.f32 %v6574_v29, 0.0  ;;  %v6566_v7 = vadd.f32 %v6561_v57, %v6395_v31 }
 0x65b   :  { %v6563_v20 = vpop.f32.mrf.mxu0 }
 0x65c   :  { %6578 = vst [vmem:[%s12550_s10] sm:$0xff] %v6576_v62  ;;  %v6575_v38 = vadd.f32 %v7654_v24, %v6566_v7 }
 0x65e   :  { %v6577_v52 = vmax.f32 %v6575_v38, 0.0 }
 0x660   :  { %6579 = vst [vmem:[%s12550_s10 + $0x8] sm:$0xff] %v6577_v52  ;;  %v6580_v11 = vpack.c.bf16 %v6577_v52, %v6576_v62 }
 0x662   :  { %7704 = vmatmul.mubr.bf16.vlgmr.msra.gmra.mxu1 %v6580_v11 }
 0x722   :  { %v6686_v54 = vpop.f32.mrf.mxu1 }
 0x723   :  { %v6687_v50 = vadd.f32 %v7655_v43, %v6686_v54 }
 0x724   :  { %v7705_v21 = vpop.f32.mrf.mxu1 }
 0x725   :  { %6693 = vmax.xlane.f32.xlu0 %v6687_v50 }
 0x726   :  { %v6689_v18 = vpop.f32.mrf.mxu1 }
 0x727   :  { %v6690_v15 = vadd.f32 %v7655_v43, %v6689_v18 }
 0x728   :  { %v7706_v42 = vpop.f32.mrf.mxu1 }
 0x729   :  { %6695 = vmax.xlane.f32.xlu0 %v6690_v15 }
 0x7ae   :  { %v6694_v22 = vpop.xlane.xlu0 %6693 }
 0x7af   :  { %v6697_v12 = vsub.f32 %v6687_v50, %v6694_v22 }
 0x7b1   :  { %v6699_v14 = vmul.f32 1.442695, %v6697_v12 }
 0x7b2   :  { %v6696_v19 = vpop.xlane.xlu0 %6695 }
 0x7b3   :  { %v6698_v9 = vsub.f32 %v6690_v15, %v6696_v19  ;;  %8157 = vpow2.f32 %v6699_v14 }
 0x7b5   :  { %v6701_v36 = vmul.f32 1.442695, %v6698_v9 }
 0x7b7   :  { %8159 = vpow2.f32 %v6701_v36 }
 0x7c0   :  { %v8158_v17 = vpop.eup %8157 }
 0x7c1   :  { %6703 = vadd.xlane.f32.xlu1 %v8158_v17 }
 0x7c4   :  { %v8160_v27 = vpop.eup %8159 }
 0x7c5   :  { %6705 = vadd.xlane.f32.xlu1 %v8160_v27 }
 0x84a   :  { %v6704_v13 = vpop.xlane.xlu1 %6703 }
 0x84b   :  { %8161 = vlog2.f32 %v6704_v13 }
 0x84e   :  { %v6706_v4 = vpop.xlane.xlu1 %6705 }
 0x84f   :  { %8163 = vlog2.f32 %v6706_v4 }
 0x858   :  { %v8162_v35 = vpop.eup %8161 }
 0x859   :  { %v6708_v23 = vmul.f32 0.6931472, %v8162_v35 }
 0x85b   :  { %v6711_v39 = vsub.f32 %v6697_v12, %v6708_v23 }
 0x85c   :  { %v8164_v40 = vpop.eup %8163 }
 0x85d   :  { %6713 = vst [vmem:[%s12552_s9] sm:$0xff] %v6711_v39  ;;  %v6710_v37 = vmul.f32 0.6931472, %v8164_v40 }
 0x85f   :  { %v6712_v34 = vsub.f32 %v6698_v9, %v6710_v37 }
 0x861   :  { %6714 = vst [vmem:[%s12552_s9 + $0x8] sm:$0xff] %v6712_v34 }

</bundles_post_ra>
